<compile_context>
chip_gen: v5e
topology: v5e:2x2
jax: 0.10.0
libtpu: 0.0.40
codegen_flags: <defaults>
</compile_context>

<pallas_src>
import jax
import jax.numpy as jnp
from jax.experimental import pallas as pl
from jax.experimental.pallas import tpu as pltpu

IN_DIM = 784
HID_DIM = 256
OUT_DIM = 10
OUT_PAD = 128          # lane-dense output width (>= OUT_DIM, multiple of 128)


def _round_up(n, m):
    return ((n + m - 1) // m) * m


def _num_tensorcores():
    # v7x has 2 TensorCores per chip; v5e/v6e have 1.
    try:
        kind = jax.devices()[0].device_kind.lower()
        return 2 if "v7" in kind else 1
    except Exception:  # pragma: no cover - defensive default
        return 1


def _pick_tb(B, max_tb=2048):
    """Per-core batch tile.

    Multiple of 16 (bf16 packs two rows per sublane), large enough to amortize
    the ~0.35 us per-grid-step overhead on single-TC chips, and >= 2 tiles on
    v7x so both TensorCores get work.  At tb=2048 the double-buffered f32 x
    tile is ~12.8 MB, comfortably inside the 32 MB scoped-VMEM budget on every
    generation (v7x has 64 MiB physical per core).
    """
    ncores = _num_tensorcores()
    tb = _round_up(pl.cdiv(_round_up(B, 16), ncores), 16)
    return max(16, min(max_tb, tb))


def mlp_kernel(x_ref, w1_ref, b1_ref, w2_ref, b2_ref, o_ref):
    # x arrives as f32 straight from HBM; cast to bf16 in-kernel (VPU) so the
    # wrapper never re-streams x through HBM just to change its dtype.
    x_bf = x_ref[...].astype(jnp.bfloat16)
    # Layer 1: (TB, 784)bf16 @ (784, 256)bf16 -> f32 accumulation, + bias, ReLU.
    h = jnp.dot(x_bf, w1_ref[...], preferred_element_type=jnp.float32)
    h = jnp.maximum(h + b1_ref[...], 0.0)
    # Layer 2: (TB, 256)bf16 @ (256, 128)bf16 -> f32 accumulation, + bias.
    y = jnp.dot(h.astype(jnp.bfloat16), w2_ref[...],
                preferred_element_type=jnp.float32)
    # bf16 writeback into the 128-lane padded output (dense, unmasked stores).
    o_ref[...] = (y + b2_ref[...]).astype(o_ref.dtype)


def mlp_forward(x, w1_bf, b1_f, w2_pad, b2_pad, *, tb=None):
    """x: (B, 784) f32; w1_bf: (784, 256) bf16; b1_f: (1, 256) f32;
    w2_pad: (256, 128) bf16; b2_pad: (1, 128) f32.  Returns (B, 10) f32."""
    B = x.shape[0]
    if tb is None:
        tb = _pick_tb(B)
    B_pad = _round_up(B, tb)

    # Pad only a (small) ragged tail; when B tiles evenly this is a no-op and
    # x reaches the kernel untouched (single HBM read, no extra copy pass).
    x_p = x if B_pad == B else jnp.pad(x, ((0, B_pad - B), (0, 0)))

    grid = (B_pad // tb,)

    out_padded = pl.pallas_call(
        mlp_kernel,
        out_shape=jax.ShapeDtypeStruct((B_pad, OUT_PAD), jnp.bfloat16),
        grid=grid,
        in_specs=[
            pl.BlockSpec((tb, IN_DIM), lambda i: (i, 0)),          # x tile (f32)
            pl.BlockSpec((IN_DIM, HID_DIM), lambda i: (0, 0)),     # w1 resident
            pl.BlockSpec((1, HID_DIM), lambda i: (0, 0)),          # b1 resident
            pl.BlockSpec((HID_DIM, OUT_PAD), lambda i: (0, 0)),    # w2 resident
            pl.BlockSpec((1, OUT_PAD), lambda i: (0, 0)),          # b2 resident
        ],
        out_specs=pl.BlockSpec((tb, OUT_PAD), lambda i: (i, 0)),
        compiler_params=pltpu.CompilerParams(
            # Independent batch tiles -> shard across TensorCores on v7x.
            dimension_semantics=("parallel",),
            vmem_limit_bytes=32 * 1024 * 1024,
        ),
    )(x_p, w1_bf, b1_f, w2_pad, b2_pad)

    return out_padded[:B, :OUT_DIM].astype(jnp.float32)


def init_params(key):
    """nn.Linear-style init (U(+-1/sqrt(fan_in))).

    Returns (kernel_params, ref_params):
      kernel_params: pre-materialized in kernel layout (w1 bf16; w2/b2 padded
        to 128 output lanes, w2 bf16) so mlp_forward never re-casts / re-pads
        parameters per call.
      ref_params: the original f32 tensors for the pure-JAX reference.
    """
    k1, k2, k3, k4 = jax.random.split(key, 4)
    bound1 = 1.0 / (IN_DIM ** 0.5)
    bound2 = 1.0 / (HID_DIM ** 0.5)
    w1 = jax.random.uniform(k1, (IN_DIM, HID_DIM), jnp.float32, -bound1, bound1)
    b1 = jax.random.uniform(k2, (1, HID_DIM), jnp.float32, -bound1, bound1)
    w2 = jax.random.uniform(k3, (HID_DIM, OUT_DIM), jnp.float32, -bound2, bound2)
    b2 = jax.random.uniform(k4, (1, OUT_DIM), jnp.float32, -bound2, bound2)

    w1_bf = w1.astype(jnp.bfloat16)
    w2_pad = jnp.pad(w2, ((0, 0), (0, OUT_PAD - OUT_DIM))).astype(jnp.bfloat16)
    b2_pad = jnp.pad(b2, ((0, 0), (0, OUT_PAD - OUT_DIM)))
    return (w1_bf, b1, w2_pad, b2_pad), (w1, b1, w2, b2)


if __name__ == "__main__":
    key = jax.random.PRNGKey(0)
    kx, kp = jax.random.split(key)

    # Large enough batch to exercise batch tiling (grid=2 on v7x, grid=1 on
    # single-TC chips), still tiny overall (~1.6 MiB of activations).
    B = 512
    x = jax.random.normal(kx, (B, IN_DIM), jnp.float32)
    (w1_bf, b1, w2_pad, b2_pad), (w1, b1_ref, w2, b2) = init_params(kp)

    fwd = jax.jit(mlp_forward)
    out = jax.block_until_ready(fwd(x, w1_bf, b1, w2_pad, b2_pad))
    assert out.shape == (B, OUT_DIM)

    # Reference in plain JAX with matching bf16 input casts + f32 accumulation.
    xb = x.astype(jnp.bfloat16).astype(jnp.float32)
    w1b = w1.astype(jnp.bfloat16).astype(jnp.float32)
    w2b = w2.astype(jnp.bfloat16).astype(jnp.float32)
    h_ref = jnp.maximum(xb @ w1b + b1_ref, 0.0)
    ref = h_ref.astype(jnp.bfloat16).astype(jnp.float32) @ w2b + b2
    max_err = float(jnp.max(jnp.abs(out - ref)))
    assert jnp.allclose(out, ref, atol=3e-2, rtol=3e-2), max_err

    print("KERNEL_OK")
</pallas_src>

<mosaic_0001>
module attributes {stable_mosaic.version = 11 : i64} {
  func.func @mlp_kernel(%arg0: i32, %arg1: memref<512x784xf32, #tpu.memory_space<vmem>>, %arg2: memref<784x256xbf16, #tpu.memory_space<vmem>>, %arg3: memref<1x256xf32, #tpu.memory_space<vmem>>, %arg4: memref<256x128xbf16, #tpu.memory_space<vmem>>, %arg5: memref<1x128xf32, #tpu.memory_space<vmem>>, %arg6: memref<512x128xbf16, #tpu.memory_space<vmem>>) attributes {dimension_semantics = [#tpu.dimension_semantics<parallel>], iteration_bounds = array<i64: 1>, scalar_prefetch = 0 : i64, scratch_operands = 0 : i64, tpu.core_type = #tpu.core_type<tc>, window_params = [{transform_indices = @transform_0, window_bounds = array<i64: 512, 784>}, {pipeline_mode = #tpu.pipeline_mode<synchronous>, transform_indices = @transform_1, window_bounds = array<i64: 784, 256>}, {pipeline_mode = #tpu.pipeline_mode<synchronous>, transform_indices = @transform_2, window_bounds = array<i64: 1, 256>}, {pipeline_mode = #tpu.pipeline_mode<synchronous>, transform_indices = @transform_3, window_bounds = array<i64: 256, 128>}, {pipeline_mode = #tpu.pipeline_mode<synchronous>, transform_indices = @transform_4, window_bounds = array<i64: 1, 128>}, {transform_indices = @transform_5, window_bounds = array<i64: 512, 128>}]} {
    %c0 = arith.constant 0 : index
    %c0_0 = arith.constant 0 : index
    %0 = vector.load %arg1[%c0, %c0_0] : memref<512x784xf32, #tpu.memory_space<vmem>>, vector<512x784xf32>
    %1 = arith.truncf %0 : vector<512x784xf32> to vector<512x784xbf16>
    %c0_1 = arith.constant 0 : index
    %c0_2 = arith.constant 0 : index
    %2 = vector.load %arg2[%c0_1, %c0_2] : memref<784x256xbf16, #tpu.memory_space<vmem>>, vector<784x256xbf16>
    %cst = arith.constant dense<0.000000e+00> : vector<512x256xf32>
    %3 = tpu.matmul %1, %2, %cst {dimension_numbers = #tpu.dot_dimension_numbers<[1], [0], [0], [1], [0, 0, 1, 1], [], []>} : vector<512x784xbf16>, vector<784x256xbf16>, vector<512x256xf32> -> vector<512x256xf32>
    %c0_3 = arith.constant 0 : index
    %c0_4 = arith.constant 0 : index
    %4 = vector.load %arg3[%c0_3, %c0_4] : memref<1x256xf32, #tpu.memory_space<vmem>>, vector<1x256xf32>
    %5 = vector.broadcast %4 : vector<1x256xf32> to vector<512x256xf32>
    %6 = arith.addf %3, %5 : vector<512x256xf32>
    %cst_5 = arith.constant 0.000000e+00 : f32
    %7 = vector.broadcast %cst_5 : f32 to vector<512x256xf32>
    %8 = arith.maximumf %6, %7 : vector<512x256xf32>
    %9 = arith.truncf %8 : vector<512x256xf32> to vector<512x256xbf16>
    %c0_6 = arith.constant 0 : index
    %c0_7 = arith.constant 0 : index
    %10 = vector.load %arg4[%c0_6, %c0_7] : memref<256x128xbf16, #tpu.memory_space<vmem>>, vector<256x128xbf16>
    %cst_8 = arith.constant dense<0.000000e+00> : vector<512x128xf32>
    %11 = tpu.matmul %9, %10, %cst_8 {dimension_numbers = #tpu.dot_dimension_numbers<[1], [0], [0], [1], [0, 0, 1, 1], [], []>} : vector<512x256xbf16>, vector<256x128xbf16>, vector<512x128xf32> -> vector<512x128xf32>
    %c0_9 = arith.constant 0 : index
    %c0_10 = arith.constant 0 : index
    %12 = vector.load %arg5[%c0_9, %c0_10] : memref<1x128xf32, #tpu.memory_space<vmem>>, vector<1x128xf32>
    %13 = vector.broadcast %12 : vector<1x128xf32> to vector<512x128xf32>
    %14 = arith.addf %11, %13 : vector<512x128xf32>
    %15 = arith.truncf %14 : vector<512x128xf32> to vector<512x128xbf16>
    %c0_11 = arith.constant 0 : index
    %c0_12 = arith.constant 0 : index
    %16 = vector.load %arg6[%c0_11, %c0_12] : memref<512x128xbf16, #tpu.memory_space<vmem>>, vector<512x128xbf16>
    tpu.vector_store %arg6[%c0_11, %c0_12], %15 {strides = array<i32>} : memref<512x128xbf16, #tpu.memory_space<vmem>>, vector<512x128xbf16>,
    return
  }
  func.func @transform_0(%arg0: i32) -> (i32, i32) {
    %c0_i32 = arith.constant 0 : i32
    %c0_i32_0 = arith.constant 0 : i32
    return %arg0, %c0_i32 : i32, i32
  }
  func.func @transform_1(%arg0: i32) -> (i32, i32) {
    %c0_i32 = arith.constant 0 : i32
    %c0_i32_0 = arith.constant 0 : i32
    %c0_i32_1 = arith.constant 0 : i32
    return %c0_i32, %c0_i32_0 : i32, i32
  }
  func.func @transform_2(%arg0: i32) -> (i32, i32) {
    %c0_i32 = arith.constant 0 : i32
    %c0_i32_0 = arith.constant 0 : i32
    %c0_i32_1 = arith.constant 0 : i32
    return %c0_i32, %c0_i32_0 : i32, i32
  }
  func.func @transform_3(%arg0: i32) -> (i32, i32) {
    %c0_i32 = arith.constant 0 : i32
    %c0_i32_0 = arith.constant 0 : i32
    %c0_i32_1 = arith.constant 0 : i32
    return %c0_i32, %c0_i32_0 : i32, i32
  }
  func.func @transform_4(%arg0: i32) -> (i32, i32) {
    %c0_i32 = arith.constant 0 : i32
    %c0_i32_0 = arith.constant 0 : i32
    %c0_i32_1 = arith.constant 0 : i32
    return %c0_i32, %c0_i32_0 : i32, i32
  }
  func.func @transform_5(%arg0: i32) -> (i32, i32) {
    %c0_i32 = arith.constant 0 : i32
    %c0_i32_0 = arith.constant 0 : i32
    return %arg0, %c0_i32 : i32, i32
  }
}

</mosaic_0001>

<bundles_post_ra>
// kernel: mlp_forward.1
= control target key start
LH: loop header
LB: loop body
LE: loop exit
PB: predicated region body
PF: predicated region fallthrough
CT: control target
= control target key end

     0   :  { %vm1287_vm0 = vcmask 130048   ;;  %s9490_s1 = inlined_call_operand.vmem [shape: bf16[784,256], index: 1, kind: input, shape index: {}]   ;;  %s9491_s0 = inlined_call_operand.vmem [shape: f32[512,784], index: 0, kind: input, shape index: {}]   ;;  %s9492_s2 = inlined_call_operand.vmem [shape: f32[1,256], index: 2, kind: input, shape index: {}]   ;;  %s9493_s3 = inlined_call_operand.vmem [shape: bf16[256,128], index: 3, kind: input, shape index: {}]   ;;  %s9494_s4 = inlined_call_operand.vmem [shape: f32[1,128], index: 4, kind: input, shape index: {}]   ;;  %s9495_s5 = inlined_call_operand.vmem [shape: bf16[512,128], index: 5, kind: output, shape index: {}]  }
   0x1   :  { %v4602_v0 = vld [vmem:[%s9490_s1 + $0x70] sm:$0xf]  ;;  %v5079_v1 = vld [vmem:[%s9490_s1 + $0x74] sm:$0xf0]  ;;  %v4594_v11 = vld [vmem:[%s9490_s1 + $0x60] sm:$0xf] }
   0x2   :  { %v4666_v2 = vld [vmem:[%s9490_s1 + $0xf0] sm:$0xf]  ;;  %v4603_v3 = vor.u32 %v5079_v1, %v4602_v0  ;;  %v5095_v4 = vld [vmem:[%s9490_s1 + $0xf4] sm:$0xf0]  ;;  %v5077_v13 = vld [vmem:[%s9490_s1 + $0x64] sm:$0xf0] }
   0x3   :  { %v4730_v5 = vld [vmem:[%s9490_s1 + $0x170] sm:$0xf]  ;;  %v5111_v6 = vld [vmem:[%s9490_s1 + $0x174] sm:$0xf0]  ;;  %v4667_v7 = vor.u32 %v5095_v4, %v4666_v2  ;;  %v4658_v14 = vld [vmem:[%s9490_s1 + $0xe0] sm:$0xf]  ;;  %v4595_v16 = vor.u32 %v5077_v13, %v4594_v11 }
   0x4   :  { %v4731_v8 = vor.u32 %v5111_v6, %v4730_v5  ;;  %v4794_v9 = vld [vmem:[%s9490_s1 + $0x1f0] sm:$0xf]  ;;  %v5127_v10 = vld [vmem:[%s9490_s1 + $0x1f4] sm:$0xf0]  ;;  %1384 = vmatpush.bf16.msra.mxu0 %v4603_v3  ;;  %v5093_v15 = vld [vmem:[%s9490_s1 + $0xe4] sm:$0xf0] }
   0x5   :  { %v4795_v12 = vor.u32 %v5127_v10, %v4794_v9  ;;  %1553 = vmatpush.bf16.msra.mxu1 %v4667_v7  ;;  %v4659_v17 = vor.u32 %v5093_v15, %v4658_v14  ;;  %v4722_v18 = vld [vmem:[%s9490_s1 + $0x160] sm:$0xf]  ;;  %v5109_v19 = vld [vmem:[%s9490_s1 + $0x164] sm:$0xf0]  ;;  %v4586_v23 = vld [vmem:[%s9490_s1 + $0x50] sm:$0xf] }
   0x6   :  { %1722 = vmatpush.bf16.msra.mxu2 %v4731_v8  ;;  %v4786_v20 = vld [vmem:[%s9490_s1 + $0x1e0] sm:$0xf]  ;;  %v4723_v21 = vor.u32 %v5109_v19, %v4722_v18  ;;  %v5125_v22 = vld [vmem:[%s9490_s1 + $0x1e4] sm:$0xf0]  ;;  %v5075_v24 = vld [vmem:[%s9490_s1 + $0x54] sm:$0xf0] }
   0x7   :  { %1891 = vmatpush.bf16.msra.mxu3 %v4795_v12  ;;  %v4787_v25 = vor.u32 %v5125_v22, %v4786_v20  ;;  %v4650_v26 = vld [vmem:[%s9490_s1 + $0xd0] sm:$0xf]  ;;  %v5091_v27 = vld [vmem:[%s9490_s1 + $0xd4] sm:$0xf0]  ;;  %v4587_v29 = vor.u32 %v5075_v24, %v4586_v23  ;;  %v4578_v35 = vld [vmem:[%s9490_s1 + $0x40] sm:$0xf] }
   0x8   :  { %v4714_v28 = vld [vmem:[%s9490_s1 + $0x150] sm:$0xf]  ;;  %1385 = vmatpush.bf16.msra.mxu0 %v4595_v16  ;;  %v5107_v30 = vld [vmem:[%s9490_s1 + $0x154] sm:$0xf0]  ;;  %v4651_v33 = vor.u32 %v5091_v27, %v4650_v26  ;;  %v5073_v36 = vld [vmem:[%s9490_s1 + $0x44] sm:$0xf0] }
   0x9   :  { %v4778_v31 = vld [vmem:[%s9490_s1 + $0x1d0] sm:$0xf]  ;;  %v5123_v32 = vld [vmem:[%s9490_s1 + $0x1d4] sm:$0xf0]  ;;  %1554 = vmatpush.bf16.msra.mxu1 %v4659_v17  ;;  %v4715_v34 = vor.u32 %v5107_v30, %v4714_v28  ;;  %v4642_v37 = vld [vmem:[%s9490_s1 + $0xc0] sm:$0xf]  ;;  %v4579_v44 = vor.u32 %v5073_v36, %v4578_v35 }
   0xa   :  { %1723 = vmatpush.bf16.msra.mxu2 %v4723_v21  ;;  %v4779_v38 = vor.u32 %v5123_v32, %v4778_v31  ;;  %v5089_v39 = vld [vmem:[%s9490_s1 + $0xc4] sm:$0xf0]  ;;  %v4706_v40 = vld [vmem:[%s9490_s1 + $0x140] sm:$0xf]  ;;  %v4570_v47 = vld [vmem:[%s9490_s1 + $0x30] sm:$0xf] }
   0xb   :  { %1892 = vmatpush.bf16.msra.mxu3 %v4787_v25  ;;  %v5105_v41 = vld [vmem:[%s9490_s1 + $0x144] sm:$0xf0]  ;;  %v4770_v42 = vld [vmem:[%s9490_s1 + $0x1c0] sm:$0xf]  ;;  %v4643_v45 = vor.u32 %v5089_v39, %v4642_v37  ;;  %v5071_v48 = vld [vmem:[%s9490_s1 + $0x34] sm:$0xf0] }
   0xc   :  { %v5121_v43 = vld [vmem:[%s9490_s1 + $0x1c4] sm:$0xf0]  ;;  %1386 = vmatpush.bf16.msra.mxu0 %v4587_v29  ;;  %v4707_v46 = vor.u32 %v5105_v41, %v4706_v40  ;;  %v4634_v49 = vld [vmem:[%s9490_s1 + $0xb0] sm:$0xf]  ;;  %v5087_v51 = vld [vmem:[%s9490_s1 + $0xb4] sm:$0xf0]  ;;  %v4571_v56 = vor.u32 %v5071_v48, %v4570_v47 }
   0xd   :  { %1555 = vmatpush.bf16.msra.mxu1 %v4651_v33  ;;  %v4771_v50 = vor.u32 %v5121_v43, %v4770_v42  ;;  %v4698_v52 = vld [vmem:[%s9490_s1 + $0x130] sm:$0xf]  ;;  %v5103_v53 = vld [vmem:[%s9490_s1 + $0x134] sm:$0xf0]  ;;  %v4635_v57 = vor.u32 %v5087_v51, %v4634_v49  ;;  %v4562_v59 = vld [vmem:[%s9490_s1 + $0x20] sm:$0xf] }
   0xe   :  { %1724 = vmatpush.bf16.msra.mxu2 %v4715_v34  ;;  %v4762_v54 = vld [vmem:[%s9490_s1 + $0x1b0] sm:$0xf]  ;;  %v5119_v55 = vld [vmem:[%s9490_s1 + $0x1b4] sm:$0xf0]  ;;  %v4699_v58 = vor.u32 %v5103_v53, %v4698_v52  ;;  %v5069_v60 = vld [vmem:[%s9490_s1 + $0x24] sm:$0xf0] }
   0xf   :  { %1893 = vmatpush.bf16.msra.mxu3 %v4779_v38  ;;  %v4626_v61 = vld [vmem:[%s9490_s1 + $0xa0] sm:$0xf]  ;;  %v4763_v62 = vor.u32 %v5119_v55, %v4762_v54  ;;  %v5085_v63 = vld [vmem:[%s9490_s1 + $0xa4] sm:$0xf0]  ;;  %v4563_v4 = vor.u32 %v5069_v60, %v4562_v59  ;;  %v4554_v7 = vld [vmem:[%s9490_s1 + $0x10] sm:$0xf] }
  0x10   :  { %1387 = vmatpush.bf16.msra.mxu0 %v4579_v44  ;;  %v4690_v0 = vld [vmem:[%s9490_s1 + $0x120] sm:$0xf]  ;;  %v5101_v1 = vld [vmem:[%s9490_s1 + $0x124] sm:$0xf0]  ;;  %v4627_v5 = vor.u32 %v5085_v63, %v4626_v61  ;;  %v5067_v8 = vld [vmem:[%s9490_s1 + $0x14] sm:$0xf0] }
  0x11   :  { %1556 = vmatpush.bf16.msra.mxu1 %v4643_v45  ;;  %v4754_v2 = vld [vmem:[%s9490_s1 + $0x1a0] sm:$0xf]  ;;  %v5117_v3 = vld [vmem:[%s9490_s1 + $0x1a4] sm:$0xf0]  ;;  %v4691_v6 = vor.u32 %v5101_v1, %v4690_v0  ;;  %v4618_v9 = vld [vmem:[%s9490_s1 + $0x90] sm:$0xf]  ;;  %v4555_v16 = vor.u32 %v5067_v8, %v4554_v7 }
  0x12   :  { %1725 = vmatpush.bf16.msra.mxu2 %v4707_v46  ;;  %v4755_v10 = vor.u32 %v5117_v3, %v4754_v2  ;;  %v5083_v11 = vld [vmem:[%s9490_s1 + $0x94] sm:$0xf0]  ;;  %v4682_v12 = vld [vmem:[%s9490_s1 + $0x110] sm:$0xf]  ;;  %v4546_v17 = vld [vmem:[%s9490_s1] sm:$0xf] }
  0x13   :  { %1894 = vmatpush.bf16.msra.mxu3 %v4771_v50  ;;  %v5099_v13 = vld [vmem:[%s9490_s1 + $0x114] sm:$0xf0]  ;;  %v4746_v14 = vld [vmem:[%s9490_s1 + $0x190] sm:$0xf]  ;;  %v5065_v18 = vld [vmem:[%s9490_s1 + $0x4] sm:$0xf0]  ;;  %v4619_v20 = vor.u32 %v5083_v11, %v4618_v9 }
  0x14   :  { %1388 = vmatpush.bf16.msra.mxu0 %v4571_v56  ;;  %v5115_v15 = vld [vmem:[%s9490_s1 + $0x194] sm:$0xf0]  ;;  %v4610_v19 = vld [vmem:[%s9490_s1 + $0x80] sm:$0xf]  ;;  %v4683_v21 = vor.u32 %v5099_v13, %v4682_v12  ;;  %v5081_v22 = vld [vmem:[%s9490_s1 + $0x84] sm:$0xf0]  ;;  %v4547_v32 = vor.u32 %v5065_v18, %v4546_v17 }
  0x15   :  { %1557 = vmatpush.bf16.msra.mxu1 %v4635_v57  ;;  %v4674_v23 = vld [vmem:[%s9490_s1 + $0x100] sm:$0xf]  ;;  %v5097_v24 = vld [vmem:[%s9490_s1 + $0x104] sm:$0xf0]  ;;  %v4747_v25 = vor.u32 %v5115_v15, %v4746_v14  ;;  %v28_v29 = vld [vmem:[%s9491_s0 + $0x38] sm:$0xff]  ;;  %v4611_v36 = vor.u32 %v5081_v22, %v4610_v19 }
  0x16   :  { %1726 = vmatpush.bf16.msra.mxu2 %v4699_v58  ;;  %v4738_v26 = vld [vmem:[%s9490_s1 + $0x180] sm:$0xf]  ;;  %v5113_v27 = vld [vmem:[%s9490_s1 + $0x184] sm:$0xf0]  ;;  %v4858_v30 = vld [vmem:[%s9490_s1 + $0x270] sm:$0xf]  ;;  %v4675_v37 = vor.u32 %v5097_v24, %v4674_v23 }
  0x17   :  { %1895 = vmatpush.bf16.msra.mxu3 %v4763_v62  ;;  %v21_v28 = vld [vmem:[%s9491_s0] sm:$0xff]  ;;  %v5143_v31 = vld [vmem:[%s9490_s1 + $0x274] sm:$0xf0]  ;;  %v22_v33 = vld [vmem:[%s9491_s0 + $0x8] sm:$0xff]  ;;  %v4739_v41 = vor.u32 %v5113_v27, %v4738_v26 }
  0x18   :  { %1389 = vmatpush.bf16.msra.mxu0 %v4563_v4  ;;  %v4922_v34 = vld [vmem:[%s9490_s1 + $0x2f0] sm:$0xf]  ;;  %v5159_v35 = vld [vmem:[%s9490_s1 + $0x2f4] sm:$0xf0]  ;;  %v29_v38 = vld [vmem:[%s9491_s0 + $0x40] sm:$0xff]  ;;  %v4859_v42 = vor.u32 %v5143_v31, %v4858_v30  ;;  %v5630_v45 = vpack.c.bf16 %v28_v29, %v21_v28 }
  0x19   :  { %1558 = vmatpush.bf16.msra.mxu1 %v4627_v5  ;;  %v23_v39 = vld [vmem:[%s9491_s0 + $0x10] sm:$0xff]  ;;  %v30_v40 = vld [vmem:[%s9491_s0 + $0x48] sm:$0xff]  ;;  %v24_v43 = vld [vmem:[%s9491_s0 + $0x18] sm:$0xff]  ;;  %v4923_v46 = vor.u32 %v5159_v35, %v4922_v34  ;;  %v5632_v47 = vpack.c.bf16 %v29_v38, %v22_v33 }
  0x1a   :  { %1727 = vmatpush.bf16.msra.mxu2 %v4691_v6  ;;  %v31_v44 = vld [vmem:[%s9491_s0 + $0x50] sm:$0xff]  ;;  %v5634_v48 = vpack.c.bf16 %v30_v40, %v23_v39  ;;  %v42_v51 = vld [vmem:[%s9491_s0 + $0xa8] sm:$0xff]  ;;  %v36_v52 = vld [vmem:[%s9491_s0 + $0x78] sm:$0xff] }
  0x1b   :  { %1896 = vmatpush.bf16.msra.mxu3 %v4755_v10  ;;  %9689 = vst [vmem:[#allocation2_spill] sm:$0xff] %v5632_v47  ;;  %v5636_v49 = vpack.c.bf16 %v31_v44, %v24_v43  ;;  %v35_v50 = vld [vmem:[%s9491_s0 + $0x70] sm:$0xff]  ;;  %v37_v54 = vld [vmem:[%s9491_s0 + $0x80] sm:$0xff]  ;;  %v44_v55 = vld [vmem:[%s9491_s0 + $0xb8] sm:$0xff] }
  0x1c   :  { %1390 = vmatpush.bf16.msra.mxu0 %v4555_v16  ;;  %9690 = vst [vmem:[#allocation3_spill] sm:$0xff] %v5634_v48  ;;  %v43_v53 = vld [vmem:[%s9491_s0 + $0xb0] sm:$0xff]  ;;  %v38_v56 = vld [vmem:[%s9491_s0 + $0x88] sm:$0xff]  ;;  %v45_v57 = vld [vmem:[%s9491_s0 + $0xc0] sm:$0xff]  ;;  %v5666_v58 = vpack.c.bf16 %v42_v51, %v35_v50  ;;  %v5670_v60 = vpack.c.bf16 %v44_v55, %v37_v54 }
  0x1d   :  { %1559 = vmatpush.bf16.msra.mxu1 %v4619_v20  ;;  %9691 = vst [vmem:[#allocation4_spill] sm:$0xff] %v5636_v49  ;;  %v5668_v59 = vpack.c.bf16 %v43_v53, %v36_v52  ;;  %v5672_v61 = vpack.c.bf16 %v45_v57, %v38_v56  ;;  %v49_v62 = vld [vmem:[%s9491_s0 + $0xe0] sm:$0xff]  ;;  %v56_v63 = vld [vmem:[%s9491_s0 + $0x118] sm:$0xff]  ;;  %v50_v0 = vld [vmem:[%s9491_s0 + $0xe8] sm:$0xff] }
  0x1e   :  { %1728 = vmatpush.bf16.msra.mxu2 %v4683_v21  ;;  %9693 = vst [vmem:[#allocation6_spill] sm:$0xff] %v5670_v60  ;;  %v57_v1 = vld [vmem:[%s9491_s0 + $0x120] sm:$0xff]  ;;  %v51_v2 = vld [vmem:[%s9491_s0 + $0xf0] sm:$0xff]  ;;  %v58_v3 = vld [vmem:[%s9491_s0 + $0x128] sm:$0xff]  ;;  %v5702_v6 = vpack.c.bf16 %v56_v63, %v49_v62 }
  0x1f   :  { %1897 = vmatpush.bf16.msra.mxu3 %v4747_v25  ;;  %9692 = vst [vmem:[#allocation5_spill] sm:$0xff] %v5668_v59  ;;  %v52_v4 = vld [vmem:[%s9491_s0 + $0xf8] sm:$0xff]  ;;  %v59_v5 = vld [vmem:[%s9491_s0 + $0x130] sm:$0xff]  ;;  %v5704_v7 = vpack.c.bf16 %v57_v1, %v50_v0  ;;  %v5706_v8 = vpack.c.bf16 %v58_v3, %v51_v2  ;;  %v4850_v10 = vld [vmem:[%s9490_s1 + $0x260] sm:$0xf] }
  0x20   :  { %1391 = vmatpush.bf16.msra.mxu0 %v4547_v32  ;;  %9694 = vst [vmem:[#allocation7_spill] sm:$0xff] %v5672_v61  ;;  %v5708_v9 = vpack.c.bf16 %v59_v5, %v52_v4  ;;  %v5141_v11 = vld [vmem:[%s9490_s1 + $0x264] sm:$0xf0]  ;;  %v4914_v13 = vld [vmem:[%s9490_s1 + $0x2e0] sm:$0xf]  ;;  %v63_v16 = vld [vmem:[%s9491_s0 + $0x150] sm:$0xff] }
  0x21   :  { %1560 = vmatpush.bf16.msra.mxu1 %v4611_v36  ;;  %9695 = vst [vmem:[#allocation8_spill] sm:$0xff] %v5704_v7  ;;  %v4851_v12 = vor.u32 %v5141_v11, %v4850_v10  ;;  %v5157_v14 = vld [vmem:[%s9490_s1 + $0x2e4] sm:$0xf0]  ;;  %v64_v18 = vld [vmem:[%s9491_s0 + $0x158] sm:$0xff]  ;;  %v71_v19 = vld [vmem:[%s9491_s0 + $0x190] sm:$0xff] }
  0x22   :  { %1729 = vmatpush.bf16.msra.mxu2 %v4675_v37  ;;  %9696 = vst [vmem:[#allocation9_spill] sm:$0xff] %v5706_v8  ;;  %v4915_v15 = vor.u32 %v5157_v14, %v4914_v13  ;;  %v70_v17 = vld [vmem:[%s9491_s0 + $0x188] sm:$0xff]  ;;  %v65_v20 = vld [vmem:[%s9491_s0 + $0x160] sm:$0xff]  ;;  %v72_v21 = vld [vmem:[%s9491_s0 + $0x198] sm:$0xff]  ;;  %v5752_v25 = vpack.c.bf16 %v71_v19, %v64_v18 }
  0x23   :  { %1898 = vmatpush.bf16.msra.mxu3 %v4739_v41  ;;  %1392 = vmatmul.bf16.vlgmr.msra.gmra.mxu0 %v5630_v45  ;;  %9697 = vst [vmem:[#allocation10_spill] sm:$0xff] %v5708_v9  ;;  %v66_v22 = vld [vmem:[%s9491_s0 + $0x168] sm:$0xff]  ;;  %v73_v23 = vld [vmem:[%s9491_s0 + $0x1a0] sm:$0xff]  ;;  %v5750_v24 = vpack.c.bf16 %v70_v17, %v63_v16  ;;  %v5754_v26 = vpack.c.bf16 %v72_v21, %v65_v20  ;;  %v84_v29 = vld [vmem:[%s9491_s0 + $0x1f8] sm:$0xff] }
  0x24   :  { %2060 = vmatpush.bf16.msrb.mxu0 %v4859_v42  ;;  %1561 = vmatmul.bf16.vlgmr.msra.gmra.mxu1 %v5632_v47  ;;  %9698 = vst [vmem:[#allocation11_spill] sm:$0xff] %v5752_v25  ;;  %v5756_v27 = vpack.c.bf16 %v73_v23, %v66_v22  ;;  %v77_v28 = vld [vmem:[%s9491_s0 + $0x1c0] sm:$0xff]  ;;  %v78_v30 = vld [vmem:[%s9491_s0 + $0x1c8] sm:$0xff]  ;;  %v79_v32 = vld [vmem:[%s9491_s0 + $0x1d0] sm:$0xff] }
  0x25   :  { %2229 = vmatpush.bf16.msrb.mxu1 %v4923_v46  ;;  %1730 = vmatmul.bf16.vlgmr.msra.gmra.mxu2 %v5634_v48  ;;  %9699 = vst [vmem:[#allocation12_spill] sm:$0xff] %v5754_v26  ;;  %v85_v31 = vld [vmem:[%s9491_s0 + $0x200] sm:$0xff]  ;;  %v86_v33 = vld [vmem:[%s9491_s0 + $0x208] sm:$0xff]  ;;  %v80_v34 = vld [vmem:[%s9491_s0 + $0x1d8] sm:$0xff]  ;;  %v5786_v36 = vpack.c.bf16 %v84_v29, %v77_v28 }
  0x26   :  { %1899 = vmatmul.bf16.vlgmr.msra.gmra.mxu3 %v5636_v49  ;;  %9700 = vst [vmem:[#allocation13_spill] sm:$0xff] %v5756_v27  ;;  %v87_v35 = vld [vmem:[%s9491_s0 + $0x210] sm:$0xff]  ;;  %v5788_v37 = vpack.c.bf16 %v85_v31, %v78_v30  ;;  %v5790_v38 = vpack.c.bf16 %v86_v33, %v79_v32  ;;  %v98_v41 = vld [vmem:[%s9491_s0 + $0x268] sm:$0xff]  ;;  %v92_v42 = vld [vmem:[%s9491_s0 + $0x238] sm:$0xff] }
  0x27   :  { %v5792_v39 = vpack.c.bf16 %v87_v35, %v80_v34  ;;  %v91_v40 = vld [vmem:[%s9491_s0 + $0x230] sm:$0xff]  ;;  %v93_v44 = vld [vmem:[%s9491_s0 + $0x240] sm:$0xff]  ;;  %v100_v46 = vld [vmem:[%s9491_s0 + $0x278] sm:$0xff] }
  0x28   :  { %2061 = vmatpush.bf16.msrb.mxu0 %v4851_v12  ;;  %9701 = vst [vmem:[#allocation14_spill] sm:$0xff] %v5788_v37  ;;  %v99_v43 = vld [vmem:[%s9491_s0 + $0x270] sm:$0xff]  ;;  %v94_v50 = vld [vmem:[%s9491_s0 + $0x248] sm:$0xff]  ;;  %v101_v51 = vld [vmem:[%s9491_s0 + $0x280] sm:$0xff]  ;;  %v5822_v52 = vpack.c.bf16 %v98_v41, %v91_v40  ;;  %v5826_v54 = vpack.c.bf16 %v100_v46, %v93_v44 }
  0x29   :  { %2230 = vmatpush.bf16.msrb.mxu1 %v4915_v15  ;;  %9702 = vst [vmem:[#allocation15_spill] sm:$0xff] %v5790_v38  ;;  %v5824_v53 = vpack.c.bf16 %v99_v43, %v92_v42  ;;  %v5828_v55 = vpack.c.bf16 %v101_v51, %v94_v50  ;;  %v105_v56 = vld [vmem:[%s9491_s0 + $0x2a0] sm:$0xff]  ;;  %v112_v57 = vld [vmem:[%s9491_s0 + $0x2d8] sm:$0xff]  ;;  %v106_v62 = vld [vmem:[%s9491_s0 + $0x2a8] sm:$0xff] }
  0x2a   :  { %9703 = vst [vmem:[#allocation16_spill] sm:$0xff] %v5792_v39  ;;  %v113_v63 = vld [vmem:[%s9491_s0 + $0x2e0] sm:$0xff]  ;;  %v107_v0 = vld [vmem:[%s9491_s0 + $0x2b0] sm:$0xff]  ;;  %v114_v1 = vld [vmem:[%s9491_s0 + $0x2e8] sm:$0xff]  ;;  %v5858_v4 = vpack.c.bf16 %v112_v57, %v105_v56 }
  0x2b   :  { %9704 = vst [vmem:[#allocation17_spill] sm:$0xff] %v5824_v53  ;;  %v108_v2 = vld [vmem:[%s9491_s0 + $0x2b8] sm:$0xff]  ;;  %v115_v3 = vld [vmem:[%s9491_s0 + $0x2f0] sm:$0xff]  ;;  %v5860_v5 = vpack.c.bf16 %v113_v63, %v106_v62  ;;  %v5862_v10 = vpack.c.bf16 %v114_v1, %v107_v0  ;;  %v126_v19 = vld [vmem:[%s9491_s0 + $0x348] sm:$0xff] }
  0x2c   :  { %9705 = vst [vmem:[#allocation18_spill] sm:$0xff] %v5826_v54  ;;  %v5864_v11 = vpack.c.bf16 %v115_v3, %v108_v2  ;;  %v4842_v12 = vld [vmem:[%s9490_s1 + $0x250] sm:$0xf]  ;;  %v5139_v13 = vld [vmem:[%s9490_s1 + $0x254] sm:$0xf0]  ;;  %v121_v22 = vld [vmem:[%s9491_s0 + $0x320] sm:$0xff] }
  0x2d   :  { %9706 = vst [vmem:[#allocation19_spill] sm:$0xff] %v5828_v55  ;;  %v4843_v14 = vor.u32 %v5139_v13, %v4842_v12  ;;  %v4906_v15 = vld [vmem:[%s9490_s1 + $0x2d0] sm:$0xf]  ;;  %v5155_v16 = vld [vmem:[%s9490_s1 + $0x2d4] sm:$0xf0]  ;;  %v122_v28 = vld [vmem:[%s9491_s0 + $0x328] sm:$0xff] }
  0x2e   :  { %9707 = vst [vmem:[#allocation20_spill] sm:$0xff] %v5860_v5  ;;  %v4907_v17 = vor.u32 %v5155_v16, %v4906_v15  ;;  %v119_v18 = vld [vmem:[%s9491_s0 + $0x310] sm:$0xff]  ;;  %v120_v20 = vld [vmem:[%s9491_s0 + $0x318] sm:$0xff]  ;;  %v129_v29 = vld [vmem:[%s9491_s0 + $0x360] sm:$0xff] }
  0x2f   :  { %9708 = vst [vmem:[#allocation21_spill] sm:$0xff] %v5862_v10  ;;  %2062 = vmatpush.bf16.msrb.mxu0 %v4843_v14  ;;  %v127_v21 = vld [vmem:[%s9491_s0 + $0x350] sm:$0xff]  ;;  %v128_v23 = vld [vmem:[%s9491_s0 + $0x358] sm:$0xff]  ;;  %v5906_v30 = vpack.c.bf16 %v126_v19, %v119_v18  ;;  %v4930_v33 = vld [vmem:[%s9490_s1 + $0x300] sm:$0xf]  ;;  %v5918_v35 = vpack.c.bf16 %v129_v29, %v122_v28 }
  0x30   :  { %9709 = vst [vmem:[#allocation22_spill] sm:$0xff] %v5864_v11  ;;  %2231 = vmatpush.bf16.msrb.mxu1 %v4907_v17  ;;  %v5908_v31 = vpack.c.bf16 %v127_v21, %v120_v20  ;;  %v5910_v32 = vpack.c.bf16 %v128_v23, %v121_v22  ;;  %v5161_v34 = vld [vmem:[%s9490_s1 + $0x304] sm:$0xf0]  ;;  %v5078_v41 = vld [vmem:[%s9490_s1 + $0x74] sm:$0xf]  ;;  %v133_v46 = vld [vmem:[%s9491_s0 + $0x380] sm:$0xff] }
  0x31   :  { %9712 = vst [vmem:[#allocation25_spill] sm:$0xff] %v5918_v35  ;;  %v4931_v40 = vor.u32 %v5161_v34, %v4930_v33  ;;  %v4604_v42 = vld [vmem:[%s9490_s1 + $0x78] sm:$0xf0]  ;;  %v791_v44 = vld [vmem:[%s9492_s2] sm:$0x3]  ;;  %v134_v51 = vld [vmem:[%s9491_s0 + $0x388] sm:$0xff] }
  0x32   :  { %9710 = vst [vmem:[#allocation23_spill] sm:$0xff] %v5908_v31  ;;  %v4607_v43 = vor.u32 %v5078_v41, %v4604_v42  ;;  %v140_v50 = vld [vmem:[%s9491_s0 + $0x3b8] sm:$0xff]  ;;  %v5942_v56 = vperm.slane %v791_v44, 0  ;;  %v141_v57 = vld [vmem:[%s9491_s0 + $0x3c0] sm:$0xff]  ;;  %v135_v62 = vld [vmem:[%s9491_s0 + $0x390] sm:$0xff] }
  0x33   :  { %1397 = vmatmul.bf16.gmra.mxu0 %v5666_v58  ;;  %9711 = vst [vmem:[#allocation24_spill] sm:$0xff] %v5910_v32  ;;  %2405 = vmatpush.bf16.msrb.mxu2 %v4931_v40  ;;  %v142_v63 = vld [vmem:[%s9491_s0 + $0x3c8] sm:$0xff]  ;;  %v136_v0 = vld [vmem:[%s9491_s0 + $0x398] sm:$0xff]  ;;  %v143_v1 = vld [vmem:[%s9491_s0 + $0x3d0] sm:$0xff]  ;;  %v5959_v2 = vpack.c.bf16 %v140_v50, %v133_v46  ;;  %v5961_v12 = vpack.c.bf16 %v141_v57, %v134_v51 }
  0x34   :  { %1566 = vmatmul.bf16.gmra.mxu1 %v5668_v59  ;;  %2567 = vmatpush.bf16.msrb.mxu3 %v4607_v43  ;;  %v5963_v13 = vpack.c.bf16 %v142_v63, %v135_v62  ;;  %v5966_v16 = vpack.c.bf16 %v143_v1, %v136_v0  ;;  %v147_v33 = vld [vmem:[%s9491_s0 + $0x3f0] sm:$0xff]  ;;  %v154_v34 = vld [vmem:[%s9491_s0 + $0x428] sm:$0xff]  ;;  %v148_v40 = vld [vmem:[%s9491_s0 + $0x3f8] sm:$0xff] }
  0x35   :  { %1735 = vmatmul.bf16.gmra.mxu2 %v5670_v60  ;;  %9713 = vst [vmem:[#allocation26_spill] sm:$0xff] %v5961_v12  ;;  %v155_v41 = vld [vmem:[%s9491_s0 + $0x430] sm:$0xff]  ;;  %v149_v42 = vld [vmem:[%s9491_s0 + $0x400] sm:$0xff]  ;;  %v156_v43 = vld [vmem:[%s9491_s0 + $0x438] sm:$0xff]  ;;  %v5999_v51 = vpack.c.bf16 %v154_v34, %v147_v33 }
  0x36   :  { %1904 = vmatmul.bf16.gmra.mxu3 %v5672_v61  ;;  %9714 = vst [vmem:[#allocation27_spill] sm:$0xff] %v5963_v13  ;;  %v150_v44 = vld [vmem:[%s9491_s0 + $0x408] sm:$0xff]  ;;  %v157_v46 = vld [vmem:[%s9491_s0 + $0x440] sm:$0xff]  ;;  %v6001_v0 = vpack.c.bf16 %v155_v41, %v148_v40  ;;  %v6003_v1 = vpack.c.bf16 %v156_v43, %v149_v42  ;;  %v168_v41 = vld [vmem:[%s9491_s0 + $0x498] sm:$0xff] }
  0x37   :  { %9715 = vst [vmem:[#allocation28_spill] sm:$0xff] %v5966_v16  ;;  %v161_v40 = vld [vmem:[%s9491_s0 + $0x460] sm:$0xff]  ;;  %v162_v42 = vld [vmem:[%s9491_s0 + $0x468] sm:$0xff] }
  0x38   :  { %9716 = vst [vmem:[#allocation29_spill] sm:$0xff] %v6001_v0  ;;  %v169_v43 = vld [vmem:[%s9491_s0 + $0x4a0] sm:$0xff] }
  0x39   :  { %9717 = vst [vmem:[#allocation30_spill] sm:$0xff] %v6003_v1 }
  0x43   :  { %1402 = vmatmul.bf16.gmra.mxu0 %v5702_v6 }
  0x44   :  { %1571 = vmatmul.bf16.gmra.mxu1 %v5704_v7 }
  0x45   :  { %1740 = vmatmul.bf16.gmra.mxu2 %v5706_v8 }
  0x46   :  { %1909 = vmatmul.bf16.gmra.mxu3 %v5708_v9 }
  0x53   :  { %1407 = vmatmul.bf16.gmra.mxu0 %v5750_v24 }
  0x54   :  { %1576 = vmatmul.bf16.gmra.mxu1 %v5752_v25 }
  0x55   :  { %1745 = vmatmul.bf16.gmra.mxu2 %v5754_v26 }
  0x56   :  { %1914 = vmatmul.bf16.gmra.mxu3 %v5756_v27 }
  0x63   :  { %1412 = vmatmul.bf16.gmra.mxu0 %v5786_v36 }
  0x64   :  { %1581 = vmatmul.bf16.gmra.mxu1 %v5788_v37 }
  0x65   :  { %1750 = vmatmul.bf16.gmra.mxu2 %v5790_v38 }
  0x66   :  { %1919 = vmatmul.bf16.gmra.mxu3 %v5792_v39 }
  0x73   :  { %1417 = vmatmul.bf16.gmra.mxu0 %v5822_v52 }
  0x74   :  { %1586 = vmatmul.bf16.gmra.mxu1 %v5824_v53 }
  0x75   :  { %1755 = vmatmul.bf16.gmra.mxu2 %v5826_v54 }
  0x76   :  { %1924 = vmatmul.bf16.gmra.mxu3 %v5828_v55 }
  0x83   :  { %1422 = vmatmul.bf16.gmra.mxu0 %v5858_v4 }
  0x84   :  { %1591 = vmatmul.bf16.gmra.mxu1 %v5860_v5 }
  0x85   :  { %1760 = vmatmul.bf16.gmra.mxu2 %v5862_v10 }
  0x86   :  { %1929 = vmatmul.bf16.gmra.mxu3 %v5864_v11 }
  0x93   :  { %1427 = vmatmul.bf16.gmra.mxu0 %v5906_v30 }
  0x94   :  { %1596 = vmatmul.bf16.gmra.mxu1 %v5908_v31 }
  0x95   :  { %1765 = vmatmul.bf16.gmra.mxu2 %v5910_v32 }
  0x96   :  { %1934 = vmatmul.bf16.gmra.mxu3 %v5918_v35 }
  0xa0   :  { %v1393_v3 = vpop.f32.mrf.mxu0 }
  0xa1   :  { %v1394_v14 = vadd.f32 %v1393_v3, %v5942_v56  ;;  %v1562_v15 = vpop.f32.mrf.mxu1 }
  0xa3   :  { %v1563_v17 = vadd.f32 %v1562_v15, %v1394_v14  ;;  %1432 = vmatmul.bf16.gmra.mxu0 %v5959_v2  ;;  %v6006_v15 = vpack.c.bf16 %v157_v46, %v150_v44  ;;  %v163_v44 = vld [vmem:[%s9491_s0 + $0x470] sm:$0xff]  ;;  %v170_v46 = vld [vmem:[%s9491_s0 + $0x4a8] sm:$0xff] }
  0xa4   :  { %1601 = vmatmul.bf16.gmra.mxu1 %v5961_v12 }
  0xa5   :  { %1770 = vmatmul.bf16.gmra.mxu2 %v5963_v13  ;;  %9718 = vst [vmem:[#allocation31_spill] sm:$0xff] %v6006_v15 }
  0xa6   :  { %1939 = vmatmul.bf16.gmra.mxu3 %v5966_v16 }
  0xa8   :  { %v1731_v18 = vpop.f32.mrf.mxu2  ;;  %v1395_v20 = vpop.f32.mrf.mxu0 }
  0xa9   :  { %v1732_v19 = vadd.f32 %v1731_v18, %v1563_v17  ;;  %v1900_v21 = vpop.f32.mrf.mxu3  ;;  %v1396_v22 = vadd.f32 %v1395_v20, %v5942_v56  ;;  %v1564_v23 = vpop.f32.mrf.mxu1 }
  0xab   :  { %v5973_v28 = vadd.f32 %v1900_v21, %v1732_v19  ;;  %v1565_v29 = vadd.f32 %v1564_v23, %v1396_v22 }
  0xb0   :  { %v1733_v50 = vpop.f32.mrf.mxu2  ;;  %v1398_v62 = vpop.f32.mrf.mxu0 }
  0xb1   :  { %v1734_v57 = vadd.f32 %v1733_v50, %v1565_v29  ;;  %v1902_v63 = vpop.f32.mrf.mxu3  ;;  %v1399_v3 = vadd.f32 %v1398_v62, %v5942_v56  ;;  %v1567_v14 = vpop.f32.mrf.mxu1  ;;  %v164_v50 = vld [vmem:[%s9491_s0 + $0x478] sm:$0xff] }
  0xb3   :  { %v6008_v17 = vadd.f32 %v1902_v63, %v1734_v57  ;;  %v1568_v18 = vadd.f32 %v1567_v14, %v1399_v3  ;;  %1437 = vmatmul.bf16.gmra.mxu0 %v5999_v51  ;;  %v171_v57 = vld [vmem:[%s9491_s0 + $0x4b0] sm:$0xff]  ;;  %v6041_v63 = vpack.c.bf16 %v168_v41, %v161_v40  ;;  %v5137_v40 = vld [vmem:[%s9490_s1 + $0x244] sm:$0xf0] }
  0xb4   :  { %1606 = vmatmul.bf16.gmra.mxu1 %v6001_v0 }
  0xb5   :  { %1775 = vmatmul.bf16.gmra.mxu2 %v6003_v1 }
  0xb6   :  { %1944 = vmatmul.bf16.gmra.mxu3 %v6006_v15 }
  0xb8   :  { %v1736_v19 = vpop.f32.mrf.mxu2  ;;  %v1400_v21 = vpop.f32.mrf.mxu0 }
  0xb9   :  { %v1737_v20 = vadd.f32 %v1736_v19, %v1568_v18  ;;  %v1905_v22 = vpop.f32.mrf.mxu3  ;;  %v1401_v23 = vadd.f32 %v1400_v21, %v5942_v56  ;;  %v1569_v29 = vpop.f32.mrf.mxu1  ;;  %v6043_v19 = vpack.c.bf16 %v169_v43, %v162_v42  ;;  %v4898_v42 = vld [vmem:[%s9490_s1 + $0x2c0] sm:$0xf]  ;;  %v5153_v43 = vld [vmem:[%s9490_s1 + $0x2c4] sm:$0xf0] }
  0xbb   :  { %v6015_v33 = vadd.f32 %v1905_v22, %v1737_v20  ;;  %v1570_v34 = vadd.f32 %v1569_v29, %v1401_v23  ;;  %9719 = vst [vmem:[#allocation32_spill] sm:$0xff] %v6043_v19  ;;  %v6045_v20 = vpack.c.bf16 %v170_v46, %v163_v44  ;;  %v6048_v23 = vpack.c.bf16 %v171_v57, %v164_v50 }
  0xbc   :  { %v4899_v44 = vor.u32 %v5153_v43, %v4898_v42  ;;  %v184_v42 = vld [vmem:[%s9491_s0 + $0x518] sm:$0xff]  ;;  %v178_v43 = vld [vmem:[%s9491_s0 + $0x4e8] sm:$0xff] }
  0xbd   :  { %9720 = vst [vmem:[#allocation33_spill] sm:$0xff] %v6045_v20 }
  0xbe   :  { %9721 = vst [vmem:[#allocation34_spill] sm:$0xff] %v6048_v23  ;;  %2232 = vmatpush.bf16.msrb.mxu1 %v4899_v44  ;;  %v185_v44 = vld [vmem:[%s9491_s0 + $0x520] sm:$0xff] }
  0xbf   :  { %v6102_v1 = vpack.c.bf16 %v185_v44, %v178_v43 }
  0xc0   :  { %v1738_v62 = vpop.f32.mrf.mxu2  ;;  %v1403_v14 = vpop.f32.mrf.mxu0 }
  0xc1   :  { %v1739_v3 = vadd.f32 %v1738_v62, %v1570_v34  ;;  %v1907_v18 = vpop.f32.mrf.mxu3  ;;  %v1404_v21 = vadd.f32 %v1403_v14, %v5942_v56  ;;  %v1572_v22 = vpop.f32.mrf.mxu1  ;;  %v4834_v34 = vld [vmem:[%s9490_s1 + $0x240] sm:$0xf]  ;;  %9724 = vst [vmem:[#allocation37_spill] sm:$0xff] %v6102_v1 }
  0xc2   :  { %v4835_v41 = vor.u32 %v5137_v40, %v4834_v34  ;;  %v182_v34 = vld [vmem:[%s9491_s0 + $0x508] sm:$0xff]  ;;  %v183_v40 = vld [vmem:[%s9491_s0 + $0x510] sm:$0xff] }
  0xc3   :  { %v6050_v29 = vadd.f32 %v1907_v18, %v1739_v3  ;;  %v1573_v15 = vadd.f32 %v1572_v22, %v1404_v21  ;;  %1442 = vmatmul.bf16.gmra.mxu0 %v6041_v63  ;;  %v175_v22 = vld [vmem:[%s9491_s0 + $0x4d0] sm:$0xff] }
  0xc4   :  { %1611 = vmatmul.bf16.gmra.mxu1 %v6043_v19  ;;  %2063 = vmatpush.bf16.msrb.mxu0 %v4835_v41  ;;  %v177_v41 = vld [vmem:[%s9491_s0 + $0x4e0] sm:$0xff] }
  0xc5   :  { %1780 = vmatmul.bf16.gmra.mxu2 %v6045_v20 }
  0xc6   :  { %1949 = vmatmul.bf16.gmra.mxu3 %v6048_v23  ;;  %v6099_v23 = vpack.c.bf16 %v184_v42, %v177_v41 }
  0xc8   :  { %v1741_v46 = vpop.f32.mrf.mxu2  ;;  %v1405_v57 = vpop.f32.mrf.mxu0  ;;  %9723 = vst [vmem:[#allocation36_spill] sm:$0xff] %v6099_v23 }
  0xc9   :  { %v1742_v50 = vadd.f32 %v1741_v46, %v1573_v15  ;;  %v1910_v62 = vpop.f32.mrf.mxu3  ;;  %v1406_v3 = vadd.f32 %v1405_v57, %v5942_v56  ;;  %v1574_v14 = vpop.f32.mrf.mxu1  ;;  %v176_v15 = vld [vmem:[%s9491_s0 + $0x4d8] sm:$0xff] }
  0xcb   :  { %v6069_v18 = vadd.f32 %v1910_v62, %v1742_v50  ;;  %v1575_v21 = vadd.f32 %v1574_v14, %v1406_v3  ;;  %v6095_v50 = vpack.c.bf16 %v182_v34, %v175_v22  ;;  %v6097_v14 = vpack.c.bf16 %v183_v40, %v176_v15  ;;  %v4596_v22 = vld [vmem:[%s9490_s1 + $0x68] sm:$0xf0] }
  0xcd   :  { %9722 = vst [vmem:[#allocation35_spill] sm:$0xff] %v6097_v14 }
  0xd0   :  { %v1743_v46 = vpop.f32.mrf.mxu2  ;;  %v1408_v62 = vpop.f32.mrf.mxu0 }
  0xd1   :  { %v1744_v57 = vadd.f32 %v1743_v46, %v1575_v21  ;;  %v1912_v3 = vpop.f32.mrf.mxu3  ;;  %v1409_v20 = vadd.f32 %v1408_v62, %v5942_v56  ;;  %v1577_v19 = vpop.f32.mrf.mxu1  ;;  %v5076_v21 = vld [vmem:[%s9490_s1 + $0x64] sm:$0xf] }
  0xd2   :  { %v4599_v34 = vor.u32 %v5076_v21, %v4596_v22  ;;  %v189_v46 = vld [vmem:[%s9491_s0 + $0x540] sm:$0xff]  ;;  %v198_v21 = vld [vmem:[%s9491_s0 + $0x588] sm:$0xff]  ;;  %v192_v22 = vld [vmem:[%s9491_s0 + $0x558] sm:$0xff] }
  0xd3   :  { %v6104_v0 = vadd.f32 %v1912_v3, %v1744_v57  ;;  %v1578_v16 = vadd.f32 %v1577_v19, %v1409_v20  ;;  %1447 = vmatmul.bf16.gmra.mxu0 %v6095_v50  ;;  %v196_v57 = vld [vmem:[%s9491_s0 + $0x578] sm:$0xff]  ;;  %v197_v62 = vld [vmem:[%s9491_s0 + $0x580] sm:$0xff]  ;;  %v191_v3 = vld [vmem:[%s9491_s0 + $0x550] sm:$0xff] }
  0xd4   :  { %1616 = vmatmul.bf16.gmra.mxu1 %v6097_v14  ;;  %2568 = vmatpush.bf16.msrb.mxu3 %v4599_v34  ;;  %v199_v34 = vld [vmem:[%s9491_s0 + $0x590] sm:$0xff] }
  0xd5   :  { %1785 = vmatmul.bf16.gmra.mxu2 %v6099_v23  ;;  %v6150_v13 = vpack.c.bf16 %v199_v34, %v192_v22  ;;  %v211_v34 = vld [vmem:[%s9491_s0 + $0x5f0] sm:$0xff] }
  0xd6   :  { %1954 = vmatmul.bf16.gmra.mxu3 %v6102_v1  ;;  %v6147_v1 = vpack.c.bf16 %v198_v21, %v191_v3 }
  0xd7   :  { %9727 = vst [vmem:[#allocation40_spill] sm:$0xff] %v6150_v13 }
  0xd8   :  { %v1746_v15 = vpop.f32.mrf.mxu2  ;;  %v1410_v20 = vpop.f32.mrf.mxu0  ;;  %9726 = vst [vmem:[#allocation39_spill] sm:$0xff] %v6147_v1 }
  0xd9   :  { %v1747_v19 = vadd.f32 %v1746_v15, %v1578_v16  ;;  %v1915_v40 = vpop.f32.mrf.mxu3  ;;  %v1411_v41 = vadd.f32 %v1410_v20, %v5942_v56  ;;  %v1579_v42 = vpop.f32.mrf.mxu1  ;;  %v190_v16 = vld [vmem:[%s9491_s0 + $0x548] sm:$0xff] }
  0xdb   :  { %v6117_v43 = vadd.f32 %v1915_v40, %v1747_v19  ;;  %v1580_v44 = vadd.f32 %v1579_v42, %v1411_v41  ;;  %v6143_v19 = vpack.c.bf16 %v196_v57, %v189_v46  ;;  %v6145_v42 = vpack.c.bf16 %v197_v62, %v190_v16 }
  0xdd   :  { %9725 = vst [vmem:[#allocation38_spill] sm:$0xff] %v6145_v42 }
  0xe0   :  { %v1748_v15 = vpop.f32.mrf.mxu2  ;;  %v1413_v40 = vpop.f32.mrf.mxu0 }
  0xe1   :  { %v1749_v20 = vadd.f32 %v1748_v15, %v1580_v44  ;;  %v1917_v41 = vpop.f32.mrf.mxu3  ;;  %v1414_v23 = vadd.f32 %v1413_v40, %v5942_v56  ;;  %v1582_v14 = vpop.f32.mrf.mxu1  ;;  %v205_v15 = vld [vmem:[%s9491_s0 + $0x5c0] sm:$0xff]  ;;  %v206_v40 = vld [vmem:[%s9491_s0 + $0x5c8] sm:$0xff] }
  0xe3   :  { %v6152_v12 = vadd.f32 %v1917_v41, %v1749_v20  ;;  %v1583_v35 = vadd.f32 %v1582_v14, %v1414_v23  ;;  %1452 = vmatmul.bf16.gmra.mxu0 %v6143_v19  ;;  %v203_v23 = vld [vmem:[%s9491_s0 + $0x5b0] sm:$0xff]  ;;  %v210_v14 = vld [vmem:[%s9491_s0 + $0x5e8] sm:$0xff]  ;;  %v212_v20 = vld [vmem:[%s9491_s0 + $0x5f8] sm:$0xff] }
  0xe4   :  { %1621 = vmatmul.bf16.gmra.mxu1 %v6145_v42  ;;  %v213_v41 = vld [vmem:[%s9491_s0 + $0x600] sm:$0xff] }
  0xe5   :  { %1790 = vmatmul.bf16.gmra.mxu2 %v6147_v1  ;;  %v6192_v32 = vpack.c.bf16 %v213_v41, %v206_v40  ;;  %v225_v41 = vld [vmem:[%s9491_s0 + $0x660] sm:$0xff] }
  0xe6   :  { %1959 = vmatmul.bf16.gmra.mxu3 %v6150_v13  ;;  %v6189_v13 = vpack.c.bf16 %v212_v20, %v205_v15 }
  0xe7   :  { %9730 = vst [vmem:[#allocation43_spill] sm:$0xff] %v6192_v32 }
  0xe8   :  { %v1751_v44 = vpop.f32.mrf.mxu2  ;;  %v1415_v57 = vpop.f32.mrf.mxu0  ;;  %9729 = vst [vmem:[#allocation42_spill] sm:$0xff] %v6189_v13 }
  0xe9   :  { %v1752_v46 = vadd.f32 %v1751_v44, %v1583_v35  ;;  %v1920_v16 = vpop.f32.mrf.mxu3  ;;  %v1416_v62 = vadd.f32 %v1415_v57, %v5942_v56  ;;  %v1584_v3 = vpop.f32.mrf.mxu1  ;;  %v204_v35 = vld [vmem:[%s9491_s0 + $0x5b8] sm:$0xff] }
  0xeb   :  { %v6159_v21 = vadd.f32 %v1920_v16, %v1752_v46  ;;  %v1585_v22 = vadd.f32 %v1584_v3, %v1416_v62  ;;  %v6185_v46 = vpack.c.bf16 %v210_v14, %v203_v23  ;;  %v6187_v3 = vpack.c.bf16 %v211_v34, %v204_v35 }
  0xed   :  { %9728 = vst [vmem:[#allocation41_spill] sm:$0xff] %v6187_v3 }
  0xf0   :  { %v1753_v44 = vpop.f32.mrf.mxu2  ;;  %v1418_v16 = vpop.f32.mrf.mxu0 }
  0xf1   :  { %v1754_v57 = vadd.f32 %v1753_v44, %v1585_v22  ;;  %v1922_v62 = vpop.f32.mrf.mxu3  ;;  %v1419_v1 = vadd.f32 %v1418_v16, %v5942_v56  ;;  %v1587_v42 = vpop.f32.mrf.mxu1  ;;  %v219_v44 = vld [vmem:[%s9491_s0 + $0x630] sm:$0xff]  ;;  %v220_v16 = vld [vmem:[%s9491_s0 + $0x638] sm:$0xff] }
  0xf3   :  { %v6194_v31 = vadd.f32 %v1922_v62, %v1754_v57  ;;  %v1588_v11 = vadd.f32 %v1587_v42, %v1419_v1  ;;  %1457 = vmatmul.bf16.gmra.mxu0 %v6185_v46  ;;  %v217_v1 = vld [vmem:[%s9491_s0 + $0x620] sm:$0xff]  ;;  %v224_v42 = vld [vmem:[%s9491_s0 + $0x658] sm:$0xff]  ;;  %v226_v57 = vld [vmem:[%s9491_s0 + $0x668] sm:$0xff] }
  0xf4   :  { %1626 = vmatmul.bf16.gmra.mxu1 %v6187_v3  ;;  %v227_v62 = vld [vmem:[%s9491_s0 + $0x670] sm:$0xff] }
  0xf5   :  { %1795 = vmatmul.bf16.gmra.mxu2 %v6189_v13  ;;  %v6234_v10 = vpack.c.bf16 %v227_v62, %v220_v16 }
  0xf6   :  { %1964 = vmatmul.bf16.gmra.mxu3 %v6192_v32  ;;  %v6231_v32 = vpack.c.bf16 %v226_v57, %v219_v44 }
  0xf7   :  { %9733 = vst [vmem:[#allocation46_spill] sm:$0xff] %v6234_v10 }
  0xf8   :  { %v1756_v22 = vpop.f32.mrf.mxu2  ;;  %v1420_v14 = vpop.f32.mrf.mxu0  ;;  %9732 = vst [vmem:[#allocation45_spill] sm:$0xff] %v6231_v32 }
  0xf9   :  { %v1757_v23 = vadd.f32 %v1756_v22, %v1588_v11  ;;  %v1925_v35 = vpop.f32.mrf.mxu3  ;;  %v1421_v34 = vadd.f32 %v1420_v14, %v5942_v56  ;;  %v1589_v15 = vpop.f32.mrf.mxu1  ;;  %v218_v11 = vld [vmem:[%s9491_s0 + $0x628] sm:$0xff] }
  0xfb   :  { %v6201_v20 = vadd.f32 %v1925_v35, %v1757_v23  ;;  %v1590_v40 = vadd.f32 %v1589_v15, %v1421_v34  ;;  %v6227_v23 = vpack.c.bf16 %v224_v42, %v217_v1  ;;  %v6229_v15 = vpack.c.bf16 %v225_v41, %v218_v11  ;;  %v5135_v1 = vld [vmem:[%s9490_s1 + $0x234] sm:$0xf0] }
  0xfd   :  { %9731 = vst [vmem:[#allocation44_spill] sm:$0xff] %v6229_v15 }
 0x100   :  { %v1758_v22 = vpop.f32.mrf.mxu2  ;;  %v1423_v35 = vpop.f32.mrf.mxu0 }
 0x101   :  { %v1759_v14 = vadd.f32 %v1758_v22, %v1590_v40  ;;  %v1927_v34 = vpop.f32.mrf.mxu3  ;;  %v1424_v13 = vadd.f32 %v1423_v35, %v5942_v56  ;;  %v1592_v3 = vpop.f32.mrf.mxu1  ;;  %v4826_v40 = vld [vmem:[%s9490_s1 + $0x230] sm:$0xf] }
 0x102   :  { %v4827_v42 = vor.u32 %v5135_v1, %v4826_v40  ;;  %v238_v40 = vld [vmem:[%s9491_s0 + $0x6c8] sm:$0xff]  ;;  %v239_v1 = vld [vmem:[%s9491_s0 + $0x6d0] sm:$0xff] }
 0x103   :  { %v6236_v5 = vadd.f32 %v1927_v34, %v1759_v14  ;;  %v1593_v55 = vadd.f32 %v1592_v3, %v1424_v13  ;;  %1462 = vmatmul.bf16.gmra.mxu0 %v6227_v23  ;;  %v4890_v13 = vld [vmem:[%s9490_s1 + $0x2b0] sm:$0xf]  ;;  %v5151_v3 = vld [vmem:[%s9490_s1 + $0x2b4] sm:$0xf0] }
 0x104   :  { %1631 = vmatmul.bf16.gmra.mxu1 %v6229_v15  ;;  %v4891_v11 = vor.u32 %v5151_v3, %v4890_v13  ;;  %2064 = vmatpush.bf16.msrb.mxu0 %v4827_v42  ;;  %v231_v34 = vld [vmem:[%s9491_s0 + $0x690] sm:$0xff]  ;;  %v233_v42 = vld [vmem:[%s9491_s0 + $0x6a0] sm:$0xff]  ;;  %v240_v13 = vld [vmem:[%s9491_s0 + $0x6d8] sm:$0xff] }
 0x105   :  { %1800 = vmatmul.bf16.gmra.mxu2 %v6231_v32  ;;  %v234_v3 = vld [vmem:[%s9491_s0 + $0x6a8] sm:$0xff] }
 0x106   :  { %1969 = vmatmul.bf16.gmra.mxu3 %v6234_v10  ;;  %2233 = vmatpush.bf16.msrb.mxu1 %v4891_v11  ;;  %v241_v11 = vld [vmem:[%s9491_s0 + $0x6e0] sm:$0xff]  ;;  %v6285_v10 = vpack.c.bf16 %v240_v13, %v233_v42 }
 0x107   :  { %v6288_v54 = vpack.c.bf16 %v241_v11, %v234_v3 }
 0x108   :  { %v1761_v41 = vpop.f32.mrf.mxu2  ;;  %v1425_v57 = vpop.f32.mrf.mxu0  ;;  %9735 = vst [vmem:[#allocation48_spill] sm:$0xff] %v6285_v10 }
 0x109   :  { %v1762_v44 = vadd.f32 %v1761_v41, %v1593_v55  ;;  %v1930_v16 = vpop.f32.mrf.mxu3  ;;  %v1426_v62 = vadd.f32 %v1425_v57, %v5942_v56  ;;  %v1594_v22 = vpop.f32.mrf.mxu1  ;;  %v232_v55 = vld [vmem:[%s9491_s0 + $0x698] sm:$0xff]  ;;  %9736 = vst [vmem:[#allocation49_spill] sm:$0xff] %v6288_v54 }
 0x10b   :  { %v6255_v14 = vadd.f32 %v1930_v16, %v1762_v44  ;;  %v1595_v35 = vadd.f32 %v1594_v22, %v1426_v62  ;;  %v6281_v44 = vpack.c.bf16 %v238_v40, %v231_v34  ;;  %v6283_v22 = vpack.c.bf16 %v239_v1, %v232_v55  ;;  %v4588_v34 = vld [vmem:[%s9490_s1 + $0x58] sm:$0xf0] }
 0x10d   :  { %9734 = vst [vmem:[#allocation47_spill] sm:$0xff] %v6283_v22 }
 0x110   :  { %v1763_v41 = vpop.f32.mrf.mxu2  ;;  %v1428_v16 = vpop.f32.mrf.mxu0 }
 0x111   :  { %v1764_v57 = vadd.f32 %v1763_v41, %v1595_v35  ;;  %v1932_v62 = vpop.f32.mrf.mxu3  ;;  %v1429_v32 = vadd.f32 %v1428_v16, %v5942_v56  ;;  %v1597_v15 = vpop.f32.mrf.mxu1  ;;  %v5074_v35 = vld [vmem:[%s9490_s1 + $0x54] sm:$0xf]  ;;  %v245_v41 = vld [vmem:[%s9491_s0 + $0x700] sm:$0xff] }
 0x112   :  { %v4591_v40 = vor.u32 %v5074_v35, %v4588_v34  ;;  %v253_v16 = vld [vmem:[%s9491_s0 + $0x740] sm:$0xff]  ;;  %v254_v35 = vld [vmem:[%s9491_s0 + $0x748] sm:$0xff]  ;;  %v248_v34 = vld [vmem:[%s9491_s0 + $0x718] sm:$0xff] }
 0x113   :  { %v6290_v53 = vadd.f32 %v1932_v62, %v1764_v57  ;;  %v1598_v39 = vadd.f32 %v1597_v15, %v1429_v32  ;;  %1467 = vmatmul.bf16.gmra.mxu0 %v6281_v44  ;;  %v252_v57 = vld [vmem:[%s9491_s0 + $0x738] sm:$0xff]  ;;  %v247_v62 = vld [vmem:[%s9491_s0 + $0x710] sm:$0xff] }
 0x114   :  { %1636 = vmatmul.bf16.gmra.mxu1 %v6283_v22  ;;  %2569 = vmatpush.bf16.msrb.mxu3 %v4591_v40  ;;  %v255_v40 = vld [vmem:[%s9491_s0 + $0x750] sm:$0xff] }
 0x115   :  { %1805 = vmatmul.bf16.gmra.mxu2 %v6285_v10  ;;  %v6336_v38 = vpack.c.bf16 %v255_v40, %v248_v34  ;;  %v267_v40 = vld [vmem:[%s9491_s0 + $0x7b0] sm:$0xff] }
 0x116   :  { %1974 = vmatmul.bf16.gmra.mxu3 %v6288_v54  ;;  %v6333_v54 = vpack.c.bf16 %v254_v35, %v247_v62 }
 0x117   :  { %9739 = vst [vmem:[#allocation52_spill] sm:$0xff] %v6336_v38 }
 0x118   :  { %v1766_v55 = vpop.f32.mrf.mxu2  ;;  %v1430_v15 = vpop.f32.mrf.mxu0  ;;  %9738 = vst [vmem:[#allocation51_spill] sm:$0xff] %v6333_v54 }
 0x119   :  { %v1767_v32 = vadd.f32 %v1766_v55, %v1598_v39  ;;  %v1935_v1 = vpop.f32.mrf.mxu3  ;;  %v1431_v42 = vadd.f32 %v1430_v15, %v5942_v56  ;;  %v1599_v13 = vpop.f32.mrf.mxu1  ;;  %v246_v39 = vld [vmem:[%s9491_s0 + $0x708] sm:$0xff] }
 0x11b   :  { %v6303_v3 = vadd.f32 %v1935_v1, %v1767_v32  ;;  %v1600_v11 = vadd.f32 %v1599_v13, %v1431_v42  ;;  %v6329_v32 = vpack.c.bf16 %v252_v57, %v245_v41  ;;  %v6331_v13 = vpack.c.bf16 %v253_v16, %v246_v39 }
 0x11d   :  { %9737 = vst [vmem:[#allocation50_spill] sm:$0xff] %v6331_v13 }
 0x120   :  { %v1768_v55 = vpop.f32.mrf.mxu2  ;;  %v1433_v1 = vpop.f32.mrf.mxu0 }
 0x121   :  { %v1769_v15 = vadd.f32 %v1768_v55, %v1600_v11  ;;  %v1937_v42 = vpop.f32.mrf.mxu3  ;;  %v1434_v10 = vadd.f32 %v1433_v1, %v5942_v56  ;;  %v1602_v22 = vpop.f32.mrf.mxu1  ;;  %v261_v55 = vld [vmem:[%s9491_s0 + $0x780] sm:$0xff]  ;;  %v262_v1 = vld [vmem:[%s9491_s0 + $0x788] sm:$0xff] }
 0x123   :  { %v6338_v37 = vadd.f32 %v1937_v42, %v1769_v15  ;;  %v1603_v27 = vadd.f32 %v1602_v22, %v1434_v10  ;;  %1472 = vmatmul.bf16.gmra.mxu0 %v6329_v32  ;;  %v259_v10 = vld [vmem:[%s9491_s0 + $0x770] sm:$0xff]  ;;  %v266_v22 = vld [vmem:[%s9491_s0 + $0x7a8] sm:$0xff]  ;;  %v268_v15 = vld [vmem:[%s9491_s0 + $0x7b8] sm:$0xff] }
 0x124   :  { %1641 = vmatmul.bf16.gmra.mxu1 %v6331_v13  ;;  %v269_v42 = vld [vmem:[%s9491_s0 + $0x7c0] sm:$0xff] }
 0x125   :  { %1810 = vmatmul.bf16.gmra.mxu2 %v6333_v54  ;;  %v6378_v26 = vpack.c.bf16 %v269_v42, %v262_v1  ;;  %v281_v42 = vld [vmem:[%s9491_s0 + $0x820] sm:$0xff] }
 0x126   :  { %1979 = vmatmul.bf16.gmra.mxu3 %v6336_v38  ;;  %v6375_v38 = vpack.c.bf16 %v268_v15, %v261_v55 }
 0x127   :  { %9742 = vst [vmem:[#allocation55_spill] sm:$0xff] %v6378_v26 }
 0x128   :  { %v1771_v11 = vpop.f32.mrf.mxu2  ;;  %v1435_v57 = vpop.f32.mrf.mxu0  ;;  %9741 = vst [vmem:[#allocation54_spill] sm:$0xff] %v6375_v38 }
 0x129   :  { %v1772_v41 = vadd.f32 %v1771_v11, %v1603_v27  ;;  %v1940_v39 = vpop.f32.mrf.mxu3  ;;  %v1436_v16 = vadd.f32 %v1435_v57, %v5942_v56  ;;  %v1604_v62 = vpop.f32.mrf.mxu1  ;;  %v260_v27 = vld [vmem:[%s9491_s0 + $0x778] sm:$0xff] }
 0x12b   :  { %v6345_v35 = vadd.f32 %v1940_v39, %v1772_v41  ;;  %v1605_v34 = vadd.f32 %v1604_v62, %v1436_v16  ;;  %v6371_v41 = vpack.c.bf16 %v266_v22, %v259_v10  ;;  %v6373_v62 = vpack.c.bf16 %v267_v40, %v260_v27 }
 0x12d   :  { %9740 = vst [vmem:[#allocation53_spill] sm:$0xff] %v6373_v62 }
 0x130   :  { %v1773_v11 = vpop.f32.mrf.mxu2  ;;  %v1438_v39 = vpop.f32.mrf.mxu0 }
 0x131   :  { %v1774_v57 = vadd.f32 %v1773_v11, %v1605_v34  ;;  %v1942_v16 = vpop.f32.mrf.mxu3  ;;  %v1439_v54 = vadd.f32 %v1438_v39, %v5942_v56  ;;  %v1607_v13 = vpop.f32.mrf.mxu1  ;;  %v275_v11 = vld [vmem:[%s9491_s0 + $0x7f0] sm:$0xff]  ;;  %v276_v39 = vld [vmem:[%s9491_s0 + $0x7f8] sm:$0xff] }
 0x133   :  { %v6380_v25 = vadd.f32 %v1942_v16, %v1774_v57  ;;  %v1608_v9 = vadd.f32 %v1607_v13, %v1439_v54  ;;  %1477 = vmatmul.bf16.gmra.mxu0 %v6371_v41  ;;  %v273_v54 = vld [vmem:[%s9491_s0 + $0x7e0] sm:$0xff]  ;;  %v280_v13 = vld [vmem:[%s9491_s0 + $0x818] sm:$0xff]  ;;  %v282_v57 = vld [vmem:[%s9491_s0 + $0x828] sm:$0xff] }
 0x134   :  { %1646 = vmatmul.bf16.gmra.mxu1 %v6373_v62  ;;  %v283_v16 = vld [vmem:[%s9491_s0 + $0x830] sm:$0xff] }
 0x135   :  { %1815 = vmatmul.bf16.gmra.mxu2 %v6375_v38  ;;  %v6420_v8 = vpack.c.bf16 %v283_v16, %v276_v39 }
 0x136   :  { %1984 = vmatmul.bf16.gmra.mxu3 %v6378_v26  ;;  %v6417_v26 = vpack.c.bf16 %v282_v57, %v275_v11 }
 0x137   :  { %9745 = vst [vmem:[#allocation58_spill] sm:$0xff] %v6420_v8 }
 0x138   :  { %v1776_v34 = vpop.f32.mrf.mxu2  ;;  %v1440_v22 = vpop.f32.mrf.mxu0  ;;  %9744 = vst [vmem:[#allocation57_spill] sm:$0xff] %v6417_v26 }
 0x139   :  { %v1777_v10 = vadd.f32 %v1776_v34, %v1608_v9  ;;  %v1945_v27 = vpop.f32.mrf.mxu3  ;;  %v1441_v40 = vadd.f32 %v1440_v22, %v5942_v56  ;;  %v1609_v55 = vpop.f32.mrf.mxu1  ;;  %v274_v9 = vld [vmem:[%s9491_s0 + $0x7e8] sm:$0xff] }
 0x13b   :  { %v6387_v15 = vadd.f32 %v1945_v27, %v1777_v10  ;;  %v1610_v1 = vadd.f32 %v1609_v55, %v1441_v40  ;;  %v6413_v10 = vpack.c.bf16 %v280_v13, %v273_v54  ;;  %v6415_v55 = vpack.c.bf16 %v281_v42, %v274_v9  ;;  %v5133_v54 = vld [vmem:[%s9490_s1 + $0x224] sm:$0xf0] }
 0x13d   :  { %9743 = vst [vmem:[#allocation56_spill] sm:$0xff] %v6415_v55 }
 0x140   :  { %v1778_v34 = vpop.f32.mrf.mxu2  ;;  %v1443_v27 = vpop.f32.mrf.mxu0 }
 0x141   :  { %v1779_v22 = vadd.f32 %v1778_v34, %v1610_v1  ;;  %v1947_v40 = vpop.f32.mrf.mxu3  ;;  %v1444_v38 = vadd.f32 %v1443_v27, %v5942_v56  ;;  %v1612_v62 = vpop.f32.mrf.mxu1  ;;  %v4818_v1 = vld [vmem:[%s9490_s1 + $0x220] sm:$0xf] }
 0x142   :  { %v4819_v13 = vor.u32 %v5133_v54, %v4818_v1  ;;  %v294_v1 = vld [vmem:[%s9491_s0 + $0x888] sm:$0xff]  ;;  %v295_v54 = vld [vmem:[%s9491_s0 + $0x890] sm:$0xff] }
 0x143   :  { %v6422_v7 = vadd.f32 %v1947_v40, %v1779_v22  ;;  %v1613_v61 = vadd.f32 %v1612_v62, %v1444_v38  ;;  %1482 = vmatmul.bf16.gmra.mxu0 %v6413_v10  ;;  %v4882_v38 = vld [vmem:[%s9490_s1 + $0x2a0] sm:$0xf]  ;;  %v5149_v62 = vld [vmem:[%s9490_s1 + $0x2a4] sm:$0xf0]  ;;  %v287_v40 = vld [vmem:[%s9491_s0 + $0x850] sm:$0xff] }
 0x144   :  { %1651 = vmatmul.bf16.gmra.mxu1 %v6415_v55  ;;  %v4883_v9 = vor.u32 %v5149_v62, %v4882_v38  ;;  %2065 = vmatpush.bf16.msrb.mxu0 %v4819_v13  ;;  %v289_v13 = vld [vmem:[%s9491_s0 + $0x860] sm:$0xff]  ;;  %v296_v38 = vld [vmem:[%s9491_s0 + $0x898] sm:$0xff]  ;;  %v290_v62 = vld [vmem:[%s9491_s0 + $0x868] sm:$0xff] }
 0x145   :  { %1820 = vmatmul.bf16.gmra.mxu2 %v6417_v26 }
 0x146   :  { %1989 = vmatmul.bf16.gmra.mxu3 %v6420_v8  ;;  %2234 = vmatpush.bf16.msrb.mxu1 %v4883_v9  ;;  %v297_v9 = vld [vmem:[%s9491_s0 + $0x8a0] sm:$0xff]  ;;  %v6471_v8 = vpack.c.bf16 %v296_v38, %v289_v13 }
 0x147   :  { %v6474_v60 = vpack.c.bf16 %v297_v9, %v290_v62 }
 0x148   :  { %v1781_v42 = vpop.f32.mrf.mxu2  ;;  %v1445_v57 = vpop.f32.mrf.mxu0  ;;  %9748 = vst [vmem:[#allocation61_spill] sm:$0xff] %v6471_v8 }
 0x149   :  { %v1782_v11 = vadd.f32 %v1781_v42, %v1613_v61  ;;  %v1950_v39 = vpop.f32.mrf.mxu3  ;;  %v1446_v16 = vadd.f32 %v1445_v57, %v5942_v56  ;;  %v1614_v34 = vpop.f32.mrf.mxu1  ;;  %v288_v61 = vld [vmem:[%s9491_s0 + $0x858] sm:$0xff]  ;;  %9749 = vst [vmem:[#allocation62_spill] sm:$0xff] %v6474_v60 }
 0x14b   :  { %v6441_v22 = vadd.f32 %v1950_v39, %v1782_v11  ;;  %v1615_v27 = vadd.f32 %v1614_v34, %v1446_v16  ;;  %v6467_v11 = vpack.c.bf16 %v294_v1, %v287_v40  ;;  %v6469_v34 = vpack.c.bf16 %v295_v54, %v288_v61  ;;  %v4580_v40 = vld [vmem:[%s9490_s1 + $0x48] sm:$0xf0] }
 0x14d   :  { %9746 = vst [vmem:[#allocation59_spill] sm:$0xff] %v6467_v11 }
 0x14e   :  { %9747 = vst [vmem:[#allocation60_spill] sm:$0xff] %v6469_v34 }
 0x150   :  { %v1783_v42 = vpop.f32.mrf.mxu2  ;;  %v1448_v39 = vpop.f32.mrf.mxu0 }
 0x151   :  { %v1784_v57 = vadd.f32 %v1783_v42, %v1615_v27  ;;  %v1952_v16 = vpop.f32.mrf.mxu3  ;;  %v1449_v26 = vadd.f32 %v1448_v39, %v5942_v56  ;;  %v1617_v55 = vpop.f32.mrf.mxu1  ;;  %v5072_v27 = vld [vmem:[%s9490_s1 + $0x44] sm:$0xf] }
 0x152   :  { %v4583_v1 = vor.u32 %v5072_v27, %v4580_v40  ;;  %v301_v42 = vld [vmem:[%s9491_s0 + $0x8c0] sm:$0xff]  ;;  %v310_v27 = vld [vmem:[%s9491_s0 + $0x908] sm:$0xff]  ;;  %v304_v40 = vld [vmem:[%s9491_s0 + $0x8d8] sm:$0xff] }
 0x153   :  { %v6476_v59 = vadd.f32 %v1952_v16, %v1784_v57  ;;  %v1618_v49 = vadd.f32 %v1617_v55, %v1449_v26  ;;  %1487 = vmatmul.bf16.gmra.mxu0 %v6467_v11  ;;  %v308_v57 = vld [vmem:[%s9491_s0 + $0x8f8] sm:$0xff]  ;;  %v309_v39 = vld [vmem:[%s9491_s0 + $0x900] sm:$0xff]  ;;  %v303_v16 = vld [vmem:[%s9491_s0 + $0x8d0] sm:$0xff] }
 0x154   :  { %1656 = vmatmul.bf16.gmra.mxu1 %v6469_v34  ;;  %2570 = vmatpush.bf16.msrb.mxu3 %v4583_v1  ;;  %v311_v1 = vld [vmem:[%s9491_s0 + $0x910] sm:$0xff] }
 0x155   :  { %1825 = vmatmul.bf16.gmra.mxu2 %v6471_v8  ;;  %v6522_v48 = vpack.c.bf16 %v311_v1, %v304_v40  ;;  %v323_v1 = vld [vmem:[%s9491_s0 + $0x970] sm:$0xff] }
 0x156   :  { %1994 = vmatmul.bf16.gmra.mxu3 %v6474_v60  ;;  %v6519_v60 = vpack.c.bf16 %v310_v27, %v303_v16 }
 0x157   :  { %9753 = vst [vmem:[#allocation66_spill] sm:$0xff] %v6522_v48 }
 0x158   :  { %v1786_v61 = vpop.f32.mrf.mxu2  ;;  %v1450_v55 = vpop.f32.mrf.mxu0  ;;  %9752 = vst [vmem:[#allocation65_spill] sm:$0xff] %v6519_v60 }
 0x159   :  { %v1787_v26 = vadd.f32 %v1786_v61, %v1618_v49  ;;  %v1955_v54 = vpop.f32.mrf.mxu3  ;;  %v1451_v13 = vadd.f32 %v1450_v55, %v5942_v56  ;;  %v1619_v38 = vpop.f32.mrf.mxu1  ;;  %v302_v49 = vld [vmem:[%s9491_s0 + $0x8c8] sm:$0xff] }
 0x15b   :  { %v6489_v62 = vadd.f32 %v1955_v54, %v1787_v26  ;;  %v1620_v9 = vadd.f32 %v1619_v38, %v1451_v13  ;;  %v6515_v26 = vpack.c.bf16 %v308_v57, %v301_v42  ;;  %v6517_v38 = vpack.c.bf16 %v309_v39, %v302_v49 }
 0x15d   :  { %9750 = vst [vmem:[#allocation63_spill] sm:$0xff] %v6515_v26 }
 0x15e   :  { %9751 = vst [vmem:[#allocation64_spill] sm:$0xff] %v6517_v38 }
 0x160   :  { %v1788_v61 = vpop.f32.mrf.mxu2  ;;  %v1453_v54 = vpop.f32.mrf.mxu0 }
 0x161   :  { %v1789_v55 = vadd.f32 %v1788_v61, %v1620_v9  ;;  %v1957_v13 = vpop.f32.mrf.mxu3  ;;  %v1454_v8 = vadd.f32 %v1453_v54, %v5942_v56  ;;  %v1622_v34 = vpop.f32.mrf.mxu1  ;;  %v317_v61 = vld [vmem:[%s9491_s0 + $0x940] sm:$0xff]  ;;  %v318_v54 = vld [vmem:[%s9491_s0 + $0x948] sm:$0xff] }
 0x163   :  { %v6524_v47 = vadd.f32 %v1957_v13, %v1789_v55  ;;  %v1623_v11 = vadd.f32 %v1622_v34, %v1454_v8  ;;  %1492 = vmatmul.bf16.gmra.mxu0 %v6515_v26  ;;  %v315_v8 = vld [vmem:[%s9491_s0 + $0x930] sm:$0xff]  ;;  %v322_v34 = vld [vmem:[%s9491_s0 + $0x968] sm:$0xff]  ;;  %v324_v55 = vld [vmem:[%s9491_s0 + $0x978] sm:$0xff] }
 0x164   :  { %1661 = vmatmul.bf16.gmra.mxu1 %v6517_v38  ;;  %v325_v13 = vld [vmem:[%s9491_s0 + $0x980] sm:$0xff] }
 0x165   :  { %9754 = vst [vmem:[#allocation67_spill] sm:$0xff] %v6524_v47  ;;  %1830 = vmatmul.bf16.gmra.mxu2 %v6519_v60  ;;  %v6564_v26 = vpack.c.bf16 %v325_v13, %v318_v54  ;;  %v337_v13 = vld [vmem:[%s9491_s0 + $0x9e0] sm:$0xff] }
 0x166   :  { %1999 = vmatmul.bf16.gmra.mxu3 %v6522_v48  ;;  %v6561_v48 = vpack.c.bf16 %v324_v55, %v317_v61 }
 0x167   :  { %9759 = vst [vmem:[#allocation72_spill] sm:$0xff] %v6564_v26 }
 0x168   :  { %v1791_v9 = vpop.f32.mrf.mxu2  ;;  %v1455_v57 = vpop.f32.mrf.mxu0  ;;  %9758 = vst [vmem:[#allocation71_spill] sm:$0xff] %v6561_v48 }
 0x169   :  { %v1792_v42 = vadd.f32 %v1791_v9, %v1623_v11  ;;  %v1960_v49 = vpop.f32.mrf.mxu3  ;;  %v1456_v39 = vadd.f32 %v1455_v57, %v5942_v56  ;;  %v1624_v16 = vpop.f32.mrf.mxu1  ;;  %v316_v11 = vld [vmem:[%s9491_s0 + $0x938] sm:$0xff] }
 0x16b   :  { %v6531_v27 = vadd.f32 %v1960_v49, %v1792_v42  ;;  %v1625_v40 = vadd.f32 %v1624_v16, %v1456_v39  ;;  %v6557_v42 = vpack.c.bf16 %v322_v34, %v315_v8  ;;  %v6559_v16 = vpack.c.bf16 %v323_v1, %v316_v11 }
 0x16d   :  { %9755 = vst [vmem:[#allocation68_spill] sm:$0xff] %v6531_v27 }
 0x16e   :  { %9756 = vst [vmem:[#allocation69_spill] sm:$0xff] %v6557_v42 }
 0x16f   :  { %9757 = vst [vmem:[#allocation70_spill] sm:$0xff] %v6559_v16 }
 0x170   :  { %v1793_v9 = vpop.f32.mrf.mxu2  ;;  %v1458_v49 = vpop.f32.mrf.mxu0 }
 0x171   :  { %v1794_v57 = vadd.f32 %v1793_v9, %v1625_v40  ;;  %v1962_v39 = vpop.f32.mrf.mxu3  ;;  %v1459_v60 = vadd.f32 %v1458_v49, %v5942_v56  ;;  %v1627_v38 = vpop.f32.mrf.mxu1  ;;  %v331_v9 = vld [vmem:[%s9491_s0 + $0x9b0] sm:$0xff]  ;;  %v332_v49 = vld [vmem:[%s9491_s0 + $0x9b8] sm:$0xff] }
 0x173   :  { %v6566_v27 = vadd.f32 %v1962_v39, %v1794_v57  ;;  %v1628_v47 = vadd.f32 %v1627_v38, %v1459_v60  ;;  %1497 = vmatmul.bf16.gmra.mxu0 %v6557_v42  ;;  %v329_v60 = vld [vmem:[%s9491_s0 + $0x9a0] sm:$0xff]  ;;  %v336_v38 = vld [vmem:[%s9491_s0 + $0x9d8] sm:$0xff]  ;;  %v338_v57 = vld [vmem:[%s9491_s0 + $0x9e8] sm:$0xff] }
 0x174   :  { %1666 = vmatmul.bf16.gmra.mxu1 %v6559_v16  ;;  %v339_v39 = vld [vmem:[%s9491_s0 + $0x9f0] sm:$0xff] }
 0x175   :  { %9760 = vst [vmem:[#allocation73_spill] sm:$0xff] %v6566_v27  ;;  %1835 = vmatmul.bf16.gmra.mxu2 %v6561_v48  ;;  %v6606_v42 = vpack.c.bf16 %v339_v39, %v332_v49 }
 0x176   :  { %2004 = vmatmul.bf16.gmra.mxu3 %v6564_v26  ;;  %v6603_v26 = vpack.c.bf16 %v338_v57, %v331_v9 }
 0x177   :  { %9765 = vst [vmem:[#allocation78_spill] sm:$0xff] %v6606_v42 }
 0x178   :  { %v1796_v40 = vpop.f32.mrf.mxu2  ;;  %v1460_v34 = vpop.f32.mrf.mxu0  ;;  %9764 = vst [vmem:[#allocation77_spill] sm:$0xff] %v6603_v26 }
 0x179   :  { %v1797_v8 = vadd.f32 %v1796_v40, %v1628_v47  ;;  %v1965_v11 = vpop.f32.mrf.mxu3  ;;  %v1461_v1 = vadd.f32 %v1460_v34, %v5942_v56  ;;  %v1629_v61 = vpop.f32.mrf.mxu1  ;;  %v330_v47 = vld [vmem:[%s9491_s0 + $0x9a8] sm:$0xff] }
 0x17b   :  { %v6573_v55 = vadd.f32 %v1965_v11, %v1797_v8  ;;  %v1630_v54 = vadd.f32 %v1629_v61, %v1461_v1  ;;  %v6599_v8 = vpack.c.bf16 %v336_v38, %v329_v60  ;;  %v6601_v61 = vpack.c.bf16 %v337_v13, %v330_v47  ;;  %v5131_v60 = vld [vmem:[%s9490_s1 + $0x214] sm:$0xf0] }
 0x17d   :  { %9761 = vst [vmem:[#allocation74_spill] sm:$0xff] %v6573_v55 }
 0x17e   :  { %9762 = vst [vmem:[#allocation75_spill] sm:$0xff] %v6599_v8 }
 0x17f   :  { %9763 = vst [vmem:[#allocation76_spill] sm:$0xff] %v6601_v61 }
 0x180   :  { %v1798_v40 = vpop.f32.mrf.mxu2  ;;  %v1463_v11 = vpop.f32.mrf.mxu0 }
 0x181   :  { %v1799_v34 = vadd.f32 %v1798_v40, %v1630_v54  ;;  %v1967_v1 = vpop.f32.mrf.mxu3  ;;  %v1464_v48 = vadd.f32 %v1463_v11, %v5942_v56  ;;  %v1632_v16 = vpop.f32.mrf.mxu1  ;;  %v4810_v54 = vld [vmem:[%s9490_s1 + $0x210] sm:$0xf] }
 0x182   :  { %v4811_v38 = vor.u32 %v5131_v60, %v4810_v54  ;;  %v350_v54 = vld [vmem:[%s9491_s0 + $0xa48] sm:$0xff]  ;;  %v351_v60 = vld [vmem:[%s9491_s0 + $0xa50] sm:$0xff] }
 0x183   :  { %v6608_v55 = vadd.f32 %v1967_v1, %v1799_v34  ;;  %v1633_v27 = vadd.f32 %v1632_v16, %v1464_v48  ;;  %1502 = vmatmul.bf16.gmra.mxu0 %v6599_v8  ;;  %v4874_v48 = vld [vmem:[%s9490_s1 + $0x290] sm:$0xf]  ;;  %v5147_v16 = vld [vmem:[%s9490_s1 + $0x294] sm:$0xf0] }
 0x184   :  { %1671 = vmatmul.bf16.gmra.mxu1 %v6601_v61  ;;  %v4875_v47 = vor.u32 %v5147_v16, %v4874_v48  ;;  %2066 = vmatpush.bf16.msrb.mxu0 %v4811_v38  ;;  %v343_v1 = vld [vmem:[%s9491_s0 + $0xa10] sm:$0xff]  ;;  %v345_v38 = vld [vmem:[%s9491_s0 + $0xa20] sm:$0xff]  ;;  %v352_v48 = vld [vmem:[%s9491_s0 + $0xa58] sm:$0xff] }
 0x185   :  { %9766 = vst [vmem:[#allocation79_spill] sm:$0xff] %v6608_v55  ;;  %1840 = vmatmul.bf16.gmra.mxu2 %v6603_v26  ;;  %v346_v16 = vld [vmem:[%s9491_s0 + $0xa28] sm:$0xff] }
 0x186   :  { %2009 = vmatmul.bf16.gmra.mxu3 %v6606_v42  ;;  %2235 = vmatpush.bf16.msrb.mxu1 %v4875_v47  ;;  %v353_v47 = vld [vmem:[%s9491_s0 + $0xa60] sm:$0xff]  ;;  %v6657_v42 = vpack.c.bf16 %v352_v48, %v345_v38 }
 0x187   :  { %v6660_v8 = vpack.c.bf16 %v353_v47, %v346_v16 }
 0x188   :  { %v1801_v13 = vpop.f32.mrf.mxu2  ;;  %v1465_v57 = vpop.f32.mrf.mxu0  ;;  %9770 = vst [vmem:[#allocation83_spill] sm:$0xff] %v6657_v42 }
 0x189   :  { %v1802_v9 = vadd.f32 %v1801_v13, %v1633_v27  ;;  %v1970_v49 = vpop.f32.mrf.mxu3  ;;  %v1466_v39 = vadd.f32 %v1465_v57, %v5942_v56  ;;  %v1634_v40 = vpop.f32.mrf.mxu1  ;;  %v344_v27 = vld [vmem:[%s9491_s0 + $0xa18] sm:$0xff]  ;;  %9771 = vst [vmem:[#allocation84_spill] sm:$0xff] %v6660_v8 }
 0x18b   :  { %v6627_v34 = vadd.f32 %v1970_v49, %v1802_v9  ;;  %v1635_v11 = vadd.f32 %v1634_v40, %v1466_v39  ;;  %v6653_v9 = vpack.c.bf16 %v350_v54, %v343_v1  ;;  %v6655_v40 = vpack.c.bf16 %v351_v60, %v344_v27  ;;  %v4572_v1 = vld [vmem:[%s9490_s1 + $0x38] sm:$0xf0] }
 0x18d   :  { %9767 = vst [vmem:[#allocation80_spill] sm:$0xff] %v6627_v34 }
 0x18e   :  { %9768 = vst [vmem:[#allocation81_spill] sm:$0xff] %v6653_v9 }
 0x18f   :  { %9769 = vst [vmem:[#allocation82_spill] sm:$0xff] %v6655_v40 }
 0x190   :  { %v1803_v13 = vpop.f32.mrf.mxu2  ;;  %v1468_v49 = vpop.f32.mrf.mxu0 }
 0x191   :  { %v1804_v57 = vadd.f32 %v1803_v13, %v1635_v11  ;;  %v1972_v39 = vpop.f32.mrf.mxu3  ;;  %v1469_v26 = vadd.f32 %v1468_v49, %v5942_v56  ;;  %v1637_v61 = vpop.f32.mrf.mxu1  ;;  %v5070_v11 = vld [vmem:[%s9490_s1 + $0x34] sm:$0xf]  ;;  %v357_v13 = vld [vmem:[%s9491_s0 + $0xa80] sm:$0xff] }
 0x192   :  { %v4575_v54 = vor.u32 %v5070_v11, %v4572_v1  ;;  %v365_v49 = vld [vmem:[%s9491_s0 + $0xac0] sm:$0xff]  ;;  %v366_v11 = vld [vmem:[%s9491_s0 + $0xac8] sm:$0xff]  ;;  %v360_v1 = vld [vmem:[%s9491_s0 + $0xa98] sm:$0xff] }
 0x193   :  { %v6662_v34 = vadd.f32 %v1972_v39, %v1804_v57  ;;  %v1638_v55 = vadd.f32 %v1637_v61, %v1469_v26  ;;  %1507 = vmatmul.bf16.gmra.mxu0 %v6653_v9  ;;  %v364_v57 = vld [vmem:[%s9491_s0 + $0xab8] sm:$0xff]  ;;  %v359_v39 = vld [vmem:[%s9491_s0 + $0xa90] sm:$0xff] }
 0x194   :  { %1676 = vmatmul.bf16.gmra.mxu1 %v6655_v40  ;;  %2571 = vmatpush.bf16.msrb.mxu3 %v4575_v54  ;;  %v367_v54 = vld [vmem:[%s9491_s0 + $0xad0] sm:$0xff] }
 0x195   :  { %9772 = vst [vmem:[#allocation85_spill] sm:$0xff] %v6662_v34  ;;  %1845 = vmatmul.bf16.gmra.mxu2 %v6657_v42  ;;  %v6708_v9 = vpack.c.bf16 %v367_v54, %v360_v1  ;;  %v379_v54 = vld [vmem:[%s9491_s0 + $0xb30] sm:$0xff] }
 0x196   :  { %2014 = vmatmul.bf16.gmra.mxu3 %v6660_v8  ;;  %v6705_v8 = vpack.c.bf16 %v366_v11, %v359_v39 }
 0x197   :  { %9777 = vst [vmem:[#allocation90_spill] sm:$0xff] %v6708_v9 }
 0x198   :  { %v1806_v27 = vpop.f32.mrf.mxu2  ;;  %v1470_v61 = vpop.f32.mrf.mxu0  ;;  %9776 = vst [vmem:[#allocation89_spill] sm:$0xff] %v6705_v8 }
 0x199   :  { %v1807_v26 = vadd.f32 %v1806_v27, %v1638_v55  ;;  %v1975_v60 = vpop.f32.mrf.mxu3  ;;  %v1471_v38 = vadd.f32 %v1470_v61, %v5942_v56  ;;  %v1639_v48 = vpop.f32.mrf.mxu1  ;;  %v358_v55 = vld [vmem:[%s9491_s0 + $0xa88] sm:$0xff] }
 0x19b   :  { %v6675_v16 = vadd.f32 %v1975_v60, %v1807_v26  ;;  %v1640_v47 = vadd.f32 %v1639_v48, %v1471_v38  ;;  %v6701_v26 = vpack.c.bf16 %v364_v57, %v357_v13  ;;  %v6703_v48 = vpack.c.bf16 %v365_v49, %v358_v55 }
 0x19d   :  { %9773 = vst [vmem:[#allocation86_spill] sm:$0xff] %v6675_v16 }
 0x19e   :  { %9774 = vst [vmem:[#allocation87_spill] sm:$0xff] %v6701_v26 }
 0x19f   :  { %9775 = vst [vmem:[#allocation88_spill] sm:$0xff] %v6703_v48 }
 0x1a0   :  { %v1808_v27 = vpop.f32.mrf.mxu2  ;;  %v1473_v60 = vpop.f32.mrf.mxu0 }
 0x1a1   :  { %v1809_v61 = vadd.f32 %v1808_v27, %v1640_v47  ;;  %v1977_v38 = vpop.f32.mrf.mxu3  ;;  %v1474_v42 = vadd.f32 %v1473_v60, %v5942_v56  ;;  %v1642_v40 = vpop.f32.mrf.mxu1  ;;  %v373_v27 = vld [vmem:[%s9491_s0 + $0xb00] sm:$0xff]  ;;  %v374_v60 = vld [vmem:[%s9491_s0 + $0xb08] sm:$0xff] }
 0x1a3   :  { %v6710_v16 = vadd.f32 %v1977_v38, %v1809_v61  ;;  %v1643_v34 = vadd.f32 %v1642_v40, %v1474_v42  ;;  %1512 = vmatmul.bf16.gmra.mxu0 %v6701_v26  ;;  %v371_v42 = vld [vmem:[%s9491_s0 + $0xaf0] sm:$0xff]  ;;  %v378_v40 = vld [vmem:[%s9491_s0 + $0xb28] sm:$0xff]  ;;  %v380_v61 = vld [vmem:[%s9491_s0 + $0xb38] sm:$0xff] }
 0x1a4   :  { %1681 = vmatmul.bf16.gmra.mxu1 %v6703_v48  ;;  %v381_v38 = vld [vmem:[%s9491_s0 + $0xb40] sm:$0xff] }
 0x1a5   :  { %9778 = vst [vmem:[#allocation91_spill] sm:$0xff] %v6710_v16  ;;  %1850 = vmatmul.bf16.gmra.mxu2 %v6705_v8  ;;  %v6750_v26 = vpack.c.bf16 %v381_v38, %v374_v60  ;;  %v393_v38 = vld [vmem:[%s9491_s0 + $0xba0] sm:$0xff] }
 0x1a6   :  { %2019 = vmatmul.bf16.gmra.mxu3 %v6708_v9  ;;  %v6747_v9 = vpack.c.bf16 %v380_v61, %v373_v27 }
 0x1a7   :  { %9783 = vst [vmem:[#allocation96_spill] sm:$0xff] %v6750_v26 }
 0x1a8   :  { %v1811_v47 = vpop.f32.mrf.mxu2  ;;  %v1475_v57 = vpop.f32.mrf.mxu0  ;;  %9782 = vst [vmem:[#allocation95_spill] sm:$0xff] %v6747_v9 }
 0x1a9   :  { %v1812_v13 = vadd.f32 %v1811_v47, %v1643_v34  ;;  %v1980_v55 = vpop.f32.mrf.mxu3  ;;  %v1476_v49 = vadd.f32 %v1475_v57, %v5942_v56  ;;  %v1644_v39 = vpop.f32.mrf.mxu1  ;;  %v372_v34 = vld [vmem:[%s9491_s0 + $0xaf8] sm:$0xff] }
 0x1ab   :  { %v6717_v11 = vadd.f32 %v1980_v55, %v1812_v13  ;;  %v1645_v1 = vadd.f32 %v1644_v39, %v1476_v49  ;;  %v6743_v13 = vpack.c.bf16 %v378_v40, %v371_v42  ;;  %v6745_v39 = vpack.c.bf16 %v379_v54, %v372_v34 }
 0x1ad   :  { %9779 = vst [vmem:[#allocation92_spill] sm:$0xff] %v6717_v11 }
 0x1ae   :  { %9780 = vst [vmem:[#allocation93_spill] sm:$0xff] %v6743_v13 }
 0x1af   :  { %9781 = vst [vmem:[#allocation94_spill] sm:$0xff] %v6745_v39 }
 0x1b0   :  { %v1813_v47 = vpop.f32.mrf.mxu2  ;;  %v1478_v55 = vpop.f32.mrf.mxu0 }
 0x1b1   :  { %v1814_v57 = vadd.f32 %v1813_v47, %v1645_v1  ;;  %v1982_v49 = vpop.f32.mrf.mxu3  ;;  %v1479_v8 = vadd.f32 %v1478_v55, %v5942_v56  ;;  %v1647_v48 = vpop.f32.mrf.mxu1  ;;  %v387_v47 = vld [vmem:[%s9491_s0 + $0xb70] sm:$0xff]  ;;  %v388_v55 = vld [vmem:[%s9491_s0 + $0xb78] sm:$0xff] }
 0x1b3   :  { %v6752_v11 = vadd.f32 %v1982_v49, %v1814_v57  ;;  %v1648_v16 = vadd.f32 %v1647_v48, %v1479_v8  ;;  %1517 = vmatmul.bf16.gmra.mxu0 %v6743_v13  ;;  %v385_v8 = vld [vmem:[%s9491_s0 + $0xb60] sm:$0xff]  ;;  %v392_v48 = vld [vmem:[%s9491_s0 + $0xb98] sm:$0xff]  ;;  %v394_v57 = vld [vmem:[%s9491_s0 + $0xba8] sm:$0xff] }
 0x1b4   :  { %1686 = vmatmul.bf16.gmra.mxu1 %v6745_v39  ;;  %v395_v49 = vld [vmem:[%s9491_s0 + $0xbb0] sm:$0xff] }
 0x1b5   :  { %9784 = vst [vmem:[#allocation97_spill] sm:$0xff] %v6752_v11  ;;  %1855 = vmatmul.bf16.gmra.mxu2 %v6747_v9  ;;  %v6792_v13 = vpack.c.bf16 %v395_v49, %v388_v55 }
 0x1b6   :  { %2024 = vmatmul.bf16.gmra.mxu3 %v6750_v26  ;;  %v6789_v26 = vpack.c.bf16 %v394_v57, %v387_v47 }
 0x1b7   :  { %9789 = vst [vmem:[#allocation102_spill] sm:$0xff] %v6792_v13 }
 0x1b8   :  { %v1816_v1 = vpop.f32.mrf.mxu2  ;;  %v1480_v40 = vpop.f32.mrf.mxu0  ;;  %9788 = vst [vmem:[#allocation101_spill] sm:$0xff] %v6789_v26 }
 0x1b9   :  { %v1817_v42 = vadd.f32 %v1816_v1, %v1648_v16  ;;  %v1985_v34 = vpop.f32.mrf.mxu3  ;;  %v1481_v54 = vadd.f32 %v1480_v40, %v5942_v56  ;;  %v1649_v27 = vpop.f32.mrf.mxu1  ;;  %v386_v16 = vld [vmem:[%s9491_s0 + $0xb68] sm:$0xff] }
 0x1bb   :  { %v6759_v61 = vadd.f32 %v1985_v34, %v1817_v42  ;;  %v1650_v60 = vadd.f32 %v1649_v27, %v1481_v54  ;;  %v6785_v42 = vpack.c.bf16 %v392_v48, %v385_v8  ;;  %v6787_v27 = vpack.c.bf16 %v393_v38, %v386_v16  ;;  %v5129_v8 = vld [vmem:[%s9490_s1 + $0x204] sm:$0xf0] }
 0x1bd   :  { %9785 = vst [vmem:[#allocation98_spill] sm:$0xff] %v6759_v61 }
 0x1be   :  { %9786 = vst [vmem:[#allocation99_spill] sm:$0xff] %v6785_v42 }
 0x1bf   :  { %9787 = vst [vmem:[#allocation100_spill] sm:$0xff] %v6787_v27 }
 0x1c0   :  { %v1818_v1 = vpop.f32.mrf.mxu2  ;;  %v1483_v34 = vpop.f32.mrf.mxu0 }
 0x1c1   :  { %v1819_v40 = vadd.f32 %v1818_v1, %v1650_v60  ;;  %v1987_v54 = vpop.f32.mrf.mxu3  ;;  %v1484_v9 = vadd.f32 %v1483_v34, %v5942_v56  ;;  %v1652_v39 = vpop.f32.mrf.mxu1  ;;  %v4802_v60 = vld [vmem:[%s9490_s1 + $0x200] sm:$0xf] }
 0x1c2   :  { %v4803_v48 = vor.u32 %v5129_v8, %v4802_v60  ;;  %v406_v60 = vld [vmem:[%s9491_s0 + $0xc08] sm:$0xff]  ;;  %v407_v8 = vld [vmem:[%s9491_s0 + $0xc10] sm:$0xff] }
 0x1c3   :  { %v6794_v61 = vadd.f32 %v1987_v54, %v1819_v40  ;;  %v1653_v11 = vadd.f32 %v1652_v39, %v1484_v9  ;;  %1522 = vmatmul.bf16.gmra.mxu0 %v6785_v42  ;;  %v4866_v9 = vld [vmem:[%s9490_s1 + $0x280] sm:$0xf]  ;;  %v5145_v39 = vld [vmem:[%s9490_s1 + $0x284] sm:$0xf0]  ;;  %v399_v54 = vld [vmem:[%s9491_s0 + $0xbd0] sm:$0xff] }
 0x1c4   :  { %1691 = vmatmul.bf16.gmra.mxu1 %v6787_v27  ;;  %v4867_v16 = vor.u32 %v5145_v39, %v4866_v9  ;;  %2067 = vmatpush.bf16.msrb.mxu0 %v4803_v48  ;;  %v401_v48 = vld [vmem:[%s9491_s0 + $0xbe0] sm:$0xff]  ;;  %v408_v9 = vld [vmem:[%s9491_s0 + $0xc18] sm:$0xff]  ;;  %v402_v39 = vld [vmem:[%s9491_s0 + $0xbe8] sm:$0xff] }
 0x1c5   :  { %9790 = vst [vmem:[#allocation103_spill] sm:$0xff] %v6794_v61  ;;  %1860 = vmatmul.bf16.gmra.mxu2 %v6789_v26 }
 0x1c6   :  { %2029 = vmatmul.bf16.gmra.mxu3 %v6792_v13  ;;  %2236 = vmatpush.bf16.msrb.mxu1 %v4867_v16  ;;  %v409_v16 = vld [vmem:[%s9491_s0 + $0xc20] sm:$0xff]  ;;  %v6843_v13 = vpack.c.bf16 %v408_v9, %v401_v48 }
 0x1c7   :  { %v6846_v42 = vpack.c.bf16 %v409_v16, %v402_v39 }
 0x1c8   :  { %v1821_v38 = vpop.f32.mrf.mxu2  ;;  %v1485_v57 = vpop.f32.mrf.mxu0  ;;  %9794 = vst [vmem:[#allocation107_spill] sm:$0xff] %v6843_v13 }
 0x1c9   :  { %v1822_v47 = vadd.f32 %v1821_v38, %v1653_v11  ;;  %v1990_v55 = vpop.f32.mrf.mxu3  ;;  %v1486_v49 = vadd.f32 %v1485_v57, %v5942_v56  ;;  %v1654_v1 = vpop.f32.mrf.mxu1  ;;  %v400_v11 = vld [vmem:[%s9491_s0 + $0xbd8] sm:$0xff]  ;;  %9795 = vst [vmem:[#allocation108_spill] sm:$0xff] %v6846_v42 }
 0x1cb   :  { %v6813_v40 = vadd.f32 %v1990_v55, %v1822_v47  ;;  %v1655_v34 = vadd.f32 %v1654_v1, %v1486_v49  ;;  %v6839_v47 = vpack.c.bf16 %v406_v60, %v399_v54  ;;  %v6841_v1 = vpack.c.bf16 %v407_v8, %v400_v11  ;;  %v4564_v54 = vld [vmem:[%s9490_s1 + $0x28] sm:$0xf0] }
 0x1cd   :  { %9791 = vst [vmem:[#allocation104_spill] sm:$0xff] %v6813_v40 }
 0x1ce   :  { %9792 = vst [vmem:[#allocation105_spill] sm:$0xff] %v6839_v47 }
 0x1cf   :  { %9793 = vst [vmem:[#allocation106_spill] sm:$0xff] %v6841_v1 }
 0x1d0   :  { %v1823_v38 = vpop.f32.mrf.mxu2  ;;  %v1488_v55 = vpop.f32.mrf.mxu0 }
 0x1d1   :  { %v1824_v57 = vadd.f32 %v1823_v38, %v1655_v34  ;;  %v1992_v49 = vpop.f32.mrf.mxu3  ;;  %v1489_v26 = vadd.f32 %v1488_v55, %v5942_v56  ;;  %v1657_v27 = vpop.f32.mrf.mxu1  ;;  %v5068_v34 = vld [vmem:[%s9490_s1 + $0x24] sm:$0xf] }
 0x1d2   :  { %v4567_v60 = vor.u32 %v5068_v34, %v4564_v54  ;;  %v413_v38 = vld [vmem:[%s9491_s0 + $0xc40] sm:$0xff]  ;;  %v422_v34 = vld [vmem:[%s9491_s0 + $0xc88] sm:$0xff]  ;;  %v416_v54 = vld [vmem:[%s9491_s0 + $0xc58] sm:$0xff] }
 0x1d3   :  { %v6848_v40 = vadd.f32 %v1992_v49, %v1824_v57  ;;  %v1658_v61 = vadd.f32 %v1657_v27, %v1489_v26  ;;  %1527 = vmatmul.bf16.gmra.mxu0 %v6839_v47  ;;  %v420_v57 = vld [vmem:[%s9491_s0 + $0xc78] sm:$0xff]  ;;  %v421_v55 = vld [vmem:[%s9491_s0 + $0xc80] sm:$0xff]  ;;  %v415_v49 = vld [vmem:[%s9491_s0 + $0xc50] sm:$0xff] }
 0x1d4   :  { %1696 = vmatmul.bf16.gmra.mxu1 %v6841_v1  ;;  %2572 = vmatpush.bf16.msrb.mxu3 %v4567_v60  ;;  %v423_v60 = vld [vmem:[%s9491_s0 + $0xc90] sm:$0xff] }
 0x1d5   :  { %9796 = vst [vmem:[#allocation109_spill] sm:$0xff] %v6848_v40  ;;  %1865 = vmatmul.bf16.gmra.mxu2 %v6843_v13  ;;  %v6894_v47 = vpack.c.bf16 %v423_v60, %v416_v54  ;;  %v435_v60 = vld [vmem:[%s9491_s0 + $0xcf0] sm:$0xff] }
 0x1d6   :  { %2034 = vmatmul.bf16.gmra.mxu3 %v6846_v42  ;;  %v6891_v42 = vpack.c.bf16 %v422_v34, %v415_v49 }
 0x1d7   :  { %9801 = vst [vmem:[#allocation114_spill] sm:$0xff] %v6894_v47 }
 0x1d8   :  { %v1826_v11 = vpop.f32.mrf.mxu2  ;;  %v1490_v27 = vpop.f32.mrf.mxu0  ;;  %9800 = vst [vmem:[#allocation113_spill] sm:$0xff] %v6891_v42 }
 0x1d9   :  { %v1827_v26 = vadd.f32 %v1826_v11, %v1658_v61  ;;  %v1995_v8 = vpop.f32.mrf.mxu3  ;;  %v1491_v48 = vadd.f32 %v1490_v27, %v5942_v56  ;;  %v1659_v9 = vpop.f32.mrf.mxu1  ;;  %v414_v61 = vld [vmem:[%s9491_s0 + $0xc48] sm:$0xff] }
 0x1db   :  { %v6861_v39 = vadd.f32 %v1995_v8, %v1827_v26  ;;  %v1660_v16 = vadd.f32 %v1659_v9, %v1491_v48  ;;  %v6887_v26 = vpack.c.bf16 %v420_v57, %v413_v38  ;;  %v6889_v9 = vpack.c.bf16 %v421_v55, %v414_v61 }
 0x1dd   :  { %9797 = vst [vmem:[#allocation110_spill] sm:$0xff] %v6861_v39 }
 0x1de   :  { %9798 = vst [vmem:[#allocation111_spill] sm:$0xff] %v6887_v26 }
 0x1df   :  { %9799 = vst [vmem:[#allocation112_spill] sm:$0xff] %v6889_v9 }
 0x1e0   :  { %v1828_v11 = vpop.f32.mrf.mxu2  ;;  %v1493_v8 = vpop.f32.mrf.mxu0 }
 0x1e1   :  { %v1829_v27 = vadd.f32 %v1828_v11, %v1660_v16  ;;  %v1997_v48 = vpop.f32.mrf.mxu3  ;;  %v1494_v13 = vadd.f32 %v1493_v8, %v5942_v56  ;;  %v1662_v1 = vpop.f32.mrf.mxu1  ;;  %v429_v11 = vld [vmem:[%s9491_s0 + $0xcc0] sm:$0xff]  ;;  %v430_v8 = vld [vmem:[%s9491_s0 + $0xcc8] sm:$0xff] }
 0x1e3   :  { %v6896_v39 = vadd.f32 %v1997_v48, %v1829_v27  ;;  %v1663_v40 = vadd.f32 %v1662_v1, %v1494_v13  ;;  %1532 = vmatmul.bf16.gmra.mxu0 %v6887_v26  ;;  %v427_v13 = vld [vmem:[%s9491_s0 + $0xcb0] sm:$0xff]  ;;  %v434_v1 = vld [vmem:[%s9491_s0 + $0xce8] sm:$0xff]  ;;  %v436_v27 = vld [vmem:[%s9491_s0 + $0xcf8] sm:$0xff] }
 0x1e4   :  { %1701 = vmatmul.bf16.gmra.mxu1 %v6889_v9  ;;  %v437_v48 = vld [vmem:[%s9491_s0 + $0xd00] sm:$0xff] }
 0x1e5   :  { %9802 = vst [vmem:[#allocation115_spill] sm:$0xff] %v6896_v39  ;;  %1870 = vmatmul.bf16.gmra.mxu2 %v6891_v42  ;;  %v6936_v26 = vpack.c.bf16 %v437_v48, %v430_v8  ;;  %v5066_v48 = vld [vmem:[%s9490_s1 + $0x14] sm:$0xf] }
 0x1e6   :  { %2039 = vmatmul.bf16.gmra.mxu3 %v6894_v47  ;;  %v6933_v47 = vpack.c.bf16 %v436_v27, %v429_v11 }
 0x1e7   :  { %9807 = vst [vmem:[#allocation120_spill] sm:$0xff] %v6936_v26 }
 0x1e8   :  { %v1831_v16 = vpop.f32.mrf.mxu2  ;;  %v1495_v57 = vpop.f32.mrf.mxu0  ;;  %9806 = vst [vmem:[#allocation119_spill] sm:$0xff] %v6933_v47 }
 0x1e9   :  { %v1832_v38 = vadd.f32 %v1831_v16, %v1663_v40  ;;  %v2000_v61 = vpop.f32.mrf.mxu3  ;;  %v1496_v55 = vadd.f32 %v1495_v57, %v5942_v56  ;;  %v1664_v49 = vpop.f32.mrf.mxu1  ;;  %v428_v40 = vld [vmem:[%s9491_s0 + $0xcb8] sm:$0xff] }
 0x1eb   :  { %v6903_v34 = vadd.f32 %v2000_v61, %v1832_v38  ;;  %v1665_v54 = vadd.f32 %v1664_v49, %v1496_v55  ;;  %v6929_v38 = vpack.c.bf16 %v434_v1, %v427_v13  ;;  %v6931_v49 = vpack.c.bf16 %v435_v60, %v428_v40 }
 0x1ed   :  { %9803 = vst [vmem:[#allocation116_spill] sm:$0xff] %v6903_v34 }
 0x1ee   :  { %9804 = vst [vmem:[#allocation117_spill] sm:$0xff] %v6929_v38 }
 0x1ef   :  { %9805 = vst [vmem:[#allocation118_spill] sm:$0xff] %v6931_v49 }
 0x1f0   :  { %v1833_v16 = vpop.f32.mrf.mxu2  ;;  %v1498_v61 = vpop.f32.mrf.mxu0 }
 0x1f1   :  { %v1834_v57 = vadd.f32 %v1833_v16, %v1665_v54  ;;  %v2002_v55 = vpop.f32.mrf.mxu3  ;;  %v1499_v42 = vadd.f32 %v1498_v61, %v5942_v56  ;;  %v1667_v9 = vpop.f32.mrf.mxu1  ;;  %v4556_v16 = vld [vmem:[%s9490_s1 + $0x18] sm:$0xf0]  ;;  %v443_v61 = vld [vmem:[%s9491_s0 + $0xd30] sm:$0xff] }
 0x1f3   :  { %v6938_v34 = vadd.f32 %v2002_v55, %v1834_v57  ;;  %v1668_v39 = vadd.f32 %v1667_v9, %v1499_v42  ;;  %1537 = vmatmul.bf16.gmra.mxu0 %v6929_v38  ;;  %v441_v42 = vld [vmem:[%s9491_s0 + $0xd20] sm:$0xff]  ;;  %v448_v9 = vld [vmem:[%s9491_s0 + $0xd58] sm:$0xff]  ;;  %v450_v55 = vld [vmem:[%s9491_s0 + $0xd68] sm:$0xff] }
 0x1f4   :  { %1706 = vmatmul.bf16.gmra.mxu1 %v6931_v49  ;;  %v449_v57 = vld [vmem:[%s9491_s0 + $0xd60] sm:$0xff]  ;;  %v6981_v38 = vpack.c.bf16 %v450_v55, %v443_v61  ;;  %v4732_v61 = vld [vmem:[%s9490_s1 + $0x178] sm:$0xf0] }
 0x1f5   :  { %9808 = vst [vmem:[#allocation121_spill] sm:$0xff] %v6938_v34  ;;  %1875 = vmatmul.bf16.gmra.mxu2 %v6933_v47 }
 0x1f6   :  { %2044 = vmatmul.bf16.gmra.mxu3 %v6936_v26  ;;  %9812 = vst [vmem:[#allocation125_spill] sm:$0xff] %v6981_v38 }
 0x1f8   :  { %v1836_v54 = vpop.f32.mrf.mxu2  ;;  %v1500_v1 = vpop.f32.mrf.mxu0 }
 0x1f9   :  { %v1837_v13 = vadd.f32 %v1836_v54, %v1668_v39  ;;  %v2005_v40 = vpop.f32.mrf.mxu3  ;;  %v1501_v60 = vadd.f32 %v1500_v1, %v5942_v56  ;;  %v1669_v11 = vpop.f32.mrf.mxu1  ;;  %v442_v39 = vld [vmem:[%s9491_s0 + $0xd28] sm:$0xff]  ;;  %v4559_v54 = vor.u32 %v5066_v48, %v4556_v16  ;;  %v451_v1 = vld [vmem:[%s9491_s0 + $0xd70] sm:$0xff]  ;;  %v5064_v48 = vld [vmem:[%s9490_s1 + $0x4] sm:$0xf] }
 0x1fa   :  { %v6979_v49 = vpack.c.bf16 %v449_v57, %v442_v39  ;;  %v4548_v16 = vld [vmem:[%s9490_s1 + $0x8] sm:$0xf0]  ;;  %v5094_v57 = vld [vmem:[%s9490_s1 + $0xf4] sm:$0xf] }
 0x1fb   :  { %v6945_v27 = vadd.f32 %v2005_v40, %v1837_v13  ;;  %v1670_v8 = vadd.f32 %v1669_v11, %v1501_v60  ;;  %v444_v13 = vld [vmem:[%s9491_s0 + $0xd38] sm:$0xff]  ;;  %v6977_v60 = vpack.c.bf16 %v448_v9, %v441_v42  ;;  %2573 = vmatpush.bf16.msrb.mxu3 %v4559_v54 }
 0x1fc   :  { %9811 = vst [vmem:[#allocation124_spill] sm:$0xff] %v6979_v49  ;;  %v6990_v9 = vpack.c.bf16 %v451_v1, %v444_v13 }
 0x1fd   :  { %9809 = vst [vmem:[#allocation122_spill] sm:$0xff] %v6945_v27 }
 0x1fe   :  { %9810 = vst [vmem:[#allocation123_spill] sm:$0xff] %v6977_v60 }
 0x1ff   :  { %9813 = vst [vmem:[#allocation126_spill] sm:$0xff] %v6990_v9 }
 0x200   :  { %v1838_v40 = vpop.f32.mrf.mxu2  ;;  %v1503_v26 = vpop.f32.mrf.mxu0 }
 0x201   :  { %v1839_v11 = vadd.f32 %v1838_v40, %v1670_v8  ;;  %v2007_v47 = vpop.f32.mrf.mxu3  ;;  %v1504_v27 = vadd.f32 %v1503_v26, %v5942_v56  ;;  %v1672_v42 = vpop.f32.mrf.mxu1  ;;  %v4551_v8 = vor.u32 %v5064_v48, %v4548_v16  ;;  %v4668_v26 = vld [vmem:[%s9490_s1 + $0xf8] sm:$0xf0] }
 0x203   :  { %v6992_v54 = vadd.f32 %v2007_v47, %v1839_v11  ;;  %v1673_v39 = vadd.f32 %v1672_v42, %v1504_v27  ;;  %1542 = vmatmul.bf16.gmra.mxu0 %v6977_v60  ;;  %2574 = vmatpush.bf16.msrb.mxu3 %v4551_v8  ;;  %v4671_v47 = vor.u32 %v5094_v57, %v4668_v26  ;;  %v5110_v27 = vld [vmem:[%s9490_s1 + $0x174] sm:$0xf]  ;;  %v462_v26 = vld [vmem:[%s9491_s0 + $0xdc8] sm:$0xff] }
 0x204   :  { %1711 = vmatmul.bf16.gmra.mxu1 %v6979_v49  ;;  %v4735_v55 = vor.u32 %v5110_v27, %v4732_v61  ;;  %v455_v57 = vld [vmem:[%s9491_s0 + $0xd90] sm:$0xff]  ;;  %v457_v27 = vld [vmem:[%s9491_s0 + $0xda0] sm:$0xff]  ;;  %v464_v61 = vld [vmem:[%s9491_s0 + $0xdd8] sm:$0xff] }
 0x205   :  { %9814 = vst [vmem:[#allocation127_spill] sm:$0xff] %v6992_v54  ;;  %1880 = vmatmul.bf16.gmra.mxu2 %v6981_v38  ;;  %2736 = vmatpush.bf16.msra.mxu0 %v4671_v47  ;;  %v463_v47 = vld [vmem:[%s9491_s0 + $0xdd0] sm:$0xff]  ;;  %v7041_v38 = vpack.c.bf16 %v464_v61, %v457_v27 }
 0x206   :  { %2049 = vmatmul.bf16.gmra.mxu3 %v6990_v9  ;;  %2905 = vmatpush.bf16.msra.mxu1 %v4735_v55  ;;  %v458_v55 = vld [vmem:[%s9491_s0 + $0xda8] sm:$0xff] }
 0x207   :  { %9817 = vst [vmem:[#allocation130_spill] sm:$0xff] %v7041_v38 }
 0x208   :  { %v1841_v13 = vpop.f32.mrf.mxu2  ;;  %v1505_v40 = vpop.f32.mrf.mxu0 }
 0x209   :  { %v1842_v1 = vadd.f32 %v1841_v13, %v1673_v39  ;;  %v2010_v11 = vpop.f32.mrf.mxu3  ;;  %v1506_v48 = vadd.f32 %v1505_v40, %v5942_v56  ;;  %v1674_v16 = vpop.f32.mrf.mxu1  ;;  %v456_v39 = vld [vmem:[%s9491_s0 + $0xd98] sm:$0xff]  ;;  %v465_v13 = vld [vmem:[%s9491_s0 + $0xde0] sm:$0xff]  ;;  %v7037_v40 = vpack.c.bf16 %v462_v26, %v455_v57 }
 0x20a   :  { %v7039_v9 = vpack.c.bf16 %v463_v47, %v456_v39 }
 0x20b   :  { %v7011_v42 = vadd.f32 %v2010_v11, %v1842_v1  ;;  %v1675_v8 = vadd.f32 %v1674_v16, %v1506_v48 }
 0x20c   :  { %9816 = vst [vmem:[#allocation129_spill] sm:$0xff] %v7039_v9 }
 0x20d   :  { %9815 = vst [vmem:[#allocation128_spill] sm:$0xff] %v7011_v42  ;;  %v7044_v42 = vpack.c.bf16 %v465_v13, %v458_v55  ;;  %v33_v13 = vld [vmem:[%s9491_s0 + $0x60] sm:$0xff] }
 0x20f   :  { %9818 = vst [vmem:[#allocation131_spill] sm:$0xff] %v7044_v42 }
 0x210   :  { %v1843_v1 = vpop.f32.mrf.mxu2  ;;  %v1508_v48 = vpop.f32.mrf.mxu0 }
 0x211   :  { %v1844_v11 = vadd.f32 %v1843_v1, %v1675_v8  ;;  %v2012_v16 = vpop.f32.mrf.mxu3  ;;  %v1509_v49 = vadd.f32 %v1508_v48, %v5942_v56  ;;  %v1677_v60 = vpop.f32.mrf.mxu1  ;;  %v27_v1 = vld [vmem:[%s9491_s0 + $0x30] sm:$0xff] }
 0x213   :  { %v7046_v54 = vadd.f32 %v2012_v16, %v1844_v11  ;;  %v1678_v34 = vadd.f32 %v1677_v60, %v1509_v49  ;;  %1547 = vmatmul.bf16.gmra.mxu0 %v7037_v40  ;;  %v25_v49 = vld [vmem:[%s9491_s0 + $0x20] sm:$0xff]  ;;  %v32_v60 = vld [vmem:[%s9491_s0 + $0x58] sm:$0xff]  ;;  %v34_v11 = vld [vmem:[%s9491_s0 + $0x68] sm:$0xff] }
 0x214   :  { %1716 = vmatmul.bf16.gmra.mxu1 %v7039_v9  ;;  %v7073_v16 = vpack.c.bf16 %v32_v60, %v25_v49 }
 0x215   :  { %1885 = vmatmul.bf16.gmra.mxu2 %v7041_v38 }
 0x216   :  { %2054 = vmatmul.bf16.gmra.mxu3 %v7044_v42  ;;  %9819 = vst [vmem:[#allocation132_spill] sm:$0xff] %v7073_v16 }
 0x218   :  { %v1846_v8 = vpop.f32.mrf.mxu2  ;;  %v1510_v26 = vpop.f32.mrf.mxu0 }
 0x219   :  { %v1847_v57 = vadd.f32 %v1846_v8, %v1678_v34  ;;  %v2015_v39 = vpop.f32.mrf.mxu3  ;;  %v1511_v47 = vadd.f32 %v1510_v26, %v5942_v56  ;;  %v1679_v27 = vpop.f32.mrf.mxu1  ;;  %v26_v34 = vld [vmem:[%s9491_s0 + $0x28] sm:$0xff] }
 0x21b   :  { %v7053_v61 = vadd.f32 %v2015_v39, %v1847_v57  ;;  %v1680_v55 = vadd.f32 %v1679_v27, %v1511_v47  ;;  %v7075_v39 = vpack.c.bf16 %v33_v13, %v26_v34  ;;  %v7077_v47 = vpack.c.bf16 %v34_v11, %v27_v1 }
 0x21d   :  { %9820 = vst [vmem:[#allocation133_spill] sm:$0xff] %v7075_v39 }
 0x21e   :  { %9821 = vst [vmem:[#allocation134_spill] sm:$0xff] %v7077_v47 }
 0x220   :  { %v1848_v48 = vpop.f32.mrf.mxu2  ;;  %v1513_v57 = vpop.f32.mrf.mxu0 }
 0x221   :  { %v1849_v8 = vadd.f32 %v1848_v48, %v1680_v55  ;;  %v2017_v26 = vpop.f32.mrf.mxu3  ;;  %v1514_v27 = vadd.f32 %v1513_v57, %v5942_v56  ;;  %v1682_v42 = vpop.f32.mrf.mxu1  ;;  %v41_v57 = vld [vmem:[%s9491_s0 + $0xa0] sm:$0xff] }
 0x223   :  { %v7080_v38 = vadd.f32 %v2017_v26, %v1849_v8  ;;  %v1683_v9 = vadd.f32 %v1682_v42, %v1514_v27  ;;  %2068 = vmatmul.bf16.vlgmr.msrb.gmra.mxu0 %v7073_v16  ;;  %v39_v42 = vld [vmem:[%s9491_s0 + $0x90] sm:$0xff]  ;;  %v46_v8 = vld [vmem:[%s9491_s0 + $0xc8] sm:$0xff]  ;;  %v48_v26 = vld [vmem:[%s9491_s0 + $0xd8] sm:$0xff] }
 0x224   :  { %2237 = vmatmul.bf16.vlgmr.msrb.gmra.mxu1 %v7075_v39 }
 0x225   :  { %4936 = vmatmul.msk.bf16.vlgmr.msrb.gmra.mxu2 %vm1287_vm0, %v7077_v47 }
 0x226   :  { %2575 = vmatmul.bf16.vlgmr.msrb.gmra.mxu3 %v5630_v45  ;;  %v40_v45 = vld [vmem:[%s9491_s0 + $0x98] sm:$0xff] }
 0x228   :  { %v1851_v55 = vpop.f32.mrf.mxu2  ;;  %v1515_v60 = vpop.f32.mrf.mxu0 }
 0x229   :  { %v1852_v49 = vadd.f32 %v1851_v55, %v1683_v9  ;;  %v2020_v34 = vpop.f32.mrf.mxu3  ;;  %v1516_v13 = vadd.f32 %v1515_v60, %v5942_v56  ;;  %v1684_v1 = vpop.f32.mrf.mxu1  ;;  %v47_v9 = vld [vmem:[%s9491_s0 + $0xd0] sm:$0xff]  ;;  %v7108_v55 = vpack.c.bf16 %v46_v8, %v39_v42 }
 0x22b   :  { %v7088_v11 = vadd.f32 %v2020_v34, %v1852_v49  ;;  %v1685_v48 = vadd.f32 %v1684_v1, %v1516_v13  ;;  %9823 = vst [vmem:[#allocation136_spill] sm:$0xff] %v7108_v55  ;;  %v7110_v13 = vpack.c.bf16 %v47_v9, %v40_v45  ;;  %v7112_v1 = vpack.c.bf16 %v48_v26, %v41_v57 }
 0x22d   :  { %9822 = vst [vmem:[#allocation135_spill] sm:$0xff] %v7088_v11 }
 0x22e   :  { %9824 = vst [vmem:[#allocation137_spill] sm:$0xff] %v7110_v13 }
 0x22f   :  { %9825 = vst [vmem:[#allocation138_spill] sm:$0xff] %v7112_v1 }
 0x230   :  { %v1853_v27 = vpop.f32.mrf.mxu2  ;;  %v1518_v60 = vpop.f32.mrf.mxu0 }
 0x231   :  { %v1854_v49 = vadd.f32 %v1853_v27, %v1685_v48  ;;  %v2022_v34 = vpop.f32.mrf.mxu3  ;;  %v1519_v47 = vadd.f32 %v1518_v60, %v5942_v56  ;;  %v1687_v39 = vpop.f32.mrf.mxu1  ;;  %v62_v60 = vld [vmem:[%s9491_s0 + $0x148] sm:$0xff] }
 0x233   :  { %v7115_v16 = vadd.f32 %v2022_v34, %v1854_v49  ;;  %v1688_v11 = vadd.f32 %v1687_v39, %v1519_v47  ;;  %2073 = vmatmul.bf16.gmra.mxu0 %v7108_v55  ;;  %v53_v39 = vld [vmem:[%s9491_s0 + $0x100] sm:$0xff]  ;;  %v60_v47 = vld [vmem:[%s9491_s0 + $0x138] sm:$0xff]  ;;  %v55_v49 = vld [vmem:[%s9491_s0 + $0x110] sm:$0xff] }
 0x234   :  { %2242 = vmatmul.bf16.gmra.mxu1 %v7110_v13 }
 0x235   :  { %4937 = vmatmul.msk.bf16.gmra.mxu2 %vm1287_vm0, %v7112_v1 }
 0x236   :  { %2580 = vmatmul.bf16.gmra.mxu3 %v5666_v58  ;;  %v54_v58 = vld [vmem:[%s9491_s0 + $0x108] sm:$0xff] }
 0x238   :  { %v1856_v48 = vpop.f32.mrf.mxu2  ;;  %v1520_v8 = vpop.f32.mrf.mxu0 }
 0x239   :  { %v1857_v42 = vadd.f32 %v1856_v48, %v1688_v11  ;;  %v2025_v45 = vpop.f32.mrf.mxu3  ;;  %v1521_v9 = vadd.f32 %v1520_v8, %v5942_v56  ;;  %v1689_v57 = vpop.f32.mrf.mxu1  ;;  %v61_v11 = vld [vmem:[%s9491_s0 + $0x140] sm:$0xff]  ;;  %v7143_v48 = vpack.c.bf16 %v60_v47, %v53_v39  ;;  %v4660_v39 = vld [vmem:[%s9490_s1 + $0xe8] sm:$0xf0] }
 0x23b   :  { %v7123_v26 = vadd.f32 %v2025_v45, %v1857_v42  ;;  %v1690_v27 = vadd.f32 %v1689_v57, %v1521_v9  ;;  %9827 = vst [vmem:[#allocation140_spill] sm:$0xff] %v7143_v48  ;;  %v7145_v9 = vpack.c.bf16 %v61_v11, %v54_v58  ;;  %v7147_v57 = vpack.c.bf16 %v62_v60, %v55_v49 }
 0x23d   :  { %9826 = vst [vmem:[#allocation139_spill] sm:$0xff] %v7123_v26 }
 0x23e   :  { %9828 = vst [vmem:[#allocation141_spill] sm:$0xff] %v7145_v9 }
 0x23f   :  { %9829 = vst [vmem:[#allocation142_spill] sm:$0xff] %v7147_v57 }
 0x240   :  { %v1858_v34 = vpop.f32.mrf.mxu2  ;;  %v1523_v8 = vpop.f32.mrf.mxu0 }
 0x241   :  { %v1859_v42 = vadd.f32 %v1858_v34, %v1690_v27  ;;  %v2027_v45 = vpop.f32.mrf.mxu3  ;;  %v1524_v1 = vadd.f32 %v1523_v8, %v5942_v56  ;;  %v1692_v13 = vpop.f32.mrf.mxu1  ;;  %v5092_v27 = vld [vmem:[%s9490_s1 + $0xe4] sm:$0xf] }
 0x242   :  { %v4663_v47 = vor.u32 %v5092_v27, %v4660_v39  ;;  %v67_v27 = vld [vmem:[%s9491_s0 + $0x170] sm:$0xff]  ;;  %v74_v39 = vld [vmem:[%s9491_s0 + $0x1a8] sm:$0xff] }
 0x243   :  { %v7150_v55 = vadd.f32 %v2027_v45, %v1859_v42  ;;  %v1693_v26 = vadd.f32 %v1692_v13, %v1524_v1  ;;  %2078 = vmatmul.bf16.gmra.mxu0 %v7143_v48  ;;  %v5108_v13 = vld [vmem:[%s9490_s1 + $0x164] sm:$0xf]  ;;  %v4724_v1 = vld [vmem:[%s9490_s1 + $0x168] sm:$0xf0] }
 0x244   :  { %2247 = vmatmul.bf16.gmra.mxu1 %v7145_v9  ;;  %v4727_v58 = vor.u32 %v5108_v13, %v4724_v1  ;;  %2737 = vmatpush.bf16.msra.mxu0 %v4663_v47  ;;  %v75_v47 = vld [vmem:[%s9491_s0 + $0x1b0] sm:$0xff]  ;;  %v69_v13 = vld [vmem:[%s9491_s0 + $0x180] sm:$0xff]  ;;  %v76_v1 = vld [vmem:[%s9491_s0 + $0x1b8] sm:$0xff] }
 0x245   :  { %4938 = vmatmul.msk.bf16.gmra.mxu2 %vm1287_vm0, %v7147_v57 }
 0x246   :  { %2585 = vmatmul.bf16.gmra.mxu3 %v5702_v6  ;;  %2906 = vmatpush.bf16.msra.mxu1 %v4727_v58 }
 0x248   :  { %v1861_v11 = vpop.f32.mrf.mxu2  ;;  %v1525_v60 = vpop.f32.mrf.mxu0 }
 0x249   :  { %v1862_v49 = vadd.f32 %v1861_v11, %v1693_v26  ;;  %v2030_v34 = vpop.f32.mrf.mxu3  ;;  %v1526_v42 = vadd.f32 %v1525_v60, %v5942_v56  ;;  %v1694_v8 = vpop.f32.mrf.mxu1  ;;  %v68_v26 = vld [vmem:[%s9491_s0 + $0x178] sm:$0xff]  ;;  %v7190_v11 = vpack.c.bf16 %v74_v39, %v67_v27 }
 0x24b   :  { %v7170_v6 = vadd.f32 %v2030_v34, %v1862_v49  ;;  %v1695_v45 = vadd.f32 %v1694_v8, %v1526_v42  ;;  %9831 = vst [vmem:[#allocation144_spill] sm:$0xff] %v7190_v11  ;;  %v7192_v42 = vpack.c.bf16 %v75_v47, %v68_v26  ;;  %v7194_v8 = vpack.c.bf16 %v76_v1, %v69_v13 }
 0x24d   :  { %9830 = vst [vmem:[#allocation143_spill] sm:$0xff] %v7170_v6 }
 0x24e   :  { %9832 = vst [vmem:[#allocation145_spill] sm:$0xff] %v7192_v42 }
 0x24f   :  { %9833 = vst [vmem:[#allocation146_spill] sm:$0xff] %v7194_v8 }
 0x250   :  { %v1863_v58 = vpop.f32.mrf.mxu2  ;;  %v1528_v60 = vpop.f32.mrf.mxu0 }
 0x251   :  { %v1864_v49 = vadd.f32 %v1863_v58, %v1695_v45  ;;  %v2032_v34 = vpop.f32.mrf.mxu3  ;;  %v1529_v57 = vadd.f32 %v1528_v60, %v5942_v56  ;;  %v1697_v9 = vpop.f32.mrf.mxu1  ;;  %v90_v60 = vld [vmem:[%s9491_s0 + $0x228] sm:$0xff] }
 0x253   :  { %v7197_v48 = vadd.f32 %v2032_v34, %v1864_v49  ;;  %v1698_v6 = vadd.f32 %v1697_v9, %v1529_v57  ;;  %2083 = vmatmul.bf16.gmra.mxu0 %v7190_v11  ;;  %v81_v9 = vld [vmem:[%s9491_s0 + $0x1e0] sm:$0xff]  ;;  %v88_v57 = vld [vmem:[%s9491_s0 + $0x218] sm:$0xff]  ;;  %v83_v49 = vld [vmem:[%s9491_s0 + $0x1f0] sm:$0xff] }
 0x254   :  { %2252 = vmatmul.bf16.gmra.mxu1 %v7192_v42 }
 0x255   :  { %4939 = vmatmul.msk.bf16.gmra.mxu2 %vm1287_vm0, %v7194_v8 }
 0x256   :  { %2590 = vmatmul.bf16.gmra.mxu3 %v5750_v24  ;;  %v82_v24 = vld [vmem:[%s9491_s0 + $0x1e8] sm:$0xff] }
 0x258   :  { %v1866_v45 = vpop.f32.mrf.mxu2  ;;  %v1530_v39 = vpop.f32.mrf.mxu0 }
 0x259   :  { %v1867_v27 = vadd.f32 %v1866_v45, %v1698_v6  ;;  %v2035_v26 = vpop.f32.mrf.mxu3  ;;  %v1531_v47 = vadd.f32 %v1530_v39, %v5942_v56  ;;  %v1699_v13 = vpop.f32.mrf.mxu1  ;;  %v89_v6 = vld [vmem:[%s9491_s0 + $0x220] sm:$0xff]  ;;  %v7225_v45 = vpack.c.bf16 %v88_v57, %v81_v9 }
 0x25b   :  { %v7205_v1 = vadd.f32 %v2035_v26, %v1867_v27  ;;  %v1700_v58 = vadd.f32 %v1699_v13, %v1531_v47  ;;  %9835 = vst [vmem:[#allocation148_spill] sm:$0xff] %v7225_v45  ;;  %v7227_v47 = vpack.c.bf16 %v89_v6, %v82_v24  ;;  %v7229_v13 = vpack.c.bf16 %v90_v60, %v83_v49 }
 0x25d   :  { %9834 = vst [vmem:[#allocation147_spill] sm:$0xff] %v7205_v1 }
 0x25e   :  { %9836 = vst [vmem:[#allocation149_spill] sm:$0xff] %v7227_v47 }
 0x25f   :  { %9837 = vst [vmem:[#allocation150_spill] sm:$0xff] %v7229_v13 }
 0x260   :  { %v1868_v34 = vpop.f32.mrf.mxu2  ;;  %v1533_v39 = vpop.f32.mrf.mxu0 }
 0x261   :  { %v1869_v27 = vadd.f32 %v1868_v34, %v1700_v58  ;;  %v2037_v26 = vpop.f32.mrf.mxu3  ;;  %v1534_v8 = vadd.f32 %v1533_v39, %v5942_v56  ;;  %v1702_v42 = vpop.f32.mrf.mxu1  ;;  %v104_v39 = vld [vmem:[%s9491_s0 + $0x298] sm:$0xff] }
 0x263   :  { %v7232_v11 = vadd.f32 %v2037_v26, %v1869_v27  ;;  %v1703_v1 = vadd.f32 %v1702_v42, %v1534_v8  ;;  %2088 = vmatmul.bf16.gmra.mxu0 %v7225_v45  ;;  %v95_v42 = vld [vmem:[%s9491_s0 + $0x250] sm:$0xff]  ;;  %v102_v8 = vld [vmem:[%s9491_s0 + $0x288] sm:$0xff]  ;;  %v97_v27 = vld [vmem:[%s9491_s0 + $0x260] sm:$0xff] }
 0x264   :  { %2257 = vmatmul.bf16.gmra.mxu1 %v7227_v47 }
 0x265   :  { %4940 = vmatmul.msk.bf16.gmra.mxu2 %vm1287_vm0, %v7229_v13 }
 0x266   :  { %2595 = vmatmul.bf16.gmra.mxu3 %v5786_v36  ;;  %v96_v36 = vld [vmem:[%s9491_s0 + $0x258] sm:$0xff] }
 0x268   :  { %v1871_v58 = vpop.f32.mrf.mxu2  ;;  %v1535_v57 = vpop.f32.mrf.mxu0 }
 0x269   :  { %v1872_v9 = vadd.f32 %v1871_v58, %v1703_v1  ;;  %v2040_v24 = vpop.f32.mrf.mxu3  ;;  %v1536_v6 = vadd.f32 %v1535_v57, %v5942_v56  ;;  %v1704_v49 = vpop.f32.mrf.mxu1  ;;  %v103_v1 = vld [vmem:[%s9491_s0 + $0x290] sm:$0xff]  ;;  %v7260_v58 = vpack.c.bf16 %v102_v8, %v95_v42 }
 0x26b   :  { %v7240_v60 = vadd.f32 %v2040_v24, %v1872_v9  ;;  %v1705_v34 = vadd.f32 %v1704_v49, %v1536_v6  ;;  %9839 = vst [vmem:[#allocation152_spill] sm:$0xff] %v7260_v58  ;;  %v7262_v6 = vpack.c.bf16 %v103_v1, %v96_v36  ;;  %v7264_v49 = vpack.c.bf16 %v104_v39, %v97_v27 }
 0x26d   :  { %9838 = vst [vmem:[#allocation151_spill] sm:$0xff] %v7240_v60 }
 0x26e   :  { %9840 = vst [vmem:[#allocation153_spill] sm:$0xff] %v7262_v6 }
 0x26f   :  { %9841 = vst [vmem:[#allocation154_spill] sm:$0xff] %v7264_v49 }
 0x270   :  { %v1873_v26 = vpop.f32.mrf.mxu2  ;;  %v1538_v57 = vpop.f32.mrf.mxu0 }
 0x271   :  { %v1874_v9 = vadd.f32 %v1873_v26, %v1705_v34  ;;  %v2042_v24 = vpop.f32.mrf.mxu3  ;;  %v1539_v13 = vadd.f32 %v1538_v57, %v5942_v56  ;;  %v1707_v47 = vpop.f32.mrf.mxu1  ;;  %v118_v57 = vld [vmem:[%s9491_s0 + $0x308] sm:$0xff] }
 0x273   :  { %v7267_v45 = vadd.f32 %v2042_v24, %v1874_v9  ;;  %v1708_v60 = vadd.f32 %v1707_v47, %v1539_v13  ;;  %2093 = vmatmul.bf16.gmra.mxu0 %v7260_v58  ;;  %v109_v47 = vld [vmem:[%s9491_s0 + $0x2c0] sm:$0xff]  ;;  %v116_v13 = vld [vmem:[%s9491_s0 + $0x2f8] sm:$0xff]  ;;  %v111_v9 = vld [vmem:[%s9491_s0 + $0x2d0] sm:$0xff] }
 0x274   :  { %2262 = vmatmul.bf16.gmra.mxu1 %v7262_v6 }
 0x275   :  { %4941 = vmatmul.msk.bf16.gmra.mxu2 %vm1287_vm0, %v7264_v49 }
 0x276   :  { %2600 = vmatmul.bf16.gmra.mxu3 %v5822_v52  ;;  %v110_v52 = vld [vmem:[%s9491_s0 + $0x2c8] sm:$0xff] }
 0x278   :  { %v1876_v34 = vpop.f32.mrf.mxu2  ;;  %v1540_v8 = vpop.f32.mrf.mxu0 }
 0x279   :  { %v1877_v42 = vadd.f32 %v1876_v34, %v1708_v60  ;;  %v2045_v36 = vpop.f32.mrf.mxu3  ;;  %v1541_v1 = vadd.f32 %v1540_v8, %v5942_v56  ;;  %v1709_v27 = vpop.f32.mrf.mxu1  ;;  %v117_v60 = vld [vmem:[%s9491_s0 + $0x300] sm:$0xff]  ;;  %v7295_v34 = vpack.c.bf16 %v116_v13, %v109_v47  ;;  %v4652_v47 = vld [vmem:[%s9490_s1 + $0xd8] sm:$0xf0] }
 0x27b   :  { %v7275_v39 = vadd.f32 %v2045_v36, %v1877_v42  ;;  %v1710_v26 = vadd.f32 %v1709_v27, %v1541_v1  ;;  %9843 = vst [vmem:[#allocation156_spill] sm:$0xff] %v7295_v34  ;;  %v7297_v1 = vpack.c.bf16 %v117_v60, %v110_v52  ;;  %v7299_v27 = vpack.c.bf16 %v118_v57, %v111_v9 }
 0x27d   :  { %9842 = vst [vmem:[#allocation155_spill] sm:$0xff] %v7275_v39 }
 0x27e   :  { %9844 = vst [vmem:[#allocation157_spill] sm:$0xff] %v7297_v1 }
 0x27f   :  { %9845 = vst [vmem:[#allocation158_spill] sm:$0xff] %v7299_v27 }
 0x280   :  { %v1878_v24 = vpop.f32.mrf.mxu2  ;;  %v1543_v8 = vpop.f32.mrf.mxu0 }
 0x281   :  { %v1879_v42 = vadd.f32 %v1878_v24, %v1710_v26  ;;  %v2047_v36 = vpop.f32.mrf.mxu3  ;;  %v1544_v49 = vadd.f32 %v1543_v8, %v5942_v56  ;;  %v1712_v6 = vpop.f32.mrf.mxu1  ;;  %v5090_v26 = vld [vmem:[%s9490_s1 + $0xd4] sm:$0xf] }
 0x282   :  { %v4655_v13 = vor.u32 %v5090_v26, %v4652_v47  ;;  %v123_v26 = vld [vmem:[%s9491_s0 + $0x330] sm:$0xff]  ;;  %v130_v47 = vld [vmem:[%s9491_s0 + $0x368] sm:$0xff] }
 0x283   :  { %v7302_v58 = vadd.f32 %v2047_v36, %v1879_v42  ;;  %v1713_v39 = vadd.f32 %v1712_v6, %v1544_v49  ;;  %2098 = vmatmul.bf16.gmra.mxu0 %v7295_v34  ;;  %v5106_v6 = vld [vmem:[%s9490_s1 + $0x154] sm:$0xf]  ;;  %v4716_v49 = vld [vmem:[%s9490_s1 + $0x158] sm:$0xf0] }
 0x284   :  { %2267 = vmatmul.bf16.gmra.mxu1 %v7297_v1  ;;  %v4719_v52 = vor.u32 %v5106_v6, %v4716_v49  ;;  %2738 = vmatpush.bf16.msra.mxu0 %v4655_v13  ;;  %v131_v13 = vld [vmem:[%s9491_s0 + $0x370] sm:$0xff]  ;;  %v125_v6 = vld [vmem:[%s9491_s0 + $0x340] sm:$0xff]  ;;  %v132_v49 = vld [vmem:[%s9491_s0 + $0x378] sm:$0xff] }
 0x285   :  { %4942 = vmatmul.msk.bf16.gmra.mxu2 %vm1287_vm0, %v7299_v27 }
 0x286   :  { %2605 = vmatmul.bf16.gmra.mxu3 %v5858_v4  ;;  %2907 = vmatpush.bf16.msra.mxu1 %v4719_v52 }
 0x288   :  { %v1881_v60 = vpop.f32.mrf.mxu2  ;;  %v1545_v57 = vpop.f32.mrf.mxu0 }
 0x289   :  { %v1882_v9 = vadd.f32 %v1881_v60, %v1713_v39  ;;  %v2050_v24 = vpop.f32.mrf.mxu3  ;;  %v1546_v42 = vadd.f32 %v1545_v57, %v5942_v56  ;;  %v1714_v8 = vpop.f32.mrf.mxu1  ;;  %v124_v39 = vld [vmem:[%s9491_s0 + $0x338] sm:$0xff]  ;;  %v7342_v60 = vpack.c.bf16 %v130_v47, %v123_v26  ;;  %v5142_v47 = vld [vmem:[%s9490_s1 + $0x274] sm:$0xf] }
 0x28a   :  { %v4796_v26 = vld [vmem:[%s9490_s1 + $0x1f8] sm:$0xf0] }
 0x28b   :  { %v7322_v4 = vadd.f32 %v2050_v24, %v1882_v9  ;;  %v1715_v36 = vadd.f32 %v1714_v8, %v1546_v42  ;;  %9847 = vst [vmem:[#allocation160_spill] sm:$0xff] %v7342_v60  ;;  %v7344_v42 = vpack.c.bf16 %v131_v13, %v124_v39  ;;  %v7346_v8 = vpack.c.bf16 %v132_v49, %v125_v6 }
 0x28d   :  { %9846 = vst [vmem:[#allocation159_spill] sm:$0xff] %v7322_v4 }
 0x28e   :  { %9848 = vst [vmem:[#allocation161_spill] sm:$0xff] %v7344_v42 }
 0x28f   :  { %9849 = vst [vmem:[#allocation162_spill] sm:$0xff] %v7346_v8 }
 0x290   :  { %v1883_v52 = vpop.f32.mrf.mxu2  ;;  %v1548_v57 = vpop.f32.mrf.mxu0 }
 0x291   :  { %v1884_v9 = vadd.f32 %v1883_v52, %v1715_v36  ;;  %v2052_v24 = vpop.f32.mrf.mxu3  ;;  %v1549_v27 = vadd.f32 %v1548_v57, %v5942_v56  ;;  %v1717_v1 = vpop.f32.mrf.mxu1  ;;  %v5126_v36 = vld [vmem:[%s9490_s1 + $0x1f4] sm:$0xf] }
 0x293   :  { %v7349_v34 = vadd.f32 %v2052_v24, %v1884_v9  ;;  %v1718_v4 = vadd.f32 %v1717_v1, %v1549_v27  ;;  %2103 = vmatmul.bf16.gmra.mxu0 %v7342_v60  ;;  %v4799_v1 = vor.u32 %v5126_v36, %v4796_v26  ;;  %v4860_v27 = vld [vmem:[%s9490_s1 + $0x278] sm:$0xf0]  ;;  %v139_v26 = vld [vmem:[%s9491_s0 + $0x3b0] sm:$0xff] }
 0x294   :  { %2272 = vmatmul.bf16.gmra.mxu1 %v7344_v42  ;;  %v4863_v39 = vor.u32 %v5142_v47, %v4860_v27  ;;  %v144_v36 = vld [vmem:[%s9491_s0 + $0x3d8] sm:$0xff]  ;;  %v146_v47 = vld [vmem:[%s9491_s0 + $0x3e8] sm:$0xff] }
 0x295   :  { %4943 = vmatmul.msk.bf16.gmra.mxu2 %vm1287_vm0, %v7346_v8 }
 0x296   :  { %2610 = vmatmul.bf16.gmra.mxu3 %v5906_v30  ;;  %3074 = vmatpush.bf16.msra.mxu2 %v4799_v1  ;;  %v137_v30 = vld [vmem:[%s9491_s0 + $0x3a0] sm:$0xff] }
 0x297   :  { %3243 = vmatpush.bf16.msra.mxu3 %v4863_v39  ;;  %v7389_v27 = vpack.c.bf16 %v144_v36, %v137_v30 }
 0x298   :  { %v1886_v13 = vpop.f32.mrf.mxu2  ;;  %v1550_v49 = vpop.f32.mrf.mxu0 }
 0x299   :  { %v1887_v6 = vadd.f32 %v1886_v13, %v1718_v4  ;;  %v2055_v52 = vpop.f32.mrf.mxu3  ;;  %v1551_v9 = vadd.f32 %v1550_v49, %v5942_v56  ;;  %v1719_v57 = vpop.f32.mrf.mxu1  ;;  %v138_v4 = vld [vmem:[%s9491_s0 + $0x3a8] sm:$0xff]  ;;  %v145_v56 = vld [vmem:[%s9491_s0 + $0x3e0] sm:$0xff]  ;;  %9850 = vst [vmem:[#allocation163_spill] sm:$0xff] %v7389_v27 }
 0x29a   :  { %v7391_v49 = vpack.c.bf16 %v145_v56, %v138_v4 }
 0x29b   :  { %v7369_v24 = vadd.f32 %v2055_v52, %v1887_v6  ;;  %v1720_v8 = vadd.f32 %v1719_v57, %v1551_v9  ;;  %v7393_v52 = vpack.c.bf16 %v146_v47, %v139_v26  ;;  %v151_v47 = vld [vmem:[%s9491_s0 + $0x410] sm:$0xff] }
 0x29c   :  { %9851 = vst [vmem:[#allocation164_spill] sm:$0xff] %v7391_v49 }
 0x29d   :  { %9852 = vst [vmem:[#allocation165_spill] sm:$0xff] %v7393_v52 }
 0x2a0   :  { %v1888_v1 = vpop.f32.mrf.mxu2  ;;  %v2069_v6 = vpop.f32.mrf.mxu0 }
 0x2a1   :  { %v1889_v39 = vadd.f32 %v1888_v1, %v1720_v8  ;;  %v2057_v13 = vpop.f32.mrf.mxu3  ;;  %v2070_v9 = vadd.f32 %v2069_v6, %v5973_v28  ;;  %v2238_v57 = vpop.f32.mrf.mxu1  ;;  %v158_v1 = vld [vmem:[%s9491_s0 + $0x448] sm:$0xff] }
 0x2a2   :  { %v7424_v6 = vpack.c.bf16 %v158_v1, %v151_v47 }
 0x2a3   :  { %v7396_v42 = vadd.f32 %v2057_v13, %v1889_v39  ;;  %v2239_v60 = vadd.f32 %v2238_v57, %v2070_v9  ;;  %2108 = vmatmul.bf16.gmra.mxu0 %v7389_v27  ;;  %v160_v39 = vld [vmem:[%s9491_s0 + $0x458] sm:$0xff] }
 0x2a4   :  { %2277 = vmatmul.bf16.gmra.mxu1 %v7391_v49 }
 0x2a5   :  { %9853 = vst [vmem:[#allocation166_spill] sm:$0xff] %v7396_v42  ;;  %4944 = vmatmul.msk.bf16.gmra.mxu2 %vm1287_vm0, %v7393_v52 }
 0x2a6   :  { %2615 = vmatmul.bf16.gmra.mxu3 %v5959_v2  ;;  %v152_v2 = vld [vmem:[%s9491_s0 + $0x418] sm:$0xff] }
 0x2a8   :  { %v2407_v8 = vpop.f32.mrf.mxu2  ;;  %v2071_v36 = vpop.f32.mrf.mxu0 }
 0x2a9   :  { %v2408_v30 = vadd.f32 %v2407_v8, %v2239_v60  ;;  %v7403_v4 = vpop.f32.mrf.mxu3  ;;  %v2072_v28 = vadd.f32 %v2071_v36, %v6008_v17  ;;  %v2240_v56 = vpop.f32.mrf.mxu1  ;;  %v159_v60 = vld [vmem:[%s9491_s0 + $0x450] sm:$0xff]  ;;  %v153_v17 = vld [vmem:[%s9491_s0 + $0x420] sm:$0xff] }
 0x2aa   :  { %9854 = vst [vmem:[#allocation167_spill] sm:$0xff] %v7403_v4  ;;  %v7428_v36 = vpack.c.bf16 %v159_v60, %v152_v2  ;;  %v174_v60 = vld [vmem:[%s9491_s0 + $0x4c8] sm:$0xff] }
 0x2ab   :  { %v2241_v26 = vadd.f32 %v2240_v56, %v2072_v28  ;;  %v7430_v28 = vpack.c.bf16 %v160_v39, %v153_v17  ;;  %v3750_v49 = vmax.f32 %v2408_v30, 0.0 }
 0x2ac   :  { %9855 = vst [vmem:[#allocation168_spill] sm:$0xff] %v7428_v36 }
 0x2ad   :  { %9856 = vst [vmem:[#allocation169_spill] sm:$0xff] %v7430_v28 }
 0x2b0   :  { %v2409_v13 = vpop.f32.mrf.mxu2  ;;  %v2074_v57 = vpop.f32.mrf.mxu0 }
 0x2b1   :  { %v2410_v9 = vadd.f32 %v2409_v13, %v2241_v26  ;;  %v7426_v8 = vpop.f32.mrf.mxu3  ;;  %v2075_v56 = vadd.f32 %v2074_v57, %v6015_v33  ;;  %v2243_v52 = vpop.f32.mrf.mxu1 }
 0x2b3   :  { %v3752_v27 = vmax.f32 %v2410_v9, 0.0  ;;  %v2244_v4 = vadd.f32 %v2243_v52, %v2075_v56  ;;  %2113 = vmatmul.bf16.gmra.mxu0 %v7424_v6 }
 0x2b4   :  { %2282 = vmatmul.bf16.gmra.mxu1 %v7428_v36 }
 0x2b5   :  { %v7434_v42 = vpack.c.bf16 %v3752_v27, %v3750_v49  ;;  %4945 = vmatmul.msk.bf16.gmra.mxu2 %vm1287_vm0, %v7430_v28  ;;  %v165_v27 = vld [vmem:[%s9491_s0 + $0x480] sm:$0xff]  ;;  %v172_v49 = vld [vmem:[%s9491_s0 + $0x4b8] sm:$0xff] }
 0x2b6   :  { %2620 = vmatmul.bf16.gmra.mxu3 %v5999_v51  ;;  %v166_v51 = vld [vmem:[%s9491_s0 + $0x488] sm:$0xff]  ;;  %v7461_v39 = vpack.c.bf16 %v172_v49, %v165_v27  ;;  %v5104_v49 = vld [vmem:[%s9490_s1 + $0x144] sm:$0xf] }
 0x2b7   :  { %9857 = vst [vmem:[#allocation170_spill] sm:$0xff] %v7434_v42  ;;  %v4644_v27 = vld [vmem:[%s9490_s1 + $0xc8] sm:$0xf0] }
 0x2b8   :  { %v2412_v26 = vpop.f32.mrf.mxu2  ;;  %v2076_v1 = vpop.f32.mrf.mxu0 }
 0x2b9   :  { %v2413_v47 = vadd.f32 %v2412_v26, %v2244_v4  ;;  %v7440_v2 = vpop.f32.mrf.mxu3  ;;  %v2077_v33 = vadd.f32 %v2076_v1, %v6050_v29  ;;  %v2245_v30 = vpop.f32.mrf.mxu1  ;;  %v173_v4 = vld [vmem:[%s9491_s0 + $0x4c0] sm:$0xff]  ;;  %v167_v29 = vld [vmem:[%s9491_s0 + $0x490] sm:$0xff] }
 0x2ba   :  { %v7465_v56 = vpack.c.bf16 %v173_v4, %v166_v51  ;;  %v7467_v26 = vpack.c.bf16 %v174_v60, %v167_v29  ;;  %v4708_v51 = vld [vmem:[%s9490_s1 + $0x148] sm:$0xf0] }
 0x2bb   :  { %v2246_v52 = vadd.f32 %v2245_v30, %v2077_v33  ;;  %v3754_v30 = vmax.f32 %v2413_v47, 0.0  ;;  %v4711_v4 = vor.u32 %v5104_v49, %v4708_v51 }
 0x2bc   :  { %9858 = vst [vmem:[#allocation171_spill] sm:$0xff] %v7465_v56 }
 0x2bd   :  { %9859 = vst [vmem:[#allocation172_spill] sm:$0xff] %v7467_v26  ;;  %2908 = vmatpush.bf16.msra.mxu1 %v4711_v4 }
 0x2c0   :  { %v2414_v17 = vpop.f32.mrf.mxu2  ;;  %v2079_v9 = vpop.f32.mrf.mxu0 }
 0x2c1   :  { %v2415_v13 = vadd.f32 %v2414_v17, %v2246_v52  ;;  %v7463_v57 = vpop.f32.mrf.mxu3  ;;  %v2080_v1 = vadd.f32 %v2079_v9, %v6069_v18  ;;  %v2248_v33 = vpop.f32.mrf.mxu1  ;;  %v5088_v52 = vld [vmem:[%s9490_s1 + $0xc4] sm:$0xf] }
 0x2c2   :  { %v4647_v47 = vor.u32 %v5088_v52, %v4644_v27  ;;  %v188_v52 = vld [vmem:[%s9491_s0 + $0x538] sm:$0xff] }
 0x2c3   :  { %v3756_v28 = vmax.f32 %v2415_v13, 0.0  ;;  %v2249_v36 = vadd.f32 %v2248_v33, %v2080_v1  ;;  %2118 = vmatmul.bf16.gmra.mxu0 %v7461_v39  ;;  %v179_v1 = vld [vmem:[%s9491_s0 + $0x4f0] sm:$0xff]  ;;  %v186_v33 = vld [vmem:[%s9491_s0 + $0x528] sm:$0xff] }
 0x2c4   :  { %2287 = vmatmul.bf16.gmra.mxu1 %v7465_v56  ;;  %2739 = vmatpush.bf16.msra.mxu0 %v4647_v47  ;;  %v7510_v47 = vpack.c.bf16 %v186_v33, %v179_v1 }
 0x2c5   :  { %4946 = vmatmul.msk.bf16.gmra.mxu2 %vm1287_vm0, %v7467_v26  ;;  %v7480_v18 = vpack.c.bf16 %v3756_v28, %v3754_v30  ;;  %v187_v30 = vld [vmem:[%s9491_s0 + $0x530] sm:$0xff] }
 0x2c6   :  { %2625 = vmatmul.bf16.gmra.mxu3 %v6041_v63 }
 0x2c7   :  { %9860 = vst [vmem:[#allocation173_spill] sm:$0xff] %v7480_v18  ;;  %v5124_v18 = vld [vmem:[%s9490_s1 + $0x1e4] sm:$0xf] }
 0x2c8   :  { %v2417_v29 = vpop.f32.mrf.mxu2  ;;  %v2081_v17 = vpop.f32.mrf.mxu0 }
 0x2c9   :  { %v2418_v60 = vadd.f32 %v2417_v29, %v2249_v36  ;;  %v7489_v13 = vpop.f32.mrf.mxu3  ;;  %v2082_v28 = vadd.f32 %v2081_v17, %v6104_v0  ;;  %v2250_v63 = vpop.f32.mrf.mxu1  ;;  %v180_v36 = vld [vmem:[%s9491_s0 + $0x4f8] sm:$0xff]  ;;  %v181_v0 = vld [vmem:[%s9491_s0 + $0x500] sm:$0xff] }
 0x2ca   :  { %v7514_v29 = vpack.c.bf16 %v187_v30, %v180_v36  ;;  %v7516_v17 = vpack.c.bf16 %v188_v52, %v181_v0  ;;  %v5140_v36 = vld [vmem:[%s9490_s1 + $0x264] sm:$0xf] }
 0x2cb   :  { %v2251_v9 = vadd.f32 %v2250_v63, %v2082_v28  ;;  %v3758_v26 = vmax.f32 %v2418_v60, 0.0 }
 0x2cc   :  { %9861 = vst [vmem:[#allocation174_spill] sm:$0xff] %v7514_v29 }
 0x2cd   :  { %9862 = vst [vmem:[#allocation175_spill] sm:$0xff] %v7516_v17 }
 0x2d0   :  { %v2419_v27 = vpop.f32.mrf.mxu2  ;;  %v2084_v51 = vpop.f32.mrf.mxu0 }
 0x2d1   :  { %v2420_v49 = vadd.f32 %v2419_v27, %v2251_v9  ;;  %v7512_v4 = vpop.f32.mrf.mxu3  ;;  %v2085_v28 = vadd.f32 %v2084_v51, %v6117_v43  ;;  %v2253_v63 = vpop.f32.mrf.mxu1  ;;  %v4788_v9 = vld [vmem:[%s9490_s1 + $0x1e8] sm:$0xf0] }
 0x2d2   :  { %v4791_v33 = vor.u32 %v5124_v18, %v4788_v9  ;;  %v4852_v43 = vld [vmem:[%s9490_s1 + $0x268] sm:$0xf0] }
 0x2d3   :  { %v3760_v56 = vmax.f32 %v2420_v49, 0.0  ;;  %v2254_v1 = vadd.f32 %v2253_v63, %v2085_v28  ;;  %2123 = vmatmul.bf16.gmra.mxu0 %v7510_v47  ;;  %v4855_v60 = vor.u32 %v5140_v36, %v4852_v43  ;;  %v193_v63 = vld [vmem:[%s9491_s0 + $0x560] sm:$0xff]  ;;  %v202_v9 = vld [vmem:[%s9491_s0 + $0x5a8] sm:$0xff] }
 0x2d4   :  { %2292 = vmatmul.bf16.gmra.mxu1 %v7514_v29  ;;  %3075 = vmatpush.bf16.msra.mxu2 %v4791_v33 }
 0x2d5   :  { %4947 = vmatmul.msk.bf16.gmra.mxu2 %vm1287_vm0, %v7516_v17  ;;  %v7535_v30 = vpack.c.bf16 %v3760_v56, %v3758_v26  ;;  %3244 = vmatpush.bf16.msra.mxu3 %v4855_v60  ;;  %v200_v56 = vld [vmem:[%s9491_s0 + $0x598] sm:$0xff]  ;;  %v201_v26 = vld [vmem:[%s9491_s0 + $0x5a0] sm:$0xff] }
 0x2d6   :  { %2630 = vmatmul.bf16.gmra.mxu3 %v6095_v50  ;;  %v194_v50 = vld [vmem:[%s9491_s0 + $0x568] sm:$0xff]  ;;  %v7559_v33 = vpack.c.bf16 %v200_v56, %v193_v63 }
 0x2d7   :  { %9863 = vst [vmem:[#allocation176_spill] sm:$0xff] %v7535_v30 }
 0x2d8   :  { %v2422_v18 = vpop.f32.mrf.mxu2  ;;  %v2086_v52 = vpop.f32.mrf.mxu0 }
 0x2d9   :  { %v2423_v0 = vadd.f32 %v2422_v18, %v2254_v1  ;;  %v7538_v27 = vpop.f32.mrf.mxu3  ;;  %v2087_v49 = vadd.f32 %v2086_v52, %v6152_v12  ;;  %v2255_v51 = vpop.f32.mrf.mxu1  ;;  %v195_v12 = vld [vmem:[%s9491_s0 + $0x570] sm:$0xff]  ;;  %v7563_v18 = vpack.c.bf16 %v201_v26, %v194_v50 }
 0x2da   :  { %v7565_v52 = vpack.c.bf16 %v202_v9, %v195_v12  ;;  %v207_v9 = vld [vmem:[%s9491_s0 + $0x5d0] sm:$0xff] }
 0x2db   :  { %v2256_v28 = vadd.f32 %v2255_v51, %v2087_v49  ;;  %9864 = vst [vmem:[#allocation177_spill] sm:$0xff] %v7563_v18  ;;  %v3762_v17 = vmax.f32 %v2423_v0, 0.0 }
 0x2dc   :  { %9865 = vst [vmem:[#allocation178_spill] sm:$0xff] %v7565_v52 }
 0x2e0   :  { %v2424_v1 = vpop.f32.mrf.mxu2  ;;  %v2089_v43 = vpop.f32.mrf.mxu0 }
 0x2e1   :  { %v2425_v36 = vadd.f32 %v2424_v1, %v2256_v28  ;;  %v7561_v60 = vpop.f32.mrf.mxu3  ;;  %v2090_v49 = vadd.f32 %v2089_v43, %v6159_v21  ;;  %v2258_v51 = vpop.f32.mrf.mxu1 }
 0x2e3   :  { %v3764_v29 = vmax.f32 %v2425_v36, 0.0  ;;  %v2259_v30 = vadd.f32 %v2258_v51, %v2090_v49  ;;  %2128 = vmatmul.bf16.gmra.mxu0 %v7559_v33 }
 0x2e4   :  { %2297 = vmatmul.bf16.gmra.mxu1 %v7563_v18 }
 0x2e5   :  { %4948 = vmatmul.msk.bf16.gmra.mxu2 %vm1287_vm0, %v7565_v52  ;;  %v7572_v28 = vpack.c.bf16 %v3764_v29, %v3762_v17  ;;  %v214_v29 = vld [vmem:[%s9491_s0 + $0x608] sm:$0xff]  ;;  %v215_v17 = vld [vmem:[%s9491_s0 + $0x610] sm:$0xff] }
 0x2e6   :  { %2635 = vmatmul.bf16.gmra.mxu3 %v6143_v19  ;;  %v208_v19 = vld [vmem:[%s9491_s0 + $0x5d8] sm:$0xff]  ;;  %v7596_v36 = vpack.c.bf16 %v214_v29, %v207_v9 }
 0x2e7   :  { %9866 = vst [vmem:[#allocation179_spill] sm:$0xff] %v7572_v28 }
 0x2e8   :  { %v2427_v63 = vpop.f32.mrf.mxu2  ;;  %v2091_v50 = vpop.f32.mrf.mxu0 }
 0x2e9   :  { %v2428_v56 = vadd.f32 %v2427_v63, %v2259_v30  ;;  %v7575_v26 = vpop.f32.mrf.mxu3  ;;  %v2092_v21 = vadd.f32 %v2091_v50, %v6194_v31  ;;  %v2260_v0 = vpop.f32.mrf.mxu1  ;;  %v209_v31 = vld [vmem:[%s9491_s0 + $0x5e0] sm:$0xff]  ;;  %v216_v30 = vld [vmem:[%s9491_s0 + $0x618] sm:$0xff]  ;;  %v7600_v63 = vpack.c.bf16 %v215_v17, %v208_v19 }
 0x2ea   :  { %v7602_v50 = vpack.c.bf16 %v216_v30, %v209_v31  ;;  %v221_v30 = vld [vmem:[%s9491_s0 + $0x640] sm:$0xff] }
 0x2eb   :  { %v2261_v12 = vadd.f32 %v2260_v0, %v2092_v21  ;;  %9867 = vst [vmem:[#allocation180_spill] sm:$0xff] %v7600_v63  ;;  %v3766_v52 = vmax.f32 %v2428_v56, 0.0 }
 0x2ec   :  { %9868 = vst [vmem:[#allocation181_spill] sm:$0xff] %v7602_v50 }
 0x2f0   :  { %v2429_v1 = vpop.f32.mrf.mxu2  ;;  %v2094_v49 = vpop.f32.mrf.mxu0 }
 0x2f1   :  { %v2430_v43 = vadd.f32 %v2429_v1, %v2261_v12  ;;  %v7598_v51 = vpop.f32.mrf.mxu3  ;;  %v2095_v21 = vadd.f32 %v2094_v49, %v6201_v20  ;;  %v2263_v0 = vpop.f32.mrf.mxu1 }
 0x2f3   :  { %v3768_v18 = vmax.f32 %v2430_v43, 0.0  ;;  %v2264_v28 = vadd.f32 %v2263_v0, %v2095_v21  ;;  %2133 = vmatmul.bf16.gmra.mxu0 %v7596_v36 }
 0x2f4   :  { %2302 = vmatmul.bf16.gmra.mxu1 %v7600_v63 }
 0x2f5   :  { %4949 = vmatmul.msk.bf16.gmra.mxu2 %vm1287_vm0, %v7602_v50  ;;  %v7609_v12 = vpack.c.bf16 %v3768_v18, %v3766_v52  ;;  %v228_v18 = vld [vmem:[%s9491_s0 + $0x678] sm:$0xff]  ;;  %v229_v52 = vld [vmem:[%s9491_s0 + $0x680] sm:$0xff] }
 0x2f6   :  { %2640 = vmatmul.bf16.gmra.mxu3 %v6185_v46  ;;  %v222_v46 = vld [vmem:[%s9491_s0 + $0x648] sm:$0xff]  ;;  %v7633_v43 = vpack.c.bf16 %v228_v18, %v221_v30  ;;  %v4636_v30 = vld [vmem:[%s9490_s1 + $0xb8] sm:$0xf0]  ;;  %v5102_v18 = vld [vmem:[%s9490_s1 + $0x134] sm:$0xf] }
 0x2f7   :  { %9869 = vst [vmem:[#allocation182_spill] sm:$0xff] %v7609_v12 }
 0x2f8   :  { %v2432_v9 = vpop.f32.mrf.mxu2  ;;  %v2096_v19 = vpop.f32.mrf.mxu0 }
 0x2f9   :  { %v2433_v29 = vadd.f32 %v2432_v9, %v2264_v28  ;;  %v7612_v17 = vpop.f32.mrf.mxu3  ;;  %v2097_v20 = vadd.f32 %v2096_v19, %v6236_v5  ;;  %v2265_v56 = vpop.f32.mrf.mxu1  ;;  %v223_v5 = vld [vmem:[%s9491_s0 + $0x650] sm:$0xff]  ;;  %v230_v28 = vld [vmem:[%s9491_s0 + $0x688] sm:$0xff]  ;;  %v7637_v9 = vpack.c.bf16 %v229_v52, %v222_v46  ;;  %v4700_v46 = vld [vmem:[%s9490_s1 + $0x138] sm:$0xf0] }
 0x2fa   :  { %v7639_v19 = vpack.c.bf16 %v230_v28, %v223_v5  ;;  %v4703_v52 = vor.u32 %v5102_v18, %v4700_v46 }
 0x2fb   :  { %v2266_v31 = vadd.f32 %v2265_v56, %v2097_v20  ;;  %9870 = vst [vmem:[#allocation183_spill] sm:$0xff] %v7637_v9  ;;  %v3770_v50 = vmax.f32 %v2433_v29, 0.0 }
 0x2fc   :  { %9871 = vst [vmem:[#allocation184_spill] sm:$0xff] %v7639_v19  ;;  %2909 = vmatpush.bf16.msra.mxu1 %v4703_v52 }
 0x300   :  { %v2434_v1 = vpop.f32.mrf.mxu2  ;;  %v2099_v21 = vpop.f32.mrf.mxu0 }
 0x301   :  { %v2435_v49 = vadd.f32 %v2434_v1, %v2266_v31  ;;  %v7635_v0 = vpop.f32.mrf.mxu3  ;;  %v2100_v20 = vadd.f32 %v2099_v21, %v6255_v14  ;;  %v2268_v56 = vpop.f32.mrf.mxu1  ;;  %v5086_v31 = vld [vmem:[%s9490_s1 + $0xb4] sm:$0xf] }
 0x302   :  { %v4639_v29 = vor.u32 %v5086_v31, %v4636_v30  ;;  %v235_v21 = vld [vmem:[%s9491_s0 + $0x6b0] sm:$0xff]  ;;  %v244_v31 = vld [vmem:[%s9491_s0 + $0x6f8] sm:$0xff] }
 0x303   :  { %v3772_v63 = vmax.f32 %v2435_v49, 0.0  ;;  %v2269_v12 = vadd.f32 %v2268_v56, %v2100_v20  ;;  %2138 = vmatmul.bf16.gmra.mxu0 %v7633_v43  ;;  %v242_v20 = vld [vmem:[%s9491_s0 + $0x6e8] sm:$0xff]  ;;  %v243_v56 = vld [vmem:[%s9491_s0 + $0x6f0] sm:$0xff] }
 0x304   :  { %2307 = vmatmul.bf16.gmra.mxu1 %v7637_v9  ;;  %2740 = vmatpush.bf16.msra.mxu0 %v4639_v29  ;;  %v7682_v29 = vpack.c.bf16 %v242_v20, %v235_v21 }
 0x305   :  { %4950 = vmatmul.msk.bf16.gmra.mxu2 %vm1287_vm0, %v7639_v19  ;;  %v7652_v14 = vpack.c.bf16 %v3772_v63, %v3770_v50 }
 0x306   :  { %2645 = vmatmul.bf16.gmra.mxu3 %v6227_v23 }
 0x307   :  { %9872 = vst [vmem:[#allocation185_spill] sm:$0xff] %v7652_v14  ;;  %v5122_v14 = vld [vmem:[%s9490_s1 + $0x1d4] sm:$0xf] }
 0x308   :  { %v2437_v5 = vpop.f32.mrf.mxu2  ;;  %v2101_v1 = vpop.f32.mrf.mxu0 }
 0x309   :  { %v2438_v28 = vadd.f32 %v2437_v5, %v2269_v12  ;;  %v7661_v49 = vpop.f32.mrf.mxu3  ;;  %v2102_v63 = vadd.f32 %v2101_v1, %v6290_v53  ;;  %v2270_v23 = vpop.f32.mrf.mxu1  ;;  %v236_v12 = vld [vmem:[%s9491_s0 + $0x6b8] sm:$0xff]  ;;  %v237_v53 = vld [vmem:[%s9491_s0 + $0x6c0] sm:$0xff] }
 0x30a   :  { %v7686_v5 = vpack.c.bf16 %v243_v56, %v236_v12  ;;  %v7688_v1 = vpack.c.bf16 %v244_v31, %v237_v53  ;;  %v5138_v12 = vld [vmem:[%s9490_s1 + $0x254] sm:$0xf] }
 0x30b   :  { %v2271_v50 = vadd.f32 %v2270_v23, %v2102_v63  ;;  %v3774_v19 = vmax.f32 %v2438_v28, 0.0 }
 0x30c   :  { %9873 = vst [vmem:[#allocation186_spill] sm:$0xff] %v7686_v5 }
 0x30d   :  { %9874 = vst [vmem:[#allocation187_spill] sm:$0xff] %v7688_v1 }
 0x310   :  { %v2439_v30 = vpop.f32.mrf.mxu2  ;;  %v2104_v46 = vpop.f32.mrf.mxu0 }
 0x311   :  { %v2440_v18 = vadd.f32 %v2439_v30, %v2271_v50  ;;  %v7684_v52 = vpop.f32.mrf.mxu3  ;;  %v2105_v63 = vadd.f32 %v2104_v46, %v6303_v3  ;;  %v2273_v23 = vpop.f32.mrf.mxu1  ;;  %v4780_v50 = vld [vmem:[%s9490_s1 + $0x1d8] sm:$0xf0] }
 0x312   :  { %v4783_v20 = vor.u32 %v5122_v14, %v4780_v50  ;;  %v4844_v3 = vld [vmem:[%s9490_s1 + $0x258] sm:$0xf0]  ;;  %v258_v50 = vld [vmem:[%s9491_s0 + $0x768] sm:$0xff] }
 0x313   :  { %v3776_v9 = vmax.f32 %v2440_v18, 0.0  ;;  %v2274_v21 = vadd.f32 %v2273_v23, %v2105_v63  ;;  %2143 = vmatmul.bf16.gmra.mxu0 %v7682_v29  ;;  %v4847_v28 = vor.u32 %v5138_v12, %v4844_v3  ;;  %v249_v23 = vld [vmem:[%s9491_s0 + $0x720] sm:$0xff] }
 0x314   :  { %2312 = vmatmul.bf16.gmra.mxu1 %v7686_v5  ;;  %3076 = vmatpush.bf16.msra.mxu2 %v4783_v20 }
 0x315   :  { %4951 = vmatmul.msk.bf16.gmra.mxu2 %vm1287_vm0, %v7688_v1  ;;  %v7707_v56 = vpack.c.bf16 %v3776_v9, %v3774_v19  ;;  %3245 = vmatpush.bf16.msra.mxu3 %v4847_v28  ;;  %v256_v9 = vld [vmem:[%s9491_s0 + $0x758] sm:$0xff]  ;;  %v257_v19 = vld [vmem:[%s9491_s0 + $0x760] sm:$0xff] }
 0x316   :  { %2650 = vmatmul.bf16.gmra.mxu3 %v6281_v44  ;;  %v250_v44 = vld [vmem:[%s9491_s0 + $0x728] sm:$0xff]  ;;  %v7731_v20 = vpack.c.bf16 %v256_v9, %v249_v23 }
 0x317   :  { %9875 = vst [vmem:[#allocation188_spill] sm:$0xff] %v7707_v56 }
 0x318   :  { %v2442_v14 = vpop.f32.mrf.mxu2  ;;  %v2106_v31 = vpop.f32.mrf.mxu0 }
 0x319   :  { %v2443_v53 = vadd.f32 %v2442_v14, %v2274_v21  ;;  %v7710_v30 = vpop.f32.mrf.mxu3  ;;  %v2107_v18 = vadd.f32 %v2106_v31, %v6338_v37  ;;  %v2275_v46 = vpop.f32.mrf.mxu1  ;;  %v251_v37 = vld [vmem:[%s9491_s0 + $0x730] sm:$0xff]  ;;  %v7735_v14 = vpack.c.bf16 %v257_v19, %v250_v44 }
 0x31a   :  { %v7737_v31 = vpack.c.bf16 %v258_v50, %v251_v37  ;;  %v263_v50 = vld [vmem:[%s9491_s0 + $0x790] sm:$0xff] }
 0x31b   :  { %v2276_v63 = vadd.f32 %v2275_v46, %v2107_v18  ;;  %9876 = vst [vmem:[#allocation189_spill] sm:$0xff] %v7735_v14  ;;  %v3778_v1 = vmax.f32 %v2443_v53, 0.0 }
 0x31c   :  { %9877 = vst [vmem:[#allocation190_spill] sm:$0xff] %v7737_v31 }
 0x320   :  { %v2444_v21 = vpop.f32.mrf.mxu2  ;;  %v2109_v3 = vpop.f32.mrf.mxu0 }
 0x321   :  { %v2445_v12 = vadd.f32 %v2444_v21, %v2276_v63  ;;  %v7733_v28 = vpop.f32.mrf.mxu3  ;;  %v2110_v18 = vadd.f32 %v2109_v3, %v6345_v35  ;;  %v2278_v46 = vpop.f32.mrf.mxu1 }
 0x323   :  { %v3780_v5 = vmax.f32 %v2445_v12, 0.0  ;;  %v2279_v56 = vadd.f32 %v2278_v46, %v2110_v18  ;;  %2148 = vmatmul.bf16.gmra.mxu0 %v7731_v20 }
 0x324   :  { %2317 = vmatmul.bf16.gmra.mxu1 %v7735_v14 }
 0x325   :  { %4952 = vmatmul.msk.bf16.gmra.mxu2 %vm1287_vm0, %v7737_v31  ;;  %v7744_v63 = vpack.c.bf16 %v3780_v5, %v3778_v1  ;;  %v270_v5 = vld [vmem:[%s9491_s0 + $0x7c8] sm:$0xff]  ;;  %v271_v1 = vld [vmem:[%s9491_s0 + $0x7d0] sm:$0xff] }
 0x326   :  { %2655 = vmatmul.bf16.gmra.mxu3 %v6329_v32  ;;  %v264_v32 = vld [vmem:[%s9491_s0 + $0x798] sm:$0xff]  ;;  %v7768_v12 = vpack.c.bf16 %v270_v5, %v263_v50 }
 0x327   :  { %9878 = vst [vmem:[#allocation191_spill] sm:$0xff] %v7744_v63 }
 0x328   :  { %v2447_v23 = vpop.f32.mrf.mxu2  ;;  %v2111_v44 = vpop.f32.mrf.mxu0 }
 0x329   :  { %v2448_v9 = vadd.f32 %v2447_v23, %v2279_v56  ;;  %v7747_v19 = vpop.f32.mrf.mxu3  ;;  %v2112_v35 = vadd.f32 %v2111_v44, %v6380_v25  ;;  %v2280_v53 = vpop.f32.mrf.mxu1  ;;  %v265_v25 = vld [vmem:[%s9491_s0 + $0x7a0] sm:$0xff]  ;;  %v272_v56 = vld [vmem:[%s9491_s0 + $0x7d8] sm:$0xff]  ;;  %v7772_v23 = vpack.c.bf16 %v271_v1, %v264_v32 }
 0x32a   :  { %v7774_v44 = vpack.c.bf16 %v272_v56, %v265_v25  ;;  %v277_v56 = vld [vmem:[%s9491_s0 + $0x800] sm:$0xff] }
 0x32b   :  { %v2281_v37 = vadd.f32 %v2280_v53, %v2112_v35  ;;  %9879 = vst [vmem:[#allocation192_spill] sm:$0xff] %v7772_v23  ;;  %v3782_v31 = vmax.f32 %v2448_v9, 0.0 }
 0x32c   :  { %9880 = vst [vmem:[#allocation193_spill] sm:$0xff] %v7774_v44 }
 0x330   :  { %v2449_v21 = vpop.f32.mrf.mxu2  ;;  %v2114_v18 = vpop.f32.mrf.mxu0 }
 0x331   :  { %v2450_v3 = vadd.f32 %v2449_v21, %v2281_v37  ;;  %v7770_v46 = vpop.f32.mrf.mxu3  ;;  %v2115_v35 = vadd.f32 %v2114_v18, %v6387_v15  ;;  %v2283_v53 = vpop.f32.mrf.mxu1 }
 0x333   :  { %v3784_v14 = vmax.f32 %v2450_v3, 0.0  ;;  %v2284_v63 = vadd.f32 %v2283_v53, %v2115_v35  ;;  %2153 = vmatmul.bf16.gmra.mxu0 %v7768_v12 }
 0x334   :  { %2322 = vmatmul.bf16.gmra.mxu1 %v7772_v23 }
 0x335   :  { %4953 = vmatmul.msk.bf16.gmra.mxu2 %vm1287_vm0, %v7774_v44  ;;  %v7781_v37 = vpack.c.bf16 %v3784_v14, %v3782_v31  ;;  %v284_v14 = vld [vmem:[%s9491_s0 + $0x838] sm:$0xff]  ;;  %v285_v31 = vld [vmem:[%s9491_s0 + $0x840] sm:$0xff] }
 0x336   :  { %2660 = vmatmul.bf16.gmra.mxu3 %v6371_v41  ;;  %v278_v41 = vld [vmem:[%s9491_s0 + $0x808] sm:$0xff]  ;;  %v7805_v3 = vpack.c.bf16 %v284_v14, %v277_v56  ;;  %v5100_v14 = vld [vmem:[%s9490_s1 + $0x124] sm:$0xf] }
 0x337   :  { %9881 = vst [vmem:[#allocation194_spill] sm:$0xff] %v7781_v37  ;;  %v4628_v56 = vld [vmem:[%s9490_s1 + $0xa8] sm:$0xf0] }
 0x338   :  { %v2452_v50 = vpop.f32.mrf.mxu2  ;;  %v2116_v32 = vpop.f32.mrf.mxu0 }
 0x339   :  { %v2453_v5 = vadd.f32 %v2452_v50, %v2284_v63  ;;  %v7784_v1 = vpop.f32.mrf.mxu3  ;;  %v2117_v15 = vadd.f32 %v2116_v32, %v6422_v7  ;;  %v2285_v9 = vpop.f32.mrf.mxu1  ;;  %v279_v7 = vld [vmem:[%s9491_s0 + $0x810] sm:$0xff]  ;;  %v286_v63 = vld [vmem:[%s9491_s0 + $0x848] sm:$0xff]  ;;  %v7809_v50 = vpack.c.bf16 %v285_v31, %v278_v41 }
 0x33a   :  { %v7811_v32 = vpack.c.bf16 %v286_v63, %v279_v7  ;;  %v4692_v41 = vld [vmem:[%s9490_s1 + $0x128] sm:$0xf0] }
 0x33b   :  { %v2286_v25 = vadd.f32 %v2285_v9, %v2117_v15  ;;  %9882 = vst [vmem:[#allocation195_spill] sm:$0xff] %v7809_v50  ;;  %v3786_v44 = vmax.f32 %v2453_v5, 0.0  ;;  %v4695_v31 = vor.u32 %v5100_v14, %v4692_v41 }
 0x33c   :  { %9883 = vst [vmem:[#allocation196_spill] sm:$0xff] %v7811_v32 }
 0x33d   :  { %2910 = vmatpush.bf16.msra.mxu1 %v4695_v31 }
 0x340   :  { %v2454_v21 = vpop.f32.mrf.mxu2  ;;  %v2119_v35 = vpop.f32.mrf.mxu0 }
 0x341   :  { %v2455_v18 = vadd.f32 %v2454_v21, %v2286_v25  ;;  %v7807_v53 = vpop.f32.mrf.mxu3  ;;  %v2120_v15 = vadd.f32 %v2119_v35, %v6441_v22  ;;  %v2288_v9 = vpop.f32.mrf.mxu1  ;;  %v5084_v25 = vld [vmem:[%s9490_s1 + $0xa4] sm:$0xf]  ;;  %v291_v35 = vld [vmem:[%s9491_s0 + $0x870] sm:$0xff] }
 0x342   :  { %v4631_v5 = vor.u32 %v5084_v25, %v4628_v56  ;;  %v300_v25 = vld [vmem:[%s9491_s0 + $0x8b8] sm:$0xff] }
 0x343   :  { %v3788_v23 = vmax.f32 %v2455_v18, 0.0  ;;  %v2289_v37 = vadd.f32 %v2288_v9, %v2120_v15  ;;  %2158 = vmatmul.bf16.gmra.mxu0 %v7805_v3  ;;  %v298_v15 = vld [vmem:[%s9491_s0 + $0x8a8] sm:$0xff]  ;;  %v299_v9 = vld [vmem:[%s9491_s0 + $0x8b0] sm:$0xff] }
 0x344   :  { %2327 = vmatmul.bf16.gmra.mxu1 %v7809_v50  ;;  %2741 = vmatpush.bf16.msra.mxu0 %v4631_v5  ;;  %v7854_v5 = vpack.c.bf16 %v298_v15, %v291_v35 }
 0x345   :  { %4954 = vmatmul.msk.bf16.gmra.mxu2 %vm1287_vm0, %v7811_v32  ;;  %v7824_v22 = vpack.c.bf16 %v3788_v23, %v3786_v44 }
 0x346   :  { %2665 = vmatmul.bf16.gmra.mxu3 %v6413_v10  ;;  %9885 = vst [vmem:[#allocation198_spill] sm:$0xff] %v7854_v5 }
 0x347   :  { %9884 = vst [vmem:[#allocation197_spill] sm:$0xff] %v7824_v22  ;;  %v5120_v22 = vld [vmem:[%s9490_s1 + $0x1c4] sm:$0xf] }
 0x348   :  { %v2457_v7 = vpop.f32.mrf.mxu2  ;;  %v2121_v21 = vpop.f32.mrf.mxu0 }
 0x349   :  { %v2458_v63 = vadd.f32 %v2457_v7, %v2289_v37  ;;  %v7833_v18 = vpop.f32.mrf.mxu3  ;;  %v2122_v23 = vadd.f32 %v2121_v21, %v6476_v59  ;;  %v2290_v10 = vpop.f32.mrf.mxu1  ;;  %v292_v37 = vld [vmem:[%s9491_s0 + $0x878] sm:$0xff]  ;;  %v293_v59 = vld [vmem:[%s9491_s0 + $0x880] sm:$0xff] }
 0x34a   :  { %v7858_v7 = vpack.c.bf16 %v299_v9, %v292_v37  ;;  %v7860_v21 = vpack.c.bf16 %v300_v25, %v293_v59  ;;  %v5136_v37 = vld [vmem:[%s9490_s1 + $0x244] sm:$0xf]  ;;  %v9889_v59 = vld [vmem:[#allocation59_spill] sm:$0xff] }
 0x34b   :  { %v2291_v44 = vadd.f32 %v2290_v10, %v2122_v23  ;;  %v3790_v32 = vmax.f32 %v2458_v63, 0.0 }
 0x34c   :  { %9886 = vst [vmem:[#allocation199_spill] sm:$0xff] %v7858_v7 }
 0x34d   :  { %9887 = vst [vmem:[#allocation200_spill] sm:$0xff] %v7860_v21 }
 0x350   :  { %v2459_v56 = vpop.f32.mrf.mxu2  ;;  %v2124_v41 = vpop.f32.mrf.mxu0 }
 0x351   :  { %v2460_v14 = vadd.f32 %v2459_v56, %v2291_v44  ;;  %v7856_v31 = vpop.f32.mrf.mxu3  ;;  %v2125_v23 = vadd.f32 %v2124_v41, %v6489_v62  ;;  %v2293_v10 = vpop.f32.mrf.mxu1  ;;  %v4772_v44 = vld [vmem:[%s9490_s1 + $0x1c8] sm:$0xf0] }
 0x352   :  { %v4775_v15 = vor.u32 %v5120_v22, %v4772_v44  ;;  %v4836_v62 = vld [vmem:[%s9490_s1 + $0x248] sm:$0xf0] }
 0x353   :  { %v3792_v50 = vmax.f32 %v2460_v14, 0.0  ;;  %v2294_v35 = vadd.f32 %v2293_v10, %v2125_v23  ;;  %2163 = vmatmul.bf16.gmra.mxu0 %v7854_v5  ;;  %v4839_v63 = vor.u32 %v5136_v37, %v4836_v62  ;;  %v9891_v41 = vld [vmem:[#allocation67_spill] sm:$0xff] }
 0x354   :  { %2332 = vmatmul.bf16.gmra.mxu1 %v7858_v7  ;;  %3077 = vmatpush.bf16.msra.mxu2 %v4775_v15  ;;  %v307_v15 = vld [vmem:[%s9491_s0 + $0x8f0] sm:$0xff]  ;;  %v314_v37 = vld [vmem:[%s9491_s0 + $0x928] sm:$0xff] }
 0x355   :  { %4955 = vmatmul.msk.bf16.gmra.mxu2 %vm1287_vm0, %v7860_v21  ;;  %v7879_v9 = vpack.c.bf16 %v3792_v50, %v3790_v32  ;;  %3246 = vmatpush.bf16.msra.mxu3 %v4839_v63  ;;  %v305_v21 = vld [vmem:[%s9491_s0 + $0x8e0] sm:$0xff]  ;;  %v312_v50 = vld [vmem:[%s9491_s0 + $0x918] sm:$0xff]  ;;  %v306_v32 = vld [vmem:[%s9491_s0 + $0x8e8] sm:$0xff] }
 0x356   :  { %2670 = vmatmul.bf16.gmra.mxu3 %v9889_v59  ;;  %v7903_v63 = vpack.c.bf16 %v312_v50, %v305_v21 }
 0x357   :  { %9888 = vst [vmem:[#allocation201_spill] sm:$0xff] %v7879_v9 }
 0x358   :  { %v2462_v22 = vpop.f32.mrf.mxu2  ;;  %v2126_v56 = vpop.f32.mrf.mxu0  ;;  %9892 = vst [vmem:[#allocation67_spill] sm:$0xff] %v7903_v63 }
 0x359   :  { %v2463_v25 = vadd.f32 %v2462_v22, %v2294_v35  ;;  %v7882_v14 = vpop.f32.mrf.mxu3  ;;  %v2127_v23 = vadd.f32 %v2126_v56, %v9891_v41  ;;  %v2295_v10 = vpop.f32.mrf.mxu1  ;;  %v313_v35 = vld [vmem:[%s9491_s0 + $0x920] sm:$0xff] }
 0x35a   :  { %9890 = vst [vmem:[#allocation59_spill] sm:$0xff] %v7882_v14  ;;  %v7907_v41 = vpack.c.bf16 %v313_v35, %v306_v32 }
 0x35b   :  { %v2296_v44 = vadd.f32 %v2295_v10, %v2127_v23  ;;  %v7909_v23 = vpack.c.bf16 %v314_v37, %v307_v15  ;;  %v9896_v10 = vld [vmem:[#allocation68_spill] sm:$0xff]  ;;  %v3794_v42 = vmax.f32 %v2463_v25, 0.0  ;;  %v9900_v37 = vld [vmem:[#allocation73_spill] sm:$0xff] }
 0x35c   :  { %9894 = vst [vmem:[#allocation203_spill] sm:$0xff] %v7907_v41 }
 0x35d   :  { %9895 = vst [vmem:[#allocation204_spill] sm:$0xff] %v7909_v23 }
 0x360   :  { %v2464_v62 = vpop.f32.mrf.mxu2  ;;  %v2129_v22 = vpop.f32.mrf.mxu0 }
 0x361   :  { %v2465_v59 = vadd.f32 %v2464_v62, %v2296_v44  ;;  %v7905_v56 = vpop.f32.mrf.mxu3  ;;  %v2130_v7 = vadd.f32 %v2129_v22, %v9896_v10  ;;  %v2298_v9 = vpop.f32.mrf.mxu1  ;;  %v9898_v44 = vld [vmem:[#allocation63_spill] sm:$0xff]  ;;  %v328_v22 = vld [vmem:[%s9491_s0 + $0x998] sm:$0xff] }
 0x362   :  { %9893 = vst [vmem:[#allocation202_spill] sm:$0xff] %v7905_v56 }
 0x363   :  { %v3796_v5 = vmax.f32 %v2465_v59, 0.0  ;;  %v2299_v14 = vadd.f32 %v2298_v9, %v2130_v7  ;;  %2168 = vmatmul.bf16.gmra.mxu0 %v7903_v63  ;;  %v319_v9 = vld [vmem:[%s9491_s0 + $0x950] sm:$0xff]  ;;  %v321_v59 = vld [vmem:[%s9491_s0 + $0x960] sm:$0xff] }
 0x364   :  { %2337 = vmatmul.bf16.gmra.mxu1 %v7907_v41 }
 0x365   :  { %4956 = vmatmul.msk.bf16.gmra.mxu2 %vm1287_vm0, %v7909_v23  ;;  %v7916_v21 = vpack.c.bf16 %v3796_v5, %v3794_v42  ;;  %v326_v42 = vld [vmem:[%s9491_s0 + $0x988] sm:$0xff]  ;;  %v320_v5 = vld [vmem:[%s9491_s0 + $0x958] sm:$0xff]  ;;  %v9905_v23 = vld [vmem:[#allocation74_spill] sm:$0xff] }
 0x366   :  { %2675 = vmatmul.bf16.gmra.mxu3 %v9898_v44  ;;  %v7940_v44 = vpack.c.bf16 %v326_v42, %v319_v9  ;;  %v9907_v9 = vld [vmem:[#allocation69_spill] sm:$0xff] }
 0x367   :  { %9897 = vst [vmem:[#allocation68_spill] sm:$0xff] %v7916_v21 }
 0x368   :  { %v2467_v50 = vpop.f32.mrf.mxu2  ;;  %v2131_v35 = vpop.f32.mrf.mxu0  ;;  %9901 = vst [vmem:[#allocation73_spill] sm:$0xff] %v7940_v44 }
 0x369   :  { %v2468_v32 = vadd.f32 %v2467_v50, %v2299_v14  ;;  %v7919_v15 = vpop.f32.mrf.mxu3  ;;  %v2132_v25 = vadd.f32 %v2131_v35, %v9900_v37  ;;  %v2300_v62 = vpop.f32.mrf.mxu1  ;;  %v327_v14 = vld [vmem:[%s9491_s0 + $0x990] sm:$0xff] }
 0x36a   :  { %9899 = vst [vmem:[#allocation63_spill] sm:$0xff] %v7919_v15 }
 0x36b   :  { %v2301_v7 = vadd.f32 %v2300_v62, %v2132_v25  ;;  %v7944_v25 = vpack.c.bf16 %v327_v14, %v320_v5  ;;  %v7946_v62 = vpack.c.bf16 %v328_v22, %v321_v59  ;;  %v3798_v63 = vmax.f32 %v2468_v32, 0.0 }
 0x36d   :  { %9903 = vst [vmem:[#allocation206_spill] sm:$0xff] %v7944_v25 }
 0x36e   :  { %9904 = vst [vmem:[#allocation207_spill] sm:$0xff] %v7946_v62 }
 0x370   :  { %v2469_v10 = vpop.f32.mrf.mxu2  ;;  %v2134_v35 = vpop.f32.mrf.mxu0 }
 0x371   :  { %v2470_v50 = vadd.f32 %v2469_v10, %v2301_v7  ;;  %v7942_v37 = vpop.f32.mrf.mxu3  ;;  %v2135_v41 = vadd.f32 %v2134_v35, %v9905_v23  ;;  %v2303_v21 = vpop.f32.mrf.mxu1  ;;  %v9909_v23 = vld [vmem:[#allocation79_spill] sm:$0xff]  ;;  %v335_v10 = vld [vmem:[%s9491_s0 + $0x9d0] sm:$0xff] }
 0x372   :  { %9902 = vst [vmem:[#allocation205_spill] sm:$0xff] %v7942_v37 }
 0x373   :  { %v3800_v15 = vmax.f32 %v2470_v50, 0.0  ;;  %v2304_v56 = vadd.f32 %v2303_v21, %v2135_v41  ;;  %2173 = vmatmul.bf16.gmra.mxu0 %v7940_v44  ;;  %v333_v21 = vld [vmem:[%s9491_s0 + $0x9c0] sm:$0xff]  ;;  %v342_v50 = vld [vmem:[%s9491_s0 + $0xa08] sm:$0xff] }
 0x374   :  { %2342 = vmatmul.bf16.gmra.mxu1 %v7944_v25 }
 0x375   :  { %4957 = vmatmul.msk.bf16.gmra.mxu2 %vm1287_vm0, %v7946_v62  ;;  %v7953_v7 = vpack.c.bf16 %v3800_v15, %v3798_v63  ;;  %v340_v63 = vld [vmem:[%s9491_s0 + $0x9f8] sm:$0xff]  ;;  %v334_v15 = vld [vmem:[%s9491_s0 + $0x9c8] sm:$0xff]  ;;  %v9914_v62 = vld [vmem:[#allocation80_spill] sm:$0xff] }
 0x376   :  { %2680 = vmatmul.bf16.gmra.mxu3 %v9907_v9  ;;  %v7977_v9 = vpack.c.bf16 %v340_v63, %v333_v21  ;;  %v4620_v21 = vld [vmem:[%s9490_s1 + $0x98] sm:$0xf0] }
 0x377   :  { %9906 = vst [vmem:[#allocation74_spill] sm:$0xff] %v7953_v7  ;;  %v4684_v63 = vld [vmem:[%s9490_s1 + $0x118] sm:$0xf0] }
 0x378   :  { %v2472_v42 = vpop.f32.mrf.mxu2  ;;  %v2136_v14 = vpop.f32.mrf.mxu0  ;;  %9910 = vst [vmem:[#allocation79_spill] sm:$0xff] %v7977_v9 }
 0x379   :  { %v2473_v5 = vadd.f32 %v2472_v42, %v2304_v56  ;;  %v7956_v59 = vpop.f32.mrf.mxu3  ;;  %v2137_v32 = vadd.f32 %v2136_v14, %v9909_v23  ;;  %v2305_v22 = vpop.f32.mrf.mxu1  ;;  %v341_v56 = vld [vmem:[%s9491_s0 + $0xa00] sm:$0xff] }
 0x37a   :  { %9908 = vst [vmem:[#allocation69_spill] sm:$0xff] %v7956_v59 }
 0x37b   :  { %v2306_v41 = vadd.f32 %v2305_v22, %v2137_v32  ;;  %v7981_v32 = vpack.c.bf16 %v341_v56, %v334_v15  ;;  %v7983_v22 = vpack.c.bf16 %v342_v50, %v335_v10  ;;  %v3802_v44 = vmax.f32 %v2473_v5, 0.0  ;;  %v9916_v5 = vld [vmem:[#allocation75_spill] sm:$0xff] }
 0x37d   :  { %9912 = vst [vmem:[#allocation209_spill] sm:$0xff] %v7981_v32 }
 0x37e   :  { %9913 = vst [vmem:[#allocation210_spill] sm:$0xff] %v7983_v22 }
 0x380   :  { %v2474_v35 = vpop.f32.mrf.mxu2  ;;  %v2139_v14 = vpop.f32.mrf.mxu0 }
 0x381   :  { %v2475_v42 = vadd.f32 %v2474_v35, %v2306_v41  ;;  %v7979_v23 = vpop.f32.mrf.mxu3  ;;  %v2140_v25 = vadd.f32 %v2139_v14, %v9914_v62  ;;  %v2308_v7 = vpop.f32.mrf.mxu1  ;;  %v5082_v41 = vld [vmem:[%s9490_s1 + $0x94] sm:$0xf] }
 0x382   :  { %9911 = vst [vmem:[#allocation208_spill] sm:$0xff] %v7979_v23  ;;  %v5118_v23 = vld [vmem:[%s9490_s1 + $0x1b4] sm:$0xf] }
 0x383   :  { %v3804_v59 = vmax.f32 %v2475_v42, 0.0  ;;  %v2309_v37 = vadd.f32 %v2308_v7, %v2140_v25  ;;  %2178 = vmatmul.bf16.gmra.mxu0 %v7977_v9  ;;  %v4623_v25 = vor.u32 %v5082_v41, %v4620_v21  ;;  %v5098_v7 = vld [vmem:[%s9490_s1 + $0x114] sm:$0xf]  ;;  %v354_v21 = vld [vmem:[%s9491_s0 + $0xa68] sm:$0xff] }
 0x384   :  { %2347 = vmatmul.bf16.gmra.mxu1 %v7981_v32  ;;  %v4687_v15 = vor.u32 %v5098_v7, %v4684_v63  ;;  %v347_v41 = vld [vmem:[%s9491_s0 + $0xa30] sm:$0xff]  ;;  %v356_v7 = vld [vmem:[%s9491_s0 + $0xa78] sm:$0xff] }
 0x385   :  { %4958 = vmatmul.msk.bf16.gmra.mxu2 %vm1287_vm0, %v7983_v22  ;;  %v7996_v62 = vpack.c.bf16 %v3804_v59, %v3802_v44  ;;  %2742 = vmatpush.bf16.msra.mxu0 %v4623_v25  ;;  %v9918_v44 = vld [vmem:[#allocation85_spill] sm:$0xff]  ;;  %v349_v25 = vld [vmem:[%s9491_s0 + $0xa40] sm:$0xff] }
 0x386   :  { %2685 = vmatmul.bf16.gmra.mxu3 %v9916_v5  ;;  %2911 = vmatpush.bf16.msra.mxu1 %v4687_v15  ;;  %v355_v5 = vld [vmem:[%s9491_s0 + $0xa70] sm:$0xff]  ;;  %v8026_v15 = vpack.c.bf16 %v354_v21, %v347_v41  ;;  %v9923_v22 = vld [vmem:[#allocation86_spill] sm:$0xff] }
 0x387   :  { %9915 = vst [vmem:[#allocation80_spill] sm:$0xff] %v7996_v62 }
 0x388   :  { %v2477_v56 = vpop.f32.mrf.mxu2  ;;  %v2141_v50 = vpop.f32.mrf.mxu0  ;;  %9919 = vst [vmem:[#allocation85_spill] sm:$0xff] %v8026_v15 }
 0x389   :  { %v2478_v10 = vadd.f32 %v2477_v56, %v2309_v37  ;;  %v8005_v35 = vpop.f32.mrf.mxu3  ;;  %v2142_v59 = vadd.f32 %v2141_v50, %v9918_v44  ;;  %v2310_v42 = vpop.f32.mrf.mxu1  ;;  %v348_v37 = vld [vmem:[%s9491_s0 + $0xa38] sm:$0xff] }
 0x38a   :  { %9917 = vst [vmem:[#allocation75_spill] sm:$0xff] %v8005_v35 }
 0x38b   :  { %v2311_v14 = vadd.f32 %v2310_v42, %v2142_v59  ;;  %v8030_v59 = vpack.c.bf16 %v355_v5, %v348_v37  ;;  %v8032_v42 = vpack.c.bf16 %v356_v7, %v349_v25  ;;  %v3806_v9 = vmax.f32 %v2478_v10, 0.0  ;;  %v5134_v37 = vld [vmem:[%s9490_s1 + $0x234] sm:$0xf] }
 0x38d   :  { %9921 = vst [vmem:[#allocation212_spill] sm:$0xff] %v8030_v59 }
 0x38e   :  { %9922 = vst [vmem:[#allocation213_spill] sm:$0xff] %v8032_v42 }
 0x390   :  { %v2479_v63 = vpop.f32.mrf.mxu2  ;;  %v2144_v50 = vpop.f32.mrf.mxu0 }
 0x391   :  { %v2480_v56 = vadd.f32 %v2479_v63, %v2311_v14  ;;  %v8028_v44 = vpop.f32.mrf.mxu3  ;;  %v2145_v32 = vadd.f32 %v2144_v50, %v9923_v22  ;;  %v2313_v62 = vpop.f32.mrf.mxu1  ;;  %v4764_v14 = vld [vmem:[%s9490_s1 + $0x1b8] sm:$0xf0]  ;;  %v9927_v63 = vld [vmem:[#allocation91_spill] sm:$0xff] }
 0x392   :  { %9920 = vst [vmem:[#allocation211_spill] sm:$0xff] %v8028_v44  ;;  %v4767_v21 = vor.u32 %v5118_v23, %v4764_v14  ;;  %v4828_v22 = vld [vmem:[%s9490_s1 + $0x238] sm:$0xf0] }
 0x393   :  { %v3808_v35 = vmax.f32 %v2480_v56, 0.0  ;;  %v2314_v41 = vadd.f32 %v2313_v62, %v2145_v32  ;;  %2183 = vmatmul.bf16.gmra.mxu0 %v8026_v15  ;;  %v4831_v10 = vor.u32 %v5134_v37, %v4828_v22  ;;  %v9925_v32 = vld [vmem:[#allocation81_spill] sm:$0xff]  ;;  %v370_v37 = vld [vmem:[%s9491_s0 + $0xae8] sm:$0xff] }
 0x394   :  { %2352 = vmatmul.bf16.gmra.mxu1 %v8030_v59  ;;  %3078 = vmatpush.bf16.msra.mxu2 %v4767_v21  ;;  %v363_v21 = vld [vmem:[%s9491_s0 + $0xab0] sm:$0xff] }
 0x395   :  { %4959 = vmatmul.msk.bf16.gmra.mxu2 %vm1287_vm0, %v8032_v42  ;;  %v8051_v5 = vpack.c.bf16 %v3808_v35, %v3806_v9  ;;  %3247 = vmatpush.bf16.msra.mxu3 %v4831_v10  ;;  %v361_v42 = vld [vmem:[%s9491_s0 + $0xaa0] sm:$0xff]  ;;  %v368_v9 = vld [vmem:[%s9491_s0 + $0xad8] sm:$0xff]  ;;  %v362_v35 = vld [vmem:[%s9491_s0 + $0xaa8] sm:$0xff] }
 0x396   :  { %2690 = vmatmul.bf16.gmra.mxu3 %v9925_v32  ;;  %v8075_v10 = vpack.c.bf16 %v368_v9, %v361_v42 }
 0x397   :  { %9924 = vst [vmem:[#allocation86_spill] sm:$0xff] %v8051_v5 }
 0x398   :  { %v2482_v23 = vpop.f32.mrf.mxu2  ;;  %v2146_v25 = vpop.f32.mrf.mxu0  ;;  %9928 = vst [vmem:[#allocation91_spill] sm:$0xff] %v8075_v10 }
 0x399   :  { %v2483_v62 = vadd.f32 %v2482_v23, %v2314_v41  ;;  %v8054_v7 = vpop.f32.mrf.mxu3  ;;  %v2147_v56 = vadd.f32 %v2146_v25, %v9927_v63  ;;  %v2315_v50 = vpop.f32.mrf.mxu1  ;;  %v369_v41 = vld [vmem:[%s9491_s0 + $0xae0] sm:$0xff] }
 0x39a   :  { %9926 = vst [vmem:[#allocation81_spill] sm:$0xff] %v8054_v7  ;;  %v8079_v63 = vpack.c.bf16 %v369_v41, %v362_v35 }
 0x39b   :  { %v2316_v14 = vadd.f32 %v2315_v50, %v2147_v56  ;;  %v8081_v56 = vpack.c.bf16 %v370_v37, %v363_v21  ;;  %v9932_v50 = vld [vmem:[#allocation92_spill] sm:$0xff]  ;;  %v3810_v15 = vmax.f32 %v2483_v62, 0.0  ;;  %v9936_v37 = vld [vmem:[#allocation97_spill] sm:$0xff] }
 0x39c   :  { %9930 = vst [vmem:[#allocation215_spill] sm:$0xff] %v8079_v63 }
 0x39d   :  { %9931 = vst [vmem:[#allocation216_spill] sm:$0xff] %v8081_v56 }
 0x3a0   :  { %v2484_v22 = vpop.f32.mrf.mxu2  ;;  %v2149_v23 = vpop.f32.mrf.mxu0 }
 0x3a1   :  { %v2485_v32 = vadd.f32 %v2484_v22, %v2316_v14  ;;  %v8077_v25 = vpop.f32.mrf.mxu3  ;;  %v2150_v59 = vadd.f32 %v2149_v23, %v9932_v50  ;;  %v2318_v5 = vpop.f32.mrf.mxu1  ;;  %v9934_v14 = vld [vmem:[#allocation87_spill] sm:$0xff]  ;;  %v384_v23 = vld [vmem:[%s9491_s0 + $0xb58] sm:$0xff] }
 0x3a2   :  { %9929 = vst [vmem:[#allocation214_spill] sm:$0xff] %v8077_v25 }
 0x3a3   :  { %v3812_v7 = vmax.f32 %v2485_v32, 0.0  ;;  %v2319_v44 = vadd.f32 %v2318_v5, %v2150_v59  ;;  %2188 = vmatmul.bf16.gmra.mxu0 %v8075_v10  ;;  %v375_v5 = vld [vmem:[%s9491_s0 + $0xb10] sm:$0xff]  ;;  %v377_v32 = vld [vmem:[%s9491_s0 + $0xb20] sm:$0xff] }
 0x3a4   :  { %2357 = vmatmul.bf16.gmra.mxu1 %v8079_v63 }
 0x3a5   :  { %4960 = vmatmul.msk.bf16.gmra.mxu2 %vm1287_vm0, %v8081_v56  ;;  %v8088_v42 = vpack.c.bf16 %v3812_v7, %v3810_v15  ;;  %v382_v15 = vld [vmem:[%s9491_s0 + $0xb48] sm:$0xff]  ;;  %v376_v7 = vld [vmem:[%s9491_s0 + $0xb18] sm:$0xff]  ;;  %v9941_v56 = vld [vmem:[#allocation98_spill] sm:$0xff] }
 0x3a6   :  { %2695 = vmatmul.bf16.gmra.mxu3 %v9934_v14  ;;  %v8112_v14 = vpack.c.bf16 %v382_v15, %v375_v5  ;;  %v9943_v5 = vld [vmem:[#allocation93_spill] sm:$0xff] }
 0x3a7   :  { %9933 = vst [vmem:[#allocation92_spill] sm:$0xff] %v8088_v42 }
 0x3a8   :  { %v2487_v9 = vpop.f32.mrf.mxu2  ;;  %v2151_v41 = vpop.f32.mrf.mxu0  ;;  %9937 = vst [vmem:[#allocation97_spill] sm:$0xff] %v8112_v14 }
 0x3a9   :  { %v2488_v35 = vadd.f32 %v2487_v9, %v2319_v44  ;;  %v8091_v21 = vpop.f32.mrf.mxu3  ;;  %v2152_v62 = vadd.f32 %v2151_v41, %v9936_v37  ;;  %v2320_v22 = vpop.f32.mrf.mxu1  ;;  %v383_v44 = vld [vmem:[%s9491_s0 + $0xb50] sm:$0xff] }
 0x3aa   :  { %9935 = vst [vmem:[#allocation87_spill] sm:$0xff] %v8091_v21 }
 0x3ab   :  { %v2321_v59 = vadd.f32 %v2320_v22, %v2152_v62  ;;  %v8116_v62 = vpack.c.bf16 %v383_v44, %v376_v7  ;;  %v8118_v22 = vpack.c.bf16 %v384_v23, %v377_v32  ;;  %v3814_v10 = vmax.f32 %v2488_v35, 0.0 }
 0x3ad   :  { %9939 = vst [vmem:[#allocation218_spill] sm:$0xff] %v8116_v62 }
 0x3ae   :  { %9940 = vst [vmem:[#allocation219_spill] sm:$0xff] %v8118_v22 }
 0x3b0   :  { %v2489_v50 = vpop.f32.mrf.mxu2  ;;  %v2154_v41 = vpop.f32.mrf.mxu0 }
 0x3b1   :  { %v2490_v9 = vadd.f32 %v2489_v50, %v2321_v59  ;;  %v8114_v37 = vpop.f32.mrf.mxu3  ;;  %v2155_v63 = vadd.f32 %v2154_v41, %v9941_v56  ;;  %v2323_v42 = vpop.f32.mrf.mxu1  ;;  %v9945_v56 = vld [vmem:[#allocation103_spill] sm:$0xff]  ;;  %v391_v50 = vld [vmem:[%s9491_s0 + $0xb90] sm:$0xff] }
 0x3b2   :  { %9938 = vst [vmem:[#allocation217_spill] sm:$0xff] %v8114_v37 }
 0x3b3   :  { %v3816_v21 = vmax.f32 %v2490_v9, 0.0  ;;  %v2324_v25 = vadd.f32 %v2323_v42, %v2155_v63  ;;  %2193 = vmatmul.bf16.gmra.mxu0 %v8112_v14  ;;  %v389_v42 = vld [vmem:[%s9491_s0 + $0xb80] sm:$0xff]  ;;  %v398_v9 = vld [vmem:[%s9491_s0 + $0xbc8] sm:$0xff] }
 0x3b4   :  { %2362 = vmatmul.bf16.gmra.mxu1 %v8116_v62 }
 0x3b5   :  { %4961 = vmatmul.msk.bf16.gmra.mxu2 %vm1287_vm0, %v8118_v22  ;;  %v8125_v59 = vpack.c.bf16 %v3816_v21, %v3814_v10  ;;  %v396_v10 = vld [vmem:[%s9491_s0 + $0xbb8] sm:$0xff]  ;;  %v390_v21 = vld [vmem:[%s9491_s0 + $0xb88] sm:$0xff]  ;;  %v9950_v22 = vld [vmem:[#allocation104_spill] sm:$0xff] }
 0x3b6   :  { %2700 = vmatmul.bf16.gmra.mxu3 %v9943_v5  ;;  %v8149_v5 = vpack.c.bf16 %v396_v10, %v389_v42  ;;  %v4612_v42 = vld [vmem:[%s9490_s1 + $0x88] sm:$0xf0] }
 0x3b7   :  { %9942 = vst [vmem:[#allocation98_spill] sm:$0xff] %v8125_v59  ;;  %v4676_v10 = vld [vmem:[%s9490_s1 + $0x108] sm:$0xf0] }
 0x3b8   :  { %v2492_v15 = vpop.f32.mrf.mxu2  ;;  %v2156_v44 = vpop.f32.mrf.mxu0  ;;  %9946 = vst [vmem:[#allocation103_spill] sm:$0xff] %v8149_v5 }
 0x3b9   :  { %v2493_v7 = vadd.f32 %v2492_v15, %v2324_v25  ;;  %v8128_v32 = vpop.f32.mrf.mxu3  ;;  %v2157_v35 = vadd.f32 %v2156_v44, %v9945_v56  ;;  %v2325_v23 = vpop.f32.mrf.mxu1  ;;  %v397_v25 = vld [vmem:[%s9491_s0 + $0xbc0] sm:$0xff] }
 0x3ba   :  { %9944 = vst [vmem:[#allocation93_spill] sm:$0xff] %v8128_v32 }
 0x3bb   :  { %v2326_v63 = vadd.f32 %v2325_v23, %v2157_v35  ;;  %v8153_v35 = vpack.c.bf16 %v397_v25, %v390_v21  ;;  %v8155_v23 = vpack.c.bf16 %v398_v9, %v391_v50  ;;  %v3818_v14 = vmax.f32 %v2493_v7, 0.0  ;;  %v9952_v7 = vld [vmem:[#allocation99_spill] sm:$0xff] }
 0x3bd   :  { %9948 = vst [vmem:[#allocation221_spill] sm:$0xff] %v8153_v35 }
 0x3be   :  { %9949 = vst [vmem:[#allocation222_spill] sm:$0xff] %v8155_v23 }
 0x3c0   :  { %v2494_v41 = vpop.f32.mrf.mxu2  ;;  %v2159_v44 = vpop.f32.mrf.mxu0 }
 0x3c1   :  { %v2495_v15 = vadd.f32 %v2494_v41, %v2326_v63  ;;  %v8151_v56 = vpop.f32.mrf.mxu3  ;;  %v2160_v62 = vadd.f32 %v2159_v44, %v9950_v22  ;;  %v2328_v59 = vpop.f32.mrf.mxu1  ;;  %v5080_v63 = vld [vmem:[%s9490_s1 + $0x84] sm:$0xf] }
 0x3c2   :  { %9947 = vst [vmem:[#allocation220_spill] sm:$0xff] %v8151_v56  ;;  %v5116_v56 = vld [vmem:[%s9490_s1 + $0x1a4] sm:$0xf] }
 0x3c3   :  { %v3820_v32 = vmax.f32 %v2495_v15, 0.0  ;;  %v2329_v37 = vadd.f32 %v2328_v59, %v2160_v62  ;;  %2198 = vmatmul.bf16.gmra.mxu0 %v8149_v5  ;;  %v4615_v62 = vor.u32 %v5080_v63, %v4612_v42  ;;  %v5096_v59 = vld [vmem:[%s9490_s1 + $0x104] sm:$0xf]  ;;  %v403_v63 = vld [vmem:[%s9491_s0 + $0xbf0] sm:$0xff]  ;;  %v410_v42 = vld [vmem:[%s9491_s0 + $0xc28] sm:$0xff] }
 0x3c4   :  { %2367 = vmatmul.bf16.gmra.mxu1 %v8153_v35  ;;  %v4679_v21 = vor.u32 %v5096_v59, %v4676_v10  ;;  %v412_v59 = vld [vmem:[%s9491_s0 + $0xc38] sm:$0xff] }
 0x3c5   :  { %4962 = vmatmul.msk.bf16.gmra.mxu2 %vm1287_vm0, %v8155_v23  ;;  %v8168_v22 = vpack.c.bf16 %v3820_v32, %v3818_v14  ;;  %2743 = vmatpush.bf16.msra.mxu0 %v4615_v62  ;;  %v9954_v14 = vld [vmem:[#allocation109_spill] sm:$0xff]  ;;  %v405_v62 = vld [vmem:[%s9491_s0 + $0xc00] sm:$0xff] }
 0x3c6   :  { %2705 = vmatmul.bf16.gmra.mxu3 %v9952_v7  ;;  %2912 = vmatpush.bf16.msra.mxu1 %v4679_v21  ;;  %v411_v7 = vld [vmem:[%s9491_s0 + $0xc30] sm:$0xff]  ;;  %v8198_v21 = vpack.c.bf16 %v410_v42, %v403_v63  ;;  %v9959_v23 = vld [vmem:[#allocation110_spill] sm:$0xff] }
 0x3c7   :  { %9951 = vst [vmem:[#allocation104_spill] sm:$0xff] %v8168_v22 }
 0x3c8   :  { %v2497_v25 = vpop.f32.mrf.mxu2  ;;  %v2161_v9 = vpop.f32.mrf.mxu0  ;;  %9955 = vst [vmem:[#allocation109_spill] sm:$0xff] %v8198_v21 }
 0x3c9   :  { %v2498_v50 = vadd.f32 %v2497_v25, %v2329_v37  ;;  %v8177_v41 = vpop.f32.mrf.mxu3  ;;  %v2162_v32 = vadd.f32 %v2161_v9, %v9954_v14  ;;  %v2330_v15 = vpop.f32.mrf.mxu1  ;;  %v404_v37 = vld [vmem:[%s9491_s0 + $0xbf8] sm:$0xff] }
 0x3ca   :  { %9953 = vst [vmem:[#allocation99_spill] sm:$0xff] %v8177_v41 }
 0x3cb   :  { %v2331_v44 = vadd.f32 %v2330_v15, %v2162_v32  ;;  %v8202_v32 = vpack.c.bf16 %v411_v7, %v404_v37  ;;  %v8204_v15 = vpack.c.bf16 %v412_v59, %v405_v62  ;;  %v3822_v5 = vmax.f32 %v2498_v50, 0.0  ;;  %v5132_v37 = vld [vmem:[%s9490_s1 + $0x224] sm:$0xf] }
 0x3cd   :  { %9957 = vst [vmem:[#allocation224_spill] sm:$0xff] %v8202_v32 }
 0x3ce   :  { %9958 = vst [vmem:[#allocation225_spill] sm:$0xff] %v8204_v15 }
 0x3d0   :  { %v2499_v10 = vpop.f32.mrf.mxu2  ;;  %v2164_v9 = vpop.f32.mrf.mxu0 }
 0x3d1   :  { %v2500_v25 = vadd.f32 %v2499_v10, %v2331_v44  ;;  %v8200_v14 = vpop.f32.mrf.mxu3  ;;  %v2165_v35 = vadd.f32 %v2164_v9, %v9959_v23  ;;  %v2333_v22 = vpop.f32.mrf.mxu1  ;;  %v4756_v44 = vld [vmem:[%s9490_s1 + $0x1a8] sm:$0xf0] }
 0x3d2   :  { %9956 = vst [vmem:[#allocation223_spill] sm:$0xff] %v8200_v14  ;;  %v4759_v42 = vor.u32 %v5116_v56, %v4756_v44  ;;  %v4820_v23 = vld [vmem:[%s9490_s1 + $0x228] sm:$0xf0] }
 0x3d3   :  { %v3824_v41 = vmax.f32 %v2500_v25, 0.0  ;;  %v2334_v63 = vadd.f32 %v2333_v22, %v2165_v35  ;;  %2203 = vmatmul.bf16.gmra.mxu0 %v8198_v21  ;;  %v4823_v50 = vor.u32 %v5132_v37, %v4820_v23  ;;  %v9961_v35 = vld [vmem:[#allocation105_spill] sm:$0xff]  ;;  %v9963_v10 = vld [vmem:[#allocation115_spill] sm:$0xff] }
 0x3d4   :  { %2372 = vmatmul.bf16.gmra.mxu1 %v8202_v32  ;;  %3079 = vmatpush.bf16.msra.mxu2 %v4759_v42  ;;  %v419_v42 = vld [vmem:[%s9491_s0 + $0xc70] sm:$0xff]  ;;  %v426_v37 = vld [vmem:[%s9491_s0 + $0xca8] sm:$0xff] }
 0x3d5   :  { %4963 = vmatmul.msk.bf16.gmra.mxu2 %vm1287_vm0, %v8204_v15  ;;  %v8223_v7 = vpack.c.bf16 %v3824_v41, %v3822_v5  ;;  %3248 = vmatpush.bf16.msra.mxu3 %v4823_v50  ;;  %v417_v15 = vld [vmem:[%s9491_s0 + $0xc60] sm:$0xff]  ;;  %v424_v5 = vld [vmem:[%s9491_s0 + $0xc98] sm:$0xff]  ;;  %v418_v41 = vld [vmem:[%s9491_s0 + $0xc68] sm:$0xff] }
 0x3d6   :  { %2710 = vmatmul.bf16.gmra.mxu3 %v9961_v35  ;;  %v8247_v50 = vpack.c.bf16 %v424_v5, %v417_v15 }
 0x3d7   :  { %9960 = vst [vmem:[#allocation110_spill] sm:$0xff] %v8223_v7 }
 0x3d8   :  { %v2502_v56 = vpop.f32.mrf.mxu2  ;;  %v2166_v62 = vpop.f32.mrf.mxu0  ;;  %9964 = vst [vmem:[#allocation115_spill] sm:$0xff] %v8247_v50 }
 0x3d9   :  { %v2503_v22 = vadd.f32 %v2502_v56, %v2334_v63  ;;  %v8226_v59 = vpop.f32.mrf.mxu3  ;;  %v2167_v25 = vadd.f32 %v2166_v62, %v9963_v10  ;;  %v2335_v9 = vpop.f32.mrf.mxu1  ;;  %v425_v63 = vld [vmem:[%s9491_s0 + $0xca0] sm:$0xff] }
 0x3da   :  { %9962 = vst [vmem:[#allocation105_spill] sm:$0xff] %v8226_v59  ;;  %v8251_v10 = vpack.c.bf16 %v425_v63, %v418_v41 }
 0x3db   :  { %v2336_v44 = vadd.f32 %v2335_v9, %v2167_v25  ;;  %v8253_v25 = vpack.c.bf16 %v426_v37, %v419_v42  ;;  %v9968_v9 = vld [vmem:[#allocation116_spill] sm:$0xff]  ;;  %v3826_v21 = vmax.f32 %v2503_v22, 0.0  ;;  %v9972_v37 = vld [vmem:[#allocation121_spill] sm:$0xff] }
 0x3dc   :  { %9966 = vst [vmem:[#allocation227_spill] sm:$0xff] %v8251_v10 }
 0x3dd   :  { %9967 = vst [vmem:[#allocation228_spill] sm:$0xff] %v8253_v25 }
 0x3e0   :  { %v2504_v23 = vpop.f32.mrf.mxu2  ;;  %v2169_v56 = vpop.f32.mrf.mxu0 }
 0x3e1   :  { %v2505_v35 = vadd.f32 %v2504_v23, %v2336_v44  ;;  %v8249_v62 = vpop.f32.mrf.mxu3  ;;  %v2170_v32 = vadd.f32 %v2169_v56, %v9968_v9  ;;  %v2338_v7 = vpop.f32.mrf.mxu1  ;;  %v9970_v44 = vld [vmem:[#allocation111_spill] sm:$0xff]  ;;  %v440_v56 = vld [vmem:[%s9491_s0 + $0xd18] sm:$0xff] }
 0x3e2   :  { %9965 = vst [vmem:[#allocation226_spill] sm:$0xff] %v8249_v62 }
 0x3e3   :  { %v3828_v59 = vmax.f32 %v2505_v35, 0.0  ;;  %v2339_v14 = vadd.f32 %v2338_v7, %v2170_v32  ;;  %2208 = vmatmul.bf16.gmra.mxu0 %v8247_v50  ;;  %v431_v7 = vld [vmem:[%s9491_s0 + $0xcd0] sm:$0xff]  ;;  %v433_v35 = vld [vmem:[%s9491_s0 + $0xce0] sm:$0xff] }
 0x3e4   :  { %2377 = vmatmul.bf16.gmra.mxu1 %v8251_v10 }
 0x3e5   :  { %4964 = vmatmul.msk.bf16.gmra.mxu2 %vm1287_vm0, %v8253_v25  ;;  %v8260_v15 = vpack.c.bf16 %v3828_v59, %v3826_v21  ;;  %v438_v21 = vld [vmem:[%s9491_s0 + $0xd08] sm:$0xff]  ;;  %v432_v59 = vld [vmem:[%s9491_s0 + $0xcd8] sm:$0xff]  ;;  %v9977_v25 = vld [vmem:[#allocation122_spill] sm:$0xff] }
 0x3e6   :  { %2715 = vmatmul.bf16.gmra.mxu3 %v9970_v44  ;;  %v8284_v44 = vpack.c.bf16 %v438_v21, %v431_v7  ;;  %v9979_v7 = vld [vmem:[#allocation117_spill] sm:$0xff] }
 0x3e7   :  { %9969 = vst [vmem:[#allocation116_spill] sm:$0xff] %v8260_v15 }
 0x3e8   :  { %v2507_v5 = vpop.f32.mrf.mxu2  ;;  %v2171_v63 = vpop.f32.mrf.mxu0  ;;  %9973 = vst [vmem:[#allocation121_spill] sm:$0xff] %v8284_v44 }
 0x3e9   :  { %v2508_v41 = vadd.f32 %v2507_v5, %v2339_v14  ;;  %v8263_v42 = vpop.f32.mrf.mxu3  ;;  %v2172_v22 = vadd.f32 %v2171_v63, %v9972_v37  ;;  %v2340_v23 = vpop.f32.mrf.mxu1  ;;  %v439_v14 = vld [vmem:[%s9491_s0 + $0xd10] sm:$0xff] }
 0x3ea   :  { %9971 = vst [vmem:[#allocation111_spill] sm:$0xff] %v8263_v42 }
 0x3eb   :  { %v2341_v32 = vadd.f32 %v2340_v23, %v2172_v22  ;;  %v8288_v22 = vpack.c.bf16 %v439_v14, %v432_v59  ;;  %v8290_v23 = vpack.c.bf16 %v440_v56, %v433_v35  ;;  %v3830_v50 = vmax.f32 %v2508_v41, 0.0 }
 0x3ed   :  { %9975 = vst [vmem:[#allocation230_spill] sm:$0xff] %v8288_v22 }
 0x3ee   :  { %9976 = vst [vmem:[#allocation231_spill] sm:$0xff] %v8290_v23 }
 0x3f0   :  { %v2509_v9 = vpop.f32.mrf.mxu2  ;;  %v2174_v63 = vpop.f32.mrf.mxu0 }
 0x3f1   :  { %v2510_v5 = vadd.f32 %v2509_v9, %v2341_v32  ;;  %v8286_v37 = vpop.f32.mrf.mxu3  ;;  %v2175_v10 = vadd.f32 %v2174_v63, %v9977_v25  ;;  %v2343_v15 = vpop.f32.mrf.mxu1  ;;  %v9981_v25 = vld [vmem:[#allocation127_spill] sm:$0xff]  ;;  %v5130_v63 = vld [vmem:[%s9490_s1 + $0x214] sm:$0xf] }
 0x3f2   :  { %9974 = vst [vmem:[#allocation229_spill] sm:$0xff] %v8286_v37 }
 0x3f3   :  { %v3832_v42 = vmax.f32 %v2510_v5, 0.0  ;;  %v2344_v62 = vadd.f32 %v2343_v15, %v2175_v10  ;;  %2213 = vmatmul.bf16.gmra.mxu0 %v8284_v44  ;;  %v5114_v10 = vld [vmem:[%s9490_s1 + $0x194] sm:$0xf]  ;;  %v4748_v15 = vld [vmem:[%s9490_s1 + $0x198] sm:$0xf0]  ;;  %v446_v5 = vld [vmem:[%s9491_s0 + $0xd48] sm:$0xff] }
 0x3f4   :  { %2382 = vmatmul.bf16.gmra.mxu1 %v8288_v22  ;;  %v4751_v9 = vor.u32 %v5114_v10, %v4748_v15  ;;  %v4740_v10 = vld [vmem:[%s9490_s1 + $0x188] sm:$0xf0] }
 0x3f5   :  { %4965 = vmatmul.msk.bf16.gmra.mxu2 %vm1287_vm0, %v8290_v23  ;;  %v8297_v32 = vpack.c.bf16 %v3832_v42, %v3830_v50  ;;  %v445_v42 = vld [vmem:[%s9491_s0 + $0xd40] sm:$0xff] }
 0x3f6   :  { %2720 = vmatmul.bf16.gmra.mxu3 %v9979_v7  ;;  %v4812_v7 = vld [vmem:[%s9490_s1 + $0x218] sm:$0xf0]  ;;  %3080 = vmatpush.bf16.msra.mxu2 %v4751_v9 }
 0x3f7   :  { %9978 = vst [vmem:[#allocation122_spill] sm:$0xff] %v8297_v32 }
 0x3f8   :  { %v2512_v21 = vpop.f32.mrf.mxu2  ;;  %v2176_v14 = vpop.f32.mrf.mxu0 }
 0x3f9   :  { %v2513_v59 = vadd.f32 %v2512_v21, %v2344_v62  ;;  %v8300_v35 = vpop.f32.mrf.mxu3  ;;  %v2177_v41 = vadd.f32 %v2176_v14, %v9981_v25  ;;  %v2345_v56 = vpop.f32.mrf.mxu1  ;;  %v452_v62 = vld [vmem:[%s9491_s0 + $0xd78] sm:$0xff]  ;;  %v453_v21 = vld [vmem:[%s9491_s0 + $0xd80] sm:$0xff]  ;;  %v447_v14 = vld [vmem:[%s9491_s0 + $0xd50] sm:$0xff] }
 0x3fa   :  { %9980 = vst [vmem:[#allocation117_spill] sm:$0xff] %v8300_v35  ;;  %v454_v25 = vld [vmem:[%s9491_s0 + $0xd88] sm:$0xff]  ;;  %v8339_v23 = vpack.c.bf16 %v452_v62, %v445_v42  ;;  %v8343_v37 = vpack.c.bf16 %v453_v21, %v446_v5  ;;  %v9985_v42 = vld [vmem:[#allocation128_spill] sm:$0xff]  ;;  %v5160_v21 = vld [vmem:[%s9490_s1 + $0x304] sm:$0xf] }
 0x3fb   :  { %v2346_v50 = vadd.f32 %v2345_v56, %v2177_v41  ;;  %v4815_v41 = vor.u32 %v5130_v63, %v4812_v7  ;;  %v5112_v56 = vld [vmem:[%s9490_s1 + $0x184] sm:$0xf]  ;;  %v8345_v9 = vpack.c.bf16 %v454_v25, %v447_v14  ;;  %v4804_v7 = vld [vmem:[%s9490_s1 + $0x208] sm:$0xf0]  ;;  %v5158_v5 = vld [vmem:[%s9490_s1 + $0x2f4] sm:$0xf] }
 0x3fc   :  { %9982 = vst [vmem:[#allocation127_spill] sm:$0xff] %v8339_v23  ;;  %v4743_v22 = vor.u32 %v5112_v56, %v4740_v10  ;;  %v5128_v63 = vld [vmem:[%s9490_s1 + $0x204] sm:$0xf]  ;;  %v3834_v56 = vmax.f32 %v2513_v59, 0.0  ;;  %v4932_v14 = vld [vmem:[%s9490_s1 + $0x308] sm:$0xf0] }
 0x3fd   :  { %3249 = vmatpush.bf16.msra.mxu3 %v4815_v41  ;;  %9983 = vst [vmem:[#allocation232_spill] sm:$0xff] %v8343_v37  ;;  %v4935_v25 = vor.u32 %v5160_v21, %v4932_v14 }
 0x3fe   :  { %9984 = vst [vmem:[#allocation233_spill] sm:$0xff] %v8345_v9  ;;  %3081 = vmatpush.bf16.msra.mxu2 %v4743_v22 }
 0x3ff   :  { %3588 = vmatpush.bf16.msrb.mxu1 %v4935_v25 }
 0x400   :  { %v2514_v15 = vpop.f32.mrf.mxu2  ;;  %v2179_v44 = vpop.f32.mrf.mxu0 }
 0x401   :  { %v2515_v32 = vadd.f32 %v2514_v15, %v2346_v50  ;;  %v8341_v35 = vpop.f32.mrf.mxu3  ;;  %v2180_v62 = vadd.f32 %v2179_v44, %v9985_v42  ;;  %v2348_v41 = vpop.f32.mrf.mxu1  ;;  %v4807_v50 = vor.u32 %v5128_v63, %v4804_v7  ;;  %v4924_v44 = vld [vmem:[%s9490_s1 + $0x2f8] sm:$0xf0] }
 0x402   :  { %v4927_v59 = vor.u32 %v5158_v5, %v4924_v44  ;;  %v466_v5 = vld [vmem:[%s9491_s0 + $0xde8] sm:$0xff]  ;;  %v467_v44 = vld [vmem:[%s9491_s0 + $0xdf0] sm:$0xff] }
 0x403   :  { %v3836_v10 = vmax.f32 %v2515_v32, 0.0  ;;  %v2349_v15 = vadd.f32 %v2348_v41, %v2180_v62  ;;  %2218 = vmatmul.bf16.gmra.mxu0 %v8339_v23  ;;  %3250 = vmatpush.bf16.msra.mxu3 %v4807_v50  ;;  %v9987_v32 = vld [vmem:[#allocation123_spill] sm:$0xff] }
 0x404   :  { %2387 = vmatmul.bf16.gmra.mxu1 %v8343_v37  ;;  %3412 = vmatpush.bf16.msrb.mxu0 %v4927_v59 }
 0x405   :  { %4966 = vmatmul.msk.bf16.gmra.mxu2 %vm1287_vm0, %v8345_v9  ;;  %v8364_v22 = vpack.c.bf16 %v3836_v10, %v3834_v56  ;;  %v459_v10 = vld [vmem:[%s9491_s0 + $0xdb0] sm:$0xff] }
 0x406   :  { %2725 = vmatmul.bf16.gmra.mxu3 %v9987_v32  ;;  %v468_v32 = vld [vmem:[%s9491_s0 + $0xdf8] sm:$0xff]  ;;  %v8394_v21 = vpack.c.bf16 %v466_v5, %v459_v10 }
 0x407   :  { %9986 = vst [vmem:[#allocation128_spill] sm:$0xff] %v8364_v22 }
 0x408   :  { %v2517_v63 = vpop.f32.mrf.mxu2  ;;  %v2181_v42 = vpop.f32.mrf.mxu0 }
 0x409   :  { %v2518_v7 = vadd.f32 %v2517_v63, %v2349_v15  ;;  %v8373_v62 = vpop.f32.mrf.mxu3  ;;  %v2182_v41 = vadd.f32 %v2181_v42, %v7046_v54  ;;  %v2350_v50 = vpop.f32.mrf.mxu1  ;;  %v460_v15 = vld [vmem:[%s9491_s0 + $0xdb8] sm:$0xff]  ;;  %v461_v54 = vld [vmem:[%s9491_s0 + $0xdc0] sm:$0xff] }
 0x40a   :  { %v8398_v42 = vpack.c.bf16 %v467_v44, %v460_v15 }
 0x40b   :  { %v2351_v56 = vadd.f32 %v2350_v50, %v2182_v41  ;;  %v8400_v41 = vpack.c.bf16 %v468_v32, %v461_v54  ;;  %v3838_v37 = vmax.f32 %v2518_v7, 0.0 }
 0x40c   :  { %9988 = vst [vmem:[#allocation123_spill] sm:$0xff] %v8398_v42 }
 0x40d   :  { %9989 = vst [vmem:[#allocation234_spill] sm:$0xff] %v8400_v41 }
 0x410   :  { %v2519_v59 = vpop.f32.mrf.mxu2  ;;  %v2184_v25 = vpop.f32.mrf.mxu0 }
 0x411   :  { %v2520_v14 = vadd.f32 %v2519_v59, %v2351_v56  ;;  %v8396_v63 = vpop.f32.mrf.mxu3  ;;  %v2185_v50 = vadd.f32 %v2184_v25, %v7053_v61  ;;  %v2353_v9 = vpop.f32.mrf.mxu1  ;;  %v9991_v25 = vld [vmem:[#allocation135_spill] sm:$0xff] }
 0x413   :  { %v3840_v22 = vmax.f32 %v2520_v14, 0.0  ;;  %v2354_v23 = vadd.f32 %v2353_v9, %v2185_v50  ;;  %2223 = vmatmul.bf16.gmra.mxu0 %v8394_v21 }
 0x414   :  { %2392 = vmatmul.bf16.gmra.mxu1 %v8398_v42  ;;  %v9992_v42 = vld [vmem:[#allocation2_spill] sm:$0xff] }
 0x415   :  { %4967 = vmatmul.msk.bf16.gmra.mxu2 %vm1287_vm0, %v8400_v41  ;;  %v8407_v56 = vpack.c.bf16 %v3840_v22, %v3838_v37 }
 0x416   :  { %2730 = vmatmul.bf16.gmra.mxu3 %v7037_v40 }
 0x417   :  { %9990 = vst [vmem:[#allocation235_spill] sm:$0xff] %v8407_v56  ;;  %v9999_v56 = vld [vmem:[#allocation5_spill] sm:$0xff] }
 0x418   :  { %v2522_v10 = vpop.f32.mrf.mxu2  ;;  %v2186_v15 = vpop.f32.mrf.mxu0 }
 0x419   :  { %v2523_v5 = vadd.f32 %v2522_v10, %v2354_v23  ;;  %v8410_v44 = vpop.f32.mrf.mxu3  ;;  %v2187_v61 = vadd.f32 %v2186_v15, %v7080_v38  ;;  %v2355_v7 = vpop.f32.mrf.mxu1  ;;  %v9993_v23 = vld [vmem:[#allocation3_spill] sm:$0xff]  ;;  %v9994_v10 = vld [vmem:[#allocation4_spill] sm:$0xff] }
 0x41a   :  { %v9996_v15 = vld [vmem:[#allocation132_spill] sm:$0xff] }
 0x41b   :  { %v2356_v9 = vadd.f32 %v2355_v7, %v2187_v61  ;;  %v3842_v22 = vmax.f32 %v2523_v5, 0.0 }
 0x420   :  { %v2524_v54 = vpop.f32.mrf.mxu2  ;;  %v2189_v59 = vpop.f32.mrf.mxu0 }
 0x421   :  { %v2525_v32 = vadd.f32 %v2524_v54, %v2356_v9  ;;  %v8413_v14 = vpop.f32.mrf.mxu3  ;;  %v2190_v50 = vadd.f32 %v2189_v59, %v9991_v25  ;;  %v2358_v37 = vpop.f32.mrf.mxu1 }
 0x423   :  { %v3844_v41 = vmax.f32 %v2525_v32, 0.0  ;;  %v2359_v40 = vadd.f32 %v2358_v37, %v2190_v50  ;;  %2744 = vmatmul.bf16.vlgmr.msra.gmra.mxu0 %v9992_v42 }
 0x424   :  { %2913 = vmatmul.bf16.vlgmr.msra.gmra.mxu1 %v9993_v23  ;;  %v9998_v23 = vld [vmem:[#allocation139_spill] sm:$0xff] }
 0x425   :  { %3082 = vmatmul.bf16.vlgmr.msra.gmra.mxu2 %v9994_v10  ;;  %v8419_v38 = vpack.c.bf16 %v3844_v41, %v3842_v22 }
 0x426   :  { %3251 = vmatmul.bf16.vlgmr.msra.gmra.mxu3 %v9996_v15 }
 0x427   :  { %9995 = vst [vmem:[#allocation135_spill] sm:$0xff] %v8419_v38 }
 0x428   :  { %v2527_v61 = vpop.f32.mrf.mxu2  ;;  %v2191_v9 = vpop.f32.mrf.mxu0 }
 0x429   :  { %v2528_v7 = vadd.f32 %v2527_v61, %v2359_v40  ;;  %v8422_v54 = vpop.f32.mrf.mxu3  ;;  %v2192_v59 = vadd.f32 %v2191_v9, %v7115_v16  ;;  %v2360_v5 = vpop.f32.mrf.mxu1  ;;  %v10000_v40 = vld [vmem:[#allocation6_spill] sm:$0xff]  ;;  %v10001_v61 = vld [vmem:[#allocation7_spill] sm:$0xff]  ;;  %v10003_v9 = vld [vmem:[#allocation136_spill] sm:$0xff] }
 0x42b   :  { %v2361_v32 = vadd.f32 %v2360_v5, %v2192_v59  ;;  %v3846_v22 = vmax.f32 %v2528_v7, 0.0 }
 0x430   :  { %v2529_v25 = vpop.f32.mrf.mxu2  ;;  %v2194_v42 = vpop.f32.mrf.mxu0 }
 0x431   :  { %v2530_v50 = vadd.f32 %v2529_v25, %v2361_v32  ;;  %v8425_v37 = vpop.f32.mrf.mxu3  ;;  %v2195_v10 = vadd.f32 %v2194_v42, %v9998_v23  ;;  %v2363_v41 = vpop.f32.mrf.mxu1 }
 0x432   :  { %9997 = vst [vmem:[#allocation2_spill] sm:$0xff] %v8425_v37  ;;  %v10006_v37 = vld [vmem:[#allocation8_spill] sm:$0xff] }
 0x433   :  { %v3848_v38 = vmax.f32 %v2530_v50, 0.0  ;;  %v2364_v15 = vadd.f32 %v2363_v41, %v2195_v10  ;;  %2749 = vmatmul.bf16.gmra.mxu0 %v9999_v56 }
 0x434   :  { %2918 = vmatmul.bf16.gmra.mxu1 %v10000_v40  ;;  %v10005_v40 = vld [vmem:[#allocation143_spill] sm:$0xff] }
 0x435   :  { %3087 = vmatmul.bf16.gmra.mxu2 %v10001_v61  ;;  %v8431_v16 = vpack.c.bf16 %v3848_v38, %v3846_v22 }
 0x436   :  { %3256 = vmatmul.bf16.gmra.mxu3 %v10003_v9 }
 0x437   :  { %10002 = vst [vmem:[#allocation3_spill] sm:$0xff] %v8431_v16 }
 0x438   :  { %v2532_v59 = vpop.f32.mrf.mxu2  ;;  %v2196_v32 = vpop.f32.mrf.mxu0 }
 0x439   :  { %v2533_v5 = vadd.f32 %v2532_v59, %v2364_v15  ;;  %v8434_v25 = vpop.f32.mrf.mxu3  ;;  %v2197_v42 = vadd.f32 %v2196_v32, %v7150_v55  ;;  %v2365_v7 = vpop.f32.mrf.mxu1  ;;  %v10007_v15 = vld [vmem:[#allocation9_spill] sm:$0xff]  ;;  %v10008_v59 = vld [vmem:[#allocation10_spill] sm:$0xff]  ;;  %v4916_v32 = vld [vmem:[%s9490_s1 + $0x2e8] sm:$0xf0] }
 0x43a   :  { %v5156_v55 = vld [vmem:[%s9490_s1 + $0x2e4] sm:$0xf] }
 0x43b   :  { %v2366_v50 = vadd.f32 %v2365_v7, %v2197_v42  ;;  %v3850_v22 = vmax.f32 %v2533_v5, 0.0  ;;  %v10010_v7 = vld [vmem:[#allocation140_spill] sm:$0xff]  ;;  %v4919_v5 = vor.u32 %v5156_v55, %v4916_v32 }
 0x43d   :  { %3413 = vmatpush.bf16.msrb.mxu0 %v4919_v5  ;;  %v10013_v5 = vld [vmem:[#allocation11_spill] sm:$0xff] }
 0x440   :  { %v2534_v23 = vpop.f32.mrf.mxu2  ;;  %v2199_v56 = vpop.f32.mrf.mxu0 }
 0x441   :  { %v2535_v10 = vadd.f32 %v2534_v23, %v2366_v50  ;;  %v8437_v41 = vpop.f32.mrf.mxu3  ;;  %v2200_v61 = vadd.f32 %v2199_v56, %v10005_v40  ;;  %v2368_v38 = vpop.f32.mrf.mxu1 }
 0x442   :  { %10004 = vst [vmem:[#allocation4_spill] sm:$0xff] %v8437_v41 }
 0x443   :  { %v3852_v16 = vmax.f32 %v2535_v10, 0.0  ;;  %v2369_v9 = vadd.f32 %v2368_v38, %v2200_v61  ;;  %2754 = vmatmul.bf16.gmra.mxu0 %v10006_v37 }
 0x444   :  { %2923 = vmatmul.bf16.gmra.mxu1 %v10007_v15 }
 0x445   :  { %3092 = vmatmul.bf16.gmra.mxu2 %v10008_v59  ;;  %v8449_v42 = vpack.c.bf16 %v3852_v16, %v3850_v22  ;;  %v10012_v16 = vld [vmem:[#allocation147_spill] sm:$0xff] }
 0x446   :  { %3261 = vmatmul.bf16.gmra.mxu3 %v10010_v7 }
 0x447   :  { %10009 = vst [vmem:[#allocation132_spill] sm:$0xff] %v8449_v42 }
 0x448   :  { %v2537_v50 = vpop.f32.mrf.mxu2  ;;  %v2201_v23 = vpop.f32.mrf.mxu0 }
 0x449   :  { %v2538_v37 = vadd.f32 %v2537_v50, %v2369_v9  ;;  %v8452_v10 = vpop.f32.mrf.mxu3  ;;  %v2202_v56 = vadd.f32 %v2201_v23, %v7197_v48  ;;  %v2370_v40 = vpop.f32.mrf.mxu1  ;;  %v10014_v9 = vld [vmem:[#allocation12_spill] sm:$0xff]  ;;  %v10015_v50 = vld [vmem:[#allocation13_spill] sm:$0xff] }
 0x44a   :  { %v10017_v23 = vld [vmem:[#allocation144_spill] sm:$0xff] }
 0x44b   :  { %v2371_v61 = vadd.f32 %v2370_v40, %v2202_v56  ;;  %v3854_v7 = vmax.f32 %v2538_v37, 0.0 }
 0x450   :  { %v2539_v38 = vpop.f32.mrf.mxu2  ;;  %v2204_v59 = vpop.f32.mrf.mxu0 }
 0x451   :  { %v2540_v15 = vadd.f32 %v2539_v38, %v2371_v61  ;;  %v8455_v41 = vpop.f32.mrf.mxu3  ;;  %v2205_v22 = vadd.f32 %v2204_v59, %v10012_v16  ;;  %v2373_v42 = vpop.f32.mrf.mxu1 }
 0x452   :  { %10011 = vst [vmem:[#allocation139_spill] sm:$0xff] %v8455_v41  ;;  %v10020_v41 = vld [vmem:[#allocation14_spill] sm:$0xff] }
 0x453   :  { %v3856_v55 = vmax.f32 %v2540_v15, 0.0  ;;  %v2374_v32 = vadd.f32 %v2373_v42, %v2205_v22  ;;  %2759 = vmatmul.bf16.gmra.mxu0 %v10013_v5 }
 0x454   :  { %2928 = vmatmul.bf16.gmra.mxu1 %v10014_v9  ;;  %v10019_v9 = vld [vmem:[#allocation151_spill] sm:$0xff] }
 0x455   :  { %3097 = vmatmul.bf16.gmra.mxu2 %v10015_v50  ;;  %v8461_v48 = vpack.c.bf16 %v3856_v55, %v3854_v7 }
 0x456   :  { %3266 = vmatmul.bf16.gmra.mxu3 %v10017_v23 }
 0x457   :  { %10016 = vst [vmem:[#allocation5_spill] sm:$0xff] %v8461_v48 }
 0x458   :  { %v2542_v56 = vpop.f32.mrf.mxu2  ;;  %v2206_v61 = vpop.f32.mrf.mxu0 }
 0x459   :  { %v2543_v40 = vadd.f32 %v2542_v56, %v2374_v32  ;;  %v8464_v38 = vpop.f32.mrf.mxu3  ;;  %v2207_v59 = vadd.f32 %v2206_v61, %v7232_v11  ;;  %v2375_v37 = vpop.f32.mrf.mxu1  ;;  %v10021_v32 = vld [vmem:[#allocation15_spill] sm:$0xff]  ;;  %v10022_v56 = vld [vmem:[#allocation16_spill] sm:$0xff] }
 0x45a   :  { %v10024_v61 = vld [vmem:[#allocation148_spill] sm:$0xff] }
 0x45b   :  { %v2376_v15 = vadd.f32 %v2375_v37, %v2207_v59  ;;  %v3858_v55 = vmax.f32 %v2543_v40, 0.0 }
 0x460   :  { %v2544_v42 = vpop.f32.mrf.mxu2  ;;  %v2209_v22 = vpop.f32.mrf.mxu0 }
 0x461   :  { %v2545_v16 = vadd.f32 %v2544_v42, %v2376_v15  ;;  %v8467_v5 = vpop.f32.mrf.mxu3  ;;  %v2210_v50 = vadd.f32 %v2209_v22, %v10019_v9  ;;  %v2378_v7 = vpop.f32.mrf.mxu1 }
 0x462   :  { %10018 = vst [vmem:[#allocation6_spill] sm:$0xff] %v8467_v5  ;;  %v10027_v5 = vld [vmem:[#allocation17_spill] sm:$0xff] }
 0x463   :  { %v3860_v48 = vmax.f32 %v2545_v16, 0.0  ;;  %v2379_v23 = vadd.f32 %v2378_v7, %v2210_v50  ;;  %2764 = vmatmul.bf16.gmra.mxu0 %v10020_v41 }
 0x464   :  { %2933 = vmatmul.bf16.gmra.mxu1 %v10021_v32  ;;  %v10026_v32 = vld [vmem:[#allocation155_spill] sm:$0xff] }
 0x465   :  { %3102 = vmatmul.bf16.gmra.mxu2 %v10022_v56  ;;  %v8473_v11 = vpack.c.bf16 %v3860_v48, %v3858_v55 }
 0x466   :  { %3271 = vmatmul.bf16.gmra.mxu3 %v10024_v61 }
 0x467   :  { %10023 = vst [vmem:[#allocation7_spill] sm:$0xff] %v8473_v11 }
 0x468   :  { %v2547_v59 = vpop.f32.mrf.mxu2  ;;  %v2211_v15 = vpop.f32.mrf.mxu0 }
 0x469   :  { %v2548_v37 = vadd.f32 %v2547_v59, %v2379_v23  ;;  %v8476_v42 = vpop.f32.mrf.mxu3  ;;  %v2212_v22 = vadd.f32 %v2211_v15, %v7267_v45  ;;  %v2380_v40 = vpop.f32.mrf.mxu1  ;;  %v10028_v23 = vld [vmem:[#allocation18_spill] sm:$0xff]  ;;  %v10029_v59 = vld [vmem:[#allocation19_spill] sm:$0xff]  ;;  %v10031_v15 = vld [vmem:[#allocation152_spill] sm:$0xff] }
 0x46b   :  { %v2381_v16 = vadd.f32 %v2380_v40, %v2212_v22  ;;  %v3862_v55 = vmax.f32 %v2548_v37, 0.0 }
 0x470   :  { %v2549_v9 = vpop.f32.mrf.mxu2  ;;  %v2214_v41 = vpop.f32.mrf.mxu0 }
 0x471   :  { %v2550_v50 = vadd.f32 %v2549_v9, %v2381_v16  ;;  %v8479_v7 = vpop.f32.mrf.mxu3  ;;  %v2215_v56 = vadd.f32 %v2214_v41, %v10026_v32  ;;  %v2383_v48 = vpop.f32.mrf.mxu1 }
 0x472   :  { %10025 = vst [vmem:[#allocation136_spill] sm:$0xff] %v8479_v7  ;;  %v10034_v7 = vld [vmem:[#allocation20_spill] sm:$0xff] }
 0x473   :  { %v3864_v11 = vmax.f32 %v2550_v50, 0.0  ;;  %v2384_v61 = vadd.f32 %v2383_v48, %v2215_v56  ;;  %2769 = vmatmul.bf16.gmra.mxu0 %v10027_v5 }
 0x474   :  { %2938 = vmatmul.bf16.gmra.mxu1 %v10028_v23  ;;  %v10033_v23 = vld [vmem:[#allocation159_spill] sm:$0xff] }
 0x475   :  { %3107 = vmatmul.bf16.gmra.mxu2 %v10029_v59  ;;  %v8485_v45 = vpack.c.bf16 %v3864_v11, %v3862_v55 }
 0x476   :  { %3276 = vmatmul.bf16.gmra.mxu3 %v10031_v15 }
 0x477   :  { %10030 = vst [vmem:[#allocation143_spill] sm:$0xff] %v8485_v45 }
 0x478   :  { %v2552_v22 = vpop.f32.mrf.mxu2  ;;  %v2216_v16 = vpop.f32.mrf.mxu0 }
 0x479   :  { %v2553_v40 = vadd.f32 %v2552_v22, %v2384_v61  ;;  %v8488_v9 = vpop.f32.mrf.mxu3  ;;  %v2217_v41 = vadd.f32 %v2216_v16, %v7302_v58  ;;  %v2385_v37 = vpop.f32.mrf.mxu1  ;;  %v10035_v61 = vld [vmem:[#allocation21_spill] sm:$0xff]  ;;  %v10036_v22 = vld [vmem:[#allocation22_spill] sm:$0xff]  ;;  %v5154_v58 = vld [vmem:[%s9490_s1 + $0x2d4] sm:$0xf] }
 0x47a   :  { %v4908_v16 = vld [vmem:[%s9490_s1 + $0x2d8] sm:$0xf0] }
 0x47b   :  { %v2386_v50 = vadd.f32 %v2385_v37, %v2217_v41  ;;  %v3866_v55 = vmax.f32 %v2553_v40, 0.0  ;;  %v10038_v37 = vld [vmem:[#allocation156_spill] sm:$0xff]  ;;  %v4911_v40 = vor.u32 %v5154_v58, %v4908_v16 }
 0x47d   :  { %3414 = vmatpush.bf16.msrb.mxu0 %v4911_v40  ;;  %v10039_v40 = vld [vmem:[#allocation23_spill] sm:$0xff] }
 0x480   :  { %v2554_v32 = vpop.f32.mrf.mxu2  ;;  %v2219_v5 = vpop.f32.mrf.mxu0 }
 0x481   :  { %v2555_v56 = vadd.f32 %v2554_v32, %v2386_v50  ;;  %v8491_v48 = vpop.f32.mrf.mxu3  ;;  %v2220_v59 = vadd.f32 %v2219_v5, %v10033_v23  ;;  %v2388_v11 = vpop.f32.mrf.mxu1 }
 0x482   :  { %10032 = vst [vmem:[#allocation8_spill] sm:$0xff] %v8491_v48 }
 0x483   :  { %v3868_v45 = vmax.f32 %v2555_v56, 0.0  ;;  %v2389_v15 = vadd.f32 %v2388_v11, %v2220_v59  ;;  %2774 = vmatmul.bf16.gmra.mxu0 %v10034_v7 }
 0x484   :  { %2943 = vmatmul.bf16.gmra.mxu1 %v10035_v61 }
 0x485   :  { %3112 = vmatmul.bf16.gmra.mxu2 %v10036_v22  ;;  %v8503_v41 = vpack.c.bf16 %v3868_v45, %v3866_v55  ;;  %v5169_v45 = vld [vmem:[%s9493_s3 + $0x38] sm:$0xff] }
 0x486   :  { %3281 = vmatmul.bf16.gmra.mxu3 %v10038_v37  ;;  %4074 = vmatpush.bf16.msrb.mxu2 %v5169_v45 }
 0x487   :  { %10037 = vst [vmem:[#allocation9_spill] sm:$0xff] %v8503_v41  ;;  %v10048_v41 = vld [vmem:[#allocation26_spill] sm:$0xff] }
 0x488   :  { %v2557_v50 = vpop.f32.mrf.mxu2  ;;  %v2221_v32 = vpop.f32.mrf.mxu0 }
 0x489   :  { %v2558_v7 = vadd.f32 %v2557_v50, %v2389_v15  ;;  %v8506_v56 = vpop.f32.mrf.mxu3  ;;  %v2222_v5 = vadd.f32 %v2221_v32, %v7349_v34  ;;  %v2390_v23 = vpop.f32.mrf.mxu1  ;;  %v5177_v34 = vld [vmem:[%s9493_s3 + $0x78] sm:$0xff]  ;;  %v10040_v50 = vld [vmem:[#allocation24_spill] sm:$0xff] }
 0x48a   :  { %v10041_v32 = vld [vmem:[#allocation25_spill] sm:$0xff]  ;;  %4243 = vmatpush.bf16.msrb.mxu3 %v5177_v34 }
 0x48b   :  { %v2391_v59 = vadd.f32 %v2390_v23, %v2222_v5  ;;  %v3870_v15 = vmax.f32 %v2558_v7, 0.0  ;;  %v10043_v23 = vld [vmem:[#allocation160_spill] sm:$0xff] }
 0x490   :  { %v2559_v11 = vpop.f32.mrf.mxu2  ;;  %v2224_v22 = vpop.f32.mrf.mxu0 }
 0x491   :  { %v2560_v61 = vadd.f32 %v2559_v11, %v2391_v59  ;;  %v8509_v48 = vpop.f32.mrf.mxu3  ;;  %v2225_v55 = vadd.f32 %v2224_v22, %v7369_v24  ;;  %v2393_v58 = vpop.f32.mrf.mxu1 }
 0x493   :  { %v3872_v16 = vmax.f32 %v2560_v61, 0.0  ;;  %v2394_v37 = vadd.f32 %v2393_v58, %v2225_v55  ;;  %2779 = vmatmul.bf16.gmra.mxu0 %v10039_v40  ;;  %v10045_v61 = vld [vmem:[#allocation166_spill] sm:$0xff] }
 0x494   :  { %2948 = vmatmul.bf16.gmra.mxu1 %v10040_v50  ;;  %v5370_v55 = vld [vmem:[%s9492_s2] sm:$0x3] }
 0x495   :  { %3117 = vmatmul.bf16.gmra.mxu2 %v10041_v32  ;;  %v8521_v5 = vpack.c.bf16 %v3872_v16, %v3870_v15  ;;  %v8530_v58 = vperm.slane %v5370_v55, 1  ;;  %v10046_v15 = vld [vmem:[#allocation167_spill] sm:$0xff]  ;;  %v10050_v55 = vld [vmem:[#allocation28_spill] sm:$0xff] }
 0x496   :  { %3286 = vmatmul.bf16.gmra.mxu3 %v10043_v23 }
 0x497   :  { %10042 = vst [vmem:[#allocation10_spill] sm:$0xff] %v8521_v5  ;;  %v2577_v16 = vadd.f32 %v10046_v15, %v8530_v58 }
 0x498   :  { %v2562_v24 = vpop.f32.mrf.mxu2  ;;  %v2226_v59 = vpop.f32.mrf.mxu0 }
 0x499   :  { %v2563_v7 = vadd.f32 %v2562_v24, %v2394_v37  ;;  %v8524_v11 = vpop.f32.mrf.mxu3  ;;  %v2227_v22 = vadd.f32 %v2226_v59, %v10045_v61  ;;  %v2395_v45 = vpop.f32.mrf.mxu1 }
 0x49a   :  { %10044 = vst [vmem:[#allocation140_spill] sm:$0xff] %v8524_v11  ;;  %v10049_v11 = vld [vmem:[#allocation27_spill] sm:$0xff] }
 0x49b   :  { %v2396_v40 = vadd.f32 %v2395_v45, %v2227_v22  ;;  %v3874_v5 = vmax.f32 %v2563_v7, 0.0  ;;  %v10052_v45 = vld [vmem:[#allocation163_spill] sm:$0xff] }
 0x4a0   :  { %v2564_v50 = vpop.f32.mrf.mxu2  ;;  %v2745_v37 = vpop.f32.mrf.mxu0 }
 0x4a1   :  { %v2565_v34 = vadd.f32 %v2564_v50, %v2396_v40  ;;  %v8534_v32 = vpop.f32.mrf.mxu3  ;;  %v2746_v23 = vadd.f32 %v2745_v37, %v2577_v16  ;;  %v2914_v24 = vpop.f32.mrf.mxu1  ;;  %v2579_v40 = vadd.f32 %v7426_v8, %v8530_v58 }
 0x4a2   :  { %10047 = vst [vmem:[#allocation147_spill] sm:$0xff] %v8534_v32 }
 0x4a3   :  { %v3876_v59 = vmax.f32 %v2565_v34, 0.0  ;;  %v2915_v61 = vadd.f32 %v2914_v24, %v2746_v23  ;;  %2784 = vmatmul.bf16.gmra.mxu0 %v10048_v41 }
 0x4a4   :  { %2953 = vmatmul.bf16.gmra.mxu1 %v10049_v11  ;;  %v2582_v11 = vadd.f32 %v7440_v2, %v8530_v58  ;;  %v2584_v2 = vadd.f32 %v7463_v57, %v8530_v58 }
 0x4a5   :  { %3122 = vmatmul.bf16.gmra.mxu2 %v10050_v55  ;;  %v8539_v22 = vpack.c.bf16 %v3876_v59, %v3874_v5 }
 0x4a6   :  { %3291 = vmatmul.bf16.gmra.mxu3 %v10052_v45 }
 0x4a7   :  { %10051 = vst [vmem:[#allocation11_spill] sm:$0xff] %v8539_v22 }
 0x4a8   :  { %v3083_v15 = vpop.f32.mrf.mxu2  ;;  %v2747_v16 = vpop.f32.mrf.mxu0 }
 0x4a9   :  { %v3084_v50 = vadd.f32 %v3083_v15, %v2915_v61  ;;  %v3252_v37 = vpop.f32.mrf.mxu3  ;;  %v2748_v7 = vadd.f32 %v2747_v16, %v2579_v40  ;;  %v2916_v34 = vpop.f32.mrf.mxu1  ;;  %v10053_v61 = vld [vmem:[#allocation29_spill] sm:$0xff]  ;;  %v10054_v15 = vld [vmem:[#allocation30_spill] sm:$0xff]  ;;  %v10055_v40 = vld [vmem:[#allocation31_spill] sm:$0xff] }
 0x4ab   :  { %v8544_v23 = vadd.f32 %v3252_v37, %v3084_v50  ;;  %v2917_v41 = vadd.f32 %v2916_v34, %v2748_v7 }
 0x4b0   :  { %v3085_v24 = vpop.f32.mrf.mxu2  ;;  %v2750_v59 = vpop.f32.mrf.mxu0 }
 0x4b1   :  { %v3086_v5 = vadd.f32 %v3085_v24, %v2917_v41  ;;  %v3254_v55 = vpop.f32.mrf.mxu3  ;;  %v2751_v45 = vadd.f32 %v2750_v59, %v2582_v11  ;;  %v2919_v22 = vpop.f32.mrf.mxu1  ;;  %v2587_v24 = vadd.f32 %v7489_v13, %v8530_v58  ;;  %v4900_v13 = vld [vmem:[%s9490_s1 + $0x2c8] sm:$0xf0] }
 0x4b3   :  { %v8548_v32 = vadd.f32 %v3254_v55, %v3086_v5  ;;  %v2920_v8 = vadd.f32 %v2919_v22, %v2751_v45  ;;  %2789 = vmatmul.bf16.gmra.mxu0 %v10053_v61 }
 0x4b4   :  { %2958 = vmatmul.bf16.gmra.mxu1 %v10054_v15 }
 0x4b5   :  { %3127 = vmatmul.bf16.gmra.mxu2 %v10055_v40  ;;  %v10057_v40 = vld [vmem:[#allocation33_spill] sm:$0xff] }
 0x4b6   :  { %3296 = vmatmul.bf16.gmra.mxu3 %v7424_v6 }
 0x4b8   :  { %v3088_v50 = vpop.f32.mrf.mxu2  ;;  %v2752_v37 = vpop.f32.mrf.mxu0 }
 0x4b9   :  { %v3089_v16 = vadd.f32 %v3088_v50, %v2920_v8  ;;  %v3257_v7 = vpop.f32.mrf.mxu3  ;;  %v2753_v34 = vadd.f32 %v2752_v37, %v2584_v2  ;;  %v2921_v41 = vpop.f32.mrf.mxu1  ;;  %v10056_v8 = vld [vmem:[#allocation32_spill] sm:$0xff]  ;;  %v10058_v2 = vld [vmem:[#allocation34_spill] sm:$0xff]  ;;  %v2589_v37 = vadd.f32 %v7512_v4, %v8530_v58 }
 0x4ba   :  { %v5152_v50 = vld [vmem:[%s9490_s1 + $0x2c4] sm:$0xf]  ;;  %v5168_v4 = vld [vmem:[%s9493_s3 + $0x30] sm:$0xff] }
 0x4bb   :  { %v8556_v11 = vadd.f32 %v3257_v7, %v3089_v16  ;;  %v2922_v22 = vadd.f32 %v2921_v41, %v2753_v34  ;;  %v4903_v16 = vor.u32 %v5152_v50, %v4900_v13  ;;  %4075 = vmatpush.bf16.msrb.mxu2 %v5168_v4  ;;  %v10059_v13 = vld [vmem:[#allocation35_spill] sm:$0xff] }
 0x4bd   :  { %3415 = vmatpush.bf16.msrb.mxu0 %v4903_v16  ;;  %v10060_v16 = vld [vmem:[#allocation36_spill] sm:$0xff] }
 0x4c0   :  { %v3090_v5 = vpop.f32.mrf.mxu2  ;;  %v2755_v55 = vpop.f32.mrf.mxu0 }
 0x4c1   :  { %v3091_v59 = vadd.f32 %v3090_v5, %v2922_v22  ;;  %v3259_v45 = vpop.f32.mrf.mxu3  ;;  %v2756_v6 = vadd.f32 %v2755_v55, %v2587_v24  ;;  %v2924_v61 = vpop.f32.mrf.mxu1 }
 0x4c3   :  { %v8560_v15 = vadd.f32 %v3259_v45, %v3091_v59  ;;  %v2925_v57 = vadd.f32 %v2924_v61, %v2756_v6  ;;  %2794 = vmatmul.bf16.gmra.mxu0 %v10056_v8  ;;  %v2592_v45 = vadd.f32 %v7538_v27, %v8530_v58  ;;  %v5176_v27 = vld [vmem:[%s9493_s3 + $0x70] sm:$0xff] }
 0x4c4   :  { %2963 = vmatmul.bf16.gmra.mxu1 %v10057_v40  ;;  %4244 = vmatpush.bf16.msrb.mxu3 %v5176_v27  ;;  %v10063_v27 = vld [vmem:[#allocation39_spill] sm:$0xff] }
 0x4c5   :  { %3132 = vmatmul.bf16.gmra.mxu2 %v10058_v2 }
 0x4c6   :  { %3301 = vmatmul.bf16.gmra.mxu3 %v7461_v39 }
 0x4c8   :  { %v3093_v7 = vpop.f32.mrf.mxu2  ;;  %v2757_v41 = vpop.f32.mrf.mxu0 }
 0x4c9   :  { %v3094_v34 = vadd.f32 %v3093_v7, %v2925_v57  ;;  %v3262_v22 = vpop.f32.mrf.mxu3  ;;  %v2758_v24 = vadd.f32 %v2757_v41, %v2589_v37  ;;  %v2926_v5 = vpop.f32.mrf.mxu1  ;;  %v10061_v37 = vld [vmem:[#allocation37_spill] sm:$0xff]  ;;  %v2594_v7 = vadd.f32 %v7561_v60, %v8530_v58 }
 0x4cb   :  { %v8574_v59 = vadd.f32 %v3262_v22, %v3094_v34  ;;  %v2927_v55 = vadd.f32 %v2926_v5, %v2758_v24 }
 0x4d0   :  { %v3095_v6 = vpop.f32.mrf.mxu2  ;;  %v2760_v39 = vpop.f32.mrf.mxu0 }
 0x4d1   :  { %v3096_v61 = vadd.f32 %v3095_v6, %v2927_v55  ;;  %v3264_v8 = vpop.f32.mrf.mxu3  ;;  %v2761_v40 = vadd.f32 %v2760_v39, %v2592_v45  ;;  %v2929_v57 = vpop.f32.mrf.mxu1 }
 0x4d3   :  { %v8581_v2 = vadd.f32 %v3264_v8, %v3096_v61  ;;  %v2930_v50 = vadd.f32 %v2929_v57, %v2761_v40  ;;  %2799 = vmatmul.bf16.gmra.mxu0 %v10059_v13  ;;  %v2597_v61 = vadd.f32 %v7575_v26, %v8530_v58  ;;  %v2599_v26 = vadd.f32 %v7598_v51, %v8530_v58 }
 0x4d4   :  { %2968 = vmatmul.bf16.gmra.mxu1 %v10060_v16  ;;  %v10064_v16 = vld [vmem:[#allocation40_spill] sm:$0xff] }
 0x4d5   :  { %3137 = vmatmul.bf16.gmra.mxu2 %v10061_v37 }
 0x4d6   :  { %3306 = vmatmul.bf16.gmra.mxu3 %v7510_v47 }
 0x4d8   :  { %v3098_v34 = vpop.f32.mrf.mxu2  ;;  %v2762_v22 = vpop.f32.mrf.mxu0 }
 0x4d9   :  { %v3099_v41 = vadd.f32 %v3098_v34, %v2930_v50  ;;  %v3267_v24 = vpop.f32.mrf.mxu3  ;;  %v2763_v5 = vadd.f32 %v2762_v22, %v2594_v7  ;;  %v2931_v55 = vpop.f32.mrf.mxu1  ;;  %v10062_v50 = vld [vmem:[#allocation38_spill] sm:$0xff] }
 0x4db   :  { %v8592_v45 = vadd.f32 %v3267_v24, %v3099_v41  ;;  %v2932_v6 = vadd.f32 %v2931_v55, %v2763_v5 }
 0x4e0   :  { %v3100_v39 = vpop.f32.mrf.mxu2  ;;  %v2765_v4 = vpop.f32.mrf.mxu0 }
 0x4e1   :  { %v3101_v8 = vadd.f32 %v3100_v39, %v2932_v6  ;;  %v3269_v47 = vpop.f32.mrf.mxu3  ;;  %v2766_v40 = vadd.f32 %v2765_v4, %v2597_v61  ;;  %v2934_v57 = vpop.f32.mrf.mxu1  ;;  %v2602_v6 = vadd.f32 %v7612_v17, %v8530_v58  ;;  %v2604_v17 = vadd.f32 %v7635_v0, %v8530_v58 }
 0x4e3   :  { %v8596_v13 = vadd.f32 %v3269_v47, %v3101_v8  ;;  %v2935_v60 = vadd.f32 %v2934_v57, %v2766_v40  ;;  %2804 = vmatmul.bf16.gmra.mxu0 %v10062_v50  ;;  %v10065_v57 = vld [vmem:[#allocation41_spill] sm:$0xff]  ;;  %v10067_v50 = vld [vmem:[#allocation43_spill] sm:$0xff] }
 0x4e4   :  { %2973 = vmatmul.bf16.gmra.mxu1 %v10063_v27 }
 0x4e5   :  { %3142 = vmatmul.bf16.gmra.mxu2 %v10064_v16 }
 0x4e6   :  { %3311 = vmatmul.bf16.gmra.mxu3 %v7559_v33 }
 0x4e8   :  { %v3103_v37 = vpop.f32.mrf.mxu2  ;;  %v2767_v34 = vpop.f32.mrf.mxu0 }
 0x4e9   :  { %v3104_v7 = vadd.f32 %v3103_v37, %v2935_v60  ;;  %v3272_v41 = vpop.f32.mrf.mxu3  ;;  %v2768_v22 = vadd.f32 %v2767_v34, %v2599_v26  ;;  %v2936_v24 = vpop.f32.mrf.mxu1  ;;  %v10066_v60 = vld [vmem:[#allocation42_spill] sm:$0xff] }
 0x4eb   :  { %v8604_v5 = vadd.f32 %v3272_v41, %v3104_v7  ;;  %v2937_v55 = vadd.f32 %v2936_v24, %v2768_v22  ;;  %v2607_v24 = vadd.f32 %v7661_v49, %v8530_v58  ;;  %v4892_v49 = vld [vmem:[%s9490_s1 + $0x2b8] sm:$0xf0] }
 0x4f0   :  { %v3105_v61 = vpop.f32.mrf.mxu2  ;;  %v2770_v8 = vpop.f32.mrf.mxu0 }
 0x4f1   :  { %v3106_v39 = vadd.f32 %v3105_v61, %v2937_v55  ;;  %v3274_v4 = vpop.f32.mrf.mxu3  ;;  %v2771_v33 = vadd.f32 %v2770_v8, %v2602_v6  ;;  %v2939_v47 = vpop.f32.mrf.mxu1 }
 0x4f3   :  { %v8608_v40 = vadd.f32 %v3274_v4, %v3106_v39  ;;  %v2940_v51 = vadd.f32 %v2939_v47, %v2771_v33  ;;  %2809 = vmatmul.bf16.gmra.mxu0 %v10065_v57  ;;  %v10068_v33 = vld [vmem:[#allocation44_spill] sm:$0xff]  ;;  %v10069_v47 = vld [vmem:[#allocation45_spill] sm:$0xff] }
 0x4f4   :  { %2978 = vmatmul.bf16.gmra.mxu1 %v10066_v60  ;;  %v5150_v57 = vld [vmem:[%s9490_s1 + $0x2b4] sm:$0xf] }
 0x4f5   :  { %3147 = vmatmul.bf16.gmra.mxu2 %v10067_v50  ;;  %v4895_v60 = vor.u32 %v5150_v57, %v4892_v49  ;;  %v2609_v50 = vadd.f32 %v7684_v52, %v8530_v58  ;;  %v5167_v52 = vld [vmem:[%s9493_s3 + $0x28] sm:$0xff]  ;;  %v2614_v57 = vadd.f32 %v7733_v28, %v8530_v58 }
 0x4f6   :  { %3316 = vmatmul.bf16.gmra.mxu3 %v7596_v36  ;;  %4076 = vmatpush.bf16.msrb.mxu2 %v5167_v52  ;;  %v10074_v52 = vld [vmem:[#allocation50_spill] sm:$0xff] }
 0x4f7   :  { %3416 = vmatpush.bf16.msrb.mxu0 %v4895_v60 }
 0x4f8   :  { %v3108_v27 = vpop.f32.mrf.mxu2  ;;  %v2772_v26 = vpop.f32.mrf.mxu0 }
 0x4f9   :  { %v3109_v16 = vadd.f32 %v3108_v27, %v2940_v51  ;;  %v3277_v37 = vpop.f32.mrf.mxu3  ;;  %v2773_v7 = vadd.f32 %v2772_v26, %v2604_v17  ;;  %v2941_v34 = vpop.f32.mrf.mxu1  ;;  %v10070_v51 = vld [vmem:[#allocation46_spill] sm:$0xff] }
 0x4fb   :  { %v8616_v41 = vadd.f32 %v3277_v37, %v3109_v16  ;;  %v2942_v22 = vadd.f32 %v2941_v34, %v2773_v7 }
 0x500   :  { %v3110_v55 = vpop.f32.mrf.mxu2  ;;  %v2775_v61 = vpop.f32.mrf.mxu0 }
 0x501   :  { %v3111_v6 = vadd.f32 %v3110_v55, %v2942_v22  ;;  %v3279_v39 = vpop.f32.mrf.mxu3  ;;  %v2776_v36 = vadd.f32 %v2775_v61, %v2607_v24  ;;  %v2944_v8 = vpop.f32.mrf.mxu1  ;;  %v2612_v24 = vadd.f32 %v7710_v30, %v8530_v58  ;;  %v5175_v30 = vld [vmem:[%s9493_s3 + $0x68] sm:$0xff] }
 0x502   :  { %4245 = vmatpush.bf16.msrb.mxu3 %v5175_v30 }
 0x503   :  { %v8620_v4 = vadd.f32 %v3279_v39, %v3111_v6  ;;  %v2945_v0 = vadd.f32 %v2944_v8, %v2776_v36  ;;  %2814 = vmatmul.bf16.gmra.mxu0 %v10068_v33  ;;  %v10071_v33 = vld [vmem:[#allocation47_spill] sm:$0xff] }
 0x504   :  { %2983 = vmatmul.bf16.gmra.mxu1 %v10069_v47  ;;  %v10072_v47 = vld [vmem:[#allocation48_spill] sm:$0xff] }
 0x505   :  { %3152 = vmatmul.bf16.gmra.mxu2 %v10070_v51  ;;  %v10073_v51 = vld [vmem:[#allocation49_spill] sm:$0xff] }
 0x506   :  { %3321 = vmatmul.bf16.gmra.mxu3 %v7633_v43 }
 0x508   :  { %v3113_v17 = vpop.f32.mrf.mxu2  ;;  %v2777_v16 = vpop.f32.mrf.mxu0 }
 0x509   :  { %v3114_v27 = vadd.f32 %v3113_v17, %v2945_v0  ;;  %v3282_v26 = vpop.f32.mrf.mxu3  ;;  %v2778_v37 = vadd.f32 %v2777_v16, %v2609_v50  ;;  %v2946_v7 = vpop.f32.mrf.mxu1 }
 0x50b   :  { %v8634_v34 = vadd.f32 %v3282_v26, %v3114_v27  ;;  %v2947_v22 = vadd.f32 %v2946_v7, %v2778_v37  ;;  %v2617_v7 = vadd.f32 %v7747_v19, %v8530_v58  ;;  %v2619_v19 = vadd.f32 %v7770_v46, %v8530_v58 }
 0x510   :  { %v3115_v55 = vpop.f32.mrf.mxu2  ;;  %v2780_v43 = vpop.f32.mrf.mxu0 }
 0x511   :  { %v3116_v6 = vadd.f32 %v3115_v55, %v2947_v22  ;;  %v3284_v61 = vpop.f32.mrf.mxu3  ;;  %v2781_v39 = vadd.f32 %v2780_v43, %v2612_v24  ;;  %v2949_v36 = vpop.f32.mrf.mxu1 }
 0x513   :  { %v8641_v8 = vadd.f32 %v3284_v61, %v3116_v6  ;;  %v2950_v0 = vadd.f32 %v2949_v36, %v2781_v39  ;;  %2819 = vmatmul.bf16.gmra.mxu0 %v10071_v33  ;;  %v10075_v39 = vld [vmem:[#allocation51_spill] sm:$0xff]  ;;  %v10076_v36 = vld [vmem:[#allocation52_spill] sm:$0xff] }
 0x514   :  { %2988 = vmatmul.bf16.gmra.mxu1 %v10072_v47 }
 0x515   :  { %3157 = vmatmul.bf16.gmra.mxu2 %v10073_v51 }
 0x516   :  { %3326 = vmatmul.bf16.gmra.mxu3 %v7682_v29 }
 0x518   :  { %v3118_v49 = vpop.f32.mrf.mxu2  ;;  %v2782_v50 = vpop.f32.mrf.mxu0 }
 0x519   :  { %v3119_v60 = vadd.f32 %v3118_v49, %v2950_v0  ;;  %v3287_v17 = vpop.f32.mrf.mxu3  ;;  %v2783_v27 = vadd.f32 %v2782_v50, %v2614_v57  ;;  %v2951_v16 = vpop.f32.mrf.mxu1  ;;  %v2622_v50 = vadd.f32 %v7784_v1, %v8530_v58  ;;  %v2624_v1 = vadd.f32 %v7807_v53, %v8530_v58 }
 0x51b   :  { %v8652_v26 = vadd.f32 %v3287_v17, %v3119_v60  ;;  %v2952_v37 = vadd.f32 %v2951_v16, %v2783_v27 }
 0x520   :  { %v3120_v22 = vpop.f32.mrf.mxu2  ;;  %v2785_v55 = vpop.f32.mrf.mxu0 }
 0x521   :  { %v3121_v24 = vadd.f32 %v3120_v22, %v2952_v37  ;;  %v3289_v29 = vpop.f32.mrf.mxu3  ;;  %v2786_v6 = vadd.f32 %v2785_v55, %v2617_v7  ;;  %v2954_v43 = vpop.f32.mrf.mxu1  ;;  %v10078_v55 = vld [vmem:[#allocation54_spill] sm:$0xff] }
 0x523   :  { %v8656_v61 = vadd.f32 %v3289_v29, %v3121_v24  ;;  %v2955_v28 = vadd.f32 %v2954_v43, %v2786_v6  ;;  %2824 = vmatmul.bf16.gmra.mxu0 %v10074_v52  ;;  %v10077_v24 = vld [vmem:[#allocation53_spill] sm:$0xff]  ;;  %v10079_v29 = vld [vmem:[#allocation55_spill] sm:$0xff] }
 0x524   :  { %2993 = vmatmul.bf16.gmra.mxu1 %v10075_v39 }
 0x525   :  { %3162 = vmatmul.bf16.gmra.mxu2 %v10076_v36 }
 0x526   :  { %3331 = vmatmul.bf16.gmra.mxu3 %v7731_v20 }
 0x528   :  { %v3123_v0 = vpop.f32.mrf.mxu2  ;;  %v2787_v30 = vpop.f32.mrf.mxu0 }
 0x529   :  { %v3124_v33 = vadd.f32 %v3123_v0, %v2955_v28  ;;  %v3292_v47 = vpop.f32.mrf.mxu3  ;;  %v2788_v51 = vadd.f32 %v2787_v30, %v2619_v19  ;;  %v2956_v57 = vpop.f32.mrf.mxu1 }
 0x52b   :  { %v8664_v49 = vadd.f32 %v3292_v47, %v3124_v33  ;;  %v2957_v60 = vadd.f32 %v2956_v57, %v2788_v51  ;;  %v2627_v33 = vadd.f32 %v7833_v18, %v8530_v58  ;;  %v4884_v18 = vld [vmem:[%s9490_s1 + $0x2a8] sm:$0xf0] }
 0x530   :  { %v3125_v17 = vpop.f32.mrf.mxu2  ;;  %v2790_v16 = vpop.f32.mrf.mxu0 }
 0x531   :  { %v3126_v27 = vadd.f32 %v3125_v17, %v2957_v60  ;;  %v3294_v37 = vpop.f32.mrf.mxu3  ;;  %v2791_v20 = vadd.f32 %v2790_v16, %v2622_v50  ;;  %v2959_v7 = vpop.f32.mrf.mxu1  ;;  %v10080_v17 = vld [vmem:[#allocation56_spill] sm:$0xff]  ;;  %v10082_v16 = vld [vmem:[#allocation58_spill] sm:$0xff] }
 0x533   :  { %v8668_v22 = vadd.f32 %v3294_v37, %v3126_v27  ;;  %v2960_v46 = vadd.f32 %v2959_v7, %v2791_v20  ;;  %2829 = vmatmul.bf16.gmra.mxu0 %v10077_v24  ;;  %v10081_v27 = vld [vmem:[#allocation57_spill] sm:$0xff]  ;;  %v5148_v37 = vld [vmem:[%s9490_s1 + $0x2a4] sm:$0xf]  ;;  %v2629_v7 = vadd.f32 %v7856_v31, %v8530_v58 }
 0x534   :  { %2998 = vmatmul.bf16.gmra.mxu1 %v10078_v55  ;;  %v4887_v20 = vor.u32 %v5148_v37, %v4884_v18  ;;  %v5166_v31 = vld [vmem:[%s9493_s3 + $0x20] sm:$0xff] }
 0x535   :  { %3167 = vmatmul.bf16.gmra.mxu2 %v10079_v29 }
 0x536   :  { %3336 = vmatmul.bf16.gmra.mxu3 %v7768_v12  ;;  %3417 = vmatpush.bf16.msrb.mxu0 %v4887_v20 }
 0x537   :  { %4077 = vmatpush.bf16.msrb.mxu2 %v5166_v31 }
 0x538   :  { %v3128_v6 = vpop.f32.mrf.mxu2  ;;  %v2792_v28 = vpop.f32.mrf.mxu0 }
 0x539   :  { %v3129_v43 = vadd.f32 %v3128_v6, %v2960_v46  ;;  %v3297_v52 = vpop.f32.mrf.mxu3  ;;  %v2793_v39 = vadd.f32 %v2792_v28, %v2624_v1  ;;  %v2961_v36 = vpop.f32.mrf.mxu1 }
 0x53b   :  { %v8676_v19 = vadd.f32 %v3297_v52, %v3129_v43  ;;  %v2962_v0 = vadd.f32 %v2961_v36, %v2793_v39  ;;  %v10083_v52 = vld [vmem:[#allocation59_spill] sm:$0xff] }
 0x53c   :  { %v2632_v39 = vadd.f32 %v10083_v52, %v8530_v58 }
 0x540   :  { %v3130_v30 = vpop.f32.mrf.mxu2  ;;  %v2795_v51 = vpop.f32.mrf.mxu0 }
 0x541   :  { %v3131_v47 = vadd.f32 %v3130_v30, %v2962_v0  ;;  %v3299_v57 = vpop.f32.mrf.mxu3  ;;  %v2796_v12 = vadd.f32 %v2795_v51, %v2627_v33  ;;  %v2964_v60 = vpop.f32.mrf.mxu1 }
 0x543   :  { %v8680_v50 = vadd.f32 %v3299_v57, %v3131_v47  ;;  %v2965_v53 = vadd.f32 %v2964_v60, %v2796_v12  ;;  %2834 = vmatmul.bf16.gmra.mxu0 %v10080_v17  ;;  %v10084_v12 = vld [vmem:[#allocation60_spill] sm:$0xff]  ;;  %v5174_v60 = vld [vmem:[%s9493_s3 + $0x60] sm:$0xff] }
 0x544   :  { %3003 = vmatmul.bf16.gmra.mxu1 %v10081_v27  ;;  %v10086_v17 = vld [vmem:[#allocation62_spill] sm:$0xff]  ;;  %4246 = vmatpush.bf16.msrb.mxu3 %v5174_v60  ;;  %v10093_v60 = vld [vmem:[#allocation67_spill] sm:$0xff] }
 0x545   :  { %3172 = vmatmul.bf16.gmra.mxu2 %v10082_v16  ;;  %v10087_v27 = vld [vmem:[#allocation198_spill] sm:$0xff] }
 0x546   :  { %3341 = vmatmul.bf16.gmra.mxu3 %v7805_v3  ;;  %v10088_v16 = vld [vmem:[#allocation202_spill] sm:$0xff] }
 0x547   :  { %v2634_v37 = vadd.f32 %v10088_v16, %v8530_v58 }
 0x548   :  { %v3133_v46 = vpop.f32.mrf.mxu2  ;;  %v2797_v55 = vpop.f32.mrf.mxu0 }
 0x549   :  { %v3134_v24 = vadd.f32 %v3133_v46, %v2965_v53  ;;  %v3302_v29 = vpop.f32.mrf.mxu3  ;;  %v2798_v1 = vadd.f32 %v2797_v55, %v2629_v7  ;;  %v2966_v6 = vpop.f32.mrf.mxu1  ;;  %v10085_v53 = vld [vmem:[#allocation61_spill] sm:$0xff] }
 0x54b   :  { %v8694_v43 = vadd.f32 %v3302_v29, %v3134_v24  ;;  %v2967_v28 = vadd.f32 %v2966_v6, %v2798_v1  ;;  %v10089_v6 = vld [vmem:[#allocation63_spill] sm:$0xff] }
 0x550   :  { %v3135_v36 = vpop.f32.mrf.mxu2  ;;  %v2800_v3 = vpop.f32.mrf.mxu0 }
 0x551   :  { %v3136_v0 = vadd.f32 %v3135_v36, %v2967_v28  ;;  %v3304_v33 = vpop.f32.mrf.mxu3  ;;  %v2801_v30 = vadd.f32 %v2800_v3, %v2632_v39  ;;  %v2969_v47 = vpop.f32.mrf.mxu1  ;;  %v2637_v28 = vadd.f32 %v10089_v6, %v8530_v58 }
 0x553   :  { %v8701_v51 = vadd.f32 %v3304_v33, %v3136_v0  ;;  %v2970_v57 = vadd.f32 %v2969_v47, %v2801_v30  ;;  %2839 = vmatmul.bf16.gmra.mxu0 %v10084_v12  ;;  %v10090_v47 = vld [vmem:[#allocation64_spill] sm:$0xff]  ;;  %v10092_v12 = vld [vmem:[#allocation66_spill] sm:$0xff] }
 0x554   :  { %3008 = vmatmul.bf16.gmra.mxu1 %v10085_v53  ;;  %v10094_v53 = vld [vmem:[#allocation205_spill] sm:$0xff] }
 0x555   :  { %3177 = vmatmul.bf16.gmra.mxu2 %v10086_v17  ;;  %v2639_v17 = vadd.f32 %v10094_v53, %v8530_v58 }
 0x556   :  { %3346 = vmatmul.bf16.gmra.mxu3 %v10087_v27 }
 0x558   :  { %v3138_v18 = vpop.f32.mrf.mxu2  ;;  %v2802_v7 = vpop.f32.mrf.mxu0 }
 0x559   :  { %v3139_v20 = vadd.f32 %v3138_v18, %v2970_v57  ;;  %v3307_v46 = vpop.f32.mrf.mxu3  ;;  %v2803_v24 = vadd.f32 %v2802_v7, %v2634_v37  ;;  %v2971_v55 = vpop.f32.mrf.mxu1  ;;  %v10091_v57 = vld [vmem:[#allocation65_spill] sm:$0xff] }
 0x55b   :  { %v8712_v29 = vadd.f32 %v3307_v46, %v3139_v20  ;;  %v2972_v1 = vadd.f32 %v2971_v55, %v2803_v24  ;;  %v10095_v55 = vld [vmem:[#allocation69_spill] sm:$0xff] }
 0x560   :  { %v3140_v52 = vpop.f32.mrf.mxu2  ;;  %v2805_v36 = vpop.f32.mrf.mxu0 }
 0x561   :  { %v3141_v39 = vadd.f32 %v3140_v52, %v2972_v1  ;;  %v3309_v0 = vpop.f32.mrf.mxu3  ;;  %v2806_v3 = vadd.f32 %v2805_v36, %v2637_v28  ;;  %v2974_v33 = vpop.f32.mrf.mxu1  ;;  %v2642_v1 = vadd.f32 %v10095_v55, %v8530_v58  ;;  %v10101_v55 = vld [vmem:[#allocation75_spill] sm:$0xff] }
 0x563   :  { %v8716_v31 = vadd.f32 %v3309_v0, %v3141_v39  ;;  %v2975_v30 = vadd.f32 %v2974_v33, %v2806_v3  ;;  %2844 = vmatmul.bf16.gmra.mxu0 %v10090_v47  ;;  %v10097_v47 = vld [vmem:[#allocation71_spill] sm:$0xff] }
 0x564   :  { %3013 = vmatmul.bf16.gmra.mxu1 %v10091_v57  ;;  %v10098_v57 = vld [vmem:[#allocation72_spill] sm:$0xff] }
 0x565   :  { %3182 = vmatmul.bf16.gmra.mxu2 %v10092_v12  ;;  %v10099_v12 = vld [vmem:[#allocation73_spill] sm:$0xff] }
 0x566   :  { %3351 = vmatmul.bf16.gmra.mxu3 %v10093_v60  ;;  %v10100_v60 = vld [vmem:[#allocation208_spill] sm:$0xff] }
 0x567   :  { %v2644_v53 = vadd.f32 %v10100_v60, %v8530_v58  ;;  %v5146_v60 = vld [vmem:[%s9490_s1 + $0x294] sm:$0xf] }
 0x568   :  { %v3143_v27 = vpop.f32.mrf.mxu2  ;;  %v2807_v37 = vpop.f32.mrf.mxu0 }
 0x569   :  { %v3144_v16 = vadd.f32 %v3143_v27, %v2975_v30  ;;  %v3312_v18 = vpop.f32.mrf.mxu3  ;;  %v2808_v20 = vadd.f32 %v2807_v37, %v2639_v17  ;;  %v2976_v7 = vpop.f32.mrf.mxu1  ;;  %v10096_v30 = vld [vmem:[#allocation70_spill] sm:$0xff] }
 0x56b   :  { %v8724_v46 = vadd.f32 %v3312_v18, %v3144_v16  ;;  %v2977_v24 = vadd.f32 %v2976_v7, %v2808_v20 }
 0x570   :  { %v3145_v6 = vpop.f32.mrf.mxu2  ;;  %v2810_v52 = vpop.f32.mrf.mxu0 }
 0x571   :  { %v3146_v28 = vadd.f32 %v3145_v6, %v2977_v24  ;;  %v3314_v39 = vpop.f32.mrf.mxu3  ;;  %v2811_v36 = vadd.f32 %v2810_v52, %v2642_v1  ;;  %v2979_v0 = vpop.f32.mrf.mxu1  ;;  %v2647_v1 = vadd.f32 %v10101_v55, %v8530_v58 }
 0x573   :  { %v8728_v3 = vadd.f32 %v3314_v39, %v3146_v28  ;;  %v2980_v33 = vadd.f32 %v2979_v0, %v2811_v36  ;;  %2849 = vmatmul.bf16.gmra.mxu0 %v10096_v30 }
 0x574   :  { %3018 = vmatmul.bf16.gmra.mxu1 %v10097_v47 }
 0x575   :  { %3187 = vmatmul.bf16.gmra.mxu2 %v10098_v57  ;;  %v10103_v57 = vld [vmem:[#allocation77_spill] sm:$0xff] }
 0x576   :  { %3356 = vmatmul.bf16.gmra.mxu3 %v10099_v12  ;;  %v10104_v12 = vld [vmem:[#allocation78_spill] sm:$0xff] }
 0x578   :  { %v3148_v17 = vpop.f32.mrf.mxu2  ;;  %v2812_v16 = vpop.f32.mrf.mxu0 }
 0x579   :  { %v3149_v27 = vadd.f32 %v3148_v17, %v2980_v33  ;;  %v3317_v37 = vpop.f32.mrf.mxu3  ;;  %v2813_v18 = vadd.f32 %v2812_v16, %v2644_v53  ;;  %v2981_v20 = vpop.f32.mrf.mxu1  ;;  %v10102_v33 = vld [vmem:[#allocation76_spill] sm:$0xff]  ;;  %v4876_v53 = vld [vmem:[%s9490_s1 + $0x298] sm:$0xf0]  ;;  %v10105_v17 = vld [vmem:[#allocation79_spill] sm:$0xff] }
 0x57a   :  { %v10106_v16 = vld [vmem:[#allocation211_spill] sm:$0xff] }
 0x57b   :  { %v8736_v7 = vadd.f32 %v3317_v37, %v3149_v27  ;;  %v2982_v24 = vadd.f32 %v2981_v20, %v2813_v18  ;;  %v4879_v27 = vor.u32 %v5146_v60, %v4876_v53  ;;  %v2649_v37 = vadd.f32 %v10106_v16, %v8530_v58  ;;  %v5165_v60 = vld [vmem:[%s9493_s3 + $0x18] sm:$0xff]  ;;  %v10109_v16 = vld [vmem:[#allocation82_spill] sm:$0xff] }
 0x57c   :  { %4078 = vmatpush.bf16.msrb.mxu2 %v5165_v60  ;;  %v10115_v60 = vld [vmem:[#allocation87_spill] sm:$0xff] }
 0x57d   :  { %3418 = vmatpush.bf16.msrb.mxu0 %v4879_v27 }
 0x580   :  { %v3150_v6 = vpop.f32.mrf.mxu2  ;;  %v2815_v52 = vpop.f32.mrf.mxu0 }
 0x581   :  { %v3151_v28 = vadd.f32 %v3150_v6, %v2982_v24  ;;  %v3319_v39 = vpop.f32.mrf.mxu3  ;;  %v2816_v36 = vadd.f32 %v2815_v52, %v2647_v1  ;;  %v2984_v0 = vpop.f32.mrf.mxu1 }
 0x583   :  { %v8740_v30 = vadd.f32 %v3319_v39, %v3151_v28  ;;  %v2985_v47 = vadd.f32 %v2984_v0, %v2816_v36  ;;  %2854 = vmatmul.bf16.gmra.mxu0 %v10102_v33  ;;  %v10107_v39 = vld [vmem:[#allocation81_spill] sm:$0xff] }
 0x584   :  { %3023 = vmatmul.bf16.gmra.mxu1 %v10103_v57  ;;  %v2652_v36 = vadd.f32 %v10107_v39, %v8530_v58 }
 0x585   :  { %3192 = vmatmul.bf16.gmra.mxu2 %v10104_v12 }
 0x586   :  { %3361 = vmatmul.bf16.gmra.mxu3 %v10105_v17 }
 0x588   :  { %v3153_v18 = vpop.f32.mrf.mxu2  ;;  %v2817_v24 = vpop.f32.mrf.mxu0 }
 0x589   :  { %v3154_v20 = vadd.f32 %v3153_v18, %v2985_v47  ;;  %v3322_v55 = vpop.f32.mrf.mxu3  ;;  %v2818_v1 = vadd.f32 %v2817_v24, %v2649_v37  ;;  %v2986_v6 = vpop.f32.mrf.mxu1  ;;  %v5173_v37 = vld [vmem:[%s9493_s3 + $0x58] sm:$0xff]  ;;  %v10110_v18 = vld [vmem:[#allocation83_spill] sm:$0xff] }
 0x58a   :  { %v10112_v24 = vld [vmem:[#allocation85_spill] sm:$0xff]  ;;  %4247 = vmatpush.bf16.msrb.mxu3 %v5173_v37 }
 0x58b   :  { %v8754_v28 = vadd.f32 %v3322_v55, %v3154_v20  ;;  %v2987_v52 = vadd.f32 %v2986_v6, %v2818_v1  ;;  %v10111_v20 = vld [vmem:[#allocation84_spill] sm:$0xff]  ;;  %v10113_v55 = vld [vmem:[#allocation214_spill] sm:$0xff] }
 0x58c   :  { %v2654_v1 = vadd.f32 %v10113_v55, %v8530_v58 }
 0x590   :  { %v3155_v0 = vpop.f32.mrf.mxu2  ;;  %v2820_v57 = vpop.f32.mrf.mxu0 }
 0x591   :  { %v3156_v33 = vadd.f32 %v3155_v0, %v2987_v52  ;;  %v3324_v12 = vpop.f32.mrf.mxu3  ;;  %v2821_v53 = vadd.f32 %v2820_v57, %v2652_v36  ;;  %v2989_v47 = vpop.f32.mrf.mxu1 }
 0x593   :  { %v8761_v17 = vadd.f32 %v3324_v12, %v3156_v33  ;;  %v2990_v27 = vadd.f32 %v2989_v47, %v2821_v53  ;;  %2859 = vmatmul.bf16.gmra.mxu0 %v10109_v16  ;;  %v2657_v53 = vadd.f32 %v10115_v60, %v8530_v58 }
 0x594   :  { %3028 = vmatmul.bf16.gmra.mxu1 %v10110_v18 }
 0x595   :  { %10108 = vst [vmem:[#allocation12_spill] sm:$0xff] %v8761_v17  ;;  %3197 = vmatmul.bf16.gmra.mxu2 %v10111_v20 }
 0x596   :  { %3366 = vmatmul.bf16.gmra.mxu3 %v10112_v24 }
 0x598   :  { %v3158_v6 = vpop.f32.mrf.mxu2  ;;  %v2822_v39 = vpop.f32.mrf.mxu0 }
 0x599   :  { %v3159_v52 = vadd.f32 %v3158_v6, %v2990_v27  ;;  %v3327_v36 = vpop.f32.mrf.mxu3  ;;  %v2823_v0 = vadd.f32 %v2822_v39, %v2654_v1  ;;  %v2991_v33 = vpop.f32.mrf.mxu1  ;;  %v10117_v27 = vld [vmem:[#allocation88_spill] sm:$0xff]  ;;  %v10118_v6 = vld [vmem:[#allocation89_spill] sm:$0xff]  ;;  %v10119_v1 = vld [vmem:[#allocation90_spill] sm:$0xff] }
 0x59a   :  { %v10121_v39 = vld [vmem:[#allocation217_spill] sm:$0xff] }
 0x59b   :  { %v8772_v57 = vadd.f32 %v3327_v36, %v3159_v52  ;;  %v2992_v12 = vadd.f32 %v2991_v33, %v2823_v0  ;;  %v10120_v52 = vld [vmem:[#allocation91_spill] sm:$0xff]  ;;  %v2659_v36 = vadd.f32 %v10121_v39, %v8530_v58 }
 0x59d   :  { %10114 = vst [vmem:[#allocation13_spill] sm:$0xff] %v8772_v57 }
 0x5a0   :  { %v3160_v47 = vpop.f32.mrf.mxu2  ;;  %v2825_v18 = vpop.f32.mrf.mxu0 }
 0x5a1   :  { %v3161_v16 = vadd.f32 %v3160_v47, %v2992_v12  ;;  %v3329_v20 = vpop.f32.mrf.mxu3  ;;  %v2826_v37 = vadd.f32 %v2825_v18, %v2657_v53  ;;  %v2994_v24 = vpop.f32.mrf.mxu1 }
 0x5a3   :  { %v8776_v17 = vadd.f32 %v3329_v20, %v3161_v16  ;;  %v2995_v55 = vadd.f32 %v2994_v24, %v2826_v37  ;;  %2864 = vmatmul.bf16.gmra.mxu0 %v10117_v27  ;;  %v10123_v20 = vld [vmem:[#allocation93_spill] sm:$0xff] }
 0x5a4   :  { %3033 = vmatmul.bf16.gmra.mxu1 %v10118_v6  ;;  %v2662_v37 = vadd.f32 %v10123_v20, %v8530_v58 }
 0x5a5   :  { %10116 = vst [vmem:[#allocation144_spill] sm:$0xff] %v8776_v17  ;;  %3202 = vmatmul.bf16.gmra.mxu2 %v10119_v1 }
 0x5a6   :  { %3371 = vmatmul.bf16.gmra.mxu3 %v10120_v52 }
 0x5a8   :  { %v3163_v0 = vpop.f32.mrf.mxu2  ;;  %v2827_v12 = vpop.f32.mrf.mxu0 }
 0x5a9   :  { %v3164_v33 = vadd.f32 %v3163_v0, %v2995_v55  ;;  %v3332_v60 = vpop.f32.mrf.mxu3  ;;  %v2828_v53 = vadd.f32 %v2827_v12, %v2659_v36  ;;  %v2996_v47 = vpop.f32.mrf.mxu1  ;;  %v10125_v55 = vld [vmem:[#allocation94_spill] sm:$0xff]  ;;  %v10126_v0 = vld [vmem:[#allocation95_spill] sm:$0xff]  ;;  %v10127_v36 = vld [vmem:[#allocation96_spill] sm:$0xff] }
 0x5aa   :  { %v10129_v12 = vld [vmem:[#allocation220_spill] sm:$0xff] }
 0x5ab   :  { %v8784_v16 = vadd.f32 %v3332_v60, %v3164_v33  ;;  %v2997_v18 = vadd.f32 %v2996_v47, %v2828_v53  ;;  %v10128_v33 = vld [vmem:[#allocation97_spill] sm:$0xff]  ;;  %v2664_v60 = vadd.f32 %v10129_v12, %v8530_v58 }
 0x5ad   :  { %10122 = vst [vmem:[#allocation151_spill] sm:$0xff] %v8784_v16 }
 0x5b0   :  { %v3165_v24 = vpop.f32.mrf.mxu2  ;;  %v2830_v6 = vpop.f32.mrf.mxu0 }
 0x5b1   :  { %v3166_v27 = vadd.f32 %v3165_v24, %v2997_v18  ;;  %v3334_v1 = vpop.f32.mrf.mxu3  ;;  %v2831_v52 = vadd.f32 %v2830_v6, %v2662_v37  ;;  %v2999_v17 = vpop.f32.mrf.mxu1  ;;  %v10131_v6 = vld [vmem:[#allocation99_spill] sm:$0xff] }
 0x5b3   :  { %v8788_v57 = vadd.f32 %v3334_v1, %v3166_v27  ;;  %v3000_v39 = vadd.f32 %v2999_v17, %v2831_v52  ;;  %2869 = vmatmul.bf16.gmra.mxu0 %v10125_v55  ;;  %v2667_v1 = vadd.f32 %v10131_v6, %v8530_v58 }
 0x5b4   :  { %3038 = vmatmul.bf16.gmra.mxu1 %v10126_v0 }
 0x5b5   :  { %10124 = vst [vmem:[#allocation14_spill] sm:$0xff] %v8788_v57  ;;  %3207 = vmatmul.bf16.gmra.mxu2 %v10127_v36 }
 0x5b6   :  { %3376 = vmatmul.bf16.gmra.mxu3 %v10128_v33 }
 0x5b8   :  { %v3168_v53 = vpop.f32.mrf.mxu2  ;;  %v2832_v18 = vpop.f32.mrf.mxu0 }
 0x5b9   :  { %v3169_v47 = vadd.f32 %v3168_v53, %v3000_v39  ;;  %v3337_v20 = vpop.f32.mrf.mxu3  ;;  %v2833_v37 = vadd.f32 %v2832_v18, %v2664_v60  ;;  %v3001_v24 = vpop.f32.mrf.mxu1  ;;  %v10133_v39 = vld [vmem:[#allocation100_spill] sm:$0xff]  ;;  %v10134_v53 = vld [vmem:[#allocation101_spill] sm:$0xff]  ;;  %v10135_v60 = vld [vmem:[#allocation102_spill] sm:$0xff] }
 0x5ba   :  { %v4868_v18 = vld [vmem:[%s9490_s1 + $0x288] sm:$0xf0] }
 0x5bb   :  { %v8796_v27 = vadd.f32 %v3337_v20, %v3169_v47  ;;  %v3002_v17 = vadd.f32 %v3001_v24, %v2833_v37  ;;  %v5144_v47 = vld [vmem:[%s9490_s1 + $0x284] sm:$0xf]  ;;  %v10136_v20 = vld [vmem:[#allocation103_spill] sm:$0xff] }
 0x5bc   :  { %v4871_v37 = vor.u32 %v5144_v47, %v4868_v18  ;;  %v10137_v24 = vld [vmem:[#allocation223_spill] sm:$0xff]  ;;  %v5164_v18 = vld [vmem:[%s9493_s3 + $0x10] sm:$0xff] }
 0x5bd   :  { %10130 = vst [vmem:[#allocation15_spill] sm:$0xff] %v8796_v27  ;;  %4079 = vmatpush.bf16.msrb.mxu2 %v5164_v18 }
 0x5be   :  { %3419 = vmatpush.bf16.msrb.mxu0 %v4871_v37 }
 0x5c0   :  { %v3170_v52 = vpop.f32.mrf.mxu2  ;;  %v2835_v0 = vpop.f32.mrf.mxu0 }
 0x5c1   :  { %v3171_v55 = vadd.f32 %v3170_v52, %v3002_v17  ;;  %v3339_v36 = vpop.f32.mrf.mxu3  ;;  %v2836_v33 = vadd.f32 %v2835_v0, %v2667_v1  ;;  %v3004_v57 = vpop.f32.mrf.mxu1 }
 0x5c3   :  { %v8800_v16 = vadd.f32 %v3339_v36, %v3171_v55  ;;  %v3005_v12 = vadd.f32 %v3004_v57, %v2836_v33  ;;  %2874 = vmatmul.bf16.gmra.mxu0 %v10133_v39  ;;  %v2669_v57 = vadd.f32 %v10137_v24, %v8530_v58  ;;  %v10139_v39 = vld [vmem:[#allocation105_spill] sm:$0xff] }
 0x5c4   :  { %3043 = vmatmul.bf16.gmra.mxu1 %v10134_v53  ;;  %v2672_v53 = vadd.f32 %v10139_v39, %v8530_v58 }
 0x5c5   :  { %10132 = vst [vmem:[#allocation16_spill] sm:$0xff] %v8800_v16  ;;  %3212 = vmatmul.bf16.gmra.mxu2 %v10135_v60 }
 0x5c6   :  { %3381 = vmatmul.bf16.gmra.mxu3 %v10136_v20 }
 0x5c8   :  { %v3173_v17 = vpop.f32.mrf.mxu2  ;;  %v2837_v1 = vpop.f32.mrf.mxu0 }
 0x5c9   :  { %v3174_v6 = vadd.f32 %v3173_v17, %v3005_v12  ;;  %v3342_v52 = vpop.f32.mrf.mxu3  ;;  %v2838_v55 = vadd.f32 %v2837_v1, %v2669_v57  ;;  %v3006_v0 = vpop.f32.mrf.mxu1  ;;  %v10141_v17 = vld [vmem:[#allocation106_spill] sm:$0xff]  ;;  %v10142_v1 = vld [vmem:[#allocation107_spill] sm:$0xff] }
 0x5cb   :  { %v8814_v36 = vadd.f32 %v3342_v52, %v3174_v6  ;;  %v3007_v33 = vadd.f32 %v3006_v0, %v2838_v55  ;;  %v5172_v6 = vld [vmem:[%s9493_s3 + $0x50] sm:$0xff]  ;;  %v10144_v55 = vld [vmem:[#allocation109_spill] sm:$0xff]  ;;  %v10145_v0 = vld [vmem:[#allocation226_spill] sm:$0xff] }
 0x5cc   :  { %v10143_v52 = vld [vmem:[#allocation108_spill] sm:$0xff]  ;;  %4248 = vmatpush.bf16.msrb.mxu3 %v5172_v6 }
 0x5cd   :  { %10138 = vst [vmem:[#allocation148_spill] sm:$0xff] %v8814_v36 }
 0x5d0   :  { %v3175_v60 = vpop.f32.mrf.mxu2  ;;  %v2840_v20 = vpop.f32.mrf.mxu0 }
 0x5d1   :  { %v3176_v16 = vadd.f32 %v3175_v60, %v3007_v33  ;;  %v3344_v47 = vpop.f32.mrf.mxu3  ;;  %v2841_v37 = vadd.f32 %v2840_v20, %v2672_v53  ;;  %v3009_v12 = vpop.f32.mrf.mxu1  ;;  %v2674_v33 = vadd.f32 %v10145_v0, %v8530_v58 }
 0x5d3   :  { %v8821_v24 = vadd.f32 %v3344_v47, %v3176_v16  ;;  %v3010_v57 = vadd.f32 %v3009_v12, %v2841_v37  ;;  %2879 = vmatmul.bf16.gmra.mxu0 %v10141_v17  ;;  %v10146_v12 = vld [vmem:[#allocation111_spill] sm:$0xff] }
 0x5d4   :  { %3048 = vmatmul.bf16.gmra.mxu1 %v10142_v1  ;;  %v2677_v17 = vadd.f32 %v10146_v12, %v8530_v58 }
 0x5d5   :  { %10140 = vst [vmem:[#allocation155_spill] sm:$0xff] %v8821_v24  ;;  %3217 = vmatmul.bf16.gmra.mxu2 %v10143_v52 }
 0x5d6   :  { %3386 = vmatmul.bf16.gmra.mxu3 %v10144_v55 }
 0x5d8   :  { %v3178_v16 = vpop.f32.mrf.mxu2  ;;  %v2842_v53 = vpop.f32.mrf.mxu0 }
 0x5d9   :  { %v3179_v39 = vadd.f32 %v3178_v16, %v3010_v57  ;;  %v3347_v60 = vpop.f32.mrf.mxu3  ;;  %v2843_v20 = vadd.f32 %v2842_v53, %v2674_v33  ;;  %v3011_v47 = vpop.f32.mrf.mxu1  ;;  %v10148_v57 = vld [vmem:[#allocation112_spill] sm:$0xff]  ;;  %v10149_v16 = vld [vmem:[#allocation113_spill] sm:$0xff]  ;;  %v10150_v33 = vld [vmem:[#allocation114_spill] sm:$0xff] }
 0x5da   :  { %v10152_v53 = vld [vmem:[#allocation229_spill] sm:$0xff] }
 0x5db   :  { %v8832_v18 = vadd.f32 %v3347_v60, %v3179_v39  ;;  %v3012_v37 = vadd.f32 %v3011_v47, %v2843_v20  ;;  %v10151_v39 = vld [vmem:[#allocation115_spill] sm:$0xff]  ;;  %v2679_v60 = vadd.f32 %v10152_v53, %v8530_v58 }
 0x5e0   :  { %v3180_v1 = vpop.f32.mrf.mxu2  ;;  %v2845_v24 = vpop.f32.mrf.mxu0 }
 0x5e1   :  { %v3181_v52 = vadd.f32 %v3180_v1, %v3012_v37  ;;  %v3349_v55 = vpop.f32.mrf.mxu3  ;;  %v2846_v6 = vadd.f32 %v2845_v24, %v2677_v17  ;;  %v3014_v36 = vpop.f32.mrf.mxu1 }
 0x5e3   :  { %v8836_v27 = vadd.f32 %v3349_v55, %v3181_v52  ;;  %v3015_v0 = vadd.f32 %v3014_v36, %v2846_v6  ;;  %2884 = vmatmul.bf16.gmra.mxu0 %v10148_v57  ;;  %v10153_v52 = vld [vmem:[#allocation117_spill] sm:$0xff] }
 0x5e4   :  { %3053 = vmatmul.bf16.gmra.mxu1 %v10149_v16  ;;  %v2682_v55 = vadd.f32 %v10153_v52, %v8530_v58 }
 0x5e5   :  { %10147 = vst [vmem:[#allocation17_spill] sm:$0xff] %v8836_v27  ;;  %3222 = vmatmul.bf16.gmra.mxu2 %v10150_v33 }
 0x5e6   :  { %3391 = vmatmul.bf16.gmra.mxu3 %v10151_v39 }
 0x5e8   :  { %v3183_v20 = vpop.f32.mrf.mxu2  ;;  %v2847_v37 = vpop.f32.mrf.mxu0 }
 0x5e9   :  { %v3184_v47 = vadd.f32 %v3183_v20, %v3015_v0  ;;  %v3352_v12 = vpop.f32.mrf.mxu3  ;;  %v2848_v24 = vadd.f32 %v2847_v37, %v2679_v60  ;;  %v3016_v17 = vpop.f32.mrf.mxu1  ;;  %v10154_v0 = vld [vmem:[#allocation118_spill] sm:$0xff]  ;;  %v10155_v20 = vld [vmem:[#allocation119_spill] sm:$0xff]  ;;  %v10156_v60 = vld [vmem:[#allocation120_spill] sm:$0xff]  ;;  %v2684_v37 = vadd.f32 %v8341_v35, %v8530_v58 }
 0x5ea   :  { %v5162_v35 = vld [vmem:[%s9493_s3] sm:$0xff] }
 0x5eb   :  { %v8844_v1 = vadd.f32 %v3352_v12, %v3184_v47  ;;  %v3017_v36 = vadd.f32 %v3016_v17, %v2848_v24  ;;  %v10157_v47 = vld [vmem:[#allocation121_spill] sm:$0xff] }
 0x5f0   :  { %v3185_v6 = vpop.f32.mrf.mxu2  ;;  %v2850_v16 = vpop.f32.mrf.mxu0 }
 0x5f1   :  { %v8848_v57 = vadd.f32 %v3185_v6, %v3017_v36  ;;  %v8850_v33 = vpop.f32.mrf.mxu3  ;;  %v2851_v39 = vadd.f32 %v2850_v16, %v2682_v55  ;;  %v3019_v53 = vpop.f32.mrf.mxu1 }
 0x5f3   :  { %v3020_v27 = vadd.f32 %v3019_v53, %v2851_v39  ;;  %2889 = vmatmul.bf16.gmra.mxu0 %v10154_v0  ;;  %v5163_v39 = vld [vmem:[%s9493_s3 + $0x8] sm:$0xff]  ;;  %v2687_v53 = vadd.f32 %v8373_v62, %v8530_v58 }
 0x5f4   :  { %3058 = vmatmul.bf16.gmra.mxu1 %v10155_v20  ;;  %4080 = vmatpush.bf16.msrb.mxu2 %v5163_v39  ;;  %v10163_v62 = vld [vmem:[#allocation127_spill] sm:$0xff] }
 0x5f5   :  { %3227 = vmatmul.bf16.gmra.mxu2 %v10156_v60 }
 0x5f6   :  { %3396 = vmatmul.bf16.gmra.mxu3 %v10157_v47 }
 0x5f8   :  { %v3188_v12 = vpop.f32.mrf.mxu2  ;;  %v2852_v17 = vpop.f32.mrf.mxu0  ;;  %4081 = vmatpush.bf16.msrb.mxu2 %v5162_v35 }
 0x5f9   :  { %v3189_v24 = vadd.f32 %v3188_v12, %v3020_v27  ;;  %v3357_v36 = vpop.f32.mrf.mxu3  ;;  %v2853_v52 = vadd.f32 %v2852_v17, %v2684_v37  ;;  %v3021_v6 = vpop.f32.mrf.mxu1  ;;  %v10161_v17 = vld [vmem:[#allocation125_spill] sm:$0xff] }
 0x5fb   :  { %v8858_v55 = vadd.f32 %v3357_v36, %v3189_v24  ;;  %v3022_v16 = vadd.f32 %v3021_v6, %v2853_v52  ;;  %v10160_v24 = vld [vmem:[#allocation124_spill] sm:$0xff]  ;;  %v10162_v36 = vld [vmem:[#allocation126_spill] sm:$0xff]  ;;  %v2689_v52 = vadd.f32 %v8396_v63, %v8530_v58 }
 0x600   :  { %v3190_v0 = vpop.f32.mrf.mxu2  ;;  %v2855_v20 = vpop.f32.mrf.mxu0 }
 0x601   :  { %v8868_v27 = vadd.f32 %v3190_v0, %v3022_v16  ;;  %v8870_v60 = vpop.f32.mrf.mxu3  ;;  %v2856_v47 = vadd.f32 %v2855_v20, %v2687_v53  ;;  %v3024_v37 = vpop.f32.mrf.mxu1 }
 0x602   :  { %10159 = vst [vmem:[#allocation19_spill] sm:$0xff] %v8870_v60 }
 0x603   :  { %10158 = vst [vmem:[#allocation18_spill] sm:$0xff] %v8868_v27  ;;  %v3025_v12 = vadd.f32 %v3024_v37, %v2856_v47  ;;  %2894 = vmatmul.bf16.gmra.mxu0 %v10160_v24  ;;  %v2692_v47 = vadd.f32 %v8410_v44, %v8530_v58  ;;  %v2694_v44 = vadd.f32 %v8413_v14, %v8530_v58 }
 0x604   :  { %3063 = vmatmul.bf16.gmra.mxu1 %v10161_v17 }
 0x605   :  { %3232 = vmatmul.bf16.gmra.mxu2 %v10162_v36 }
 0x606   :  { %3401 = vmatmul.bf16.gmra.mxu3 %v10163_v62 }
 0x608   :  { %v3193_v6 = vpop.f32.mrf.mxu2  ;;  %v2857_v39 = vpop.f32.mrf.mxu0 }
 0x609   :  { %v3194_v16 = vadd.f32 %v3193_v6, %v3025_v12  ;;  %v3362_v0 = vpop.f32.mrf.mxu3  ;;  %v2858_v60 = vadd.f32 %v2857_v39, %v2689_v52  ;;  %v3026_v53 = vpop.f32.mrf.mxu1  ;;  %v10164_v12 = vld [vmem:[#allocation129_spill] sm:$0xff]  ;;  %v5171_v52 = vld [vmem:[%s9493_s3 + $0x48] sm:$0xff]  ;;  %v10165_v6 = vld [vmem:[#allocation130_spill] sm:$0xff] }
 0x60a   :  { %4249 = vmatpush.bf16.msrb.mxu3 %v5171_v52 }
 0x60b   :  { %v8878_v20 = vadd.f32 %v3362_v0, %v3194_v16  ;;  %v3027_v35 = vadd.f32 %v3026_v53, %v2858_v60  ;;  %v10166_v60 = vld [vmem:[#allocation131_spill] sm:$0xff] }
 0x610   :  { %v3195_v37 = vpop.f32.mrf.mxu2  ;;  %v2860_v17 = vpop.f32.mrf.mxu0 }
 0x611   :  { %v8882_v24 = vadd.f32 %v3195_v37, %v3027_v35  ;;  %v8884_v36 = vpop.f32.mrf.mxu3  ;;  %v2861_v62 = vadd.f32 %v2860_v17, %v2692_v47  ;;  %v3029_v63 = vpop.f32.mrf.mxu1 }
 0x613   :  { %v3030_v27 = vadd.f32 %v3029_v63, %v2861_v62  ;;  %2899 = vmatmul.bf16.gmra.mxu0 %v10164_v12  ;;  %v2697_v62 = vadd.f32 %v8422_v54, %v8530_v58 }
 0x614   :  { %3068 = vmatmul.bf16.gmra.mxu1 %v10165_v6 }
 0x615   :  { %3237 = vmatmul.bf16.gmra.mxu2 %v10166_v60 }
 0x616   :  { %3406 = vmatmul.bf16.gmra.mxu3 %v8394_v21 }
 0x618   :  { %v3198_v16 = vpop.f32.mrf.mxu2  ;;  %v2862_v0 = vpop.f32.mrf.mxu0 }
 0x619   :  { %v3199_v39 = vadd.f32 %v3198_v16, %v3030_v27  ;;  %v3367_v53 = vpop.f32.mrf.mxu3  ;;  %v2863_v35 = vadd.f32 %v2862_v0, %v2694_v44  ;;  %v3031_v47 = vpop.f32.mrf.mxu1  ;;  %v10169_v27 = vld [vmem:[#allocation133_spill] sm:$0xff]  ;;  %v10170_v16 = vld [vmem:[#allocation134_spill] sm:$0xff] }
 0x61a   :  { %v10171_v44 = vld [vmem:[#allocation170_spill] sm:$0xff] }
 0x61b   :  { %v8895_v37 = vadd.f32 %v3367_v53, %v3199_v39  ;;  %v3032_v17 = vadd.f32 %v3031_v47, %v2863_v35  ;;  %v10172_v39 = vld [vmem:[#allocation2_spill] sm:$0xff] }
 0x61c   :  { %v2699_v0 = vadd.f32 %v10172_v39, %v8530_v58 }
 0x620   :  { %v3200_v63 = vpop.f32.mrf.mxu2  ;;  %v2865_v21 = vpop.f32.mrf.mxu0 }
 0x621   :  { %v8899_v12 = vadd.f32 %v3200_v63, %v3032_v17  ;;  %v8901_v52 = vpop.f32.mrf.mxu3  ;;  %v2866_v6 = vadd.f32 %v2865_v21, %v2697_v62  ;;  %v3034_v14 = vpop.f32.mrf.mxu1  ;;  %v2702_v21 = vadd.f32 %v8434_v25, %v8530_v58 }
 0x622   :  { %10168 = vst [vmem:[#allocation159_spill] sm:$0xff] %v8901_v52 }
 0x623   :  { %10167 = vst [vmem:[#allocation152_spill] sm:$0xff] %v8899_v12  ;;  %v3035_v60 = vadd.f32 %v3034_v14, %v2866_v6  ;;  %3420 = vmatmul.bf16.vlgmr.msrb.gmra.mxu0 %v10169_v27 }
 0x624   :  { %4968 = vmatmul.msk.bf16.vlgmr.msrb.gmra.mxu1 %vm1287_vm0, %v10170_v16 }
 0x625   :  { %4082 = vmatmul.bf16.vlgmr.msrb.gmra.mxu2 %v10171_v44 }
 0x628   :  { %v3203_v54 = vpop.f32.mrf.mxu2  ;;  %v2867_v35 = vpop.f32.mrf.mxu0 }
 0x629   :  { %v3204_v53 = vadd.f32 %v3203_v54, %v3035_v60  ;;  %v3372_v47 = vpop.f32.mrf.mxu3  ;;  %v2868_v17 = vadd.f32 %v2867_v35, %v2699_v0  ;;  %v3036_v63 = vpop.f32.mrf.mxu1  ;;  %v10175_v60 = vld [vmem:[#allocation137_spill] sm:$0xff]  ;;  %v10176_v54 = vld [vmem:[#allocation138_spill] sm:$0xff] }
 0x62a   :  { %v10177_v0 = vld [vmem:[#allocation173_spill] sm:$0xff] }
 0x62b   :  { %v8909_v52 = vadd.f32 %v3372_v47, %v3204_v53  ;;  %v3037_v62 = vadd.f32 %v3036_v63, %v2868_v17  ;;  %v10178_v53 = vld [vmem:[#allocation4_spill] sm:$0xff] }
 0x62c   :  { %v2704_v35 = vadd.f32 %v10178_v53, %v8530_v58 }
 0x630   :  { %v3205_v6 = vpop.f32.mrf.mxu2  ;;  %v2870_v27 = vpop.f32.mrf.mxu0 }
 0x631   :  { %v8913_v14 = vadd.f32 %v3205_v6, %v3037_v62  ;;  %v8915_v16 = vpop.f32.mrf.mxu3  ;;  %v2871_v44 = vadd.f32 %v2870_v27, %v2702_v21  ;;  %v3039_v39 = vpop.f32.mrf.mxu1  ;;  %v2707_v27 = vadd.f32 %v8452_v10, %v8530_v58 }
 0x632   :  { %10174 = vst [vmem:[#allocation21_spill] sm:$0xff] %v8915_v16 }
 0x633   :  { %10173 = vst [vmem:[#allocation20_spill] sm:$0xff] %v8913_v14  ;;  %v3040_v12 = vadd.f32 %v3039_v39, %v2871_v44  ;;  %3425 = vmatmul.bf16.gmra.mxu0 %v10175_v60 }
 0x634   :  { %4969 = vmatmul.msk.bf16.gmra.mxu1 %vm1287_vm0, %v10176_v54 }
 0x635   :  { %4087 = vmatmul.bf16.gmra.mxu2 %v10177_v0 }
 0x638   :  { %v3208_v25 = vpop.f32.mrf.mxu2  ;;  %v2872_v17 = vpop.f32.mrf.mxu0 }
 0x639   :  { %v3209_v47 = vadd.f32 %v3208_v25, %v3040_v12  ;;  %v3377_v63 = vpop.f32.mrf.mxu3  ;;  %v2873_v62 = vadd.f32 %v2872_v17, %v2704_v35  ;;  %v3041_v6 = vpop.f32.mrf.mxu1  ;;  %v10181_v12 = vld [vmem:[#allocation141_spill] sm:$0xff]  ;;  %v10182_v25 = vld [vmem:[#allocation142_spill] sm:$0xff]  ;;  %v10183_v35 = vld [vmem:[#allocation176_spill] sm:$0xff] }
 0x63b   :  { %v8923_v16 = vadd.f32 %v3377_v63, %v3209_v47  ;;  %v3042_v21 = vadd.f32 %v3041_v6, %v2873_v62  ;;  %v10184_v47 = vld [vmem:[#allocation139_spill] sm:$0xff] }
 0x63c   :  { %v2709_v17 = vadd.f32 %v10184_v47, %v8530_v58 }
 0x640   :  { %v3210_v44 = vpop.f32.mrf.mxu2  ;;  %v2875_v60 = vpop.f32.mrf.mxu0 }
 0x641   :  { %v8927_v39 = vadd.f32 %v3210_v44, %v3042_v21  ;;  %v8929_v54 = vpop.f32.mrf.mxu3  ;;  %v2876_v0 = vadd.f32 %v2875_v60, %v2707_v27  ;;  %v3044_v53 = vpop.f32.mrf.mxu1  ;;  %v2712_v60 = vadd.f32 %v8464_v38, %v8530_v58  ;;  %v10190_v38 = vld [vmem:[#allocation6_spill] sm:$0xff] }
 0x642   :  { %10180 = vst [vmem:[#allocation156_spill] sm:$0xff] %v8929_v54 }
 0x643   :  { %10179 = vst [vmem:[#allocation22_spill] sm:$0xff] %v8927_v39  ;;  %v3045_v14 = vadd.f32 %v3044_v53, %v2876_v0  ;;  %3430 = vmatmul.bf16.gmra.mxu0 %v10181_v12 }
 0x644   :  { %4970 = vmatmul.msk.bf16.gmra.mxu1 %vm1287_vm0, %v10182_v25 }
 0x645   :  { %4092 = vmatmul.bf16.gmra.mxu2 %v10183_v35 }
 0x648   :  { %v3213_v10 = vpop.f32.mrf.mxu2  ;;  %v2877_v62 = vpop.f32.mrf.mxu0 }
 0x649   :  { %v3214_v63 = vadd.f32 %v3213_v10, %v3045_v14  ;;  %v3382_v6 = vpop.f32.mrf.mxu3  ;;  %v2878_v21 = vadd.f32 %v2877_v62, %v2709_v17  ;;  %v3046_v44 = vpop.f32.mrf.mxu1  ;;  %v10187_v14 = vld [vmem:[#allocation145_spill] sm:$0xff]  ;;  %v5170_v17 = vld [vmem:[%s9493_s3 + $0x40] sm:$0xff]  ;;  %v2714_v62 = vadd.f32 %v10190_v38, %v8530_v58 }
 0x64a   :  { %v10188_v10 = vld [vmem:[#allocation146_spill] sm:$0xff]  ;;  %4250 = vmatpush.bf16.msrb.mxu3 %v5170_v17 }
 0x64b   :  { %v8937_v54 = vadd.f32 %v3382_v6, %v3214_v63  ;;  %v3047_v27 = vadd.f32 %v3046_v44, %v2878_v21  ;;  %v10189_v63 = vld [vmem:[#allocation179_spill] sm:$0xff] }
 0x650   :  { %v3215_v0 = vpop.f32.mrf.mxu2  ;;  %v2880_v12 = vpop.f32.mrf.mxu0 }
 0x651   :  { %v8941_v53 = vadd.f32 %v3215_v0, %v3047_v27  ;;  %v8943_v25 = vpop.f32.mrf.mxu3  ;;  %v2881_v35 = vadd.f32 %v2880_v12, %v2712_v60  ;;  %v3049_v47 = vpop.f32.mrf.mxu1 }
 0x652   :  { %10186 = vst [vmem:[#allocation24_spill] sm:$0xff] %v8943_v25 }
 0x653   :  { %10185 = vst [vmem:[#allocation23_spill] sm:$0xff] %v8941_v53  ;;  %v3050_v39 = vadd.f32 %v3049_v47, %v2881_v35  ;;  %3435 = vmatmul.bf16.gmra.mxu0 %v10187_v14  ;;  %v2717_v47 = vadd.f32 %v8476_v42, %v8530_v58 }
 0x654   :  { %4971 = vmatmul.msk.bf16.gmra.mxu1 %vm1287_vm0, %v10188_v10 }
 0x655   :  { %4097 = vmatmul.bf16.gmra.mxu2 %v10189_v63 }
 0x658   :  { %v3218_v6 = vpop.f32.mrf.mxu2  ;;  %v2882_v44 = vpop.f32.mrf.mxu0 }
 0x659   :  { %v3219_v21 = vadd.f32 %v3218_v6, %v3050_v39  ;;  %v3387_v27 = vpop.f32.mrf.mxu3  ;;  %v2883_v60 = vadd.f32 %v2882_v44, %v2714_v62  ;;  %v3051_v0 = vpop.f32.mrf.mxu1  ;;  %v10193_v39 = vld [vmem:[#allocation149_spill] sm:$0xff]  ;;  %v10194_v6 = vld [vmem:[#allocation150_spill] sm:$0xff] }
 0x65a   :  { %v10195_v62 = vld [vmem:[#allocation182_spill] sm:$0xff] }
 0x65b   :  { %v8954_v12 = vadd.f32 %v3387_v27, %v3219_v21  ;;  %v3052_v35 = vadd.f32 %v3051_v0, %v2883_v60  ;;  %v10196_v21 = vld [vmem:[#allocation136_spill] sm:$0xff] }
 0x65c   :  { %v2719_v44 = vadd.f32 %v10196_v21, %v8530_v58 }
 0x660   :  { %v3220_v14 = vpop.f32.mrf.mxu2  ;;  %v2885_v63 = vpop.f32.mrf.mxu0 }
 0x661   :  { %v8958_v10 = vadd.f32 %v3220_v14, %v3052_v35  ;;  %v8960_v17 = vpop.f32.mrf.mxu3  ;;  %v2886_v25 = vadd.f32 %v2885_v63, %v2717_v47  ;;  %v3054_v38 = vpop.f32.mrf.mxu1 }
 0x662   :  { %10192 = vst [vmem:[#allocation160_spill] sm:$0xff] %v8960_v17 }
 0x663   :  { %10191 = vst [vmem:[#allocation25_spill] sm:$0xff] %v8958_v10  ;;  %v3055_v53 = vadd.f32 %v3054_v38, %v2886_v25  ;;  %3440 = vmatmul.bf16.gmra.mxu0 %v10193_v39  ;;  %v2722_v25 = vadd.f32 %v8488_v9, %v8530_v58 }
 0x664   :  { %4972 = vmatmul.msk.bf16.gmra.mxu1 %vm1287_vm0, %v10194_v6 }
 0x665   :  { %4102 = vmatmul.bf16.gmra.mxu2 %v10195_v62 }
 0x668   :  { %v3223_v42 = vpop.f32.mrf.mxu2  ;;  %v2887_v60 = vpop.f32.mrf.mxu0 }
 0x669   :  { %v3224_v27 = vadd.f32 %v3223_v42, %v3055_v53  ;;  %v3392_v0 = vpop.f32.mrf.mxu3  ;;  %v2888_v35 = vadd.f32 %v2887_v60, %v2719_v44  ;;  %v3056_v14 = vpop.f32.mrf.mxu1  ;;  %v10199_v53 = vld [vmem:[#allocation153_spill] sm:$0xff]  ;;  %v10200_v42 = vld [vmem:[#allocation154_spill] sm:$0xff] }
 0x66a   :  { %v10201_v44 = vld [vmem:[#allocation185_spill] sm:$0xff] }
 0x66b   :  { %v8968_v17 = vadd.f32 %v3392_v0, %v3224_v27  ;;  %v3057_v47 = vadd.f32 %v3056_v14, %v2888_v35  ;;  %v10202_v27 = vld [vmem:[#allocation8_spill] sm:$0xff] }
 0x66c   :  { %v2724_v60 = vadd.f32 %v10202_v27, %v8530_v58 }
 0x670   :  { %v3225_v63 = vpop.f32.mrf.mxu2  ;;  %v2890_v39 = vpop.f32.mrf.mxu0 }
 0x671   :  { %v8972_v38 = vadd.f32 %v3225_v63, %v3057_v47  ;;  %v8974_v6 = vpop.f32.mrf.mxu3  ;;  %v2891_v62 = vadd.f32 %v2890_v39, %v2722_v25  ;;  %v3059_v21 = vpop.f32.mrf.mxu1  ;;  %v2727_v39 = vadd.f32 %v8506_v56, %v8530_v58 }
 0x672   :  { %10198 = vst [vmem:[#allocation167_spill] sm:$0xff] %v8974_v6 }
 0x673   :  { %10197 = vst [vmem:[#allocation166_spill] sm:$0xff] %v8972_v38  ;;  %v3060_v10 = vadd.f32 %v3059_v21, %v2891_v62  ;;  %3445 = vmatmul.bf16.gmra.mxu0 %v10199_v53 }
 0x674   :  { %4973 = vmatmul.msk.bf16.gmra.mxu1 %vm1287_vm0, %v10200_v42 }
 0x675   :  { %4107 = vmatmul.bf16.gmra.mxu2 %v10201_v44 }
 0x678   :  { %v3228_v9 = vpop.f32.mrf.mxu2  ;;  %v2892_v35 = vpop.f32.mrf.mxu0 }
 0x679   :  { %v3229_v0 = vadd.f32 %v3228_v9, %v3060_v10  ;;  %v3397_v14 = vpop.f32.mrf.mxu3  ;;  %v2893_v47 = vadd.f32 %v2892_v35, %v2724_v60  ;;  %v3061_v63 = vpop.f32.mrf.mxu1  ;;  %v10205_v10 = vld [vmem:[#allocation157_spill] sm:$0xff]  ;;  %v10206_v9 = vld [vmem:[#allocation158_spill] sm:$0xff]  ;;  %v10207_v60 = vld [vmem:[#allocation188_spill] sm:$0xff] }
 0x67b   :  { %v8982_v6 = vadd.f32 %v3397_v14, %v3229_v0  ;;  %v3062_v25 = vadd.f32 %v3061_v63, %v2893_v47  ;;  %v2729_v0 = vadd.f32 %v8509_v48, %v8530_v58 }
 0x680   :  { %v3230_v62 = vpop.f32.mrf.mxu2  ;;  %v2895_v53 = vpop.f32.mrf.mxu0 }
 0x681   :  { %v8986_v21 = vadd.f32 %v3230_v62, %v3062_v25  ;;  %v8988_v42 = vpop.f32.mrf.mxu3  ;;  %v2896_v44 = vadd.f32 %v2895_v53, %v2727_v39  ;;  %v3064_v27 = vpop.f32.mrf.mxu1  ;;  %v10208_v53 = vld [vmem:[#allocation140_spill] sm:$0xff] }
 0x682   :  { %10204 = vst [vmem:[#allocation27_spill] sm:$0xff] %v8988_v42 }
 0x683   :  { %10203 = vst [vmem:[#allocation26_spill] sm:$0xff] %v8986_v21  ;;  %v3065_v38 = vadd.f32 %v3064_v27, %v2896_v44  ;;  %3450 = vmatmul.bf16.gmra.mxu0 %v10205_v10  ;;  %v2732_v44 = vadd.f32 %v10208_v53, %v8530_v58 }
 0x684   :  { %4974 = vmatmul.msk.bf16.gmra.mxu1 %vm1287_vm0, %v10206_v9 }
 0x685   :  { %4112 = vmatmul.bf16.gmra.mxu2 %v10207_v60 }
 0x688   :  { %v3233_v56 = vpop.f32.mrf.mxu2  ;;  %v2897_v14 = vpop.f32.mrf.mxu0 }
 0x689   :  { %v3234_v35 = vadd.f32 %v3233_v56, %v3065_v38  ;;  %v3402_v47 = vpop.f32.mrf.mxu3  ;;  %v2898_v63 = vadd.f32 %v2897_v14, %v2729_v0  ;;  %v3066_v25 = vpop.f32.mrf.mxu1  ;;  %v10210_v38 = vld [vmem:[#allocation161_spill] sm:$0xff]  ;;  %v10211_v56 = vld [vmem:[#allocation162_spill] sm:$0xff]  ;;  %v10212_v0 = vld [vmem:[#allocation191_spill] sm:$0xff] }
 0x68b   :  { %v8996_v62 = vadd.f32 %v3402_v47, %v3234_v35  ;;  %v3067_v39 = vadd.f32 %v3066_v25, %v2898_v63  ;;  %v10213_v35 = vld [vmem:[#allocation147_spill] sm:$0xff] }
 0x68c   :  { %v2734_v14 = vadd.f32 %v10213_v35, %v8530_v58  ;;  %v10218_v58 = vld [vmem:[#allocation194_spill] sm:$0xff] }
 0x690   :  { %v3235_v27 = vpop.f32.mrf.mxu2  ;;  %v2900_v9 = vpop.f32.mrf.mxu0 }
 0x691   :  { %v9000_v10 = vadd.f32 %v3235_v27, %v3067_v39  ;;  %v9002_v60 = vpop.f32.mrf.mxu3  ;;  %v2901_v42 = vadd.f32 %v2900_v9, %v2732_v44  ;;  %v3069_v48 = vpop.f32.mrf.mxu1 }
 0x692   :  { %10209 = vst [vmem:[#allocation28_spill] sm:$0xff] %v9002_v60 }
 0x693   :  { %v3070_v21 = vadd.f32 %v3069_v48, %v2901_v42  ;;  %3455 = vmatmul.bf16.gmra.mxu0 %v10210_v38 }
 0x694   :  { %4975 = vmatmul.msk.bf16.gmra.mxu1 %vm1287_vm0, %v10211_v56  ;;  %v10216_v56 = vld [vmem:[#allocation164_spill] sm:$0xff] }
 0x695   :  { %4117 = vmatmul.bf16.gmra.mxu2 %v10212_v0  ;;  %v10217_v0 = vld [vmem:[#allocation165_spill] sm:$0xff] }
 0x698   :  { %v3238_v47 = vpop.f32.mrf.mxu2  ;;  %v2902_v25 = vpop.f32.mrf.mxu0 }
 0x699   :  { %v3239_v63 = vadd.f32 %v3238_v47, %v3070_v21  ;;  %v3407_v39 = vpop.f32.mrf.mxu3  ;;  %v2903_v53 = vadd.f32 %v2902_v25, %v2734_v14  ;;  %v3071_v27 = vpop.f32.mrf.mxu1 }
 0x69b   :  { %v9010_v60 = vadd.f32 %v3407_v39, %v3239_v63  ;;  %v3072_v44 = vadd.f32 %v3071_v27, %v2903_v53 }
 0x69d   :  { %10214 = vst [vmem:[#allocation163_spill] sm:$0xff] %v9010_v60 }
 0x6a0   :  { %v3240_v42 = vpop.f32.mrf.mxu2  ;;  %v3421_v48 = vpop.f32.mrf.mxu0 }
 0x6a1   :  { %v9012_v9 = vadd.f32 %v3240_v42, %v3072_v44  ;;  %v3590_v38 = vpop.f32.mrf.mxu1  ;;  %v3422_v21 = vadd.f32 %v3421_v48, %v8544_v23  ;;  %v10221_v23 = vld [vmem:[#allocation197_spill] sm:$0xff] }
 0x6a3   :  { %10215 = vst [vmem:[#allocation29_spill] sm:$0xff] %v9012_v9  ;;  %3460 = vmatmul.bf16.gmra.mxu0 %v10216_v56  ;;  %v3591_v47 = vadd.f32 %v3590_v38, %v3422_v21 }
 0x6a4   :  { %4976 = vmatmul.msk.bf16.gmra.mxu1 %vm1287_vm0, %v10217_v0  ;;  %v10219_v0 = vld [vmem:[#allocation168_spill] sm:$0xff] }
 0x6a5   :  { %4122 = vmatmul.bf16.gmra.mxu2 %v10218_v58  ;;  %v3751_v53 = vmax.f32 %v3591_v47, 0.0  ;;  %v10220_v58 = vld [vmem:[#allocation169_spill] sm:$0xff] }
 0x6a8   :  { %v9019_v35 = vpop.f32.mrf.mxu2  ;;  %v3423_v14 = vpop.f32.mrf.mxu0 }
 0x6a9   :  { %v3424_v63 = vadd.f32 %v3423_v14, %v8548_v32  ;;  %v3592_v25 = vpop.f32.mrf.mxu1 }
 0x6ab   :  { %v3593_v39 = vadd.f32 %v3592_v25, %v3424_v63 }
 0x6ad   :  { %v3753_v27 = vmax.f32 %v3593_v39, 0.0 }
 0x6af   :  { %v3879_v44 = vpack.c.bf16 %v3753_v27, %v3751_v53 }
 0x6b0   :  { %v9022_v42 = vpop.f32.mrf.mxu2  ;;  %v3426_v56 = vpop.f32.mrf.mxu0 }
 0x6b1   :  { %v3595_v9 = vpop.f32.mrf.mxu1  ;;  %4251 = vmatmul.bf16.vlgmr.msrb.gmra.mxu3 %v3879_v44  ;;  %v3427_v48 = vadd.f32 %v3426_v56, %v8556_v11  ;;  %v10224_v11 = vld [vmem:[#allocation201_spill] sm:$0xff] }
 0x6b3   :  { %3465 = vmatmul.bf16.gmra.mxu0 %v10219_v0  ;;  %v3596_v21 = vadd.f32 %v3595_v9, %v3427_v48 }
 0x6b4   :  { %4977 = vmatmul.msk.bf16.gmra.mxu1 %vm1287_vm0, %v10220_v58  ;;  %v10222_v58 = vld [vmem:[#allocation171_spill] sm:$0xff] }
 0x6b5   :  { %4127 = vmatmul.bf16.gmra.mxu2 %v10221_v23  ;;  %v3755_v25 = vmax.f32 %v3596_v21, 0.0  ;;  %v10223_v23 = vld [vmem:[#allocation172_spill] sm:$0xff] }
 0x6b8   :  { %v9029_v32 = vpop.f32.mrf.mxu2  ;;  %v3428_v38 = vpop.f32.mrf.mxu0 }
 0x6b9   :  { %v3429_v14 = vadd.f32 %v3428_v38, %v8560_v15  ;;  %v3597_v47 = vpop.f32.mrf.mxu1 }
 0x6bb   :  { %v3598_v63 = vadd.f32 %v3597_v47, %v3429_v14 }
 0x6bd   :  { %v3757_v39 = vmax.f32 %v3598_v63, 0.0 }
 0x6bf   :  { %v3881_v27 = vpack.c.bf16 %v3757_v39, %v3755_v25 }
 0x6c0   :  { %v9032_v53 = vpop.f32.mrf.mxu2  ;;  %v3431_v44 = vpop.f32.mrf.mxu0 }
 0x6c1   :  { %v3600_v0 = vpop.f32.mrf.mxu1  ;;  %4256 = vmatmul.bf16.gmra.mxu3 %v3881_v27  ;;  %v3432_v9 = vadd.f32 %v3431_v44, %v8574_v59  ;;  %v10227_v59 = vld [vmem:[#allocation68_spill] sm:$0xff] }
 0x6c3   :  { %3470 = vmatmul.bf16.gmra.mxu0 %v10222_v58  ;;  %v3601_v48 = vadd.f32 %v3600_v0, %v3432_v9 }
 0x6c4   :  { %4978 = vmatmul.msk.bf16.gmra.mxu1 %vm1287_vm0, %v10223_v23  ;;  %v10225_v23 = vld [vmem:[#allocation174_spill] sm:$0xff] }
 0x6c5   :  { %4132 = vmatmul.bf16.gmra.mxu2 %v10224_v11  ;;  %v3759_v47 = vmax.f32 %v3601_v48, 0.0  ;;  %v10226_v11 = vld [vmem:[#allocation175_spill] sm:$0xff] }
 0x6c8   :  { %v9039_v15 = vpop.f32.mrf.mxu2  ;;  %v3433_v56 = vpop.f32.mrf.mxu0 }
 0x6c9   :  { %v3434_v38 = vadd.f32 %v3433_v56, %v8581_v2  ;;  %v3602_v21 = vpop.f32.mrf.mxu1 }
 0x6cb   :  { %v3603_v14 = vadd.f32 %v3602_v21, %v3434_v38 }
 0x6cd   :  { %v3761_v63 = vmax.f32 %v3603_v14, 0.0 }
 0x6cf   :  { %v3883_v39 = vpack.c.bf16 %v3761_v63, %v3759_v47 }
 0x6d0   :  { %v9042_v25 = vpop.f32.mrf.mxu2  ;;  %v3436_v27 = vpop.f32.mrf.mxu0 }
 0x6d1   :  { %v3605_v58 = vpop.f32.mrf.mxu1  ;;  %4261 = vmatmul.bf16.gmra.mxu3 %v3883_v39  ;;  %v3437_v44 = vadd.f32 %v3436_v27, %v8592_v45  ;;  %v10230_v45 = vld [vmem:[#allocation74_spill] sm:$0xff] }
 0x6d3   :  { %3475 = vmatmul.bf16.gmra.mxu0 %v10225_v23  ;;  %v3606_v9 = vadd.f32 %v3605_v58, %v3437_v44 }
 0x6d4   :  { %4979 = vmatmul.msk.bf16.gmra.mxu1 %vm1287_vm0, %v10226_v11  ;;  %v10228_v11 = vld [vmem:[#allocation177_spill] sm:$0xff] }
 0x6d5   :  { %4137 = vmatmul.bf16.gmra.mxu2 %v10227_v59  ;;  %v3763_v21 = vmax.f32 %v3606_v9, 0.0  ;;  %v10229_v59 = vld [vmem:[#allocation178_spill] sm:$0xff] }
 0x6d8   :  { %v9049_v2 = vpop.f32.mrf.mxu2  ;;  %v3438_v0 = vpop.f32.mrf.mxu0 }
 0x6d9   :  { %v3439_v56 = vadd.f32 %v3438_v0, %v8596_v13  ;;  %v3607_v48 = vpop.f32.mrf.mxu1 }
 0x6db   :  { %v3608_v38 = vadd.f32 %v3607_v48, %v3439_v56 }
 0x6dd   :  { %v3765_v14 = vmax.f32 %v3608_v38, 0.0 }
 0x6df   :  { %v3885_v63 = vpack.c.bf16 %v3765_v14, %v3763_v21 }
 0x6e0   :  { %v9052_v47 = vpop.f32.mrf.mxu2  ;;  %v3441_v39 = vpop.f32.mrf.mxu0 }
 0x6e1   :  { %v3610_v23 = vpop.f32.mrf.mxu1  ;;  %4266 = vmatmul.bf16.gmra.mxu3 %v3885_v63  ;;  %v3442_v27 = vadd.f32 %v3441_v39, %v8604_v5  ;;  %v10233_v5 = vld [vmem:[#allocation80_spill] sm:$0xff] }
 0x6e3   :  { %3480 = vmatmul.bf16.gmra.mxu0 %v10228_v11  ;;  %v3611_v44 = vadd.f32 %v3610_v23, %v3442_v27 }
 0x6e4   :  { %4980 = vmatmul.msk.bf16.gmra.mxu1 %vm1287_vm0, %v10229_v59  ;;  %v10231_v59 = vld [vmem:[#allocation180_spill] sm:$0xff] }
 0x6e5   :  { %4142 = vmatmul.bf16.gmra.mxu2 %v10230_v45  ;;  %v3767_v48 = vmax.f32 %v3611_v44, 0.0  ;;  %v10232_v45 = vld [vmem:[#allocation181_spill] sm:$0xff] }
 0x6e8   :  { %v9059_v13 = vpop.f32.mrf.mxu2  ;;  %v3443_v58 = vpop.f32.mrf.mxu0 }
 0x6e9   :  { %v3444_v0 = vadd.f32 %v3443_v58, %v8608_v40  ;;  %v3612_v9 = vpop.f32.mrf.mxu1 }
 0x6eb   :  { %v3613_v56 = vadd.f32 %v3612_v9, %v3444_v0 }
 0x6ed   :  { %v3769_v38 = vmax.f32 %v3613_v56, 0.0 }
 0x6ef   :  { %v3887_v14 = vpack.c.bf16 %v3769_v38, %v3767_v48 }
 0x6f0   :  { %v9062_v21 = vpop.f32.mrf.mxu2  ;;  %v3446_v63 = vpop.f32.mrf.mxu0 }
 0x6f1   :  { %v3615_v11 = vpop.f32.mrf.mxu1  ;;  %4271 = vmatmul.bf16.gmra.mxu3 %v3887_v14  ;;  %v3447_v39 = vadd.f32 %v3446_v63, %v8616_v41  ;;  %v10236_v41 = vld [vmem:[#allocation86_spill] sm:$0xff] }
 0x6f3   :  { %3485 = vmatmul.bf16.gmra.mxu0 %v10231_v59  ;;  %v3616_v27 = vadd.f32 %v3615_v11, %v3447_v39 }
 0x6f4   :  { %4981 = vmatmul.msk.bf16.gmra.mxu1 %vm1287_vm0, %v10232_v45  ;;  %v10234_v45 = vld [vmem:[#allocation183_spill] sm:$0xff] }
 0x6f5   :  { %4147 = vmatmul.bf16.gmra.mxu2 %v10233_v5  ;;  %v3771_v9 = vmax.f32 %v3616_v27, 0.0  ;;  %v10235_v5 = vld [vmem:[#allocation184_spill] sm:$0xff] }
 0x6f8   :  { %v9069_v40 = vpop.f32.mrf.mxu2  ;;  %v3448_v23 = vpop.f32.mrf.mxu0 }
 0x6f9   :  { %v3449_v58 = vadd.f32 %v3448_v23, %v8620_v4  ;;  %v3617_v44 = vpop.f32.mrf.mxu1 }
 0x6fb   :  { %v3618_v0 = vadd.f32 %v3617_v44, %v3449_v58 }
 0x6fd   :  { %v3773_v56 = vmax.f32 %v3618_v0, 0.0 }
 0x6ff   :  { %v3889_v38 = vpack.c.bf16 %v3773_v56, %v3771_v9 }
 0x700   :  { %v9072_v48 = vpop.f32.mrf.mxu2  ;;  %v3451_v14 = vpop.f32.mrf.mxu0 }
 0x701   :  { %v3620_v59 = vpop.f32.mrf.mxu1  ;;  %4276 = vmatmul.bf16.gmra.mxu3 %v3889_v38  ;;  %v3452_v63 = vadd.f32 %v3451_v14, %v8634_v34  ;;  %v10239_v34 = vld [vmem:[#allocation92_spill] sm:$0xff] }
 0x703   :  { %3490 = vmatmul.bf16.gmra.mxu0 %v10234_v45  ;;  %v3621_v39 = vadd.f32 %v3620_v59, %v3452_v63 }
 0x704   :  { %4982 = vmatmul.msk.bf16.gmra.mxu1 %vm1287_vm0, %v10235_v5  ;;  %v10237_v5 = vld [vmem:[#allocation186_spill] sm:$0xff] }
 0x705   :  { %4152 = vmatmul.bf16.gmra.mxu2 %v10236_v41  ;;  %v3775_v44 = vmax.f32 %v3621_v39, 0.0  ;;  %v10238_v41 = vld [vmem:[#allocation187_spill] sm:$0xff] }
 0x708   :  { %v9079_v4 = vpop.f32.mrf.mxu2  ;;  %v3453_v11 = vpop.f32.mrf.mxu0 }
 0x709   :  { %v3454_v23 = vadd.f32 %v3453_v11, %v8641_v8  ;;  %v3622_v27 = vpop.f32.mrf.mxu1 }
 0x70b   :  { %v3623_v58 = vadd.f32 %v3622_v27, %v3454_v23 }
 0x70d   :  { %v3777_v0 = vmax.f32 %v3623_v58, 0.0 }
 0x70f   :  { %v3891_v9 = vpack.c.bf16 %v3777_v0, %v3775_v44 }
 0x710   :  { %v9082_v56 = vpop.f32.mrf.mxu2  ;;  %v3456_v38 = vpop.f32.mrf.mxu0 }
 0x711   :  { %v3625_v45 = vpop.f32.mrf.mxu1  ;;  %4281 = vmatmul.bf16.gmra.mxu3 %v3891_v9  ;;  %v3457_v14 = vadd.f32 %v3456_v38, %v8652_v26  ;;  %v10242_v26 = vld [vmem:[#allocation98_spill] sm:$0xff] }
 0x713   :  { %3495 = vmatmul.bf16.gmra.mxu0 %v10237_v5  ;;  %v3626_v59 = vadd.f32 %v3625_v45, %v3457_v14  ;;  %v10240_v5 = vld [vmem:[#allocation189_spill] sm:$0xff] }
 0x714   :  { %4983 = vmatmul.msk.bf16.gmra.mxu1 %vm1287_vm0, %v10238_v41 }
 0x715   :  { %4157 = vmatmul.bf16.gmra.mxu2 %v10239_v34  ;;  %v3779_v27 = vmax.f32 %v3626_v59, 0.0  ;;  %v10241_v34 = vld [vmem:[#allocation190_spill] sm:$0xff] }
 0x718   :  { %v3458_v8 = vpop.f32.mrf.mxu0  ;;  %v9090_v39 = vpop.f32.mrf.mxu2 }
 0x719   :  { %v3459_v63 = vadd.f32 %v3458_v8, %v8656_v61  ;;  %v3627_v11 = vpop.f32.mrf.mxu1 }
 0x71b   :  { %v3628_v23 = vadd.f32 %v3627_v11, %v3459_v63  ;;  %v9100_v63 = vpop.f32.mrf.mxu3 }
 0x71c   :  { %10243 = vst [vmem:[#allocation30_spill] sm:$0xff] %v9100_v63 }
 0x71d   :  { %v3781_v58 = vmax.f32 %v3628_v23, 0.0 }
 0x71f   :  { %v3893_v44 = vpack.c.bf16 %v3781_v58, %v3779_v27 }
 0x720   :  { %v3461_v0 = vpop.f32.mrf.mxu0  ;;  %v9093_v41 = vpop.f32.mrf.mxu2 }
 0x721   :  { %v3630_v9 = vpop.f32.mrf.mxu1  ;;  %4286 = vmatmul.bf16.gmra.mxu3 %v3893_v44  ;;  %v3462_v61 = vadd.f32 %v3461_v0, %v8664_v49  ;;  %v10246_v49 = vld [vmem:[#allocation104_spill] sm:$0xff] }
 0x723   :  { %3500 = vmatmul.bf16.gmra.mxu0 %v10240_v5  ;;  %v3631_v45 = vadd.f32 %v3630_v9, %v3462_v61  ;;  %v9112_v9 = vld [vmem:[%s9494_s4] ss:$0 sm:$0xff] }
 0x724   :  { %4984 = vmatmul.msk.bf16.gmra.mxu1 %vm1287_vm0, %v10241_v34  ;;  %v10244_v34 = vld [vmem:[#allocation192_spill] sm:$0xff] }
 0x725   :  { %4162 = vmatmul.bf16.gmra.mxu2 %v10242_v26  ;;  %v3783_v11 = vmax.f32 %v3631_v45, 0.0  ;;  %v10245_v26 = vld [vmem:[#allocation193_spill] sm:$0xff] }
 0x728   :  { %v3463_v38 = vpop.f32.mrf.mxu0  ;;  %v9102_v27 = vpop.f32.mrf.mxu2 }
 0x729   :  { %v3464_v14 = vadd.f32 %v3463_v38, %v8668_v22  ;;  %v3632_v8 = vpop.f32.mrf.mxu1 }
 0x72b   :  { %v3633_v59 = vadd.f32 %v3632_v8, %v3464_v14 }
 0x72d   :  { %v3785_v23 = vmax.f32 %v3633_v59, 0.0  ;;  %v4084_v59 = vadd.f32 %v9112_v9, %v9019_v35  ;;  %v10247_v35 = vld [vmem:[#allocation195_spill] sm:$0xff] }
 0x72f   :  { %v3895_v58 = vpack.c.bf16 %v3785_v23, %v3783_v11  ;;  %v4086_v11 = vadd.f32 %v9112_v9, %v9022_v42  ;;  %v10248_v42 = vld [vmem:[#allocation196_spill] sm:$0xff] }
 0x730   :  { %v3466_v44 = vpop.f32.mrf.mxu0  ;;  %v9114_v61 = vpop.f32.mrf.mxu2 }
 0x731   :  { %v3635_v5 = vpop.f32.mrf.mxu1  ;;  %4291 = vmatmul.bf16.gmra.mxu3 %v3895_v58  ;;  %v3467_v0 = vadd.f32 %v3466_v44, %v8676_v19 }
 0x733   :  { %3505 = vmatmul.bf16.gmra.mxu0 %v10244_v34  ;;  %v3636_v45 = vadd.f32 %v3635_v5, %v3467_v0  ;;  %v10249_v0 = vld [vmem:[#allocation110_spill] sm:$0xff] }
 0x734   :  { %4985 = vmatmul.msk.bf16.gmra.mxu1 %vm1287_vm0, %v10245_v26  ;;  %v4252_v22 = vpop.f32.mrf.mxu3 }
 0x735   :  { %4167 = vmatmul.bf16.gmra.mxu2 %v10246_v49  ;;  %v3787_v58 = vmax.f32 %v3636_v45, 0.0  ;;  %v4253_v44 = vadd.f32 %v4252_v22, %v4084_v59 }
 0x738   :  { %v3468_v38 = vpop.f32.mrf.mxu0  ;;  %v9124_v5 = vpop.f32.mrf.mxu2 }
 0x739   :  { %v3469_v14 = vadd.f32 %v3468_v38, %v8680_v50  ;;  %v3637_v8 = vpop.f32.mrf.mxu1 }
 0x73b   :  { %v3638_v23 = vadd.f32 %v3637_v8, %v3469_v14 }
 0x73c   :  { %v4254_v19 = vpop.f32.mrf.mxu3 }
 0x73d   :  { %v3789_v34 = vmax.f32 %v3638_v23, 0.0  ;;  %v4255_v26 = vadd.f32 %v4254_v19, %v4086_v11  ;;  %v4091_v11 = vadd.f32 %v9112_v9, %v9032_v53  ;;  %v10251_v53 = vld [vmem:[#allocation200_spill] sm:$0xff] }
 0x73f   :  { %v5181_v49 = vpack.c.bf16 %v4255_v26, %v4253_v44  ;;  %v3897_v63 = vpack.c.bf16 %v3789_v34, %v3787_v58 }
 0x740   :  { %v3471_v60 = vpop.f32.mrf.mxu0  ;;  %v9136_v19 = vpop.f32.mrf.mxu2 }
 0x741   :  { %5182 = vst [vmem:[%s9495_s5] sm:$0xff] %v5181_v49   ;;  %v3640_v50 = vpop.f32.mrf.mxu1  ;;  %4296 = vmatmul.bf16.gmra.mxu3 %v3897_v63  ;;  %v3472_v38 = vadd.f32 %v3471_v60, %v8694_v43  ;;  %v4089_v63 = vadd.f32 %v9112_v9, %v9029_v32  ;;  %v10250_v32 = vld [vmem:[#allocation199_spill] sm:$0xff] }
 0x743   :  { %3510 = vmatmul.bf16.gmra.mxu0 %v10247_v35  ;;  %v3641_v14 = vadd.f32 %v3640_v50, %v3472_v38  ;;  %v10252_v35 = vld [vmem:[#allocation116_spill] sm:$0xff] }
 0x744   :  { %4986 = vmatmul.msk.bf16.gmra.mxu1 %vm1287_vm0, %v10248_v42  ;;  %v4257_v22 = vpop.f32.mrf.mxu3 }
 0x745   :  { %4172 = vmatmul.bf16.gmra.mxu2 %v10249_v0  ;;  %v3791_v44 = vmax.f32 %v3641_v14, 0.0  ;;  %v4258_v34 = vadd.f32 %v4257_v22, %v4089_v63  ;;  %v4096_v63 = vadd.f32 %v9112_v9, %v9042_v25  ;;  %v10254_v25 = vld [vmem:[#allocation204_spill] sm:$0xff] }
 0x748   :  { %v3473_v45 = vpop.f32.mrf.mxu0  ;;  %v9146_v22 = vpop.f32.mrf.mxu2 }
 0x749   :  { %v3474_v8 = vadd.f32 %v3473_v45, %v8701_v51  ;;  %v3642_v59 = vpop.f32.mrf.mxu1 }
 0x74b   :  { %v3643_v23 = vadd.f32 %v3642_v59, %v3474_v8  ;;  %v4094_v59 = vadd.f32 %v9112_v9, %v9039_v15  ;;  %v10253_v15 = vld [vmem:[#allocation203_spill] sm:$0xff] }
 0x74c   :  { %v4259_v58 = vpop.f32.mrf.mxu3 }
 0x74d   :  { %v3793_v26 = vmax.f32 %v3643_v23, 0.0  ;;  %v4260_v49 = vadd.f32 %v4259_v58, %v4091_v11 }
 0x74f   :  { %v5186_v43 = vpack.c.bf16 %v4260_v49, %v4258_v34  ;;  %v3899_v60 = vpack.c.bf16 %v3793_v26, %v3791_v44 }
 0x750   :  { %v3476_v50 = vpop.f32.mrf.mxu0 }
 0x751   :  { %5338 = vst [vmem:[%s9495_s5 + $0x8] sm:$0xff] %v5186_v43   ;;  %v3645_v51 = vpop.f32.mrf.mxu1  ;;  %4301 = vmatmul.bf16.gmra.mxu3 %v3899_v60  ;;  %v3477_v0 = vadd.f32 %v3476_v50, %v8712_v29  ;;  %v9153_v43 = vpop.f32.mrf.mxu2  ;;  %v10255_v50 = vld [vmem:[#allocation122_spill] sm:$0xff] }
 0x753   :  { %3515 = vmatmul.bf16.gmra.mxu0 %v10250_v32  ;;  %v3646_v45 = vadd.f32 %v3645_v51, %v3477_v0 }
 0x754   :  { %4987 = vmatmul.msk.bf16.gmra.mxu1 %vm1287_vm0, %v10251_v53  ;;  %v4262_v42 = vpop.f32.mrf.mxu3 }
 0x755   :  { %4177 = vmatmul.bf16.gmra.mxu2 %v10252_v35  ;;  %v3795_v58 = vmax.f32 %v3646_v45, 0.0  ;;  %v4263_v44 = vadd.f32 %v4262_v42, %v4094_v59  ;;  %v4099_v45 = vadd.f32 %v9112_v9, %v9049_v2 }
 0x758   :  { %v3478_v38 = vpop.f32.mrf.mxu0 }
 0x759   :  { %v3479_v14 = vadd.f32 %v3478_v38, %v8716_v31  ;;  %v3647_v8 = vpop.f32.mrf.mxu1  ;;  %v9164_v38 = vpop.f32.mrf.mxu2 }
 0x75b   :  { %v3648_v11 = vadd.f32 %v3647_v8, %v3479_v14  ;;  %v4101_v14 = vadd.f32 %v9112_v9, %v9052_v47  ;;  %v10257_v47 = vld [vmem:[#allocation207_spill] sm:$0xff] }
 0x75c   :  { %v4264_v23 = vpop.f32.mrf.mxu3 }
 0x75d   :  { %v3797_v34 = vmax.f32 %v3648_v11, 0.0  ;;  %v4265_v26 = vadd.f32 %v4264_v23, %v4096_v63 }
 0x75f   :  { %v5191_v29 = vpack.c.bf16 %v4265_v26, %v4263_v44  ;;  %v3901_v49 = vpack.c.bf16 %v3797_v34, %v3795_v58  ;;  %v10256_v26 = vld [vmem:[#allocation206_spill] sm:$0xff] }
 0x760   :  { %v3481_v60 = vpop.f32.mrf.mxu0 }
 0x761   :  { %5339 = vst [vmem:[%s9495_s5 + $0x10] sm:$0xff] %v5191_v29   ;;  %v3650_v31 = vpop.f32.mrf.mxu1  ;;  %4306 = vmatmul.bf16.gmra.mxu3 %v3901_v49  ;;  %v3482_v32 = vadd.f32 %v3481_v60, %v8724_v46  ;;  %v9174_v2 = vpop.f32.mrf.mxu2  ;;  %v10258_v29 = vld [vmem:[#allocation128_spill] sm:$0xff] }
 0x763   :  { %3520 = vmatmul.bf16.gmra.mxu0 %v10253_v15  ;;  %v3651_v35 = vadd.f32 %v3650_v31, %v3482_v32  ;;  %v4106_v32 = vadd.f32 %v9112_v9, %v9062_v21  ;;  %v10260_v21 = vld [vmem:[#allocation210_spill] sm:$0xff] }
 0x764   :  { %4988 = vmatmul.msk.bf16.gmra.mxu1 %vm1287_vm0, %v10254_v25  ;;  %v4267_v51 = vpop.f32.mrf.mxu3 }
 0x765   :  { %4182 = vmatmul.bf16.gmra.mxu2 %v10255_v50  ;;  %v3799_v63 = vmax.f32 %v3651_v35, 0.0  ;;  %v4268_v11 = vadd.f32 %v4267_v51, %v4099_v45  ;;  %v4104_v51 = vadd.f32 %v9112_v9, %v9059_v13  ;;  %v10259_v13 = vld [vmem:[#allocation209_spill] sm:$0xff] }
 0x768   :  { %v3483_v53 = vpop.f32.mrf.mxu0 }
 0x769   :  { %v3484_v42 = vadd.f32 %v3483_v53, %v8728_v3  ;;  %v3652_v0 = vpop.f32.mrf.mxu1 }
 0x76b   :  { %v3653_v8 = vadd.f32 %v3652_v0, %v3484_v42 }
 0x76c   :  { %v4269_v59 = vpop.f32.mrf.mxu3 }
 0x76d   :  { %v3801_v23 = vmax.f32 %v3653_v8, 0.0  ;;  %v4270_v58 = vadd.f32 %v4269_v59, %v4101_v14  ;;  %v9185_v8 = vpop.f32.mrf.mxu2 }
 0x76f   :  { %v5196_v46 = vpack.c.bf16 %v4270_v58, %v4268_v11  ;;  %v3903_v44 = vpack.c.bf16 %v3801_v23, %v3799_v63  ;;  %v10261_v11 = vld [vmem:[#allocation235_spill] sm:$0xff] }
 0x770   :  { %v3486_v34 = vpop.f32.mrf.mxu0 }
 0x771   :  { %5340 = vst [vmem:[%s9495_s5 + $0x18] sm:$0xff] %v5196_v46   ;;  %v3655_v3 = vpop.f32.mrf.mxu1  ;;  %4311 = vmatmul.bf16.gmra.mxu3 %v3903_v44  ;;  %v3487_v60 = vadd.f32 %v3486_v34, %v8736_v7 }
 0x773   :  { %3525 = vmatmul.bf16.gmra.mxu0 %v10256_v26  ;;  %v3656_v15 = vadd.f32 %v3655_v3, %v3487_v60  ;;  %v10262_v3 = vld [vmem:[#allocation12_spill] sm:$0xff] }
 0x774   :  { %4989 = vmatmul.msk.bf16.gmra.mxu1 %vm1287_vm0, %v10257_v47  ;;  %v4272_v49 = vpop.f32.mrf.mxu3 }
 0x775   :  { %4187 = vmatmul.bf16.gmra.mxu2 %v10258_v29  ;;  %v3803_v42 = vmax.f32 %v3656_v15, 0.0  ;;  %v4273_v0 = vadd.f32 %v4272_v49, %v4104_v51  ;;  %v9195_v46 = vpop.f32.mrf.mxu2  ;;  %v4109_v29 = vadd.f32 %v9112_v9, %v9069_v40  ;;  %v4111_v49 = vadd.f32 %v9112_v9, %v9072_v48  ;;  %v10263_v40 = vld [vmem:[#allocation212_spill] sm:$0xff]  ;;  %v10264_v48 = vld [vmem:[#allocation213_spill] sm:$0xff] }
 0x778   :  { %v3488_v31 = vpop.f32.mrf.mxu0 }
 0x779   :  { %v3489_v25 = vadd.f32 %v3488_v31, %v8740_v30  ;;  %v3657_v50 = vpop.f32.mrf.mxu1 }
 0x77b   :  { %v3658_v53 = vadd.f32 %v3657_v50, %v3489_v25 }
 0x77c   :  { %v4274_v35 = vpop.f32.mrf.mxu3 }
 0x77d   :  { %v3805_v45 = vmax.f32 %v3658_v53, 0.0  ;;  %v4275_v14 = vadd.f32 %v4274_v35, %v4106_v32 }
 0x77f   :  { %v5201_v7 = vpack.c.bf16 %v4275_v14, %v4273_v0  ;;  %v3905_v59 = vpack.c.bf16 %v3805_v45, %v3803_v42  ;;  %v9205_v42 = vpop.f32.mrf.mxu2  ;;  %v10265_v0 = vld [vmem:[#allocation135_spill] sm:$0xff]  ;;  %v10266_v14 = vld [vmem:[#allocation13_spill] sm:$0xff] }
 0x780   :  { %v3491_v63 = vpop.f32.mrf.mxu0 }
 0x781   :  { %5341 = vst [vmem:[%s9495_s5 + $0x20] sm:$0xff] %v5201_v7   ;;  %v3660_v30 = vpop.f32.mrf.mxu1  ;;  %4316 = vmatmul.bf16.gmra.mxu3 %v3905_v59  ;;  %v3492_v58 = vadd.f32 %v3491_v63, %v8754_v28 }
 0x783   :  { %3530 = vmatmul.bf16.gmra.mxu0 %v10259_v13  ;;  %v3661_v34 = vadd.f32 %v3660_v30, %v3492_v58  ;;  %v10267_v30 = vld [vmem:[#allocation144_spill] sm:$0xff] }
 0x784   :  { %4990 = vmatmul.msk.bf16.gmra.mxu1 %vm1287_vm0, %v10260_v21  ;;  %v4277_v23 = vpop.f32.mrf.mxu3 }
 0x785   :  { %4192 = vmatmul.bf16.gmra.mxu2 %v10261_v11  ;;  %v3807_v15 = vmax.f32 %v3661_v34, 0.0  ;;  %v4278_v25 = vadd.f32 %v4277_v23, %v4109_v29  ;;  %v4114_v11 = vadd.f32 %v9112_v9, %v9079_v4  ;;  %v4116_v23 = vadd.f32 %v9112_v9, %v9082_v56  ;;  %v10268_v4 = vld [vmem:[#allocation215_spill] sm:$0xff]  ;;  %v10269_v56 = vld [vmem:[#allocation216_spill] sm:$0xff] }
 0x788   :  { %v3493_v44 = vpop.f32.mrf.mxu0 }
 0x789   :  { %v3494_v26 = vadd.f32 %v3493_v44, %v10262_v3  ;;  %v3662_v47 = vpop.f32.mrf.mxu1  ;;  %v9217_v44 = vpop.f32.mrf.mxu2 }
 0x78b   :  { %v3663_v60 = vadd.f32 %v3662_v47, %v3494_v26 }
 0x78c   :  { %v4279_v31 = vpop.f32.mrf.mxu3 }
 0x78d   :  { %v3809_v50 = vmax.f32 %v3663_v60, 0.0  ;;  %v4280_v51 = vadd.f32 %v4279_v31, %v4111_v49 }
 0x78f   :  { %v5206_v28 = vpack.c.bf16 %v4280_v51, %v4278_v25  ;;  %v3907_v32 = vpack.c.bf16 %v3809_v50, %v3807_v15  ;;  %v10270_v25 = vld [vmem:[#allocation3_spill] sm:$0xff] }
 0x790   :  { %v3496_v53 = vpop.f32.mrf.mxu0  ;;  %v10271_v51 = vld [vmem:[#allocation151_spill] sm:$0xff] }
 0x791   :  { %5342 = vst [vmem:[%s9495_s5 + $0x28] sm:$0xff] %v5206_v28   ;;  %v3665_v35 = vpop.f32.mrf.mxu1  ;;  %4321 = vmatmul.bf16.gmra.mxu3 %v3907_v32  ;;  %v3497_v7 = vadd.f32 %v3496_v53, %v10266_v14  ;;  %v9227_v32 = vpop.f32.mrf.mxu2  ;;  %v4121_v14 = vadd.f32 %v9112_v9, %v9093_v41  ;;  %v10274_v41 = vld [vmem:[#allocation219_spill] sm:$0xff] }
 0x793   :  { %3535 = vmatmul.bf16.gmra.mxu0 %v10263_v40  ;;  %v3666_v63 = vadd.f32 %v3665_v35, %v3497_v7  ;;  %v10272_v40 = vld [vmem:[#allocation14_spill] sm:$0xff] }
 0x794   :  { %4991 = vmatmul.msk.bf16.gmra.mxu1 %vm1287_vm0, %v10264_v48  ;;  %v4282_v45 = vpop.f32.mrf.mxu3 }
 0x795   :  { %4197 = vmatmul.bf16.gmra.mxu2 %v10265_v0  ;;  %v3811_v3 = vmax.f32 %v3666_v63, 0.0  ;;  %v4283_v26 = vadd.f32 %v4282_v45, %v4114_v11  ;;  %v4119_v45 = vadd.f32 %v9112_v9, %v9090_v39  ;;  %v10273_v39 = vld [vmem:[#allocation218_spill] sm:$0xff] }
 0x798   :  { %v3498_v59 = vpop.f32.mrf.mxu0 }
 0x799   :  { %v3499_v13 = vadd.f32 %v3498_v59, %v10267_v30  ;;  %v3667_v21 = vpop.f32.mrf.mxu1 }
 0x79b   :  { %v3668_v58 = vadd.f32 %v3667_v21, %v3499_v13 }
 0x79c   :  { %v4284_v34 = vpop.f32.mrf.mxu3 }
 0x79d   :  { %v3813_v47 = vmax.f32 %v3668_v58, 0.0  ;;  %v4285_v29 = vadd.f32 %v4284_v34, %v4116_v23  ;;  %v9234_v58 = vpop.f32.mrf.mxu2 }
 0x79f   :  { %v5211_v49 = vpack.c.bf16 %v4285_v29, %v4283_v26  ;;  %v3909_v60 = vpack.c.bf16 %v3813_v47, %v3811_v3  ;;  %v10275_v26 = vld [vmem:[#allocation132_spill] sm:$0xff]  ;;  %v10276_v29 = vld [vmem:[#allocation15_spill] sm:$0xff] }
 0x7a0   :  { %v3501_v31 = vpop.f32.mrf.mxu0 }
 0x7a1   :  { %5343 = vst [vmem:[%s9495_s5 + $0x30] sm:$0xff] %v5211_v49   ;;  %v3670_v15 = vpop.f32.mrf.mxu1  ;;  %4326 = vmatmul.bf16.gmra.mxu3 %v3909_v60  ;;  %v3502_v28 = vadd.f32 %v3501_v31, %v10271_v51  ;;  %v4126_v51 = vadd.f32 %v9112_v9, %v9114_v61  ;;  %v10279_v61 = vld [vmem:[#allocation222_spill] sm:$0xff] }
 0x7a3   :  { %3540 = vmatmul.bf16.gmra.mxu0 %v10268_v4  ;;  %v3671_v35 = vadd.f32 %v3670_v15, %v3502_v28  ;;  %v10277_v15 = vld [vmem:[#allocation16_spill] sm:$0xff] }
 0x7a4   :  { %4992 = vmatmul.msk.bf16.gmra.mxu1 %vm1287_vm0, %v10269_v56  ;;  %v4287_v50 = vpop.f32.mrf.mxu3 }
 0x7a5   :  { %4202 = vmatmul.bf16.gmra.mxu2 %v10270_v25  ;;  %v3815_v63 = vmax.f32 %v3671_v35, 0.0  ;;  %v4288_v30 = vadd.f32 %v4287_v50, %v4119_v45  ;;  %v9245_v25 = vpop.f32.mrf.mxu2  ;;  %v4124_v50 = vadd.f32 %v9112_v9, %v9102_v27 }
 0x7a8   :  { %v3503_v53 = vpop.f32.mrf.mxu0 }
 0x7a9   :  { %v3504_v48 = vadd.f32 %v3503_v53, %v10272_v40  ;;  %v3672_v0 = vpop.f32.mrf.mxu1 }
 0x7ab   :  { %v3673_v7 = vadd.f32 %v3672_v0, %v3504_v48 }
 0x7ac   :  { %v4289_v59 = vpop.f32.mrf.mxu3 }
 0x7ad   :  { %v3817_v13 = vmax.f32 %v3673_v7, 0.0  ;;  %v4290_v21 = vadd.f32 %v4289_v59, %v4121_v14  ;;  %v9255_v27 = vpop.f32.mrf.mxu2 }
 0x7af   :  { %v5216_v11 = vpack.c.bf16 %v4290_v21, %v4288_v30  ;;  %v3911_v23 = vpack.c.bf16 %v3817_v13, %v3815_v63  ;;  %v10278_v63 = vld [vmem:[#allocation221_spill] sm:$0xff]  ;;  %v10281_v21 = vld [vmem:[#allocation148_spill] sm:$0xff] }
 0x7b0   :  { %v3506_v34 = vpop.f32.mrf.mxu0  ;;  %v10280_v30 = vld [vmem:[#allocation5_spill] sm:$0xff] }
 0x7b1   :  { %5344 = vst [vmem:[%s9495_s5 + $0x38] sm:$0xff] %v5216_v11   ;;  %v3675_v3 = vpop.f32.mrf.mxu1  ;;  %4331 = vmatmul.bf16.gmra.mxu3 %v3911_v23  ;;  %v3507_v49 = vadd.f32 %v3506_v34, %v10276_v29 }
 0x7b3   :  { %3545 = vmatmul.bf16.gmra.mxu0 %v10273_v39  ;;  %v3676_v31 = vadd.f32 %v3675_v3, %v3507_v49  ;;  %v10282_v3 = vld [vmem:[#allocation155_spill] sm:$0xff] }
 0x7b4   :  { %4993 = vmatmul.msk.bf16.gmra.mxu1 %vm1287_vm0, %v10274_v41  ;;  %v4292_v47 = vpop.f32.mrf.mxu3 }
 0x7b5   :  { %4207 = vmatmul.bf16.gmra.mxu2 %v10275_v26  ;;  %v3819_v35 = vmax.f32 %v3676_v31, 0.0  ;;  %v4293_v40 = vadd.f32 %v4292_v47, %v4124_v50  ;;  %v4129_v26 = vadd.f32 %v9112_v9, %v9124_v5  ;;  %v4131_v47 = vadd.f32 %v9112_v9, %v9136_v19  ;;  %v10283_v5 = vld [vmem:[#allocation224_spill] sm:$0xff]  ;;  %v10284_v19 = vld [vmem:[#allocation225_spill] sm:$0xff] }
 0x7b8   :  { %v3508_v60 = vpop.f32.mrf.mxu0 }
 0x7b9   :  { %v3509_v4 = vadd.f32 %v3508_v60, %v10277_v15  ;;  %v3677_v56 = vpop.f32.mrf.mxu1 }
 0x7bb   :  { %v3678_v28 = vadd.f32 %v3677_v56, %v3509_v4  ;;  %v9266_v56 = vpop.f32.mrf.mxu2 }
 0x7bc   :  { %v4294_v53 = vpop.f32.mrf.mxu3 }
 0x7bd   :  { %v3821_v48 = vmax.f32 %v3678_v28, 0.0  ;;  %v4295_v0 = vadd.f32 %v4294_v53, %v4126_v51 }
 0x7bf   :  { %v5221_v45 = vpack.c.bf16 %v4295_v0, %v4293_v40  ;;  %v3913_v14 = vpack.c.bf16 %v3821_v48, %v3819_v35  ;;  %v10285_v35 = vld [vmem:[#allocation7_spill] sm:$0xff] }
 0x7c0   :  { %v3511_v7 = vpop.f32.mrf.mxu0 }
 0x7c1   :  { %5345 = vst [vmem:[%s9495_s5 + $0x40] sm:$0xff] %v5221_v45   ;;  %v3680_v59 = vpop.f32.mrf.mxu1  ;;  %4336 = vmatmul.bf16.gmra.mxu3 %v3913_v14  ;;  %v3512_v11 = vadd.f32 %v3511_v7, %v10281_v21  ;;  %v10286_v7 = vld [vmem:[#allocation17_spill] sm:$0xff] }
 0x7c3   :  { %3550 = vmatmul.bf16.gmra.mxu0 %v10278_v63  ;;  %v3681_v34 = vadd.f32 %v3680_v59, %v3512_v11  ;;  %v9276_v0 = vpop.f32.mrf.mxu2 }
 0x7c4   :  { %4994 = vmatmul.msk.bf16.gmra.mxu1 %vm1287_vm0, %v10279_v61  ;;  %v4297_v13 = vpop.f32.mrf.mxu3  ;;  %v4134_v61 = vadd.f32 %v9112_v9, %v9146_v22  ;;  %v10287_v22 = vld [vmem:[#allocation227_spill] sm:$0xff] }
 0x7c5   :  { %4212 = vmatmul.bf16.gmra.mxu2 %v10280_v30  ;;  %v3823_v60 = vmax.f32 %v3681_v34, 0.0  ;;  %v4298_v31 = vadd.f32 %v4297_v13, %v4129_v26  ;;  %v4136_v30 = vadd.f32 %v9112_v9, %v9153_v43  ;;  %v10288_v43 = vld [vmem:[#allocation228_spill] sm:$0xff] }
 0x7c8   :  { %v3513_v23 = vpop.f32.mrf.mxu0 }
 0x7c9   :  { %v3514_v39 = vadd.f32 %v3513_v23, %v10282_v3  ;;  %v3682_v41 = vpop.f32.mrf.mxu1 }
 0x7cb   :  { %v3683_v29 = vadd.f32 %v3682_v41, %v3514_v39 }
 0x7cc   :  { %v4299_v49 = vpop.f32.mrf.mxu3 }
 0x7cd   :  { %v3825_v15 = vmax.f32 %v3683_v29, 0.0  ;;  %v4300_v4 = vadd.f32 %v4299_v49, %v4131_v47  ;;  %v9286_v47 = vpop.f32.mrf.mxu2  ;;  %v10289_v29 = vld [vmem:[#allocation143_spill] sm:$0xff] }
 0x7cf   :  { %v5226_v50 = vpack.c.bf16 %v4300_v4, %v4298_v31  ;;  %v3915_v51 = vpack.c.bf16 %v3825_v15, %v3823_v60  ;;  %v3355_v31 = vadd.f32 %v8850_v33, %v8848_v57 }
 0x7d0   :  { %v3516_v28 = vpop.f32.mrf.mxu0 }
 0x7d1   :  { %5346 = vst [vmem:[%s9495_s5 + $0x48] sm:$0xff] %v5226_v50   ;;  %v3685_v53 = vpop.f32.mrf.mxu1  ;;  %4341 = vmatmul.bf16.gmra.mxu3 %v3915_v51  ;;  %v3517_v48 = vadd.f32 %v3516_v28, %v8832_v18  ;;  %v4139_v28 = vadd.f32 %v9112_v9, %v9164_v38  ;;  %v10290_v38 = vld [vmem:[#allocation230_spill] sm:$0xff] }
 0x7d3   :  { %3555 = vmatmul.bf16.gmra.mxu0 %v10283_v5  ;;  %v3686_v14 = vadd.f32 %v3685_v53, %v3517_v48  ;;  %v4141_v53 = vadd.f32 %v9112_v9, %v9174_v2  ;;  %v10291_v2 = vld [vmem:[#allocation231_spill] sm:$0xff] }
 0x7d4   :  { %4995 = vmatmul.msk.bf16.gmra.mxu1 %vm1287_vm0, %v10284_v19  ;;  %v4302_v40 = vpop.f32.mrf.mxu3 }
 0x7d5   :  { %4217 = vmatmul.bf16.gmra.mxu2 %v10285_v35  ;;  %v3827_v11 = vmax.f32 %v3686_v14, 0.0  ;;  %v4303_v23 = vadd.f32 %v4302_v40, %v4134_v61  ;;  %v9299_v19 = vpop.f32.mrf.mxu2 }
 0x7d8   :  { %v3518_v45 = vpop.f32.mrf.mxu0 }
 0x7d9   :  { %v3519_v59 = vadd.f32 %v3518_v45, %v10286_v7  ;;  %v3687_v63 = vpop.f32.mrf.mxu1 }
 0x7db   :  { %v3688_v13 = vadd.f32 %v3687_v63, %v3519_v59  ;;  %v10292_v59 = vld [vmem:[#allocation9_spill] sm:$0xff] }
 0x7dc   :  { %v4304_v21 = vpop.f32.mrf.mxu3 }
 0x7dd   :  { %v3829_v34 = vmax.f32 %v3688_v13, 0.0  ;;  %v4305_v3 = vadd.f32 %v4304_v21, %v4136_v30  ;;  %v9309_v30 = vpop.f32.mrf.mxu2  ;;  %v10293_v13 = vld [vmem:[#allocation18_spill] sm:$0xff]  ;;  %v10294_v21 = vld [vmem:[#allocation19_spill] sm:$0xff] }
 0x7df   :  { %v5231_v18 = vpack.c.bf16 %v4305_v3, %v4303_v23  ;;  %v3917_v39 = vpack.c.bf16 %v3829_v34, %v3827_v11  ;;  %v3360_v11 = vadd.f32 %v10294_v21, %v10293_v13  ;;  %v10298_v13 = vld [vmem:[#allocation123_spill] sm:$0xff] }
 0x7e0   :  { %v3521_v41 = vpop.f32.mrf.mxu0  ;;  %v10300_v21 = vld [vmem:[#allocation11_spill] sm:$0xff] }
 0x7e1   :  { %5347 = vst [vmem:[%s9495_s5 + $0x50] sm:$0xff] %v5231_v18   ;;  %v3690_v26 = vpop.f32.mrf.mxu1  ;;  %4346 = vmatmul.bf16.gmra.mxu3 %v3917_v39  ;;  %v3522_v60 = vadd.f32 %v3521_v41, %v8844_v1  ;;  %v4144_v39 = vadd.f32 %v9112_v9, %v9185_v8  ;;  %v4146_v41 = vadd.f32 %v9112_v9, %v9195_v46  ;;  %v10295_v8 = vld [vmem:[#allocation232_spill] sm:$0xff]  ;;  %v10296_v46 = vld [vmem:[#allocation233_spill] sm:$0xff] }
 0x7e3   :  { %3560 = vmatmul.bf16.gmra.mxu0 %v10287_v22  ;;  %v3691_v4 = vadd.f32 %v3690_v26, %v3522_v60 }
 0x7e4   :  { %4996 = vmatmul.msk.bf16.gmra.mxu1 %vm1287_vm0, %v10288_v43  ;;  %v4307_v49 = vpop.f32.mrf.mxu3 }
 0x7e5   :  { %4222 = vmatmul.bf16.gmra.mxu2 %v10289_v29  ;;  %v3831_v40 = vmax.f32 %v3691_v4, 0.0  ;;  %v4308_v48 = vadd.f32 %v4307_v49, %v4139_v28 }
 0x7e8   :  { %v3523_v15 = vpop.f32.mrf.mxu0 }
 0x7e9   :  { %v3524_v50 = vadd.f32 %v3523_v15, %v3355_v31  ;;  %v3692_v51 = vpop.f32.mrf.mxu1  ;;  %v9317_v15 = vpop.f32.mrf.mxu2 }
 0x7eb   :  { %v3693_v5 = vadd.f32 %v3692_v51, %v3524_v50  ;;  %v10297_v51 = vld [vmem:[#allocation10_spill] sm:$0xff] }
 0x7ec   :  { %v4309_v35 = vpop.f32.mrf.mxu3 }
 0x7ed   :  { %v3833_v1 = vmax.f32 %v3693_v5, 0.0  ;;  %v4310_v45 = vadd.f32 %v4309_v35, %v4141_v53  ;;  %v3365_v5 = vadd.f32 %v8884_v36, %v8882_v24 }
 0x7ef   :  { %v3919_v14 = vpack.c.bf16 %v3833_v1, %v3831_v40  ;;  %v5236_v57 = vpack.c.bf16 %v4310_v45, %v4308_v48 }
 0x7f0   :  { %v3526_v33 = vpop.f32.mrf.mxu0 }
 0x7f1   :  { %5348 = vst [vmem:[%s9495_s5 + $0x58] sm:$0xff] %v5236_v57   ;;  %v3695_v7 = vpop.f32.mrf.mxu1  ;;  %4351 = vmatmul.bf16.gmra.mxu3 %v3919_v14  ;;  %v3527_v61 = vadd.f32 %v3526_v33, %v8858_v55  ;;  %v9329_v45 = vpop.f32.mrf.mxu2  ;;  %v4149_v14 = vadd.f32 %v9112_v9, %v9205_v42  ;;  %v4151_v57 = vadd.f32 %v9112_v9, %v9217_v44  ;;  %v10299_v44 = vld [vmem:[#allocation234_spill] sm:$0xff] }
 0x7f3   :  { %3565 = vmatmul.bf16.gmra.mxu0 %v10290_v38  ;;  %v3696_v34 = vadd.f32 %v3695_v7, %v3527_v61 }
 0x7f4   :  { %4997 = vmatmul.msk.bf16.gmra.mxu1 %vm1287_vm0, %v10291_v2  ;;  %v4312_v63 = vpop.f32.mrf.mxu3 }
 0x7f5   :  { %4227 = vmatmul.bf16.gmra.mxu2 %v10292_v59  ;;  %v3835_v43 = vmax.f32 %v3696_v34, 0.0  ;;  %v4313_v29 = vadd.f32 %v4312_v63, %v4144_v39  ;;  %v10301_v34 = vld [vmem:[#allocation152_spill] sm:$0xff] }
 0x7f8   :  { %v3528_v23 = vpop.f32.mrf.mxu0 }
 0x7f9   :  { %v3529_v3 = vadd.f32 %v3528_v23, %v3360_v11  ;;  %v3697_v18 = vpop.f32.mrf.mxu1  ;;  %v9339_v42 = vpop.f32.mrf.mxu2 }
 0x7fb   :  { %v3698_v26 = vadd.f32 %v3697_v18, %v3529_v3  ;;  %v10302_v3 = vld [vmem:[#allocation159_spill] sm:$0xff] }
 0x7fc   :  { %v4314_v22 = vpop.f32.mrf.mxu3  ;;  %v3370_v18 = vadd.f32 %v10302_v3, %v10301_v34  ;;  %v4164_v3 = vadd.f32 %v9112_v9, %v9266_v56 }
 0x7fd   :  { %v3837_v55 = vmax.f32 %v3698_v26, 0.0  ;;  %v4315_v49 = vadd.f32 %v4314_v22, %v4146_v41 }
 0x7ff   :  { %v3921_v60 = vpack.c.bf16 %v3837_v55, %v3835_v43  ;;  %v5241_v31 = vpack.c.bf16 %v4315_v49, %v4313_v29  ;;  %v4154_v43 = vadd.f32 %v9112_v9, %v9227_v32  ;;  %v4156_v29 = vadd.f32 %v9112_v9, %v9234_v58  ;;  %v10304_v58 = vld [vmem:[#allocation21_spill] sm:$0xff] }
 0x800   :  { %v3531_v4 = vpop.f32.mrf.mxu0 }
 0x801   :  { %5349 = vst [vmem:[%s9495_s5 + $0x60] sm:$0xff] %v5241_v31   ;;  %v3700_v50 = vpop.f32.mrf.mxu1  ;;  %4356 = vmatmul.bf16.gmra.mxu3 %v3921_v60  ;;  %v3532_v53 = vadd.f32 %v3531_v4, %v8878_v20 }
 0x803   :  { %3570 = vmatmul.bf16.gmra.mxu0 %v10295_v8  ;;  %v3701_v40 = vadd.f32 %v3700_v50, %v3532_v53  ;;  %v10303_v53 = vld [vmem:[#allocation20_spill] sm:$0xff] }
 0x804   :  { %4998 = vmatmul.msk.bf16.gmra.mxu1 %vm1287_vm0, %v10296_v46  ;;  %v4317_v28 = vpop.f32.mrf.mxu3 }
 0x805   :  { %4232 = vmatmul.bf16.gmra.mxu2 %v10297_v51  ;;  %v3839_v38 = vmax.f32 %v3701_v40, 0.0  ;;  %v4318_v2 = vadd.f32 %v4317_v28, %v4149_v14  ;;  %v4159_v14 = vadd.f32 %v9112_v9, %v9245_v25 }
 0x808   :  { %v3533_v35 = vpop.f32.mrf.mxu0 }
 0x809   :  { %v3534_v48 = vadd.f32 %v3533_v35, %v3365_v5  ;;  %v3702_v1 = vpop.f32.mrf.mxu1  ;;  %v3375_v5 = vadd.f32 %v10304_v58, %v10303_v53  ;;  %v4171_v53 = vadd.f32 %v9112_v9, %v9299_v19 }
 0x80b   :  { %v3703_v33 = vadd.f32 %v3702_v1, %v3534_v48 }
 0x80c   :  { %v4319_v7 = vpop.f32.mrf.mxu3 }
 0x80d   :  { %v3841_v20 = vmax.f32 %v3703_v33, 0.0  ;;  %v4320_v59 = vadd.f32 %v4319_v7, %v4151_v57  ;;  %v4161_v57 = vadd.f32 %v9112_v9, %v9255_v27  ;;  %v10306_v27 = vld [vmem:[#allocation156_spill] sm:$0xff] }
 0x80f   :  { %v3923_v63 = vpack.c.bf16 %v3841_v20, %v3839_v38  ;;  %v5246_v24 = vpack.c.bf16 %v4320_v59, %v4318_v2 }
 0x810   :  { %v3536_v36 = vpop.f32.mrf.mxu0 }
 0x811   :  { %5350 = vst [vmem:[%s9495_s5 + $0x68] sm:$0xff] %v5246_v24   ;;  %v3705_v61 = vpop.f32.mrf.mxu1  ;;  %4361 = vmatmul.bf16.gmra.mxu3 %v3923_v63  ;;  %v3537_v23 = vadd.f32 %v3536_v36, %v8895_v37 }
 0x813   :  { %3575 = vmatmul.bf16.gmra.mxu0 %v10298_v13  ;;  %v3706_v41 = vadd.f32 %v3705_v61, %v3537_v23  ;;  %v10305_v13 = vld [vmem:[#allocation22_spill] sm:$0xff] }
 0x814   :  { %4999 = vmatmul.msk.bf16.gmra.mxu1 %vm1287_vm0, %v10299_v44  ;;  %v4322_v11 = vpop.f32.mrf.mxu3  ;;  %v3380_v44 = vadd.f32 %v10306_v27, %v10305_v13 }
 0x815   :  { %4237 = vmatmul.bf16.gmra.mxu2 %v10300_v21  ;;  %v3843_v60 = vmax.f32 %v3706_v41, 0.0  ;;  %v4323_v31 = vadd.f32 %v4322_v11, %v4154_v43 }
 0x818   :  { %v3538_v39 = vpop.f32.mrf.mxu0 }
 0x819   :  { %v3539_v26 = vadd.f32 %v3538_v39, %v3370_v18  ;;  %v3707_v22 = vpop.f32.mrf.mxu1  ;;  %v4166_v18 = vadd.f32 %v9112_v9, %v9276_v0 }
 0x81b   :  { %v3708_v55 = vadd.f32 %v3707_v22, %v3539_v26 }
 0x81c   :  { %v4324_v49 = vpop.f32.mrf.mxu3 }
 0x81d   :  { %v3845_v4 = vmax.f32 %v3708_v55, 0.0  ;;  %v4325_v50 = vadd.f32 %v4324_v49, %v4156_v29 }
 0x81f   :  { %v3925_v37 = vpack.c.bf16 %v3845_v4, %v3843_v60  ;;  %v5251_v8 = vpack.c.bf16 %v4325_v50, %v4323_v31  ;;  %v9374_v31 = vpop.f32.mrf.mxu2  ;;  %v10307_v4 = vld [vmem:[#allocation23_spill] sm:$0xff]  ;;  %v10308_v50 = vld [vmem:[#allocation24_spill] sm:$0xff] }
 0x820   :  { %v3541_v46 = vpop.f32.mrf.mxu0 }
 0x821   :  { %5351 = vst [vmem:[%s9495_s5 + $0x70] sm:$0xff] %v5251_v8   ;;  %v3710_v51 = vpop.f32.mrf.mxu1  ;;  %4366 = vmatmul.bf16.gmra.mxu3 %v3925_v37  ;;  %v3542_v32 = vadd.f32 %v3541_v46, %v8909_v52  ;;  %v3385_v37 = vadd.f32 %v10308_v50, %v10307_v4 }
 0x823   :  { %v3711_v40 = vadd.f32 %v3710_v51, %v3542_v32  ;;  %v4169_v32 = vadd.f32 %v9112_v9, %v9286_v47 }
 0x824   :  { %v4327_v28 = vpop.f32.mrf.mxu3 }
 0x825   :  { %v3847_v38 = vmax.f32 %v3711_v40, 0.0  ;;  %v4328_v2 = vadd.f32 %v4327_v28, %v4159_v14 }
 0x828   :  { %v3543_v35 = vpop.f32.mrf.mxu0 }
 0x829   :  { %v3544_v48 = vadd.f32 %v3543_v35, %v3375_v5  ;;  %v3712_v1 = vpop.f32.mrf.mxu1  ;;  %v9383_v5 = vpop.f32.mrf.mxu2 }
 0x82b   :  { %v3713_v33 = vadd.f32 %v3712_v1, %v3544_v48 }
 0x82c   :  { %v4329_v7 = vpop.f32.mrf.mxu3 }
 0x82d   :  { %v3849_v20 = vmax.f32 %v3713_v33, 0.0  ;;  %v4330_v59 = vadd.f32 %v4329_v7, %v4161_v57 }
 0x82f   :  { %v3927_v52 = vpack.c.bf16 %v3849_v20, %v3847_v38  ;;  %v5256_v63 = vpack.c.bf16 %v4330_v59, %v4328_v2  ;;  %v10309_v2 = vld [vmem:[#allocation25_spill] sm:$0xff]  ;;  %v10310_v20 = vld [vmem:[#allocation160_spill] sm:$0xff] }
 0x830   :  { %v3546_v24 = vpop.f32.mrf.mxu0  ;;  %v3390_v59 = vadd.f32 %v10310_v20, %v10309_v2 }
 0x831   :  { %5352 = vst [vmem:[%s9495_s5 + $0x78] sm:$0xff] %v5256_v63   ;;  %v3715_v36 = vpop.f32.mrf.mxu1  ;;  %4371 = vmatmul.bf16.gmra.mxu3 %v3927_v52  ;;  %v3547_v25 = vadd.f32 %v3546_v24, %v8923_v16  ;;  %v9389_v38 = vpop.f32.mrf.mxu2 }
 0x833   :  { %v3716_v11 = vadd.f32 %v3715_v36, %v3547_v25  ;;  %v4176_v25 = vadd.f32 %v9112_v9, %v9317_v15  ;;  %v10311_v15 = vld [vmem:[#allocation166_spill] sm:$0xff] }
 0x834   :  { %v4332_v61 = vpop.f32.mrf.mxu3 }
 0x835   :  { %v3851_v26 = vmax.f32 %v3716_v11, 0.0  ;;  %v4333_v22 = vadd.f32 %v4332_v61, %v4164_v3  ;;  %v4174_v61 = vadd.f32 %v9112_v9, %v9309_v30 }
 0x838   :  { %v3548_v21 = vpop.f32.mrf.mxu0 }
 0x839   :  { %v3549_v23 = vadd.f32 %v3548_v21, %v3380_v44  ;;  %v3717_v34 = vpop.f32.mrf.mxu1  ;;  %v4190_v3 = vpop.f32.mrf.mxu2 }
 0x83b   :  { %v3718_v39 = vadd.f32 %v3717_v34, %v3549_v23 }
 0x83c   :  { %v4334_v41 = vpop.f32.mrf.mxu3 }
 0x83d   :  { %v3853_v43 = vmax.f32 %v3718_v39, 0.0  ;;  %v4335_v29 = vadd.f32 %v4334_v41, %v4166_v18 }
 0x83f   :  { %v3929_v16 = vpack.c.bf16 %v3853_v43, %v3851_v26  ;;  %v5261_v55 = vpack.c.bf16 %v4335_v29, %v4333_v22  ;;  %v10312_v26 = vld [vmem:[#allocation167_spill] sm:$0xff] }
 0x840   :  { %v3551_v49 = vpop.f32.mrf.mxu0  ;;  %v3395_v22 = vadd.f32 %v10312_v26, %v10311_v15 }
 0x841   :  { %5353 = vst [vmem:[%s9495_s5 + $0x80] sm:$0xff] %v5261_v55   ;;  %v3720_v60 = vpop.f32.mrf.mxu1  ;;  %4376 = vmatmul.bf16.gmra.mxu3 %v3929_v16  ;;  %v3552_v0 = vadd.f32 %v3551_v49, %v8937_v54  ;;  %v9403_v49 = vpop.f32.mrf.mxu2 }
 0x843   :  { %v3721_v46 = vadd.f32 %v3720_v60, %v3552_v0  ;;  %v4179_v60 = vadd.f32 %v9112_v9, %v9329_v45 }
 0x844   :  { %v4337_v56 = vpop.f32.mrf.mxu3 }
 0x845   :  { %v3855_v40 = vmax.f32 %v3721_v46, 0.0  ;;  %v4338_v48 = vadd.f32 %v4337_v56, %v4169_v32  ;;  %v4181_v56 = vadd.f32 %v9112_v9, %v9339_v42  ;;  %v10313_v42 = vld [vmem:[#allocation26_spill] sm:$0xff] }
 0x848   :  { %v3553_v8 = vpop.f32.mrf.mxu0 }
 0x849   :  { %v3554_v51 = vadd.f32 %v3553_v8, %v3385_v37  ;;  %v3722_v28 = vpop.f32.mrf.mxu1 }
 0x84b   :  { %v3723_v58 = vadd.f32 %v3722_v28, %v3554_v51 }
 0x84c   :  { %v4339_v35 = vpop.f32.mrf.mxu3 }
 0x84d   :  { %v3857_v54 = vmax.f32 %v3723_v58, 0.0  ;;  %v4340_v1 = vadd.f32 %v4339_v35, %v4171_v53  ;;  %v4195_v53 = vpop.f32.mrf.mxu2  ;;  %v10314_v35 = vld [vmem:[#allocation27_spill] sm:$0xff] }
 0x84f   :  { %v3931_v14 = vpack.c.bf16 %v3857_v54, %v3855_v40  ;;  %v5266_v57 = vpack.c.bf16 %v4340_v1, %v4338_v48  ;;  %v3400_v40 = vadd.f32 %v10314_v35, %v10313_v42 }
 0x850   :  { %v3556_v33 = vpop.f32.mrf.mxu0 }
 0x851   :  { %5354 = vst [vmem:[%s9495_s5 + $0x88] sm:$0xff] %v5266_v57   ;;  %v3725_v7 = vpop.f32.mrf.mxu1  ;;  %4381 = vmatmul.bf16.gmra.mxu3 %v3931_v14  ;;  %v3557_v19 = vadd.f32 %v3556_v33, %v8954_v12  ;;  %v4184_v57 = vadd.f32 %v9112_v9, %v9374_v31  ;;  %v4186_v33 = vadd.f32 %v9112_v9, %v9383_v5  ;;  %v10315_v5 = vld [vmem:[#allocation28_spill] sm:$0xff] }
 0x853   :  { %v3726_v63 = vadd.f32 %v3725_v7, %v3557_v19 }
 0x854   :  { %v4342_v47 = vpop.f32.mrf.mxu3 }
 0x855   :  { %v3859_v44 = vmax.f32 %v3726_v63, 0.0  ;;  %v4343_v21 = vadd.f32 %v4342_v47, %v4174_v61 }
 0x858   :  { %v3558_v52 = vpop.f32.mrf.mxu0 }
 0x859   :  { %v3559_v24 = vadd.f32 %v3558_v52, %v3390_v59  ;;  %v3727_v36 = vpop.f32.mrf.mxu1 }
 0x85b   :  { %v3728_v13 = vadd.f32 %v3727_v36, %v3559_v24 }
 0x85c   :  { %v4344_v27 = vpop.f32.mrf.mxu3 }
 0x85d   :  { %v3861_v12 = vmax.f32 %v3728_v13, 0.0  ;;  %v4345_v11 = vadd.f32 %v4344_v27, %v4176_v25  ;;  %v3405_v25 = vadd.f32 %v10315_v5, %v9000_v10 }
 0x85f   :  { %v3933_v23 = vpack.c.bf16 %v3861_v12, %v3859_v44  ;;  %v5271_v34 = vpack.c.bf16 %v4345_v11, %v4343_v21  ;;  %v4189_v11 = vadd.f32 %v9112_v9, %v9389_v38  ;;  %v10316_v38 = vld [vmem:[#allocation163_spill] sm:$0xff] }
 0x860   :  { %v3561_v18 = vpop.f32.mrf.mxu0 }
 0x861   :  { %5355 = vst [vmem:[%s9495_s5 + $0x90] sm:$0xff] %v5271_v34   ;;  %v3730_v39 = vpop.f32.mrf.mxu1  ;;  %4386 = vmatmul.bf16.gmra.mxu3 %v3933_v23  ;;  %v3562_v41 = vadd.f32 %v3561_v18, %v8968_v17  ;;  %v4191_v23 = vadd.f32 %v9112_v9, %v4190_v3  ;;  %v10317_v9 = vld [vmem:[#allocation29_spill] sm:$0xff]  ;;  %v10318_v3 = vld [vmem:[#allocation30_spill] sm:$0xff] }
 0x863   :  { %v3731_v29 = vadd.f32 %v3730_v39, %v3562_v41 }
 0x864   :  { %v4347_v30 = vpop.f32.mrf.mxu3 }
 0x865   :  { %v3863_v50 = vmax.f32 %v3731_v29, 0.0  ;;  %v4348_v37 = vadd.f32 %v4347_v30, %v4179_v60 }
 0x868   :  { %v3563_v43 = vpop.f32.mrf.mxu0 }
 0x869   :  { %v3564_v16 = vadd.f32 %v3563_v43, %v3395_v22  ;;  %v3732_v55 = vpop.f32.mrf.mxu1 }
 0x86b   :  { %v3733_v0 = vadd.f32 %v3732_v55, %v3564_v16  ;;  %v3410_v55 = vadd.f32 %v10318_v3, %v10317_v9 }
 0x86c   :  { %v4349_v4 = vpop.f32.mrf.mxu3 }
 0x86d   :  { %v3865_v17 = vmax.f32 %v3733_v0, 0.0  ;;  %v4350_v8 = vadd.f32 %v4349_v4, %v4181_v56 }
 0x86f   :  { %v3935_v46 = vpack.c.bf16 %v3865_v17, %v3863_v50  ;;  %v5276_v51 = vpack.c.bf16 %v4350_v8, %v4348_v37  ;;  %v9437_v50 = vld [vmem:[%s9494_s4] ss:$0 sm:$0xff] }
 0x870   :  { %v3566_v28 = vpop.f32.mrf.mxu0  ;;  %v4194_v37 = vadd.f32 %v9437_v50, %v9403_v49  ;;  %v4196_v17 = vadd.f32 %v9437_v50, %v4195_v53 }
 0x871   :  { %5356 = vst [vmem:[%s9495_s5 + $0x98] sm:$0xff] %v5276_v51   ;;  %v3735_v32 = vpop.f32.mrf.mxu1  ;;  %4391 = vmatmul.bf16.gmra.mxu3 %v3935_v46  ;;  %v3567_v58 = vadd.f32 %v3566_v28, %v8982_v6  ;;  %v4198_v6 = vpop.f32.mrf.mxu2 }
 0x872   :  { %v4199_v49 = vadd.f32 %v9437_v50, %v4198_v6 }
 0x873   :  { %v3736_v54 = vadd.f32 %v3735_v32, %v3567_v58 }
 0x874   :  { %v4352_v45 = vpop.f32.mrf.mxu3 }
 0x875   :  { %v3867_v19 = vmax.f32 %v3736_v54, 0.0  ;;  %v4353_v2 = vadd.f32 %v4352_v45, %v4184_v57 }
 0x878   :  { %v3568_v48 = vpop.f32.mrf.mxu0 }
 0x879   :  { %v3569_v1 = vadd.f32 %v3568_v48, %v3400_v40  ;;  %v3737_v14 = vpop.f32.mrf.mxu1  ;;  %v4200_v13 = vpop.f32.mrf.mxu2 }
 0x87a   :  { %v4201_v53 = vadd.f32 %v9437_v50, %v4200_v13 }
 0x87b   :  { %v3738_v7 = vadd.f32 %v3737_v14, %v3569_v1 }
 0x87c   :  { %v4354_v47 = vpop.f32.mrf.mxu3 }
 0x87d   :  { %v3869_v20 = vmax.f32 %v3738_v7, 0.0  ;;  %v4355_v59 = vadd.f32 %v4354_v47, %v4186_v33 }
 0x87f   :  { %v3937_v52 = vpack.c.bf16 %v3869_v20, %v3867_v19  ;;  %v5281_v63 = vpack.c.bf16 %v4355_v59, %v4353_v2 }
 0x880   :  { %v3571_v24 = vpop.f32.mrf.mxu0 }
 0x881   :  { %5357 = vst [vmem:[%s9495_s5 + $0xa0] sm:$0xff] %v5281_v63   ;;  %v3740_v36 = vpop.f32.mrf.mxu1  ;;  %4396 = vmatmul.bf16.gmra.mxu3 %v3937_v52  ;;  %v3572_v61 = vadd.f32 %v3571_v24, %v8996_v62  ;;  %v4203_v43 = vpop.f32.mrf.mxu2 }
 0x882   :  { %v4204_v19 = vadd.f32 %v9437_v50, %v4203_v43 }
 0x883   :  { %v3741_v44 = vadd.f32 %v3740_v36, %v3572_v61 }
 0x884   :  { %v4357_v31 = vpop.f32.mrf.mxu3 }
 0x885   :  { %v3871_v39 = vmax.f32 %v3741_v44, 0.0  ;;  %v4358_v30 = vadd.f32 %v4357_v31, %v4189_v11 }
 0x888   :  { %v3573_v27 = vpop.f32.mrf.mxu0 }
 0x889   :  { %v3574_v21 = vadd.f32 %v3573_v27, %v3405_v25  ;;  %v3742_v12 = vpop.f32.mrf.mxu1  ;;  %v4205_v46 = vpop.f32.mrf.mxu2 }
 0x88a   :  { %v4206_v2 = vadd.f32 %v9437_v50, %v4205_v46 }
 0x88b   :  { %v3743_v34 = vadd.f32 %v3742_v12, %v3574_v21 }
 0x88c   :  { %v4359_v18 = vpop.f32.mrf.mxu3 }
 0x88d   :  { %v3873_v41 = vmax.f32 %v3743_v34, 0.0  ;;  %v4360_v15 = vadd.f32 %v4359_v18, %v4191_v23 }
 0x88f   :  { %v3939_v62 = vpack.c.bf16 %v3873_v41, %v3871_v39  ;;  %v5286_v26 = vpack.c.bf16 %v4360_v15, %v4358_v30 }
 0x890   :  { %v3576_v22 = vpop.f32.mrf.mxu0 }
 0x891   :  { %5358 = vst [vmem:[%s9495_s5 + $0xa8] sm:$0xff] %v5286_v26   ;;  %v3745_v10 = vpop.f32.mrf.mxu1  ;;  %4401 = vmatmul.bf16.gmra.mxu3 %v3939_v62  ;;  %v3577_v16 = vadd.f32 %v3576_v22, %v10316_v38  ;;  %v4208_v48 = vpop.f32.mrf.mxu2 }
 0x892   :  { %v4209_v36 = vadd.f32 %v9437_v50, %v4208_v48 }
 0x893   :  { %v3746_v56 = vadd.f32 %v3745_v10, %v3577_v16 }
 0x894   :  { %v4362_v29 = vpop.f32.mrf.mxu3 }
 0x895   :  { %v3875_v28 = vmax.f32 %v3746_v56, 0.0  ;;  %v4363_v32 = vadd.f32 %v4362_v29, %v4194_v37 }
 0x898   :  { %v3578_v60 = vpop.f32.mrf.mxu0 }
 0x899   :  { %v3579_v0 = vadd.f32 %v3578_v60, %v3410_v55  ;;  %v3747_v4 = vpop.f32.mrf.mxu1  ;;  %v4210_v33 = vpop.f32.mrf.mxu2 }
 0x89a   :  { %v4211_v31 = vadd.f32 %v9437_v50, %v4210_v33 }
 0x89b   :  { %v3748_v8 = vadd.f32 %v3747_v4, %v3579_v0 }
 0x89c   :  { %v4364_v51 = vpop.f32.mrf.mxu3 }
 0x89d   :  { %v3877_v45 = vmax.f32 %v3748_v8, 0.0  ;;  %v4365_v58 = vadd.f32 %v4364_v51, %v4196_v17 }
 0x89f   :  { %v3941_v42 = vpack.c.bf16 %v3877_v45, %v3875_v28  ;;  %v5291_v35 = vpack.c.bf16 %v4365_v58, %v4363_v32 }
 0x8a1   :  { %5359 = vst [vmem:[%s9495_s5 + $0xb0] sm:$0xff] %v5291_v35   ;;  %4406 = vmatmul.bf16.gmra.mxu3 %v3941_v42  ;;  %v4213_v47 = vpop.f32.mrf.mxu2 }
 0x8a2   :  { %v4214_v12 = vadd.f32 %v9437_v50, %v4213_v47 }
 0x8a4   :  { %v4367_v40 = vpop.f32.mrf.mxu3 }
 0x8a5   :  { %v4368_v1 = vadd.f32 %v4367_v40, %v4199_v49 }
 0x8a9   :  { %v4215_v63 = vpop.f32.mrf.mxu2 }
 0x8aa   :  { %v4216_v11 = vadd.f32 %v9437_v50, %v4215_v63 }
 0x8ac   :  { %v4369_v54 = vpop.f32.mrf.mxu3 }
 0x8ad   :  { %v4370_v14 = vadd.f32 %v4369_v54, %v4201_v53 }
 0x8af   :  { %v5296_v57 = vpack.c.bf16 %v4370_v14, %v4368_v1 }
 0x8b1   :  { %5360 = vst [vmem:[%s9495_s5 + $0xb8] sm:$0xff] %v5296_v57   ;;  %v4218_v13 = vpop.f32.mrf.mxu2 }
 0x8b2   :  { %v4219_v15 = vadd.f32 %v9437_v50, %v4218_v13 }
 0x8b4   :  { %v4372_v7 = vpop.f32.mrf.mxu3 }
 0x8b5   :  { %v4373_v59 = vadd.f32 %v4372_v7, %v4204_v19 }
 0x8b9   :  { %v4220_v21 = vpop.f32.mrf.mxu2 }
 0x8ba   :  { %v4221_v62 = vadd.f32 %v9437_v50, %v4220_v21 }
 0x8bc   :  { %v4374_v20 = vpop.f32.mrf.mxu3 }
 0x8bd   :  { %v4375_v6 = vadd.f32 %v4374_v20, %v4206_v2 }
 0x8bf   :  { %v5301_v52 = vpack.c.bf16 %v4375_v6, %v4373_v59 }
 0x8c1   :  { %5361 = vst [vmem:[%s9495_s5 + $0xc0] sm:$0xff] %v5301_v52   ;;  %v4223_v30 = vpop.f32.mrf.mxu2 }
 0x8c2   :  { %v4224_v9 = vadd.f32 %v9437_v50, %v4223_v30 }
 0x8c4   :  { %v4377_v24 = vpop.f32.mrf.mxu3 }
 0x8c5   :  { %v4378_v5 = vadd.f32 %v4377_v24, %v4209_v36 }
 0x8c9   :  { %v4225_v26 = vpop.f32.mrf.mxu2 }
 0x8ca   :  { %v4226_v3 = vadd.f32 %v9437_v50, %v4225_v26 }
 0x8cc   :  { %v4379_v61 = vpop.f32.mrf.mxu3 }
 0x8cd   :  { %v4380_v25 = vadd.f32 %v4379_v61, %v4211_v31 }
 0x8cf   :  { %v5306_v27 = vpack.c.bf16 %v4380_v25, %v4378_v5 }
 0x8d1   :  { %5362 = vst [vmem:[%s9495_s5 + $0xc8] sm:$0xff] %v5306_v27   ;;  %v4228_v16 = vpop.f32.mrf.mxu2 }
 0x8d2   :  { %v4229_v8 = vadd.f32 %v9437_v50, %v4228_v16 }
 0x8d4   :  { %v4382_v44 = vpop.f32.mrf.mxu3 }
 0x8d5   :  { %v4383_v34 = vadd.f32 %v4382_v44, %v4214_v12 }
 0x8d9   :  { %v4230_v4 = vpop.f32.mrf.mxu2 }
 0x8da   :  { %v4231_v46 = vadd.f32 %v9437_v50, %v4230_v4 }
 0x8dc   :  { %v4384_v23 = vpop.f32.mrf.mxu3 }
 0x8dd   :  { %v4385_v18 = vadd.f32 %v4384_v23, %v4216_v11 }
 0x8df   :  { %v5311_v39 = vpack.c.bf16 %v4385_v18, %v4383_v34 }
 0x8e1   :  { %5363 = vst [vmem:[%s9495_s5 + $0xd0] sm:$0xff] %v5311_v39   ;;  %v4233_v17 = vpop.f32.mrf.mxu2 }
 0x8e2   :  { %v4234_v35 = vadd.f32 %v9437_v50, %v4233_v17 }
 0x8e4   :  { %v4387_v41 = vpop.f32.mrf.mxu3 }
 0x8e5   :  { %v4388_v10 = vadd.f32 %v4387_v41, %v4219_v15 }
 0x8e9   :  { %v4235_v58 = vpop.f32.mrf.mxu2 }
 0x8ea   :  { %v4236_v40 = vadd.f32 %v9437_v50, %v4235_v58 }
 0x8ec   :  { %v4389_v22 = vpop.f32.mrf.mxu3 }
 0x8ed   :  { %v4390_v43 = vadd.f32 %v4389_v22, %v4221_v62 }
 0x8ef   :  { %v5316_v29 = vpack.c.bf16 %v4390_v43, %v4388_v10 }
 0x8f1   :  { %5364 = vst [vmem:[%s9495_s5 + $0xd8] sm:$0xff] %v5316_v29   ;;  %v4238_v54 = vpop.f32.mrf.mxu2 }
 0x8f2   :  { %v4239_v33 = vadd.f32 %v9437_v50, %v4238_v54 }
 0x8f4   :  { %v4392_v38 = vpop.f32.mrf.mxu3 }
 0x8f5   :  { %v4393_v60 = vadd.f32 %v4392_v38, %v4224_v9 }
 0x8f9   :  { %v4240_v57 = vpop.f32.mrf.mxu2 }
 0x8fa   :  { %v4241_v7 = vadd.f32 %v9437_v50, %v4240_v57 }
 0x8fc   :  { %v4394_v55 = vpop.f32.mrf.mxu3 }
 0x8fd   :  { %v4395_v56 = vadd.f32 %v4394_v55, %v4226_v3 }
 0x8ff   :  { %v5321_v0 = vpack.c.bf16 %v4395_v56, %v4393_v60 }
 0x901   :  { %5365 = vst [vmem:[%s9495_s5 + $0xe0] sm:$0xff] %v5321_v0  }
 0x904   :  { %v4397_v37 = vpop.f32.mrf.mxu3 }
 0x905   :  { %v4398_v28 = vadd.f32 %v4397_v37, %v4229_v8 }
 0x90c   :  { %v4399_v51 = vpop.f32.mrf.mxu3 }
 0x90d   :  { %v4400_v32 = vadd.f32 %v4399_v51, %v4231_v46 }
 0x90f   :  { %v5326_v45 = vpack.c.bf16 %v4400_v32, %v4398_v28 }
 0x911   :  { %5366 = vst [vmem:[%s9495_s5 + $0xe8] sm:$0xff] %v5326_v45  }
 0x914   :  { %v4402_v42 = vpop.f32.mrf.mxu3 }
 0x915   :  { %v4403_v49 = vadd.f32 %v4402_v42, %v4234_v35 }
 0x91c   :  { %v4404_v48 = vpop.f32.mrf.mxu3 }
 0x91d   :  { %v4405_v53 = vadd.f32 %v4404_v48, %v4236_v40 }
 0x91f   :  { %v5331_v1 = vpack.c.bf16 %v4405_v53, %v4403_v49 }
 0x921   :  { %5367 = vst [vmem:[%s9495_s5 + $0xf0] sm:$0xff] %v5331_v1  }
 0x924   :  { %v4407_v14 = vpop.f32.mrf.mxu3 }
 0x925   :  { %v4408_v19 = vadd.f32 %v4407_v14, %v4239_v33 }
 0x92c   :  { %v4409_v47 = vpop.f32.mrf.mxu3 }
 0x92d   :  { %v4410_v2 = vadd.f32 %v4409_v47, %v4241_v7 }
 0x92f   :  { %v5336_v20 = vpack.c.bf16 %v4410_v2, %v4408_v19 }
 0x931   :  { %5368 = vst [vmem:[%s9495_s5 + $0xf8] sm:$0xff] %v5336_v20  }

</bundles_post_ra>
